<compile_context>
chip_gen: v7x
topology: tpu7x:2x2x1
jax: 0.10.0
libtpu: 0.0.40
codegen_flags: <defaults>
</compile_context>

<pallas_src>
import jax
import jax.numpy as jnp
from jax.experimental import pallas as pl
from jax.experimental.pallas import tpu as pltpu

N_AGENTS = 3
EMBED_DIM = 128
HYPERNET_EMBED = 128

STATE_C, STATE_H, STATE_W = 6, 20, 20
STATE_FLAT = STATE_C * STATE_H * STATE_W     # 2400
C1_POS = 8                                   # conv1 output positions needed per axis
C1_COLS = C1_POS * C1_POS * 16               # 1024, cols (oh, ow, co)   (8*128)
POOL_BLK = 384                               # 288 (ph,pw,co) zero-padded to 3*128
C2_COLS = 4 * POOL_BLK                       # 1536, cols (dh, dw, [ph,pw,co pad])
C3_COLS = 256                                # cols (qh, qw, co)
BLOCK_B = 128                                # batch rows per grid step

_CDT = jnp.bfloat16                          # GEMM operand dtype (accumulate in f32)


# ------------------------------ the fused kernel ------------------------------

def _qmix_kernel(x_ref, aq_ref, srep_ref,
                 t1_ref, b1_ref, t2_ref, b2_ref, t3_ref, b3_ref,
                 wfc_ref, bfc_ref, wc1_ref, bc1_ref,
                 ww1_ref, bw1_ref, wwf_ref, bwf_ref, wv_ref, bv_ref,
                 o_ref):
    f32 = jnp.float32
    E = EMBED_DIM
    P = POOL_BLK

    x = x_ref[...].astype(_CDT)                                       # (Bt, 2400)

    # conv1 (6->16, 4x4, stride 2) + ReLU as one Toeplitz GEMM; cols (oh, ow, co).
    c1 = jnp.dot(x, t1_ref[...], preferred_element_type=f32) + b1_ref[...]
    c1 = jnp.maximum(c1, 0.0)                                         # (Bt, 1024)

    # conv2 (16->32, 3x3) restricted to the pool-covered 6x6 region, as a
    # block-Toeplitz GEMM; cols (dh, dw, [ph, pw, co] padded to 384).
    y2 = jnp.dot(c1.astype(_CDT), t2_ref[...],
                 preferred_element_type=f32) + b2_ref[...]            # (Bt, 1536)

    # 2x2 max-pool (floor mode) == max over the four lane-aligned (dh, dw) blocks.
    pooled = jnp.maximum(jnp.maximum(y2[:, 0:P], y2[:, P:2 * P]),
                         jnp.maximum(y2[:, 2 * P:3 * P], y2[:, 3 * P:4 * P]))

    # conv3 (32->64, 2x2) + ReLU as a Toeplitz GEMM; cols (qh, qw, co) = (h,w,c) flatten.
    x3 = jnp.dot(pooled.astype(_CDT), t3_ref[...],
                 preferred_element_type=f32) + b3_ref[...]
    x3 = jnp.maximum(x3, 0.0)                                         # (Bt, 256)

    # fc (NCHW-flatten permutation folded into the weight) + ReLU -> state embedding
    emb = jnp.dot(x3.astype(_CDT), wfc_ref[...],
                  preferred_element_type=f32) + bfc_ref[...]
    emb = jnp.maximum(emb, 0.0)                                       # (Bt, 128)
    embb = emb.astype(_CDT)

    # hypernet stage 1, heads concatenated: [hyper_w_1[0] | hyper_w_final[0] | V[0] | hyper_b_1]
    s1 = jnp.dot(embb, wc1_ref[...], preferred_element_type=f32) + bc1_ref[...]
    h1 = jnp.maximum(s1[:, 0:E], 0.0)
    hf = jnp.maximum(s1[:, E:2 * E], 0.0)
    v0 = jnp.maximum(s1[:, 2 * E:3 * E], 0.0)
    b1h = s1[:, 3 * E:4 * E]                                          # no ReLU

    # hypernet stage 2
    w1 = jnp.dot(h1.astype(_CDT), ww1_ref[...],
                 preferred_element_type=f32) + bw1_ref[...]           # (Bt, 3E)
    wf = jnp.dot(hf.astype(_CDT), wwf_ref[...],
                 preferred_element_type=f32) + bwf_ref[...]           # (Bt, E)
    v = jnp.sum(v0 * wv_ref[...], axis=1, keepdims=True) + bv_ref[...]  # (Bt, 1)

    # mixing: elu(agent_qs @ |w1| + b1) . |w_final| + v
    aq_rep = jnp.dot(aq_ref[...], srep_ref[...],
                     preferred_element_type=f32)                      # (Bt, 3E) lane-repeat
    t = aq_rep * jnp.abs(w1)
    acc = b1h + t[:, 0:E] + t[:, E:2 * E] + t[:, 2 * E:3 * E]
    neg = jnp.minimum(acc, 0.0)
    elu_neg = jnp.tanh(0.5 * neg) * (jnp.exp(neg) + 1.0)   # == expm1(neg), exact for neg<=0
    hidden = jnp.where(acc > 0.0, acc, elu_neg)
    q = jnp.sum(hidden * jnp.abs(wf), axis=1, keepdims=True) + v
    o_ref[...] = q.astype(o_ref.dtype)


# ------------------------------ forward wrapper --------------------------------

def qmixer_forward(kp, agent_qs, states, *, block_b=BLOCK_B):
    """agent_qs: (bs, seq, n_agents); states: (bs*seq, 6, 20, 20) NCHW."""
    bs = agent_qs.shape[0]
    B = states.shape[0]

    x = states.reshape(B, STATE_FLAT).astype(jnp.float32)      # layout-preserving
    aq = agent_qs.reshape(B, N_AGENTS).astype(jnp.float32)

    bt = min(block_b, B)
    grid = (pl.cdiv(B, bt),)

    weight_args = (kp["t1"], kp["b1t"], kp["t2"], kp["b2t"], kp["t3"], kp["b3t"],
                   kp["wfc"], kp["bfc"], kp["wc1"], kp["bc1"],
                   kp["ww1"], kp["bw1"], kp["wwf"], kp["bwf"], kp["wv"], kp["bv"])

    in_specs = ([pl.BlockSpec((bt, STATE_FLAT), lambda i: (i, 0)),   # batch-tiled
                 pl.BlockSpec((bt, N_AGENTS), lambda i: (i, 0)),     # batch-tiled
                 pl.BlockSpec(kp["srep"].shape, lambda i: (0, 0))]   # resident
                + [pl.BlockSpec(w.shape, lambda i: (0, 0)) for w in weight_args])

    q = pl.pallas_call(
        _qmix_kernel,
        out_shape=jax.ShapeDtypeStruct((B, 1), jnp.float32),
        grid=grid,
        in_specs=in_specs,
        out_specs=pl.BlockSpec((bt, 1), lambda i: (i, 0)),
        compiler_params=pltpu.CompilerParams(
            dimension_semantics=("parallel",),
            vmem_limit_bytes=48 * 1024 * 1024),
    )(x, aq, kp["srep"], *weight_args)

    return q.reshape(bs, -1, 1)


# ------------------------------ parameters -------------------------------------

def _init_linear(key, fan_in, fan_out):
    kw_, kb_ = jax.random.split(key)
    lim = 1.0 / float(jnp.sqrt(fan_in))
    w = jax.random.uniform(kw_, (fan_in, fan_out), jnp.float32, -lim, lim)
    b = jax.random.uniform(kb_, (fan_out,), jnp.float32, -lim, lim)
    return w, b


def _init_conv(key, cout, cin, kh, kw):
    kw_, kb_ = jax.random.split(key)
    fan_in = cin * kh * kw
    lim = 1.0 / float(jnp.sqrt(fan_in))
    w = jax.random.uniform(kw_, (cout, cin, kh, kw), jnp.float32, -lim, lim)
    b = jax.random.uniform(kb_, (cout,), jnp.float32, -lim, lim)
    return w, b


def init_params(key):
    ks = jax.random.split(key, 11)
    p = {}
    p["c1_w"], p["c1_b"] = _init_conv(ks[0], 16, 6, 4, 4)        # Conv2d(6,16,4,s=2)
    p["c2_w"], p["c2_b"] = _init_conv(ks[1], 32, 16, 3, 3)       # Conv2d(16,32,3,s=1)
    p["c3_w"], p["c3_b"] = _init_conv(ks[2], 64, 32, 2, 2)       # Conv2d(32,64,2,s=1)
    p["fc_w"], p["fc_b"] = _init_linear(ks[3], 256, EMBED_DIM)   # rows = NCHW flatten
    p["hw1_0_w"], p["hw1_0_b"] = _init_linear(ks[4], EMBED_DIM, HYPERNET_EMBED)
    p["hw1_1_w"], p["hw1_1_b"] = _init_linear(ks[5], HYPERNET_EMBED, EMBED_DIM * N_AGENTS)
    p["hwf_0_w"], p["hwf_0_b"] = _init_linear(ks[6], EMBED_DIM, HYPERNET_EMBED)
    p["hwf_1_w"], p["hwf_1_b"] = _init_linear(ks[7], HYPERNET_EMBED, EMBED_DIM)
    p["hb1_w"], p["hb1_b"] = _init_linear(ks[8], EMBED_DIM, EMBED_DIM)
    p["v_0_w"], p["v_0_b"] = _init_linear(ks[9], EMBED_DIM, EMBED_DIM)
    p["v_1_w"], p["v_1_b"] = _init_linear(ks[10], EMBED_DIM, 1)
    return p


def _shift_indicator(in_size, out_size, ksize, stride):
    """I[h, o, k] = 1.0 iff h == stride*o + k."""
    h = jnp.arange(in_size)[:, None, None]
    o = jnp.arange(out_size)[None, :, None]
    k = jnp.arange(ksize)[None, None, :]
    return (h == stride * o + k).astype(jnp.float32)


def _pool_shift_indicator():
    """J[a, d, f, k] = 1.0 iff a == 2*f + d + k (conv1 pos, pool offset, pool cell, conv2 tap)."""
    a = jnp.arange(C1_POS)[:, None, None, None]
    d = jnp.arange(2)[None, :, None, None]
    f = jnp.arange(3)[None, None, :, None]
    k = jnp.arange(3)[None, None, None, :]
    return (a == 2 * f + d + k).astype(jnp.float32)


def prepare_params(p):
    """One-time repack into fused-kernel Toeplitz layouts (OUTSIDE the jitted forward)."""
    kp = {}

    # conv1 -> Toeplitz (2400, 1024): rows = NCHW state flatten (ci,h,w),
    # cols (oh, ow, co) over the 8x8 output region consumed downstream.
    i1 = _shift_indicator(STATE_H, C1_POS, 4, 2)                       # (20, 8, 4)
    t1 = jnp.einsum("hok,wpl,cikl->ihwopc", i1, i1, p["c1_w"])
    kp["t1"] = t1.reshape(STATE_FLAT, C1_COLS).astype(_CDT)
    kp["b1t"] = jnp.tile(p["c1_b"], C1_POS * C1_POS).reshape(1, C1_COLS)

    # conv2 (pooled 6x6 region only) -> block-Toeplitz (1024, 1536):
    # cols (dh, dw, [ph, pw, co] zero-padded 288 -> 384 for 128-lane alignment).
    j2 = _pool_shift_indicator()                                       # (8, 2, 3, 3)
    t2 = jnp.einsum("adfk,begl,cikl->abidefgc", j2, j2, p["c2_w"])
    t2 = t2.reshape(C1_COLS, 4, 288)
    t2 = jnp.pad(t2, ((0, 0), (0, 0), (0, POOL_BLK - 288)))
    kp["t2"] = t2.reshape(C1_COLS, C2_COLS).astype(_CDT)
    b2blk = jnp.pad(jnp.tile(p["c2_b"], 9), (0, POOL_BLK - 288))       # (384,)
    kp["b2t"] = jnp.tile(b2blk, 4).reshape(1, C2_COLS)

    # conv3 -> Toeplitz (384, 256): rows (ph, pw, ci) zero-padded, cols (qh, qw, co).
    k3 = _shift_indicator(3, 2, 2, 1)                                  # (3, 2, 2)
    t3 = jnp.einsum("pqk,rsl,cikl->priqsc", k3, k3, p["c3_w"]).reshape(288, C3_COLS)
    kp["t3"] = jnp.pad(t3, ((0, POOL_BLK - 288), (0, 0))).astype(_CDT)
    kp["b3t"] = jnp.tile(p["c3_b"], 4).reshape(1, C3_COLS)

    # fc: permute rows from PyTorch NCHW flatten (c,h,w) to the kernel's (h,w,c).
    kp["wfc"] = (p["fc_w"].reshape(64, 2, 2, EMBED_DIM)
                 .transpose(1, 2, 0, 3).reshape(256, EMBED_DIM).astype(_CDT))
    kp["bfc"] = p["fc_b"].reshape(1, EMBED_DIM)

    # hypernet stage 1 heads concatenated: [hw1_0 | hwf_0 | v_0 | hb1] -> (128, 512)
    kp["wc1"] = jnp.concatenate(
        [p["hw1_0_w"], p["hwf_0_w"], p["v_0_w"], p["hb1_w"]], axis=1).astype(_CDT)
    kp["bc1"] = jnp.concatenate(
        [p["hw1_0_b"], p["hwf_0_b"], p["v_0_b"], p["hb1_b"]]).reshape(1, 4 * EMBED_DIM)

    # hypernet stage 2
    kp["ww1"] = p["hw1_1_w"].astype(_CDT)
    kp["bw1"] = p["hw1_1_b"].reshape(1, EMBED_DIM * N_AGENTS)
    kp["wwf"] = p["hwf_1_w"].astype(_CDT)
    kp["bwf"] = p["hwf_1_b"].reshape(1, EMBED_DIM)
    kp["wv"] = p["v_1_w"].reshape(1, EMBED_DIM)            # f32, used elementwise
    kp["bv"] = p["v_1_b"].reshape(1, 1)

    # agent-q lane replicator: (3, 384) block-ones so aq @ srep == repeat(aq, 128).
    kp["srep"] = jnp.repeat(jnp.eye(N_AGENTS, dtype=jnp.float32), EMBED_DIM, axis=1)
    return kp


# ------------------------------ main --------------------------------------------

if __name__ == "__main__":
    key = jax.random.PRNGKey(0)
    kparam_key, ka, ks = jax.random.split(key, 3)

    bs, seq = 2, 4
    B = bs * seq
    raw_params = init_params(kparam_key)
    kparams = prepare_params(raw_params)       # one-time repack, outside jit
    agent_qs = jax.random.normal(ka, (bs, seq, N_AGENTS), jnp.float32)
    states = jax.random.normal(ks, (B, STATE_C, STATE_H, STATE_W), jnp.float32)

    q_tot = jax.jit(qmixer_forward)(kparams, agent_qs, states)
    q_tot = jax.block_until_ready(q_tot)
    assert q_tot.shape == (bs, seq, 1)
    print("KERNEL_OK")
</pallas_src>

<mosaic_0001>
module attributes {stable_mosaic.version = 11 : i64} {
  func.func @_qmix_kernel(%arg0: i32, %arg1: memref<8x2400xf32, #tpu.memory_space<vmem>>, %arg2: memref<8x3xf32, #tpu.memory_space<vmem>>, %arg3: memref<3x384xf32, #tpu.memory_space<vmem>>, %arg4: memref<2400x1024xbf16, #tpu.memory_space<vmem>>, %arg5: memref<1x1024xf32, #tpu.memory_space<vmem>>, %arg6: memref<1024x1536xbf16, #tpu.memory_space<vmem>>, %arg7: memref<1x1536xf32, #tpu.memory_space<vmem>>, %arg8: memref<384x256xbf16, #tpu.memory_space<vmem>>, %arg9: memref<1x256xf32, #tpu.memory_space<vmem>>, %arg10: memref<256x128xbf16, #tpu.memory_space<vmem>>, %arg11: memref<1x128xf32, #tpu.memory_space<vmem>>, %arg12: memref<128x512xbf16, #tpu.memory_space<vmem>>, %arg13: memref<1x512xf32, #tpu.memory_space<vmem>>, %arg14: memref<128x384xbf16, #tpu.memory_space<vmem>>, %arg15: memref<1x384xf32, #tpu.memory_space<vmem>>, %arg16: memref<128x128xbf16, #tpu.memory_space<vmem>>, %arg17: memref<1x128xf32, #tpu.memory_space<vmem>>, %arg18: memref<1x128xf32, #tpu.memory_space<vmem>>, %arg19: memref<1x1xf32, #tpu.memory_space<vmem>>, %arg20: memref<8x1xf32, #tpu.memory_space<vmem>>) attributes {dimension_semantics = [#tpu.dimension_semantics<parallel>], iteration_bounds = array<i64: 1>, scalar_prefetch = 0 : i64, scratch_operands = 0 : i64, tpu.core_type = #tpu.core_type<tc>, window_params = [{transform_indices = @transform_0, window_bounds = array<i64: 8, 2400>}, {transform_indices = @transform_1, window_bounds = array<i64: 8, 3>}, {pipeline_mode = #tpu.pipeline_mode<synchronous>, transform_indices = @transform_2, window_bounds = array<i64: 3, 384>}, {pipeline_mode = #tpu.pipeline_mode<synchronous>, transform_indices = @transform_3, window_bounds = array<i64: 2400, 1024>}, {pipeline_mode = #tpu.pipeline_mode<synchronous>, transform_indices = @transform_4, window_bounds = array<i64: 1, 1024>}, {pipeline_mode = #tpu.pipeline_mode<synchronous>, transform_indices = @transform_5, window_bounds = array<i64: 1024, 1536>}, {pipeline_mode = #tpu.pipeline_mode<synchronous>, transform_indices = @transform_6, window_bounds = array<i64: 1, 1536>}, {pipeline_mode = #tpu.pipeline_mode<synchronous>, transform_indices = @transform_7, window_bounds = array<i64: 384, 256>}, {pipeline_mode = #tpu.pipeline_mode<synchronous>, transform_indices = @transform_8, window_bounds = array<i64: 1, 256>}, {pipeline_mode = #tpu.pipeline_mode<synchronous>, transform_indices = @transform_9, window_bounds = array<i64: 256, 128>}, {pipeline_mode = #tpu.pipeline_mode<synchronous>, transform_indices = @transform_10, window_bounds = array<i64: 1, 128>}, {pipeline_mode = #tpu.pipeline_mode<synchronous>, transform_indices = @transform_11, window_bounds = array<i64: 128, 512>}, {pipeline_mode = #tpu.pipeline_mode<synchronous>, transform_indices = @transform_12, window_bounds = array<i64: 1, 512>}, {pipeline_mode = #tpu.pipeline_mode<synchronous>, transform_indices = @transform_13, window_bounds = array<i64: 128, 384>}, {pipeline_mode = #tpu.pipeline_mode<synchronous>, transform_indices = @transform_14, window_bounds = array<i64: 1, 384>}, {pipeline_mode = #tpu.pipeline_mode<synchronous>, transform_indices = @transform_15, window_bounds = array<i64: 128, 128>}, {pipeline_mode = #tpu.pipeline_mode<synchronous>, transform_indices = @transform_16, window_bounds = array<i64: 1, 128>}, {pipeline_mode = #tpu.pipeline_mode<synchronous>, transform_indices = @transform_17, window_bounds = array<i64: 1, 128>}, {pipeline_mode = #tpu.pipeline_mode<synchronous>, transform_indices = @transform_18, window_bounds = array<i64: 1, 1>}, {transform_indices = @transform_19, window_bounds = array<i64: 8, 1>}]} {
    %c0 = arith.constant 0 : index
    %c0_0 = arith.constant 0 : index
    %0 = vector.load %arg1[%c0, %c0_0] : memref<8x2400xf32, #tpu.memory_space<vmem>>, vector<8x2400xf32>
    %1 = arith.truncf %0 : vector<8x2400xf32> to vector<8x2400xbf16>
    %c0_1 = arith.constant 0 : index
    %c0_2 = arith.constant 0 : index
    %2 = vector.load %arg4[%c0_1, %c0_2] : memref<2400x1024xbf16, #tpu.memory_space<vmem>>, vector<2400x1024xbf16>
    %cst = arith.constant dense<0.000000e+00> : vector<8x1024xf32>
    %3 = tpu.matmul %1, %2, %cst {dimension_numbers = #tpu.dot_dimension_numbers<[1], [0], [0], [1], [0, 0, 1, 1], [], []>} : vector<8x2400xbf16>, vector<2400x1024xbf16>, vector<8x1024xf32> -> vector<8x1024xf32>
    %c0_3 = arith.constant 0 : index
    %c0_4 = arith.constant 0 : index
    %4 = vector.load %arg5[%c0_3, %c0_4] : memref<1x1024xf32, #tpu.memory_space<vmem>>, vector<1x1024xf32>
    %5 = vector.broadcast %4 : vector<1x1024xf32> to vector<8x1024xf32>
    %6 = arith.addf %3, %5 : vector<8x1024xf32>
    %cst_5 = arith.constant 0.000000e+00 : f32
    %7 = vector.broadcast %cst_5 : f32 to vector<8x1024xf32>
    %8 = arith.maximumf %6, %7 : vector<8x1024xf32>
    %9 = arith.truncf %8 : vector<8x1024xf32> to vector<8x1024xbf16>
    %c0_6 = arith.constant 0 : index
    %c0_7 = arith.constant 0 : index
    %10 = vector.load %arg6[%c0_6, %c0_7] : memref<1024x1536xbf16, #tpu.memory_space<vmem>>, vector<1024x1536xbf16>
    %cst_8 = arith.constant dense<0.000000e+00> : vector<8x1536xf32>
    %11 = tpu.matmul %9, %10, %cst_8 {dimension_numbers = #tpu.dot_dimension_numbers<[1], [0], [0], [1], [0, 0, 1, 1], [], []>} : vector<8x1024xbf16>, vector<1024x1536xbf16>, vector<8x1536xf32> -> vector<8x1536xf32>
    %c0_9 = arith.constant 0 : index
    %c0_10 = arith.constant 0 : index
    %12 = vector.load %arg7[%c0_9, %c0_10] : memref<1x1536xf32, #tpu.memory_space<vmem>>, vector<1x1536xf32>
    %13 = vector.broadcast %12 : vector<1x1536xf32> to vector<8x1536xf32>
    %14 = arith.addf %11, %13 : vector<8x1536xf32>
    %15 = vector.extract_strided_slice %14 {offsets = [0, 0], sizes = [8, 384], strides = [1, 1]} : vector<8x1536xf32> to vector<8x384xf32>
    %16 = vector.extract_strided_slice %14 {offsets = [0, 384], sizes = [8, 384], strides = [1, 1]} : vector<8x1536xf32> to vector<8x384xf32>
    %17 = arith.maximumf %15, %16 : vector<8x384xf32>
    %18 = vector.extract_strided_slice %14 {offsets = [0, 768], sizes = [8, 384], strides = [1, 1]} : vector<8x1536xf32> to vector<8x384xf32>
    %19 = vector.extract_strided_slice %14 {offsets = [0, 1152], sizes = [8, 384], strides = [1, 1]} : vector<8x1536xf32> to vector<8x384xf32>
    %20 = arith.maximumf %18, %19 : vector<8x384xf32>
    %21 = arith.maximumf %17, %20 : vector<8x384xf32>
    %22 = arith.truncf %21 : vector<8x384xf32> to vector<8x384xbf16>
    %c0_11 = arith.constant 0 : index
    %c0_12 = arith.constant 0 : index
    %23 = vector.load %arg8[%c0_11, %c0_12] : memref<384x256xbf16, #tpu.memory_space<vmem>>, vector<384x256xbf16>
    %cst_13 = arith.constant dense<0.000000e+00> : vector<8x256xf32>
    %24 = tpu.matmul %22, %23, %cst_13 {dimension_numbers = #tpu.dot_dimension_numbers<[1], [0], [0], [1], [0, 0, 1, 1], [], []>} : vector<8x384xbf16>, vector<384x256xbf16>, vector<8x256xf32> -> vector<8x256xf32>
    %c0_14 = arith.constant 0 : index
    %c0_15 = arith.constant 0 : index
    %25 = vector.load %arg9[%c0_14, %c0_15] : memref<1x256xf32, #tpu.memory_space<vmem>>, vector<1x256xf32>
    %26 = vector.broadcast %25 : vector<1x256xf32> to vector<8x256xf32>
    %27 = arith.addf %24, %26 : vector<8x256xf32>
    %cst_16 = arith.constant 0.000000e+00 : f32
    %28 = vector.broadcast %cst_16 : f32 to vector<8x256xf32>
    %29 = arith.maximumf %27, %28 : vector<8x256xf32>
    %30 = arith.truncf %29 : vector<8x256xf32> to vector<8x256xbf16>
    %c0_17 = arith.constant 0 : index
    %c0_18 = arith.constant 0 : index
    %31 = vector.load %arg10[%c0_17, %c0_18] : memref<256x128xbf16, #tpu.memory_space<vmem>>, vector<256x128xbf16>
    %cst_19 = arith.constant dense<0.000000e+00> : vector<8x128xf32>
    %32 = tpu.matmul %30, %31, %cst_19 {dimension_numbers = #tpu.dot_dimension_numbers<[1], [0], [0], [1], [0, 0, 1, 1], [], []>} : vector<8x256xbf16>, vector<256x128xbf16>, vector<8x128xf32> -> vector<8x128xf32>
    %c0_20 = arith.constant 0 : index
    %c0_21 = arith.constant 0 : index
    %33 = vector.load %arg11[%c0_20, %c0_21] : memref<1x128xf32, #tpu.memory_space<vmem>>, vector<1x128xf32>
    %34 = vector.broadcast %33 : vector<1x128xf32> to vector<8x128xf32>
    %35 = arith.addf %32, %34 : vector<8x128xf32>
    %cst_22 = arith.constant 0.000000e+00 : f32
    %36 = vector.broadcast %cst_22 : f32 to vector<8x128xf32>
    %37 = arith.maximumf %35, %36 : vector<8x128xf32>
    %38 = arith.truncf %37 : vector<8x128xf32> to vector<8x128xbf16>
    %c0_23 = arith.constant 0 : index
    %c0_24 = arith.constant 0 : index
    %39 = vector.load %arg12[%c0_23, %c0_24] : memref<128x512xbf16, #tpu.memory_space<vmem>>, vector<128x512xbf16>
    %cst_25 = arith.constant dense<0.000000e+00> : vector<8x512xf32>
    %40 = tpu.matmul %38, %39, %cst_25 {dimension_numbers = #tpu.dot_dimension_numbers<[1], [0], [0], [1], [0, 0, 1, 1], [], []>} : vector<8x128xbf16>, vector<128x512xbf16>, vector<8x512xf32> -> vector<8x512xf32>
    %c0_26 = arith.constant 0 : index
    %c0_27 = arith.constant 0 : index
    %41 = vector.load %arg13[%c0_26, %c0_27] : memref<1x512xf32, #tpu.memory_space<vmem>>, vector<1x512xf32>
    %42 = vector.broadcast %41 : vector<1x512xf32> to vector<8x512xf32>
    %43 = arith.addf %40, %42 : vector<8x512xf32>
    %44 = vector.extract_strided_slice %43 {offsets = [0, 0], sizes = [8, 128], strides = [1, 1]} : vector<8x512xf32> to vector<8x128xf32>
    %cst_28 = arith.constant 0.000000e+00 : f32
    %45 = vector.broadcast %cst_28 : f32 to vector<8x128xf32>
    %46 = arith.maximumf %44, %45 : vector<8x128xf32>
    %47 = vector.extract_strided_slice %43 {offsets = [0, 128], sizes = [8, 128], strides = [1, 1]} : vector<8x512xf32> to vector<8x128xf32>
    %cst_29 = arith.constant 0.000000e+00 : f32
    %48 = vector.broadcast %cst_29 : f32 to vector<8x128xf32>
    %49 = arith.maximumf %47, %48 : vector<8x128xf32>
    %50 = vector.extract_strided_slice %43 {offsets = [0, 256], sizes = [8, 128], strides = [1, 1]} : vector<8x512xf32> to vector<8x128xf32>
    %cst_30 = arith.constant 0.000000e+00 : f32
    %51 = vector.broadcast %cst_30 : f32 to vector<8x128xf32>
    %52 = arith.maximumf %50, %51 : vector<8x128xf32>
    %53 = vector.extract_strided_slice %43 {offsets = [0, 384], sizes = [8, 128], strides = [1, 1]} : vector<8x512xf32> to vector<8x128xf32>
    %54 = arith.truncf %46 : vector<8x128xf32> to vector<8x128xbf16>
    %c0_31 = arith.constant 0 : index
    %c0_32 = arith.constant 0 : index
    %55 = vector.load %arg14[%c0_31, %c0_32] : memref<128x384xbf16, #tpu.memory_space<vmem>>, vector<128x384xbf16>
    %cst_33 = arith.constant dense<0.000000e+00> : vector<8x384xf32>
    %56 = tpu.matmul %54, %55, %cst_33 {dimension_numbers = #tpu.dot_dimension_numbers<[1], [0], [0], [1], [0, 0, 1, 1], [], []>} : vector<8x128xbf16>, vector<128x384xbf16>, vector<8x384xf32> -> vector<8x384xf32>
    %c0_34 = arith.constant 0 : index
    %c0_35 = arith.constant 0 : index
    %57 = vector.load %arg15[%c0_34, %c0_35] : memref<1x384xf32, #tpu.memory_space<vmem>>, vector<1x384xf32>
    %58 = vector.broadcast %57 : vector<1x384xf32> to vector<8x384xf32>
    %59 = arith.addf %56, %58 : vector<8x384xf32>
    %60 = arith.truncf %49 : vector<8x128xf32> to vector<8x128xbf16>
    %c0_36 = arith.constant 0 : index
    %c0_37 = arith.constant 0 : index
    %61 = vector.load %arg16[%c0_36, %c0_37] : memref<128x128xbf16, #tpu.memory_space<vmem>>, vector<128x128xbf16>
    %cst_38 = arith.constant dense<0.000000e+00> : vector<8x128xf32>
    %62 = tpu.matmul %60, %61, %cst_38 {dimension_numbers = #tpu.dot_dimension_numbers<[1], [0], [0], [1], [0, 0, 1, 1], [], []>} : vector<8x128xbf16>, vector<128x128xbf16>, vector<8x128xf32> -> vector<8x128xf32>
    %c0_39 = arith.constant 0 : index
    %c0_40 = arith.constant 0 : index
    %63 = vector.load %arg17[%c0_39, %c0_40] : memref<1x128xf32, #tpu.memory_space<vmem>>, vector<1x128xf32>
    %64 = vector.broadcast %63 : vector<1x128xf32> to vector<8x128xf32>
    %65 = arith.addf %62, %64 : vector<8x128xf32>
    %c0_41 = arith.constant 0 : index
    %c0_42 = arith.constant 0 : index
    %66 = vector.load %arg18[%c0_41, %c0_42] : memref<1x128xf32, #tpu.memory_space<vmem>>, vector<1x128xf32>
    %67 = vector.broadcast %66 : vector<1x128xf32> to vector<8x128xf32>
    %68 = arith.mulf %52, %67 : vector<8x128xf32>
    %cst_43 = arith.constant dense<0.000000e+00> : vector<8xf32>
    %69 = vector.multi_reduction <add>, %68, %cst_43 [1] : vector<8x128xf32> to vector<8xf32>
    %70 = vector.shape_cast %69 : vector<8xf32> to vector<8x1xf32>
    %c0_44 = arith.constant 0 : index
    %c0_45 = arith.constant 0 : index
    %71 = vector.load %arg19[%c0_44, %c0_45] : memref<1x1xf32, #tpu.memory_space<vmem>>, vector<1x1xf32>
    %72 = vector.broadcast %71 : vector<1x1xf32> to vector<8x1xf32>
    %73 = arith.addf %70, %72 : vector<8x1xf32>
    %c0_46 = arith.constant 0 : index
    %c0_47 = arith.constant 0 : index
    %74 = vector.load %arg2[%c0_46, %c0_47] : memref<8x3xf32, #tpu.memory_space<vmem>>, vector<8x3xf32>
    %c0_48 = arith.constant 0 : index
    %c0_49 = arith.constant 0 : index
    %75 = vector.load %arg3[%c0_48, %c0_49] : memref<3x384xf32, #tpu.memory_space<vmem>>, vector<3x384xf32>
    %cst_50 = arith.constant dense<0.000000e+00> : vector<8x384xf32>
    %76 = tpu.matmul %74, %75, %cst_50 {dimension_numbers = #tpu.dot_dimension_numbers<[1], [0], [0], [1], [0, 0, 1, 1], [], []>} : vector<8x3xf32>, vector<3x384xf32>, vector<8x384xf32> -> vector<8x384xf32>
    %77 = math.absf %59 : vector<8x384xf32>
    %78 = arith.mulf %76, %77 : vector<8x384xf32>
    %79 = vector.extract_strided_slice %78 {offsets = [0, 0], sizes = [8, 128], strides = [1, 1]} : vector<8x384xf32> to vector<8x128xf32>
    %80 = arith.addf %53, %79 : vector<8x128xf32>
    %81 = vector.extract_strided_slice %78 {offsets = [0, 128], sizes = [8, 128], strides = [1, 1]} : vector<8x384xf32> to vector<8x128xf32>
    %82 = arith.addf %80, %81 : vector<8x128xf32>
    %83 = vector.extract_strided_slice %78 {offsets = [0, 256], sizes = [8, 128], strides = [1, 1]} : vector<8x384xf32> to vector<8x128xf32>
    %84 = arith.addf %82, %83 : vector<8x128xf32>
    %cst_51 = arith.constant 0.000000e+00 : f32
    %85 = vector.broadcast %cst_51 : f32 to vector<8x128xf32>
    %86 = arith.minimumf %84, %85 : vector<8x128xf32>
    %cst_52 = arith.constant 5.000000e-01 : f32
    %87 = vector.broadcast %cst_52 : f32 to vector<8x128xf32>
    %88 = arith.mulf %87, %86 : vector<8x128xf32>
    %89 = math.tanh %88 : vector<8x128xf32>
    %90 = math.exp %86 : vector<8x128xf32>
    %cst_53 = arith.constant 1.000000e+00 : f32
    %91 = vector.broadcast %cst_53 : f32 to vector<8x128xf32>
    %92 = arith.addf %90, %91 : vector<8x128xf32>
    %93 = arith.mulf %89, %92 : vector<8x128xf32>
    %cst_54 = arith.constant 0.000000e+00 : f32
    %94 = vector.broadcast %cst_54 : f32 to vector<8x128xf32>
    %95 = arith.cmpf ogt, %84, %94 : vector<8x128xf32>
    %96 = arith.select %95, %84, %93 : vector<8x128xi1>, vector<8x128xf32>
    %97 = math.absf %65 : vector<8x128xf32>
    %98 = arith.mulf %96, %97 : vector<8x128xf32>
    %cst_55 = arith.constant dense<0.000000e+00> : vector<8xf32>
    %99 = vector.multi_reduction <add>, %98, %cst_55 [1] : vector<8x128xf32> to vector<8xf32>
    %100 = vector.shape_cast %99 : vector<8xf32> to vector<8x1xf32>
    %101 = arith.addf %100, %73 : vector<8x1xf32>
    %c0_56 = arith.constant 0 : index
    %c0_57 = arith.constant 0 : index
    %102 = vector.load %arg20[%c0_56, %c0_57] : memref<8x1xf32, #tpu.memory_space<vmem>>, vector<8x1xf32>
    tpu.vector_store %arg20[%c0_56, %c0_57], %101 {strides = array<i32>} : memref<8x1xf32, #tpu.memory_space<vmem>>, vector<8x1xf32>,
    return
  }
  func.func @transform_0(%arg0: i32) -> (i32, i32) {
    %c0_i32 = arith.constant 0 : i32
    %c0_i32_0 = arith.constant 0 : i32
    return %arg0, %c0_i32 : i32, i32
  }
  func.func @transform_1(%arg0: i32) -> (i32, i32) {
    %c0_i32 = arith.constant 0 : i32
    %c0_i32_0 = arith.constant 0 : i32
    return %arg0, %c0_i32 : i32, i32
  }
  func.func @transform_2(%arg0: i32) -> (i32, i32) {
    %c0_i32 = arith.constant 0 : i32
    %c0_i32_0 = arith.constant 0 : i32
    %c0_i32_1 = arith.constant 0 : i32
    return %c0_i32, %c0_i32_0 : i32, i32
  }
  func.func @transform_3(%arg0: i32) -> (i32, i32) {
    %c0_i32 = arith.constant 0 : i32
    %c0_i32_0 = arith.constant 0 : i32
    %c0_i32_1 = arith.constant 0 : i32
    return %c0_i32, %c0_i32_0 : i32, i32
  }
  func.func @transform_4(%arg0: i32) -> (i32, i32) {
    %c0_i32 = arith.constant 0 : i32
    %c0_i32_0 = arith.constant 0 : i32
    %c0_i32_1 = arith.constant 0 : i32
    return %c0_i32, %c0_i32_0 : i32, i32
  }
  func.func @transform_5(%arg0: i32) -> (i32, i32) {
    %c0_i32 = arith.constant 0 : i32
    %c0_i32_0 = arith.constant 0 : i32
    %c0_i32_1 = arith.constant 0 : i32
    return %c0_i32, %c0_i32_0 : i32, i32
  }
  func.func @transform_6(%arg0: i32) -> (i32, i32) {
    %c0_i32 = arith.constant 0 : i32
    %c0_i32_0 = arith.constant 0 : i32
    %c0_i32_1 = arith.constant 0 : i32
    return %c0_i32, %c0_i32_0 : i32, i32
  }
  func.func @transform_7(%arg0: i32) -> (i32, i32) {
    %c0_i32 = arith.constant 0 : i32
    %c0_i32_0 = arith.constant 0 : i32
    %c0_i32_1 = arith.constant 0 : i32
    return %c0_i32, %c0_i32_0 : i32, i32
  }
  func.func @transform_8(%arg0: i32) -> (i32, i32) {
    %c0_i32 = arith.constant 0 : i32
    %c0_i32_0 = arith.constant 0 : i32
    %c0_i32_1 = arith.constant 0 : i32
    return %c0_i32, %c0_i32_0 : i32, i32
  }
  func.func @transform_9(%arg0: i32) -> (i32, i32) {
    %c0_i32 = arith.constant 0 : i32
    %c0_i32_0 = arith.constant 0 : i32
    %c0_i32_1 = arith.constant 0 : i32
    return %c0_i32, %c0_i32_0 : i32, i32
  }
  func.func @transform_10(%arg0: i32) -> (i32, i32) {
    %c0_i32 = arith.constant 0 : i32
    %c0_i32_0 = arith.constant 0 : i32
    %c0_i32_1 = arith.constant 0 : i32
    return %c0_i32, %c0_i32_0 : i32, i32
  }
  func.func @transform_11(%arg0: i32) -> (i32, i32) {
    %c0_i32 = arith.constant 0 : i32
    %c0_i32_0 = arith.constant 0 : i32
    %c0_i32_1 = arith.constant 0 : i32
    return %c0_i32, %c0_i32_0 : i32, i32
  }
  func.func @transform_12(%arg0: i32) -> (i32, i32) {
    %c0_i32 = arith.constant 0 : i32
    %c0_i32_0 = arith.constant 0 : i32
    %c0_i32_1 = arith.constant 0 : i32
    return %c0_i32, %c0_i32_0 : i32, i32
  }
  func.func @transform_13(%arg0: i32) -> (i32, i32) {
    %c0_i32 = arith.constant 0 : i32
    %c0_i32_0 = arith.constant 0 : i32
    %c0_i32_1 = arith.constant 0 : i32
    return %c0_i32, %c0_i32_0 : i32, i32
  }
  func.func @transform_14(%arg0: i32) -> (i32, i32) {
    %c0_i32 = arith.constant 0 : i32
    %c0_i32_0 = arith.constant 0 : i32
    %c0_i32_1 = arith.constant 0 : i32
    return %c0_i32, %c0_i32_0 : i32, i32
  }
  func.func @transform_15(%arg0: i32) -> (i32, i32) {
    %c0_i32 = arith.constant 0 : i32
    %c0_i32_0 = arith.constant 0 : i32
    %c0_i32_1 = arith.constant 0 : i32
    return %c0_i32, %c0_i32_0 : i32, i32
  }
  func.func @transform_16(%arg0: i32) -> (i32, i32) {
    %c0_i32 = arith.constant 0 : i32
    %c0_i32_0 = arith.constant 0 : i32
    %c0_i32_1 = arith.constant 0 : i32
    return %c0_i32, %c0_i32_0 : i32, i32
  }
  func.func @transform_17(%arg0: i32) -> (i32, i32) {
    %c0_i32 = arith.constant 0 : i32
    %c0_i32_0 = arith.constant 0 : i32
    %c0_i32_1 = arith.constant 0 : i32
    return %c0_i32, %c0_i32_0 : i32, i32
  }
  func.func @transform_18(%arg0: i32) -> (i32, i32) {
    %c0_i32 = arith.constant 0 : i32
    %c0_i32_0 = arith.constant 0 : i32
    %c0_i32_1 = arith.constant 0 : i32
    return %c0_i32, %c0_i32_0 : i32, i32
  }
  func.func @transform_19(%arg0: i32) -> (i32, i32) {
    %c0_i32 = arith.constant 0 : i32
    %c0_i32_0 = arith.constant 0 : i32
    return %arg0, %c0_i32 : i32, i32
  }
}

</mosaic_0001>

<bundles_post_ra>
// kernel: qmixer_forward.1
= control target key start
LH: loop header
LB: loop body
LE: loop exit
PB: predicated region body
PF: predicated region fallthrough
CT: control target
= control target key end

     0   :  { %s21237_s0 = inlined_call_operand.vmem [shape: f32[8,2400], index: 0, kind: input, shape index: {}]   ;;  %s21238_s1 = inlined_call_operand.vmem [shape: f32[8,3], index: 1, kind: input, shape index: {}]   ;;  %s21239_s2 = inlined_call_operand.hbm [shape: f32[3,384], index: 2, kind: input, shape index: {}]   ;;  %s21240_s3 = inlined_call_operand.hbm [shape: bf16[2400,1024], index: 3, kind: input, shape index: {}]   ;;  %s21241_s4 = inlined_call_operand.hbm [shape: f32[1,1024], index: 4, kind: input, shape index: {}]   ;;  %s21242_s5 = inlined_call_operand.hbm [shape: bf16[1024,1536], index: 5, kind: input, shape index: {}]   ;;  %s21243_s6 = inlined_call_operand.hbm [shape: f32[1,1536], index: 6, kind: input, shape index: {}]   ;;  %s21244_s7 = inlined_call_operand.hbm [shape: bf16[384,256], index: 7, kind: input, shape index: {}]   ;;  %s21245_s8 = inlined_call_operand.hbm [shape: f32[1,256], index: 8, kind: input, shape index: {}]   ;;  %s21246_s9 = inlined_call_operand.hbm [shape: bf16[256,128], index: 9, kind: input, shape index: {}]   ;;  %s21247_s10 = inlined_call_operand.hbm [shape: f32[1,128], index: 10, kind: input, shape index: {}]   ;;  %s21248_s11 = inlined_call_operand.hbm [shape: bf16[128,512], index: 11, kind: input, shape index: {}]   ;;  %s21249_s12 = inlined_call_operand.hbm [shape: f32[1,512], index: 12, kind: input, shape index: {}]   ;;  %s21250_s13 = inlined_call_operand.hbm [shape: bf16[128,384], index: 13, kind: input, shape index: {}]   ;;  %s21251_s14 = inlined_call_operand.hbm [shape: f32[1,384], index: 14, kind: input, shape index: {}]   ;;  %s21252_s15 = inlined_call_operand.hbm [shape: bf16[128,128], index: 15, kind: input, shape index: {}]   ;;  %s21253_s16 = inlined_call_operand.hbm [shape: f32[1,128], index: 16, kind: input, shape index: {}]   ;;  %s21254_s17 = inlined_call_operand.hbm [shape: f32[1,128], index: 17, kind: input, shape index: {}]   ;;  %s21255_s18 = inlined_call_operand.<no memory space> [shape: f32[1,1], index: 18, kind: input, shape index: {}]   ;;  %s21256_s19 = inlined_call_operand.vmem [shape: f32[8,1], index: 19, kind: output, shape index: {}]  }
   0x1   :  { %21260 = sst [smem:[#allocation37_spill]] %s21237_s0  ;;  %v24_v0 = vstv %s21255_s18 }
   0x2   :  { %21261 = sst [smem:[#allocation38_spill]] %s21238_s1  ;;  %25 = vst [vmem:[#allocation2] sm:$0x1] %v24_v0 }
   0x3   :  { %21262 = sst [smem:[#allocation39_spill]] %s21239_s2 }
   0x4   :  { %21263 = sst [smem:[#allocation40_spill]] %s21240_s3 }
   0x5   :  { %26 = vsyncpa [#allocation4], 0 }
   0x6   :  { %27 = vsyncpa [#allocation6], 0 }
   0x7   :  { %28 = vsyncpa [#allocation9], 0 }
   0x8   :  { %29 = vsyncpa [#allocation12], 0 }
   0x9   :  { %30 = vsyncpa [#allocation15], 0 }
   0xa   :  { %31 = vsyncpa [#allocation18], 0 }
   0xb   :  { %32 = vsyncpa [#allocation21], 0 }
   0xc   :  { %33 = vsyncpa [#allocation24], 0 }
   0xd   :  { %34 = vsyncpa [#allocation27], 0  ;;  %s20493_s20 = smov [#allocation5]   ;;  %s21264_s2 = sld [smem:[#allocation40_spill]] }
   0xe   :  { %s54_s21 = sshll.u32 %s20493_s20, 4  ;;  %s55_s21 = int_to_ptr.vmem [resolvable:$true] %s54_s21 }
  0x13   :  { %s20123_s23 = scalar_lea.hbm %s21264_s2, 153600 }
  0x14   :  { %p20124_p0 = scmp.ne.s32.totalorder %s21264_s2, %s20123_s23  ;;  %p20127_p1 = scmp.lt.u32.totalorder %s20123_s23, %s21264_s2 }
  0x16   :  { %p20129_p2 = pnand %p20127_p1, %p20124_p0 }
  0x18   :  { %20132 = shalt.err (!%p20129_p2)
}
  0x19   :  { %s20133_s26 = scalar_lea.vmem %s55_s21, 153600  ;;  %p20138_p4 = scmp.lt.s32.totalorder %s55_s21, %s55_s21 }
  0x1a   :  { %p20134_p3 = scmp.ne.s32.totalorder %s55_s21, %s20133_s26  ;;  %p20139_p5 = scmp.lt.s32.totalorder %s20133_s26, %s20133_s26 }
  0x1c   :  { %p20140_p6 = por %p20139_p5, %p20138_p4 }
  0x1e   :  { %p20141_p7 = pnand %p20140_p6, %p20134_p3 }
  0x20   :  { %20144 = shalt.err (!%p20141_p7)
}
  0x21   :  { %s20494_s27 = smov 512   ;;  %s20495_s28 = smov 32  }
  0x22   :  { %60 = dma.hbm_to_vmem [thread:$0]  %s21264_s2, 153600, %s55_s21, [#allocation6], %s20494_s27, %s20494_s27, %s20495_s28  }
  0x23   :  { %s20496_s30 = smov [#allocation8]   ;;  %s20145_s23 = scalar_lea.hbm %s21242_s5, 98304 }
  0x24   :  { %s76_s20 = sshll.u32 %s20496_s30, 4  ;;  %p20146_p8 = scmp.ne.s32.totalorder %s21242_s5, %s20145_s23  ;;  %s77_s20 = int_to_ptr.vmem [resolvable:$true] %s76_s20 }
  0x25   :  { %p20149_p9 = scmp.lt.u32.totalorder %s20145_s23, %s21242_s5 }
  0x27   :  { %p20151_p10 = pnand %p20149_p9, %p20146_p8 }
  0x29   :  { %20154 = shalt.err (!%p20151_p10)
}
  0x2a   :  { %s20155_s26 = scalar_lea.vmem %s77_s20, 98304  ;;  %p20160_p12 = scmp.lt.s32.totalorder %s77_s20, %s77_s20 }
  0x2b   :  { %p20156_p11 = scmp.ne.s32.totalorder %s77_s20, %s20155_s26  ;;  %p20161_p13 = scmp.lt.s32.totalorder %s20155_s26, %s20155_s26 }
  0x2d   :  { %p20162_p0 = por %p20161_p13, %p20160_p12 }
  0x2f   :  { %p20163_p1 = pnand %p20162_p0, %p20156_p11 }
  0x31   :  { %20166 = shalt.err (!%p20163_p1)
}
  0x32   :  { %s20497_s21 = smov 768   ;;  %s20498_s2 = smov 48  }
  0x33   :  { %82 = dma.hbm_to_vmem [thread:$0]  %s21242_s5, 98304, %s77_s20, [#allocation9], %s20497_s21, %s20497_s21, %s20498_s2  }
  0x34   :  { %s20499_s29 = smov [#allocation11]   ;;  %s20167_s22 = scalar_lea.hbm %s21244_s7, 6144 }
  0x35   :  { %s98_s0 = sshll.u32 %s20499_s29, 4  ;;  %p20168_p2 = scmp.ne.s32.totalorder %s21244_s7, %s20167_s22  ;;  %s99_s0 = int_to_ptr.vmem [resolvable:$true] %s98_s0 }
  0x36   :  { %p20171_p3 = scmp.lt.u32.totalorder %s20167_s22, %s21244_s7 }
  0x38   :  { %p20173_p4 = pnand %p20171_p3, %p20168_p2 }
  0x3a   :  { %20176 = shalt.err (!%p20173_p4)
}
  0x3b   :  { %s20177_s3 = scalar_lea.vmem %s99_s0, 6144  ;;  %p20182_p6 = scmp.lt.s32.totalorder %s99_s0, %s99_s0 }
  0x3c   :  { %p20178_p5 = scmp.ne.s32.totalorder %s99_s0, %s20177_s3  ;;  %p20183_p7 = scmp.lt.s32.totalorder %s20177_s3, %s20177_s3 }
  0x3e   :  { %p20184_p8 = por %p20183_p7, %p20182_p6 }
  0x40   :  { %p20185_p9 = pnand %p20184_p8, %p20178_p5 }
  0x42   :  { %20188 = shalt.err (!%p20185_p9)
}
  0x43   :  { %s20500_s5 = smov 128   ;;  %s20501_s20 = smov 8  }
  0x44   :  { %104 = dma.hbm_to_vmem [thread:$0]  %s21244_s7, 6144, %s99_s0, [#allocation12], %s20500_s5, %s20500_s5, %s20501_s20  }
  0x45   :  { %s20502_s2 = smov [#allocation14]   ;;  %s20189_s30 = scalar_lea.hbm %s21246_s9, 2048 }
  0x46   :  { %s120_s27 = sshll.u32 %s20502_s2, 4  ;;  %p20190_p10 = scmp.ne.s32.totalorder %s21246_s9, %s20189_s30  ;;  %s121_s27 = int_to_ptr.vmem [resolvable:$true] %s120_s27 }
  0x47   :  { %p20193_p11 = scmp.lt.u32.totalorder %s20189_s30, %s21246_s9 }
  0x49   :  { %p20195_p12 = pnand %p20193_p11, %p20190_p10 }
  0x4b   :  { %20198 = shalt.err (!%p20195_p12)
}
  0x4c   :  { %s20199_s25 = scalar_lea.vmem %s121_s27, 2048  ;;  %p20204_p0 = scmp.lt.s32.totalorder %s121_s27, %s121_s27 }
  0x4d   :  { %p20200_p13 = scmp.ne.s32.totalorder %s121_s27, %s20199_s25  ;;  %p20205_p1 = scmp.lt.s32.totalorder %s20199_s25, %s20199_s25 }
  0x4f   :  { %p20206_p2 = por %p20205_p1, %p20204_p0 }
  0x51   :  { %p20207_p3 = pnand %p20206_p2, %p20200_p13 }
  0x53   :  { %20210 = shalt.err (!%p20207_p3)
}
  0x54   :  { %s20503_s7 = smov 64   ;;  %s20504_s0 = smov 4  }
  0x55   :  { %126 = dma.hbm_to_vmem [thread:$0]  %s21246_s9, 2048, %s121_s27, [#allocation15], %s20503_s7, %s20503_s7, %s20504_s0  }
  0x56   :  { %s20505_s5 = smov [#allocation17]   ;;  %s20211_s2 = scalar_lea.hbm %s21248_s11, 4096 }
  0x57   :  { %s142_s20 = sshll.u32 %s20505_s5, 4  ;;  %p20212_p4 = scmp.ne.s32.totalorder %s21248_s11, %s20211_s2  ;;  %s143_s20 = int_to_ptr.vmem [resolvable:$true] %s142_s20 }
  0x58   :  { %p20215_p5 = scmp.lt.u32.totalorder %s20211_s2, %s21248_s11 }
  0x5a   :  { %p20217_p6 = pnand %p20215_p5, %p20212_p4 }
  0x5c   :  { %20220 = shalt.err (!%p20217_p6)
}
  0x5d   :  { %s20221_s22 = scalar_lea.vmem %s143_s20, 4096  ;;  %p20226_p8 = scmp.lt.s32.totalorder %s143_s20, %s143_s20 }
  0x5e   :  { %p20222_p7 = scmp.ne.s32.totalorder %s143_s20, %s20221_s22  ;;  %p20227_p9 = scmp.lt.s32.totalorder %s20221_s22, %s20221_s22 }
  0x60   :  { %p20228_p10 = por %p20227_p9, %p20226_p8 }
  0x62   :  { %p20229_p11 = pnand %p20228_p10, %p20222_p7 }
  0x64   :  { %20232 = shalt.err (!%p20229_p11)
}
  0x65   :  { %s20506_s9 = smov 256   ;;  %s20507_s27 = smov 16  }
  0x66   :  { %148 = dma.hbm_to_vmem [thread:$0]  %s21248_s11, 4096, %s143_s20, [#allocation18], %s20506_s9, %s20506_s9, %s20507_s27  }
  0x67   :  { %s20508_s25 = smov [#allocation20]   ;;  %s20233_s26 = scalar_lea.hbm %s21250_s13, 3072 }
  0x68   :  { %s164_s18 = sshll.u32 %s20508_s25, 4  ;;  %p20234_p12 = scmp.ne.s32.totalorder %s21250_s13, %s20233_s26  ;;  %s165_s18 = int_to_ptr.vmem [resolvable:$true] %s164_s18 }
  0x69   :  { %p20237_p13 = scmp.lt.u32.totalorder %s20233_s26, %s21250_s13 }
  0x6b   :  { %p20239_p0 = pnand %p20237_p13, %p20234_p12 }
  0x6d   :  { %20242 = shalt.err (!%p20239_p0)
}
  0x6e   :  { %s20243_s30 = scalar_lea.vmem %s165_s18, 3072  ;;  %p20248_p2 = scmp.lt.s32.totalorder %s165_s18, %s165_s18 }
  0x6f   :  { %p20244_p1 = scmp.ne.s32.totalorder %s165_s18, %s20243_s30  ;;  %p20249_p3 = scmp.lt.s32.totalorder %s20243_s30, %s20243_s30 }
  0x71   :  { %p20250_p4 = por %p20249_p3, %p20248_p2 }
  0x73   :  { %p20251_p5 = pnand %p20250_p4, %p20244_p1 }
  0x75   :  { %20254 = shalt.err (!%p20251_p5)
}
  0x76   :  { %s20509_s11 = smov 192   ;;  %s20510_s20 = smov 12  }
  0x77   :  { %170 = dma.hbm_to_vmem [thread:$0]  %s21250_s13, 3072, %s165_s18, [#allocation21], %s20509_s11, %s20509_s11, %s20510_s20  }
  0x78   :  { %s20511_s9 = smov [#allocation23]   ;;  %s20512_s23 = smov [#allocation3]  }
  0x79   :  { %s186_s27 = sshll.u32 %s20511_s9, 4  ;;  %s45_s24 = sshll.u32 %s20512_s23, 4  ;;  %s187_s27 = int_to_ptr.vmem [resolvable:$true] %s186_s27  ;;  %s46_s24 = int_to_ptr.vmem [resolvable:$true] %s45_s24 }
  0x7a   :  { %s20255_s5 = scalar_lea.hbm %s21252_s15, 1024 }
  0x7b   :  { %p20256_p6 = scmp.ne.s32.totalorder %s21252_s15, %s20255_s5  ;;  %p20259_p7 = scmp.lt.u32.totalorder %s20255_s5, %s21252_s15 }
  0x7d   :  { %p20261_p8 = pnand %p20259_p7, %p20256_p6 }
  0x7f   :  { %20264 = shalt.err (!%p20261_p8)
}
  0x80   :  { %s20265_s13 = scalar_lea.vmem %s187_s27, 1024  ;;  %p20270_p10 = scmp.lt.s32.totalorder %s187_s27, %s187_s27 }
  0x81   :  { %p20266_p9 = scmp.ne.s32.totalorder %s187_s27, %s20265_s13  ;;  %p20271_p11 = scmp.lt.s32.totalorder %s20265_s13, %s20265_s13 }
  0x83   :  { %p20272_p12 = por %p20271_p11, %p20270_p10 }
  0x85   :  { %p20273_p13 = pnand %p20272_p12, %p20266_p9 }
  0x87   :  { %20276 = shalt.err (!%p20273_p13)
}
  0x88   :  { %192 = dma.hbm_to_vmem [thread:$0]  %s21252_s15, 1024, %s187_s27, [#allocation24], %s20503_s7, %s20503_s7, %s20504_s0  }
  0x89   :  { %s21265_s20 = sld [smem:[#allocation39_spill]] }
  0x8f   :  { %s20277_s1 = scalar_lea.hbm %s21265_s20, 192 }
  0x90   :  { %p20278_p0 = scmp.ne.s32.totalorder %s21265_s20, %s20277_s1  ;;  %p20281_p1 = scmp.lt.u32.totalorder %s20277_s1, %s21265_s20 }
  0x92   :  { %p20283_p2 = pnand %p20281_p1, %p20278_p0 }
  0x94   :  { %20286 = shalt.err (!%p20283_p2)
}
  0x95   :  { %s20287_s3 = scalar_lea.vmem %s46_s24, 192  ;;  %p20292_p4 = scmp.lt.s32.totalorder %s46_s24, %s46_s24 }
  0x96   :  { %p20288_p3 = scmp.ne.s32.totalorder %s46_s24, %s20287_s3  ;;  %p20293_p5 = scmp.lt.s32.totalorder %s20287_s3, %s20287_s3 }
  0x98   :  { %p20294_p6 = por %p20293_p5, %p20292_p4 }
  0x9a   :  { %p20295_p7 = pnand %p20294_p6, %p20288_p3 }
  0x9c   :  { %20298 = shalt.err (!%p20295_p7)
}
  0x9d   :  { %48 = dma.hbm_to_vmem [thread:$0]  %s21265_s20, 192, %s46_s24, [#allocation4]  }
  0x9e   :  { %s20513_s0 = smov [#allocation7]   ;;  %s20514_s5 = smov [#allocation10]  }
  0x9f   :  { %s67_s27 = sshll.u32 %s20513_s0, 4  ;;  %s89_s26 = sshll.u32 %s20514_s5, 4  ;;  %s68_s27 = int_to_ptr.vmem [resolvable:$true] %s67_s27  ;;  %s90_s26 = int_to_ptr.vmem [resolvable:$true] %s89_s26 }
  0xa0   :  { %s20299_s28 = scalar_lea.hbm %s21241_s4, 128 }
  0xa1   :  { %p20300_p8 = scmp.ne.s32.totalorder %s21241_s4, %s20299_s28  ;;  %p20303_p9 = scmp.lt.u32.totalorder %s20299_s28, %s21241_s4 }
  0xa3   :  { %p20305_p10 = pnand %p20303_p9, %p20300_p8 }
  0xa5   :  { %20308 = shalt.err (!%p20305_p10)
}
  0xa6   :  { %s20309_s24 = scalar_lea.vmem %s68_s27, 128  ;;  %p20314_p12 = scmp.lt.s32.totalorder %s68_s27, %s68_s27 }
  0xa7   :  { %p20310_p11 = scmp.ne.s32.totalorder %s68_s27, %s20309_s24  ;;  %p20315_p13 = scmp.lt.s32.totalorder %s20309_s24, %s20309_s24 }
  0xa9   :  { %p20316_p0 = por %p20315_p13, %p20314_p12 }
  0xab   :  { %p20317_p1 = pnand %p20316_p0, %p20310_p11 }
  0xad   :  { %20320 = shalt.err (!%p20317_p1)
}
  0xae   :  { %70 = dma.hbm_to_vmem [thread:$0]  %s21241_s4, 128, %s68_s27, [#allocation6]  }
  0xaf   :  { %s20321_s9 = scalar_lea.hbm %s21243_s6, 192 }
  0xb0   :  { %p20322_p2 = scmp.ne.s32.totalorder %s21243_s6, %s20321_s9  ;;  %p20325_p3 = scmp.lt.u32.totalorder %s20321_s9, %s21243_s6 }
  0xb2   :  { %p20327_p4 = pnand %p20325_p3, %p20322_p2 }
  0xb4   :  { %20330 = shalt.err (!%p20327_p4)
}
  0xb5   :  { %s20331_s7 = scalar_lea.vmem %s90_s26, 192  ;;  %p20336_p6 = scmp.lt.s32.totalorder %s90_s26, %s90_s26 }
  0xb6   :  { %p20332_p5 = scmp.ne.s32.totalorder %s90_s26, %s20331_s7  ;;  %p20337_p7 = scmp.lt.s32.totalorder %s20331_s7, %s20331_s7 }
  0xb8   :  { %p20338_p8 = por %p20337_p7, %p20336_p6 }
  0xba   :  { %p20339_p9 = pnand %p20338_p8, %p20332_p5 }
  0xbc   :  { %20342 = shalt.err (!%p20339_p9)
}
  0xbd   :  { %92 = dma.hbm_to_vmem [thread:$0]  %s21243_s6, 192, %s90_s26, [#allocation9]  }
  0xbe   :  { %s20515_s27 = smov [#allocation13]   ;;  %s20516_s21 = smov [#allocation16]  }
  0xbf   :  { %s111_s5 = sshll.u32 %s20515_s27, 4  ;;  %s133_s2 = sshll.u32 %s20516_s21, 4  ;;  %s112_s5 = int_to_ptr.vmem [resolvable:$true] %s111_s5  ;;  %s134_s2 = int_to_ptr.vmem [resolvable:$true] %s133_s2 }
  0xc0   :  { %s20343_s18 = scalar_lea.hbm %s21245_s8, 32 }
  0xc1   :  { %p20344_p10 = scmp.ne.s32.totalorder %s21245_s8, %s20343_s18  ;;  %p20347_p11 = scmp.lt.u32.totalorder %s20343_s18, %s21245_s8 }
  0xc3   :  { %p20349_p12 = pnand %p20347_p11, %p20344_p10 }
  0xc5   :  { %20352 = shalt.err (!%p20349_p12)
}
  0xc6   :  { %s20353_s6 = scalar_lea.vmem %s112_s5, 32  ;;  %p20358_p0 = scmp.lt.s32.totalorder %s112_s5, %s112_s5 }
  0xc7   :  { %p20354_p13 = scmp.ne.s32.totalorder %s112_s5, %s20353_s6  ;;  %p20359_p1 = scmp.lt.s32.totalorder %s20353_s6, %s20353_s6 }
  0xc9   :  { %p20360_p2 = por %p20359_p1, %p20358_p0 }
  0xcb   :  { %p20361_p3 = pnand %p20360_p2, %p20354_p13 }
  0xcd   :  { %20364 = shalt.err (!%p20361_p3)
}
  0xce   :  { %114 = dma.hbm_to_vmem [thread:$0]  %s21245_s8, 32, %s112_s5, [#allocation12]  }
  0xcf   :  { %s20365_s9 = scalar_lea.hbm %s21247_s10, 16 }
  0xd0   :  { %p20366_p4 = scmp.ne.s32.totalorder %s21247_s10, %s20365_s9  ;;  %p20369_p5 = scmp.lt.u32.totalorder %s20365_s9, %s21247_s10 }
  0xd2   :  { %p20371_p6 = pnand %p20369_p5, %p20366_p4 }
  0xd4   :  { %20374 = shalt.err (!%p20371_p6)
}
  0xd5   :  { %s20375_s7 = scalar_lea.vmem %s134_s2, 16  ;;  %s20379_s4 = scalar_lea.vmem %s134_s2, 32 }
  0xd6   :  { %p20376_p7 = scmp.ne.s32.totalorder %s134_s2, %s20375_s7  ;;  %p20380_p8 = scmp.lt.s32.totalorder %s134_s2, %s134_s2 }
  0xd7   :  { %p20381_p9 = scmp.lt.s32.totalorder %s20379_s4, %s20375_s7 }
  0xd9   :  { %p20382_p10 = por %p20381_p9, %p20380_p8 }
  0xdb   :  { %p20383_p11 = pnand %p20382_p10, %p20376_p7 }
  0xdd   :  { %20386 = shalt.err (!%p20383_p11)
}
  0xde   :  { %136 = dma.hbm_to_vmem [thread:$0]  %s21247_s10, 16, %s134_s2, [#allocation15]  }
  0xdf   :  { %s20517_s27 = smov [#allocation19]   ;;  %s20518_s21 = smov [#allocation22]  }
  0xe0   :  { %s155_s5 = sshll.u32 %s20517_s27, 4  ;;  %s177_s28 = sshll.u32 %s20518_s21, 4  ;;  %s156_s5 = int_to_ptr.vmem [resolvable:$true] %s155_s5  ;;  %s178_s28 = int_to_ptr.vmem [resolvable:$true] %s177_s28 }
  0xe1   :  { %s20387_s29 = scalar_lea.hbm %s21249_s12, 64 }
  0xe2   :  { %p20388_p12 = scmp.ne.s32.totalorder %s21249_s12, %s20387_s29  ;;  %p20391_p13 = scmp.lt.u32.totalorder %s20387_s29, %s21249_s12 }
  0xe4   :  { %p20393_p0 = pnand %p20391_p13, %p20388_p12 }
  0xe6   :  { %20396 = shalt.err (!%p20393_p0)
}
  0xe7   :  { %s20397_s10 = scalar_lea.vmem %s156_s5, 64  ;;  %p20402_p2 = scmp.lt.s32.totalorder %s156_s5, %s156_s5 }
  0xe8   :  { %p20398_p1 = scmp.ne.s32.totalorder %s156_s5, %s20397_s10  ;;  %p20403_p3 = scmp.lt.s32.totalorder %s20397_s10, %s20397_s10 }
  0xea   :  { %p20404_p4 = por %p20403_p3, %p20402_p2 }
  0xec   :  { %p20405_p5 = pnand %p20404_p4, %p20398_p1 }
  0xee   :  { %20408 = shalt.err (!%p20405_p5)
}
  0xef   :  { %158 = dma.hbm_to_vmem [thread:$0]  %s21249_s12, 64, %s156_s5, [#allocation18]  }
  0xf0   :  { %s20409_s22 = scalar_lea.hbm %s21251_s14, 48 }
  0xf1   :  { %p20410_p6 = scmp.ne.s32.totalorder %s21251_s14, %s20409_s22  ;;  %p20413_p7 = scmp.lt.u32.totalorder %s20409_s22, %s21251_s14 }
  0xf3   :  { %p20415_p8 = pnand %p20413_p7, %p20410_p6 }
  0xf5   :  { %20418 = shalt.err (!%p20415_p8)
}
  0xf6   :  { %s20419_s15 = scalar_lea.vmem %s178_s28, 48  ;;  %s20423_s7 = scalar_lea.vmem %s178_s28, 64 }
  0xf7   :  { %p20420_p9 = scmp.ne.s32.totalorder %s178_s28, %s20419_s15  ;;  %p20424_p10 = scmp.lt.s32.totalorder %s178_s28, %s178_s28 }
  0xf8   :  { %p20425_p11 = scmp.lt.s32.totalorder %s20423_s7, %s20419_s15 }
  0xfa   :  { %p20426_p12 = por %p20425_p11, %p20424_p10 }
  0xfc   :  { %p20427_p13 = pnand %p20426_p12, %p20420_p9 }
  0xfe   :  { %20430 = shalt.err (!%p20427_p13)
}
  0xff   :  { %180 = dma.hbm_to_vmem [thread:$0]  %s21251_s14, 48, %s178_s28, [#allocation21]  }
 0x100   :  { %s20519_s8 = smov [#allocation25]   ;;  %s20520_s27 = smov [#allocation26]  }
 0x101   :  { %s199_s0 = sshll.u32 %s20519_s8, 4  ;;  %s209_s5 = sshll.u32 %s20520_s27, 4  ;;  %s200_s0 = int_to_ptr.vmem [resolvable:$true] %s199_s0  ;;  %s210_s5 = int_to_ptr.vmem [resolvable:$true] %s209_s5 }
 0x102   :  { %s20431_s18 = scalar_lea.hbm %s21253_s16, 16 }
 0x103   :  { %p20432_p0 = scmp.ne.s32.totalorder %s21253_s16, %s20431_s18  ;;  %p20435_p1 = scmp.lt.u32.totalorder %s20431_s18, %s21253_s16 }
 0x105   :  { %p20437_p2 = pnand %p20435_p1, %p20432_p0 }
 0x107   :  { %20440 = shalt.err (!%p20437_p2)
}
 0x108   :  { %s20441_s14 = scalar_lea.vmem %s200_s0, 16  ;;  %s20445_s28 = scalar_lea.vmem %s200_s0, 32 }
 0x109   :  { %p20442_p3 = scmp.ne.s32.totalorder %s200_s0, %s20441_s14  ;;  %p20446_p4 = scmp.lt.s32.totalorder %s200_s0, %s200_s0 }
 0x10a   :  { %p20447_p5 = scmp.lt.s32.totalorder %s20445_s28, %s20441_s14 }
 0x10c   :  { %p20448_p6 = por %p20447_p5, %p20446_p4 }
 0x10e   :  { %p20449_p7 = pnand %p20448_p6, %p20442_p3 }
 0x110   :  { %20452 = shalt.err (!%p20449_p7)
}
 0x111   :  { %202 = dma.hbm_to_vmem [thread:$0]  %s21253_s16, 16, %s200_s0, [#allocation24]  }
 0x112   :  { %s20453_s20 = scalar_lea.hbm %s21254_s17, 16 }
 0x113   :  { %p20454_p8 = scmp.ne.s32.totalorder %s21254_s17, %s20453_s20  ;;  %p20457_p9 = scmp.lt.u32.totalorder %s20453_s20, %s21254_s17 }
 0x115   :  { %p20459_p10 = pnand %p20457_p9, %p20454_p8 }
 0x117   :  { %20462 = shalt.err (!%p20459_p10)
}
 0x118   :  { %s20463_s25 = scalar_lea.vmem %s210_s5, 16  ;;  %s20467_s3 = scalar_lea.vmem %s210_s5, 32 }
 0x119   :  { %p20464_p11 = scmp.ne.s32.totalorder %s210_s5, %s20463_s25  ;;  %p20468_p12 = scmp.lt.s32.totalorder %s210_s5, %s210_s5 }
 0x11a   :  { %p20469_p13 = scmp.lt.s32.totalorder %s20467_s3, %s20463_s25 }
 0x11c   :  { %p20470_p0 = por %p20469_p13, %p20468_p12 }
 0x11e   :  { %p20471_p1 = pnand %p20470_p0, %p20464_p11 }
 0x120   :  { %20474 = shalt.err (!%p20471_p1)
}
 0x121   :  { %212 = dma.hbm_to_vmem [thread:$0]  %s21254_s17, 16, %s210_s5, [#allocation27]  }
 0x122   :  { %20475 = dma.done.wait [#allocation4], 192  }
 0x123   :  { %20476 = vsyncadd [#allocation4], 4294967104 }
 0x124   :  { %20477 = dma.done.wait [#allocation6], 153728  }
 0x125   :  { %20478 = vsyncadd [#allocation6], 4294813568 }
 0x126   :  { %20479 = dma.done.wait [#allocation9], 98496  }
 0x127   :  { %20480 = vsyncadd [#allocation9], 4294868800 }
 0x128   :  { %20481 = dma.done.wait [#allocation12], 6176  }
 0x129   :  { %20482 = vsyncadd [#allocation12], 4294961120 }
 0x12a   :  { %20483 = dma.done.wait [#allocation15], 2064  }
 0x12b   :  { %20484 = vsyncadd [#allocation15], 4294965232 }
 0x12c   :  { %20485 = dma.done.wait [#allocation18], 4160  }
 0x12d   :  { %20486 = vsyncadd [#allocation18], 4294963136 }
 0x12e   :  { %20487 = dma.done.wait [#allocation21], 3120  }
 0x12f   :  { %20488 = vsyncadd [#allocation21], 4294964176 }
 0x130   :  { %20489 = dma.done.wait [#allocation24], 1040  }
 0x131   :  { %20490 = vsyncadd [#allocation24], 4294966256 }
 0x132   :  { %20491 = dma.done.wait [#allocation27], 16  }
 0x133   :  { %20492 = vsyncadd [#allocation27], 4294967280  ;;  %v302_v1 = vld [vmem:[#allocation5] sm:$0xff]  ;;  %v303_v3 = vld [vmem:[#allocation5 + $0x8] sm:$0xff]  ;;  %s21266_s12 = sld [smem:[#allocation37_spill]]  ;;  %vm7544_vm0 = vcmask 785408  }
 0x134   :  { %v306_v2 = vld [vmem:[#allocation5 + $0x20] sm:$0xff]  ;;  %v307_v5 = vld [vmem:[#allocation5 + $0x28] sm:$0xff]  ;;  %vm16133_vm1 = vcmask 1042432   ;;  %vm20523_vm2 = vmmov 0   ;;  %s21267_s29 = sld [smem:[#allocation38_spill]]  ;;  %vm16129_vm3 = vcmask 23552  }
 0x135   :  { %v16320_v4 = vcombine.high %v302_v1, %v306_v2  ;;  %v16319_v6 = vcombine.low %v302_v1, %v306_v2  ;;  %v310_v7 = vld [vmem:[#allocation5 + $0x40] sm:$0xff]  ;;  %v16322_v9 = vcombine.high %v303_v3, %v307_v5  ;;  %v16321_v10 = vcombine.low %v303_v3, %v307_v5  ;;  %v311_v12 = vld [vmem:[#allocation5 + $0x48] sm:$0xff] }
 0x136   :  { %v314_v8 = vld [vmem:[#allocation5 + $0x60] sm:$0xff]  ;;  %v315_v13 = vld [vmem:[#allocation5 + $0x68] sm:$0xff]  ;;  %vm16304_vm5 = vcmask 7168  }
 0x137   :  { %v16328_v11 = vcombine.high %v310_v7, %v314_v8  ;;  %v318_v14 = vld [vmem:[#allocation5 + $0x80] sm:$0xff]  ;;  %7548 = vmatprep.subr.bf16.mxu0 %v16320_v4  ;;  %v16330_v15 = vcombine.high %v311_v12, %v315_v13  ;;  %v319_v17 = vld [vmem:[#allocation5 + $0x88] sm:$0xff]  ;;  %7958 = vmatprep.subr.bf16.mxu1 %v16322_v9  ;;  %v16327_v19 = vcombine.low %v310_v7, %v314_v8 }
 0x138   :  { %v322_v16 = vld [vmem:[#allocation5 + $0xa0] sm:$0xff]  ;;  %v323_v18 = vld [vmem:[#allocation5 + $0xa8] sm:$0xff]  ;;  %7549 = vmatpush1.bf16.msra.mxu0 %v16319_v6  ;;  %7959 = vmatpush1.bf16.msra.mxu1 %v16321_v10  ;;  %v16329_v20 = vcombine.low %v311_v12, %v315_v13 }
 0x139   :  { %7550 = vmatprep.subr.bf16.mxu0 %v16328_v11  ;;  %v16336_v21 = vcombine.high %v318_v14, %v322_v16  ;;  %7960 = vmatprep.subr.bf16.mxu1 %v16330_v15  ;;  %v16338_v22 = vcombine.high %v319_v17, %v323_v18  ;;  %v326_v23 = vld [vmem:[#allocation5 + $0xc0] sm:$0xff]  ;;  %v327_v25 = vld [vmem:[#allocation5 + $0xc8] sm:$0xff]  ;;  %v16335_v27 = vcombine.low %v318_v14, %v322_v16 }
 0x13a   :  { %v330_v24 = vld [vmem:[#allocation5 + $0xe0] sm:$0xff]  ;;  %v331_v26 = vld [vmem:[#allocation5 + $0xe8] sm:$0xff]  ;;  %v16337_v28 = vcombine.low %v319_v17, %v323_v18 }
 0x13b   :  { %v16344_v29 = vcombine.high %v326_v23, %v330_v24  ;;  %v16346_v30 = vcombine.high %v327_v25, %v331_v26  ;;  %v334_v31 = vld [vmem:[#allocation5 + $0x100] sm:$0xff]  ;;  %v335_v33 = vld [vmem:[#allocation5 + $0x108] sm:$0xff]  ;;  %v16343_v35 = vcombine.low %v326_v23, %v330_v24  ;;  %v16345_v36 = vcombine.low %v327_v25, %v331_v26 }
 0x13c   :  { %7551 = vmatpush1.bf16.msra.mxu0 %v16327_v19  ;;  %7961 = vmatpush1.bf16.msra.mxu1 %v16329_v20  ;;  %v338_v32 = vld [vmem:[#allocation5 + $0x120] sm:$0xff]  ;;  %v339_v34 = vld [vmem:[#allocation5 + $0x128] sm:$0xff] }
 0x13d   :  { %7552 = vmatprep.subr.bf16.mxu0 %v16336_v21  ;;  %7962 = vmatprep.subr.bf16.mxu1 %v16338_v22  ;;  %v16352_v37 = vcombine.high %v334_v31, %v338_v32  ;;  %v16354_v38 = vcombine.high %v335_v33, %v339_v34  ;;  %v342_v39 = vld [vmem:[#allocation5 + $0x140] sm:$0xff]  ;;  %v343_v41 = vld [vmem:[#allocation5 + $0x148] sm:$0xff]  ;;  %v16351_v43 = vcombine.low %v334_v31, %v338_v32 }
 0x13e   :  { %v346_v40 = vld [vmem:[#allocation5 + $0x160] sm:$0xff]  ;;  %v347_v42 = vld [vmem:[#allocation5 + $0x168] sm:$0xff]  ;;  %v16353_v44 = vcombine.low %v335_v33, %v339_v34 }
 0x13f   :  { %v16360_v45 = vcombine.high %v342_v39, %v346_v40  ;;  %v16362_v46 = vcombine.high %v343_v41, %v347_v42  ;;  %v350_v47 = vld [vmem:[#allocation5 + $0x180] sm:$0xff]  ;;  %v351_v49 = vld [vmem:[#allocation5 + $0x188] sm:$0xff]  ;;  %v16359_v51 = vcombine.low %v342_v39, %v346_v40  ;;  %v16361_v52 = vcombine.low %v343_v41, %v347_v42 }
 0x140   :  { %7553 = vmatpush1.bf16.msra.mxu0 %v16335_v27  ;;  %7963 = vmatpush1.bf16.msra.mxu1 %v16337_v28  ;;  %v354_v48 = vld [vmem:[#allocation5 + $0x1a0] sm:$0xff]  ;;  %v355_v50 = vld [vmem:[#allocation5 + $0x1a8] sm:$0xff] }
 0x141   :  { %7554 = vmatprep.subr.bf16.mxu0 %v16344_v29  ;;  %7964 = vmatprep.subr.bf16.mxu1 %v16346_v30  ;;  %v16368_v53 = vcombine.high %v350_v47, %v354_v48  ;;  %v265_v54 = vld [vmem:[%s21266_s12 + $0x8] sm:$0xff]  ;;  %v16370_v55 = vcombine.high %v351_v49, %v355_v50  ;;  %v359_v59 = vld [vmem:[#allocation5 + $0x1c8] sm:$0xff]  ;;  %v16367_v61 = vcombine.low %v350_v47, %v354_v48 }
 0x142   :  { %v358_v56 = vld [vmem:[#allocation5 + $0x1c0] sm:$0xff]  ;;  %v20828_v58 = vpack.c.bf16 %v265_v54, %v265_v54  ;;  %v363_v60 = vld [vmem:[#allocation5 + $0x1e8] sm:$0xff]  ;;  %v16369_v62 = vcombine.low %v351_v49, %v355_v50 }
 0x143   :  { %v362_v57 = vld [vmem:[#allocation5 + $0x1e0] sm:$0xff]  ;;  %v16378_v0 = vcombine.high %v359_v59, %v363_v60  ;;  %v367_v3 = vld [vmem:[#allocation5 + $0x208] sm:$0xff]  ;;  %v16377_v6 = vcombine.low %v359_v59, %v363_v60 }
 0x144   :  { %7555 = vmatpush1.bf16.msra.mxu0 %v16343_v35  ;;  %7965 = vmatpush1.bf16.msra.mxu1 %v16345_v36  ;;  %v16376_v63 = vcombine.high %v358_v56, %v362_v57  ;;  %v366_v1 = vld [vmem:[#allocation5 + $0x200] sm:$0xff]  ;;  %v371_v4 = vld [vmem:[#allocation5 + $0x228] sm:$0xff]  ;;  %v16375_v5 = vcombine.low %v358_v56, %v362_v57 }
 0x145   :  { %7556 = vmatprep.subr.bf16.mxu0 %v16352_v37  ;;  %7966 = vmatprep.subr.bf16.mxu1 %v16354_v38  ;;  %v370_v2 = vld [vmem:[#allocation5 + $0x220] sm:$0xff]  ;;  %v16386_v8 = vcombine.high %v367_v3, %v371_v4  ;;  %v375_v11 = vld [vmem:[#allocation5 + $0x248] sm:$0xff]  ;;  %v16385_v14 = vcombine.low %v367_v3, %v371_v4 }
 0x146   :  { %7580 = vmatprep.mubr.bf16.mxu0 %v20828_v58  ;;  %7990 = vmatprep.mubr.bf16.mxu1 %v20828_v58  ;;  %v16384_v7 = vcombine.high %v366_v1, %v370_v2  ;;  %v374_v9 = vld [vmem:[#allocation5 + $0x240] sm:$0xff]  ;;  %v379_v12 = vld [vmem:[#allocation5 + $0x268] sm:$0xff]  ;;  %v16383_v13 = vcombine.low %v366_v1, %v370_v2 }
 0x147   :  { %v378_v10 = vld [vmem:[#allocation5 + $0x260] sm:$0xff]  ;;  %v16394_v16 = vcombine.high %v375_v11, %v379_v12  ;;  %v383_v19 = vld [vmem:[#allocation5 + $0x288] sm:$0xff]  ;;  %v16393_v22 = vcombine.low %v375_v11, %v379_v12 }
 0x148   :  { %7557 = vmatpush1.bf16.msra.mxu0 %v16351_v43  ;;  %7967 = vmatpush1.bf16.msra.mxu1 %v16353_v44  ;;  %v16392_v15 = vcombine.high %v374_v9, %v378_v10  ;;  %v382_v17 = vld [vmem:[#allocation5 + $0x280] sm:$0xff]  ;;  %v387_v20 = vld [vmem:[#allocation5 + $0x2a8] sm:$0xff]  ;;  %v16391_v21 = vcombine.low %v374_v9, %v378_v10 }
 0x149   :  { %7558 = vmatprep.subr.bf16.mxu0 %v16360_v45  ;;  %7968 = vmatprep.subr.bf16.mxu1 %v16362_v46  ;;  %v386_v18 = vld [vmem:[#allocation5 + $0x2a0] sm:$0xff]  ;;  %v16402_v24 = vcombine.high %v383_v19, %v387_v20  ;;  %v391_v27 = vld [vmem:[#allocation5 + $0x2c8] sm:$0xff]  ;;  %v16401_v30 = vcombine.low %v383_v19, %v387_v20 }
 0x14a   :  { %v16400_v23 = vcombine.high %v382_v17, %v386_v18  ;;  %v390_v25 = vld [vmem:[#allocation5 + $0x2c0] sm:$0xff]  ;;  %v395_v28 = vld [vmem:[#allocation5 + $0x2e8] sm:$0xff]  ;;  %v16399_v29 = vcombine.low %v382_v17, %v386_v18 }
 0x14b   :  { %v394_v26 = vld [vmem:[#allocation5 + $0x2e0] sm:$0xff]  ;;  %v16410_v32 = vcombine.high %v391_v27, %v395_v28  ;;  %v399_v35 = vld [vmem:[#allocation5 + $0x308] sm:$0xff]  ;;  %v16409_v38 = vcombine.low %v391_v27, %v395_v28 }
 0x14c   :  { %7559 = vmatpush1.bf16.msra.mxu0 %v16359_v51  ;;  %7969 = vmatpush1.bf16.msra.mxu1 %v16361_v52  ;;  %v16408_v31 = vcombine.high %v390_v25, %v394_v26  ;;  %v398_v33 = vld [vmem:[#allocation5 + $0x300] sm:$0xff]  ;;  %v403_v36 = vld [vmem:[#allocation5 + $0x328] sm:$0xff]  ;;  %v16407_v37 = vcombine.low %v390_v25, %v394_v26 }
 0x14d   :  { %7560 = vmatprep.subr.bf16.mxu0 %v16368_v53  ;;  %7970 = vmatprep.subr.bf16.mxu1 %v16370_v55  ;;  %v402_v34 = vld [vmem:[#allocation5 + $0x320] sm:$0xff]  ;;  %v16418_v40 = vcombine.high %v399_v35, %v403_v36  ;;  %v407_v43 = vld [vmem:[#allocation5 + $0x348] sm:$0xff]  ;;  %v16417_v46 = vcombine.low %v399_v35, %v403_v36 }
 0x14e   :  { %v16416_v39 = vcombine.high %v398_v33, %v402_v34  ;;  %v406_v41 = vld [vmem:[#allocation5 + $0x340] sm:$0xff]  ;;  %v411_v44 = vld [vmem:[#allocation5 + $0x368] sm:$0xff]  ;;  %v16415_v45 = vcombine.low %v398_v33, %v402_v34 }
 0x14f   :  { %v410_v42 = vld [vmem:[#allocation5 + $0x360] sm:$0xff]  ;;  %v16426_v48 = vcombine.high %v407_v43, %v411_v44  ;;  %v415_v51 = vld [vmem:[#allocation5 + $0x388] sm:$0xff]  ;;  %v16425_v54 = vcombine.low %v407_v43, %v411_v44 }
 0x150   :  { %7561 = vmatpush1.bf16.msra.mxu0 %v16367_v61  ;;  %7971 = vmatpush1.bf16.msra.mxu1 %v16369_v62  ;;  %v16424_v47 = vcombine.high %v406_v41, %v410_v42  ;;  %v414_v49 = vld [vmem:[#allocation5 + $0x380] sm:$0xff]  ;;  %v419_v52 = vld [vmem:[#allocation5 + $0x3a8] sm:$0xff]  ;;  %v16423_v53 = vcombine.low %v406_v41, %v410_v42 }
 0x151   :  { %7562 = vmatprep.subr.bf16.mxu0 %v16376_v63  ;;  %7972 = vmatprep.subr.bf16.mxu1 %v16378_v0  ;;  %v418_v50 = vld [vmem:[#allocation5 + $0x3a0] sm:$0xff]  ;;  %v16434_v56 = vcombine.high %v415_v51, %v419_v52  ;;  %v423_v60 = vld [vmem:[#allocation5 + $0x3c8] sm:$0xff]  ;;  %v16433_v63 = vcombine.low %v415_v51, %v419_v52 }
 0x152   :  { %v16432_v55 = vcombine.high %v414_v49, %v418_v50  ;;  %v422_v57 = vld [vmem:[#allocation5 + $0x3c0] sm:$0xff]  ;;  %v427_v61 = vld [vmem:[#allocation5 + $0x3e8] sm:$0xff]  ;;  %v16431_v62 = vcombine.low %v414_v49, %v418_v50 }
 0x153   :  { %v426_v59 = vld [vmem:[#allocation5 + $0x3e0] sm:$0xff]  ;;  %v16442_v1 = vcombine.high %v423_v60, %v427_v61  ;;  %v431_v4 = vld [vmem:[#allocation5 + $0x408] sm:$0xff] }
 0x154   :  { %7563 = vmatpush1.bf16.msra.mxu0 %v16375_v5  ;;  %7973 = vmatpush1.bf16.msra.mxu1 %v16377_v6  ;;  %v16440_v0 = vcombine.high %v422_v57, %v426_v59  ;;  %v430_v2 = vld [vmem:[#allocation5 + $0x400] sm:$0xff]  ;;  %v435_v5 = vld [vmem:[#allocation5 + $0x428] sm:$0xff]  ;;  %v16439_v6 = vcombine.low %v422_v57, %v426_v59 }
 0x155   :  { %7564 = vmatprep.subr.bf16.mxu0 %v16384_v7  ;;  %7974 = vmatprep.subr.bf16.mxu1 %v16386_v8  ;;  %v434_v3 = vld [vmem:[#allocation5 + $0x420] sm:$0xff]  ;;  %v264_v7 = vld [vmem:[%s21266_s12] sm:$0xff]  ;;  %v16441_v8 = vcombine.low %v423_v60, %v427_v61  ;;  %v16450_v10 = vcombine.high %v431_v4, %v435_v5  ;;  %v16449_v18 = vcombine.low %v431_v4, %v435_v5  ;;  %v451_v25 = vld [vmem:[#allocation5 + $0x4a8] sm:$0xff] }
 0x156   :  { %v16448_v9 = vcombine.high %v430_v2, %v434_v3  ;;  %v438_v11 = vld [vmem:[#allocation5 + $0x440] sm:$0xff]  ;;  %v16447_v17 = vcombine.low %v430_v2, %v434_v3  ;;  %v459_v33 = vld [vmem:[#allocation5 + $0x4e8] sm:$0xff] }
 0x157   :  { %v442_v12 = vld [vmem:[#allocation5 + $0x460] sm:$0xff]  ;;  %v467_v41 = vld [vmem:[#allocation5 + $0x528] sm:$0xff] }
 0x158   :  { %7565 = vmatpush1.bf16.msra.mxu0 %v16383_v13  ;;  %7975 = vmatpush1.bf16.msra.mxu1 %v16385_v14  ;;  %v20835_v13 = vpack.c.bf16 %v264_v7, %v264_v7  ;;  %v439_v14 = vld [vmem:[#allocation5 + $0x448] sm:$0xff]  ;;  %v16456_v19 = vcombine.high %v438_v11, %v442_v12  ;;  %v16455_v26 = vcombine.low %v438_v11, %v442_v12  ;;  %v498_v7 = vld [vmem:[#allocation5 + $0x620] sm:$0xff] }
 0x159   :  { %7566 = vmatprep.subr.bf16.mxu0 %v16392_v15  ;;  %7976 = vmatprep.subr.bf16.mxu1 %v16394_v16  ;;  %v443_v15 = vld [vmem:[#allocation5 + $0x468] sm:$0xff] }
 0x15a   :  { %v267_v16 = vld [vmem:[%s21266_s12 + $0x18] sm:$0xff]  ;;  %v16458_v20 = vcombine.high %v439_v14, %v443_v15  ;;  %v16457_v27 = vcombine.low %v439_v14, %v443_v15  ;;  %v502_v15 = vld [vmem:[#allocation5 + $0x640] sm:$0xff] }
 0x15b   :  { %v475_v49 = vld [vmem:[#allocation5 + $0x568] sm:$0xff] }
 0x15c   :  { %7567 = vmatpush1.bf16.msra.mxu0 %v16391_v21  ;;  %7977 = vmatpush1.bf16.msra.mxu1 %v16393_v22  ;;  %v446_v21 = vld [vmem:[#allocation5 + $0x480] sm:$0xff]  ;;  %v483_v57 = vld [vmem:[#allocation5 + $0x5a8] sm:$0xff] }
 0x15d   :  { %7568 = vmatprep.subr.bf16.mxu0 %v16400_v23  ;;  %7978 = vmatprep.subr.bf16.mxu1 %v16402_v24  ;;  %v450_v22 = vld [vmem:[#allocation5 + $0x4a0] sm:$0xff]  ;;  %v447_v23 = vld [vmem:[#allocation5 + $0x488] sm:$0xff]  ;;  %v20840_v24 = vpack.c.bf16 %v267_v16, %v267_v16 }
 0x15e   :  { %v16464_v28 = vcombine.high %v446_v21, %v450_v22  ;;  %v16463_v34 = vcombine.low %v446_v21, %v450_v22  ;;  %v16465_v35 = vcombine.low %v447_v23, %v451_v25  ;;  %v491_v2 = vld [vmem:[#allocation5 + $0x5e8] sm:$0xff]  ;;  %v506_v16 = vld [vmem:[#allocation5 + $0x660] sm:$0xff] }
 0x15f   :  { %v16520_v22 = vcombine.high %v502_v15, %v506_v16 }
 0x160   :  { %7569 = vmatpush1.bf16.msra.mxu0 %v16399_v29  ;;  %7979 = vmatpush1.bf16.msra.mxu1 %v16401_v30  ;;  %v454_v29 = vld [vmem:[#allocation5 + $0x4c0] sm:$0xff] }
 0x161   :  { %7570 = vmatprep.subr.bf16.mxu0 %v16408_v31  ;;  %7980 = vmatprep.subr.bf16.mxu1 %v16410_v32  ;;  %v458_v30 = vld [vmem:[#allocation5 + $0x4e0] sm:$0xff]  ;;  %v455_v31 = vld [vmem:[#allocation5 + $0x4c8] sm:$0xff]  ;;  %v16466_v32 = vcombine.high %v447_v23, %v451_v25 }
 0x162   :  { %v16472_v36 = vcombine.high %v454_v29, %v458_v30  ;;  %v16471_v42 = vcombine.low %v454_v29, %v458_v30  ;;  %v16473_v43 = vcombine.low %v455_v31, %v459_v33  ;;  %v510_v23 = vld [vmem:[#allocation5 + $0x680] sm:$0xff]  ;;  %v16519_v29 = vcombine.low %v502_v15, %v506_v16 }
 0x163   :  { %v514_v25 = vld [vmem:[#allocation5 + $0x6a0] sm:$0xff] }
 0x164   :  { %7571 = vmatpush1.bf16.msra.mxu0 %v16407_v37  ;;  %7981 = vmatpush1.bf16.msra.mxu1 %v16409_v38  ;;  %v462_v37 = vld [vmem:[#allocation5 + $0x500] sm:$0xff] }
 0x165   :  { %7572 = vmatprep.subr.bf16.mxu0 %v16416_v39  ;;  %7982 = vmatprep.subr.bf16.mxu1 %v16418_v40  ;;  %v466_v38 = vld [vmem:[#allocation5 + $0x520] sm:$0xff]  ;;  %v463_v39 = vld [vmem:[#allocation5 + $0x508] sm:$0xff]  ;;  %v16474_v40 = vcombine.high %v455_v31, %v459_v33  ;;  %v16528_v31 = vcombine.high %v510_v23, %v514_v25 }
 0x166   :  { %v16480_v44 = vcombine.high %v462_v37, %v466_v38  ;;  %v16479_v50 = vcombine.low %v462_v37, %v466_v38  ;;  %v16481_v51 = vcombine.low %v463_v39, %v467_v41  ;;  %v522_v33 = vld [vmem:[#allocation5 + $0x6e0] sm:$0xff]  ;;  %v16527_v37 = vcombine.low %v510_v23, %v514_v25 }
 0x167   :  { %v266_v15 = vld [vmem:[%s21266_s12 + $0x10] sm:$0xff]  ;;  %v269_v25 = vld [vmem:[%s21266_s12 + $0x28] sm:$0xff] }
 0x168   :  { %7573 = vmatpush1.bf16.msra.mxu0 %v16415_v45  ;;  %7983 = vmatpush1.bf16.msra.mxu1 %v16417_v46  ;;  %v470_v45 = vld [vmem:[#allocation5 + $0x540] sm:$0xff] }
 0x169   :  { %7574 = vmatprep.subr.bf16.mxu0 %v16424_v47  ;;  %7984 = vmatprep.subr.bf16.mxu1 %v16426_v48  ;;  %v474_v46 = vld [vmem:[#allocation5 + $0x560] sm:$0xff]  ;;  %v471_v47 = vld [vmem:[#allocation5 + $0x548] sm:$0xff]  ;;  %v16482_v48 = vcombine.high %v463_v39, %v467_v41 }
 0x16a   :  { %v16488_v52 = vcombine.high %v470_v45, %v474_v46  ;;  %v16487_v59 = vcombine.low %v470_v45, %v474_v46  ;;  %v16489_v60 = vcombine.low %v471_v47, %v475_v49  ;;  %v530_v41 = vld [vmem:[#allocation5 + $0x720] sm:$0xff] }
 0x16c   :  { %7575 = vmatpush1.bf16.msra.mxu0 %v16423_v53  ;;  %7985 = vmatpush1.bf16.msra.mxu1 %v16425_v54  ;;  %v478_v53 = vld [vmem:[#allocation5 + $0x580] sm:$0xff] }
 0x16d   :  { %7576 = vmatprep.subr.bf16.mxu0 %v16432_v55  ;;  %7986 = vmatprep.subr.bf16.mxu1 %v16434_v56  ;;  %v482_v54 = vld [vmem:[#allocation5 + $0x5a0] sm:$0xff]  ;;  %v479_v55 = vld [vmem:[#allocation5 + $0x588] sm:$0xff]  ;;  %v16490_v56 = vcombine.high %v471_v47, %v475_v49 }
 0x16e   :  { %v16496_v61 = vcombine.high %v478_v53, %v482_v54  ;;  %v16495_v3 = vcombine.low %v478_v53, %v482_v54  ;;  %v16497_v4 = vcombine.low %v479_v55, %v483_v57  ;;  %v538_v49 = vld [vmem:[#allocation5 + $0x760] sm:$0xff] }
 0x170   :  { %7577 = vmatpush1.bf16.msra.mxu0 %v16431_v62  ;;  %7987 = vmatpush1.bf16.msra.mxu1 %v16433_v63  ;;  %v486_v62 = vld [vmem:[#allocation5 + $0x5c0] sm:$0xff] }
 0x171   :  { %7578 = vmatprep.subr.bf16.mxu0 %v16440_v0  ;;  %7988 = vmatprep.subr.bf16.mxu1 %v16442_v1  ;;  %v490_v63 = vld [vmem:[#allocation5 + $0x5e0] sm:$0xff]  ;;  %v487_v0 = vld [vmem:[#allocation5 + $0x5c8] sm:$0xff]  ;;  %v16498_v1 = vcombine.high %v479_v55, %v483_v57 }
 0x172   :  { %v16504_v5 = vcombine.high %v486_v62, %v490_v63  ;;  %v16503_v11 = vcombine.low %v486_v62, %v490_v63  ;;  %v16505_v12 = vcombine.low %v487_v0, %v491_v2  ;;  %v546_v57 = vld [vmem:[#allocation5 + $0x7a0] sm:$0xff] }
 0x174   :  { %7579 = vmatpush1.bf16.msra.mxu0 %v16439_v6  ;;  %7989 = vmatpush1.bf16.msra.mxu1 %v16441_v8  ;;  %v494_v6 = vld [vmem:[#allocation5 + $0x600] sm:$0xff]  ;;  %v495_v8 = vld [vmem:[#allocation5 + $0x608] sm:$0xff] }
 0x175   :  { %7589 = vmatprep.subr.bf16.mxu0 %v16448_v9  ;;  %7999 = vmatprep.subr.bf16.mxu1 %v16450_v10  ;;  %v16506_v9 = vcombine.high %v487_v0, %v491_v2  ;;  %v499_v10 = vld [vmem:[#allocation5 + $0x628] sm:$0xff]  ;;  %v16512_v14 = vcombine.high %v494_v6, %v498_v7  ;;  %v554_v2 = vld [vmem:[#allocation5 + $0x7e0] sm:$0xff] }
 0x176   :  { %v16513_v21 = vcombine.low %v495_v8, %v499_v10 }
 0x177   :  { %7581 = vmatmul.mubr.bf16.vlgmr.msra.gmra.mrb[0].mxu0 %v20835_v13  ;;  %7991 = vmatmul.mubr.bf16.vlgmr.msra.gmra.mrb[0].mxu1 %v20835_v13 }
 0x178   :  { %7590 = vmatpush1.bf16.msra.mxu0 %v16447_v17  ;;  %8000 = vmatpush1.bf16.msra.mxu1 %v16449_v18  ;;  %v503_v17 = vld [vmem:[#allocation5 + $0x648] sm:$0xff]  ;;  %v16514_v18 = vcombine.high %v495_v8, %v499_v10  ;;  %v562_v10 = vld [vmem:[#allocation5 + $0x820] sm:$0xff] }
 0x179   :  { %7591 = vmatprep.subr.bf16.mxu0 %v16456_v19  ;;  %8001 = vmatprep.subr.bf16.mxu1 %v16458_v20  ;;  %v507_v19 = vld [vmem:[#allocation5 + $0x668] sm:$0xff]  ;;  %v16511_v20 = vcombine.low %v494_v6, %v498_v7  ;;  %v558_v7 = vld [vmem:[#allocation5 + $0x800] sm:$0xff] }
 0x17a   :  { %7621 = vmatprep.mubr.bf16.mxu0 %v20840_v24  ;;  %8031 = vmatprep.mubr.bf16.mxu1 %v20840_v24  ;;  %v16521_v30 = vcombine.low %v503_v17, %v507_v19 }
 0x17c   :  { %7592 = vmatpush1.bf16.msra.mxu0 %v16455_v26  ;;  %8002 = vmatpush1.bf16.msra.mxu1 %v16457_v27  ;;  %v511_v26 = vld [vmem:[#allocation5 + $0x688] sm:$0xff]  ;;  %v16522_v27 = vcombine.high %v503_v17, %v507_v19  ;;  %v566_v17 = vld [vmem:[#allocation5 + $0x840] sm:$0xff]  ;;  %v16576_v19 = vcombine.high %v558_v7, %v562_v10 }
 0x17d   :  { %7593 = vmatprep.subr.bf16.mxu0 %v16464_v28  ;;  %8003 = vmatprep.subr.bf16.mxu1 %v16466_v32  ;;  %v515_v28 = vld [vmem:[#allocation5 + $0x6a8] sm:$0xff]  ;;  %v518_v32 = vld [vmem:[#allocation5 + $0x6c0] sm:$0xff] }
 0x17e   :  { %v16529_v38 = vcombine.low %v511_v26, %v515_v28  ;;  %v16536_v39 = vcombine.high %v518_v32, %v522_v33  ;;  %v16535_v45 = vcombine.low %v518_v32, %v522_v33  ;;  %v578_v32 = vld [vmem:[#allocation5 + $0x8a0] sm:$0xff]  ;;  %v575_v33 = vld [vmem:[#allocation5 + $0x888] sm:$0xff] }
 0x180   :  { %7594 = vmatpush1.bf16.msra.mxu0 %v16463_v34  ;;  %8004 = vmatpush1.bf16.msra.mxu1 %v16465_v35  ;;  %v519_v34 = vld [vmem:[#allocation5 + $0x6c8] sm:$0xff]  ;;  %v16530_v35 = vcombine.high %v511_v26, %v515_v28  ;;  %v20852_v26 = vpack.c.bf16 %v266_v15, %v266_v15 }
 0x181   :  { %7595 = vmatprep.subr.bf16.mxu0 %v16472_v36  ;;  %8005 = vmatprep.subr.bf16.mxu1 %v16474_v40  ;;  %v523_v36 = vld [vmem:[#allocation5 + $0x6e8] sm:$0xff]  ;;  %v526_v40 = vld [vmem:[#allocation5 + $0x700] sm:$0xff] }
 0x182   :  { %v16537_v46 = vcombine.low %v519_v34, %v523_v36  ;;  %v16544_v47 = vcombine.high %v526_v40, %v530_v41  ;;  %v16543_v53 = vcombine.low %v526_v40, %v530_v41  ;;  %v586_v40 = vld [vmem:[#allocation5 + $0x8e0] sm:$0xff]  ;;  %v583_v41 = vld [vmem:[#allocation5 + $0x8c8] sm:$0xff] }
 0x184   :  { %7596 = vmatpush1.bf16.msra.mxu0 %v16471_v42  ;;  %8006 = vmatpush1.bf16.msra.mxu1 %v16473_v43  ;;  %v527_v42 = vld [vmem:[#allocation5 + $0x708] sm:$0xff]  ;;  %v16538_v43 = vcombine.high %v519_v34, %v523_v36 }
 0x185   :  { %7597 = vmatprep.subr.bf16.mxu0 %v16480_v44  ;;  %8007 = vmatprep.subr.bf16.mxu1 %v16482_v48  ;;  %v531_v44 = vld [vmem:[#allocation5 + $0x728] sm:$0xff]  ;;  %v534_v48 = vld [vmem:[#allocation5 + $0x740] sm:$0xff] }
 0x186   :  { %v16545_v54 = vcombine.low %v527_v42, %v531_v44  ;;  %v16552_v55 = vcombine.high %v534_v48, %v538_v49  ;;  %v16551_v62 = vcombine.low %v534_v48, %v538_v49  ;;  %v579_v34 = vld [vmem:[#allocation5 + $0x8a8] sm:$0xff]  ;;  %v594_v48 = vld [vmem:[#allocation5 + $0x920] sm:$0xff] }
 0x187   :  { %v591_v49 = vld [vmem:[#allocation5 + $0x908] sm:$0xff] }
 0x188   :  { %7598 = vmatpush1.bf16.msra.mxu0 %v16479_v50  ;;  %8008 = vmatpush1.bf16.msra.mxu1 %v16481_v51  ;;  %v535_v50 = vld [vmem:[#allocation5 + $0x748] sm:$0xff]  ;;  %v16546_v51 = vcombine.high %v527_v42, %v531_v44  ;;  %v16594_v42 = vcombine.high %v575_v33, %v579_v34 }
 0x189   :  { %7599 = vmatprep.subr.bf16.mxu0 %v16488_v52  ;;  %8009 = vmatprep.subr.bf16.mxu1 %v16490_v56  ;;  %v539_v52 = vld [vmem:[#allocation5 + $0x768] sm:$0xff]  ;;  %v542_v56 = vld [vmem:[#allocation5 + $0x780] sm:$0xff] }
 0x18a   :  { %v16553_v63 = vcombine.low %v535_v50, %v539_v52  ;;  %v16560_v0 = vcombine.high %v542_v56, %v546_v57  ;;  %v16559_v6 = vcombine.low %v542_v56, %v546_v57  ;;  %v602_v56 = vld [vmem:[#allocation5 + $0x960] sm:$0xff]  ;;  %v599_v57 = vld [vmem:[#allocation5 + $0x948] sm:$0xff] }
 0x18c   :  { %7600 = vmatpush1.bf16.msra.mxu0 %v16487_v59  ;;  %8010 = vmatpush1.bf16.msra.mxu1 %v16489_v60  ;;  %v543_v59 = vld [vmem:[#allocation5 + $0x788] sm:$0xff]  ;;  %v16554_v60 = vcombine.high %v535_v50, %v539_v52 }
 0x18d   :  { %7601 = vmatprep.subr.bf16.mxu0 %v16496_v61  ;;  %8011 = vmatprep.subr.bf16.mxu1 %v16498_v1  ;;  %v547_v61 = vld [vmem:[#allocation5 + $0x7a8] sm:$0xff]  ;;  %v550_v1 = vld [vmem:[#allocation5 + $0x7c0] sm:$0xff] }
 0x18e   :  { %v16561_v8 = vcombine.low %v543_v59, %v547_v61  ;;  %v16567_v16 = vcombine.low %v550_v1, %v554_v2 }
 0x190   :  { %7602 = vmatpush1.bf16.msra.mxu0 %v16495_v3  ;;  %8012 = vmatpush1.bf16.msra.mxu1 %v16497_v4  ;;  %v551_v3 = vld [vmem:[#allocation5 + $0x7c8] sm:$0xff]  ;;  %v16562_v4 = vcombine.high %v543_v59, %v547_v61 }
 0x191   :  { %7603 = vmatprep.subr.bf16.mxu0 %v16504_v5  ;;  %8013 = vmatprep.subr.bf16.mxu1 %v16506_v9  ;;  %v555_v5 = vld [vmem:[#allocation5 + $0x7e8] sm:$0xff]  ;;  %v16568_v9 = vcombine.high %v550_v1, %v554_v2  ;;  %v610_v1 = vld [vmem:[#allocation5 + $0x9a0] sm:$0xff] }
 0x192   :  { %v607_v2 = vld [vmem:[#allocation5 + $0x988] sm:$0xff] }
 0x194   :  { %7604 = vmatpush1.bf16.msra.mxu0 %v16503_v11  ;;  %8014 = vmatpush1.bf16.msra.mxu1 %v16505_v12  ;;  %v559_v11 = vld [vmem:[#allocation5 + $0x808] sm:$0xff] }
 0x195   :  { %7605 = vmatprep.subr.bf16.mxu0 %v16512_v14  ;;  %8015 = vmatprep.subr.bf16.mxu1 %v16514_v18  ;;  %v563_v12 = vld [vmem:[#allocation5 + $0x828] sm:$0xff]  ;;  %v16570_v14 = vcombine.high %v551_v3, %v555_v5  ;;  %v16569_v18 = vcombine.low %v551_v3, %v555_v5 }
 0x196   :  { %v16578_v23 = vcombine.high %v559_v11, %v563_v12  ;;  %v16577_v28 = vcombine.low %v559_v11, %v563_v12  ;;  %v619_v12 = vld [vmem:[#allocation5 + $0x9e8] sm:$0xff] }
 0x198   :  { %7606 = vmatpush1.bf16.msra.mxu0 %v16511_v20  ;;  %8016 = vmatpush1.bf16.msra.mxu1 %v16513_v21  ;;  %v570_v20 = vld [vmem:[#allocation5 + $0x860] sm:$0xff]  ;;  %v567_v21 = vld [vmem:[#allocation5 + $0x848] sm:$0xff] }
 0x199   :  { %7607 = vmatprep.subr.bf16.mxu0 %v16520_v22  ;;  %8017 = vmatprep.subr.bf16.mxu1 %v16522_v27  ;;  %v571_v22 = vld [vmem:[#allocation5 + $0x868] sm:$0xff]  ;;  %v16575_v27 = vcombine.low %v558_v7, %v562_v10  ;;  %v16583_v36 = vcombine.low %v566_v17, %v570_v20 }
 0x19a   :  { %v615_v10 = vld [vmem:[#allocation5 + $0x9c8] sm:$0xff] }
 0x19c   :  { %7608 = vmatpush1.bf16.msra.mxu0 %v16519_v29  ;;  %8018 = vmatpush1.bf16.msra.mxu1 %v16521_v30  ;;  %v16584_v29 = vcombine.high %v566_v17, %v570_v20  ;;  %v574_v30 = vld [vmem:[#allocation5 + $0x880] sm:$0xff]  ;;  %v16634_v20 = vcombine.high %v615_v10, %v619_v12 }
 0x19d   :  { %7609 = vmatprep.subr.bf16.mxu0 %v16528_v31  ;;  %8019 = vmatprep.subr.bf16.mxu1 %v16530_v35  ;;  %v16586_v31 = vcombine.high %v567_v21, %v571_v22  ;;  %v20854_v35 = vpack.c.bf16 %v269_v25, %v269_v25  ;;  %v16591_v44 = vcombine.low %v574_v30, %v578_v32  ;;  %v622_v17 = vld [vmem:[#allocation5 + $0xa00] sm:$0xff] }
 0x1a0   :  { %7610 = vmatpush1.bf16.msra.mxu0 %v16527_v37  ;;  %8020 = vmatpush1.bf16.msra.mxu1 %v16529_v38  ;;  %v16585_v37 = vcombine.low %v567_v21, %v571_v22  ;;  %v16592_v38 = vcombine.high %v574_v30, %v578_v32  ;;  %v627_v21 = vld [vmem:[#allocation5 + $0xa28] sm:$0xff] }
 0x1a1   :  { %7611 = vmatprep.subr.bf16.mxu0 %v16536_v39  ;;  %8021 = vmatprep.subr.bf16.mxu1 %v16538_v43  ;;  %v582_v39 = vld [vmem:[#allocation5 + $0x8c0] sm:$0xff]  ;;  %v587_v43 = vld [vmem:[#allocation5 + $0x8e8] sm:$0xff] }
 0x1a2   :  { %v16602_v50 = vcombine.high %v583_v41, %v587_v43  ;;  %v16599_v52 = vcombine.low %v582_v39, %v586_v40 }
 0x1a4   :  { %7612 = vmatpush1.bf16.msra.mxu0 %v16535_v45  ;;  %8022 = vmatpush1.bf16.msra.mxu1 %v16537_v46  ;;  %v16593_v45 = vcombine.low %v575_v33, %v579_v34  ;;  %v16600_v46 = vcombine.high %v582_v39, %v586_v40  ;;  %v643_v40 = vld [vmem:[#allocation5 + $0xaa8] sm:$0xff] }
 0x1a5   :  { %7613 = vmatprep.subr.bf16.mxu0 %v16544_v47  ;;  %8023 = vmatprep.subr.bf16.mxu1 %v16546_v51  ;;  %v590_v47 = vld [vmem:[#allocation5 + $0x900] sm:$0xff]  ;;  %v595_v51 = vld [vmem:[#allocation5 + $0x928] sm:$0xff] }
 0x1a6   :  { %v16610_v59 = vcombine.high %v591_v49, %v595_v51  ;;  %v16607_v61 = vcombine.low %v590_v47, %v594_v48 }
 0x1a8   :  { %7614 = vmatpush1.bf16.msra.mxu0 %v16543_v53  ;;  %8024 = vmatpush1.bf16.msra.mxu1 %v16545_v54  ;;  %v16601_v53 = vcombine.low %v583_v41, %v587_v43  ;;  %v16608_v54 = vcombine.high %v590_v47, %v594_v48  ;;  %v651_v48 = vld [vmem:[#allocation5 + $0xae8] sm:$0xff] }
 0x1a9   :  { %7615 = vmatprep.subr.bf16.mxu0 %v16552_v55  ;;  %8025 = vmatprep.subr.bf16.mxu1 %v16554_v60  ;;  %v598_v55 = vld [vmem:[#allocation5 + $0x940] sm:$0xff]  ;;  %v603_v60 = vld [vmem:[#allocation5 + $0x968] sm:$0xff] }
 0x1aa   :  { %v16618_v3 = vcombine.high %v599_v57, %v603_v60  ;;  %v16615_v5 = vcombine.low %v598_v55, %v602_v56 }
 0x1ac   :  { %7616 = vmatpush1.bf16.msra.mxu0 %v16551_v62  ;;  %8026 = vmatpush1.bf16.msra.mxu1 %v16553_v63  ;;  %v16609_v62 = vcombine.low %v591_v49, %v595_v51  ;;  %v16616_v63 = vcombine.high %v598_v55, %v602_v56  ;;  %v659_v56 = vld [vmem:[#allocation5 + $0xb28] sm:$0xff] }
 0x1ad   :  { %7617 = vmatprep.subr.bf16.mxu0 %v16560_v0  ;;  %8027 = vmatprep.subr.bf16.mxu1 %v16562_v4  ;;  %v606_v0 = vld [vmem:[#allocation5 + $0x980] sm:$0xff]  ;;  %v611_v4 = vld [vmem:[#allocation5 + $0x9a8] sm:$0xff] }
 0x1ae   :  { %v16624_v7 = vcombine.high %v606_v0, %v610_v1  ;;  %v16626_v11 = vcombine.high %v607_v2, %v611_v4  ;;  %v16625_v15 = vcombine.low %v607_v2, %v611_v4 }
 0x1b0   :  { %7618 = vmatpush1.bf16.msra.mxu0 %v16559_v6  ;;  %8028 = vmatpush1.bf16.msra.mxu1 %v16561_v8  ;;  %v16617_v6 = vcombine.low %v599_v57, %v603_v60  ;;  %v614_v8 = vld [vmem:[#allocation5 + $0x9c0] sm:$0xff] }
 0x1b1   :  { %7619 = vmatprep.subr.bf16.mxu0 %v16568_v9  ;;  %8029 = vmatprep.subr.bf16.mxu1 %v16570_v14  ;;  %v618_v9 = vld [vmem:[#allocation5 + $0x9e0] sm:$0xff]  ;;  %v16623_v14 = vcombine.low %v606_v0, %v610_v1  ;;  %v667_v1 = vld [vmem:[#allocation5 + $0xb68] sm:$0xff] }
 0x1b2   :  { %v16631_v22 = vcombine.low %v614_v8, %v618_v9 }
 0x1b4   :  { %7620 = vmatpush1.bf16.msra.mxu0 %v16567_v16  ;;  %8030 = vmatpush1.bf16.msra.mxu1 %v16569_v18  ;;  %v16632_v16 = vcombine.high %v614_v8, %v618_v9  ;;  %v626_v18 = vld [vmem:[#allocation5 + $0xa20] sm:$0xff]  ;;  %v675_v9 = vld [vmem:[#allocation5 + $0xba8] sm:$0xff] }
 0x1b5   :  { %7630 = vmatprep.subr.bf16.mxu0 %v16576_v19  ;;  %8040 = vmatprep.subr.bf16.mxu1 %v16578_v23  ;;  %v623_v19 = vld [vmem:[#allocation5 + $0xa08] sm:$0xff]  ;;  %v16633_v23 = vcombine.low %v615_v10, %v619_v12  ;;  %v16640_v25 = vcombine.high %v622_v17, %v626_v18  ;;  %v16639_v32 = vcombine.low %v622_v17, %v626_v18 }
 0x1b6   :  { %v16642_v30 = vcombine.high %v623_v19, %v627_v21  ;;  %v16641_v33 = vcombine.low %v623_v19, %v627_v21  ;;  %v683_v18 = vld [vmem:[#allocation5 + $0xbe8] sm:$0xff] }
 0x1b7   :  { %7622 = vmatmul.mubr.bf16.vlgmr.msra.gmra.mrb[0].mxu0 %v20852_v26  ;;  %8032 = vmatmul.mubr.bf16.vlgmr.msra.gmra.mrb[0].mxu1 %v20852_v26 }
 0x1b8   :  { %7631 = vmatpush1.bf16.msra.mxu0 %v16575_v27  ;;  %8041 = vmatpush1.bf16.msra.mxu1 %v16577_v28  ;;  %v630_v27 = vld [vmem:[#allocation5 + $0xa40] sm:$0xff] }
 0x1b9   :  { %7632 = vmatprep.subr.bf16.mxu0 %v16584_v29  ;;  %8042 = vmatprep.subr.bf16.mxu1 %v16586_v31  ;;  %v634_v28 = vld [vmem:[#allocation5 + $0xa60] sm:$0xff]  ;;  %v631_v29 = vld [vmem:[#allocation5 + $0xa48] sm:$0xff] }
 0x1ba   :  { %7662 = vmatprep.mubr.bf16.mxu0 %v20854_v35  ;;  %8072 = vmatprep.mubr.bf16.mxu1 %v20854_v35  ;;  %v635_v31 = vld [vmem:[#allocation5 + $0xa68] sm:$0xff]  ;;  %v16648_v34 = vcombine.high %v630_v27, %v634_v28  ;;  %v16647_v41 = vcombine.low %v630_v27, %v634_v28 }
 0x1bb   :  { %v16650_v39 = vcombine.high %v631_v29, %v635_v31  ;;  %v691_v27 = vld [vmem:[#allocation5 + $0xc28] sm:$0xff] }
 0x1bc   :  { %7633 = vmatpush1.bf16.msra.mxu0 %v16583_v36  ;;  %8043 = vmatpush1.bf16.msra.mxu1 %v16585_v37  ;;  %v638_v36 = vld [vmem:[#allocation5 + $0xa80] sm:$0xff] }
 0x1bd   :  { %7634 = vmatprep.subr.bf16.mxu0 %v16592_v38  ;;  %8044 = vmatprep.subr.bf16.mxu1 %v16594_v42  ;;  %v642_v37 = vld [vmem:[#allocation5 + $0xaa0] sm:$0xff]  ;;  %v639_v38 = vld [vmem:[#allocation5 + $0xa88] sm:$0xff]  ;;  %v16649_v42 = vcombine.low %v631_v29, %v635_v31  ;;  %v268_v29 = vld [vmem:[%s21266_s12 + $0x20] sm:$0xff] }
 0x1be   :  { %v16656_v43 = vcombine.high %v638_v36, %v642_v37  ;;  %v16658_v47 = vcombine.high %v639_v38, %v643_v40  ;;  %v16655_v49 = vcombine.low %v638_v36, %v642_v37  ;;  %v694_v31 = vld [vmem:[#allocation5 + $0xc40] sm:$0xff]  ;;  %v695_v36 = vld [vmem:[#allocation5 + $0xc48] sm:$0xff] }
 0x1bf   :  { %v699_v37 = vld [vmem:[#allocation5 + $0xc68] sm:$0xff] }
 0x1c0   :  { %7635 = vmatpush1.bf16.msra.mxu0 %v16591_v44  ;;  %8045 = vmatpush1.bf16.msra.mxu1 %v16593_v45  ;;  %v646_v44 = vld [vmem:[#allocation5 + $0xac0] sm:$0xff] }
 0x1c1   :  { %7636 = vmatprep.subr.bf16.mxu0 %v16600_v46  ;;  %8046 = vmatprep.subr.bf16.mxu1 %v16602_v50  ;;  %v650_v45 = vld [vmem:[#allocation5 + $0xae0] sm:$0xff]  ;;  %v647_v46 = vld [vmem:[#allocation5 + $0xac8] sm:$0xff]  ;;  %v16657_v50 = vcombine.low %v639_v38, %v643_v40  ;;  %v20866_v40 = vpack.c.bf16 %v268_v29, %v268_v29 }
 0x1c2   :  { %v16664_v51 = vcombine.high %v646_v44, %v650_v45  ;;  %v16666_v55 = vcombine.high %v647_v46, %v651_v48  ;;  %v16663_v57 = vcombine.low %v646_v44, %v650_v45  ;;  %v702_v44 = vld [vmem:[#allocation5 + $0xc80] sm:$0xff]  ;;  %v16714_v45 = vcombine.high %v695_v36, %v699_v37  ;;  %v747_v29 = vld [vmem:[#allocation5 + $0xde8] sm:$0xff] }
 0x1c4   :  { %7637 = vmatpush1.bf16.msra.mxu0 %v16599_v52  ;;  %8047 = vmatpush1.bf16.msra.mxu1 %v16601_v53  ;;  %v654_v52 = vld [vmem:[#allocation5 + $0xb00] sm:$0xff] }
 0x1c5   :  { %7638 = vmatprep.subr.bf16.mxu0 %v16608_v54  ;;  %8048 = vmatprep.subr.bf16.mxu1 %v16610_v59  ;;  %v658_v53 = vld [vmem:[#allocation5 + $0xb20] sm:$0xff]  ;;  %v655_v54 = vld [vmem:[#allocation5 + $0xb08] sm:$0xff]  ;;  %v16665_v59 = vcombine.low %v647_v46, %v651_v48 }
 0x1c6   :  { %v16672_v60 = vcombine.high %v654_v52, %v658_v53  ;;  %v16674_v0 = vcombine.high %v655_v54, %v659_v56  ;;  %v16671_v2 = vcombine.low %v654_v52, %v658_v53  ;;  %v706_v46 = vld [vmem:[#allocation5 + $0xca0] sm:$0xff]  ;;  %v707_v48 = vld [vmem:[#allocation5 + $0xca8] sm:$0xff] }
 0x1c7   :  { %v16720_v52 = vcombine.high %v702_v44, %v706_v46  ;;  %v710_v53 = vld [vmem:[#allocation5 + $0xcc0] sm:$0xff] }
 0x1c8   :  { %7639 = vmatpush1.bf16.msra.mxu0 %v16607_v61  ;;  %8049 = vmatpush1.bf16.msra.mxu1 %v16609_v62  ;;  %v662_v61 = vld [vmem:[#allocation5 + $0xb40] sm:$0xff] }
 0x1c9   :  { %7640 = vmatprep.subr.bf16.mxu0 %v16616_v63  ;;  %8050 = vmatprep.subr.bf16.mxu1 %v16618_v3  ;;  %v666_v62 = vld [vmem:[#allocation5 + $0xb60] sm:$0xff]  ;;  %v663_v63 = vld [vmem:[#allocation5 + $0xb48] sm:$0xff]  ;;  %v16673_v3 = vcombine.low %v655_v54, %v659_v56 }
 0x1ca   :  { %v16680_v4 = vcombine.high %v662_v61, %v666_v62  ;;  %v16682_v8 = vcombine.high %v663_v63, %v667_v1  ;;  %v16679_v10 = vcombine.low %v662_v61, %v666_v62  ;;  %v714_v54 = vld [vmem:[#allocation5 + $0xce0] sm:$0xff] }
 0x1cb   :  { %v16728_v61 = vcombine.high %v710_v53, %v714_v54  ;;  %v718_v62 = vld [vmem:[#allocation5 + $0xd00] sm:$0xff] }
 0x1cc   :  { %7641 = vmatpush1.bf16.msra.mxu0 %v16615_v5  ;;  %8051 = vmatpush1.bf16.msra.mxu1 %v16617_v6  ;;  %v670_v5 = vld [vmem:[#allocation5 + $0xb80] sm:$0xff] }
 0x1cd   :  { %7642 = vmatprep.subr.bf16.mxu0 %v16624_v7  ;;  %8052 = vmatprep.subr.bf16.mxu1 %v16626_v11  ;;  %v674_v6 = vld [vmem:[#allocation5 + $0xba0] sm:$0xff]  ;;  %v671_v7 = vld [vmem:[#allocation5 + $0xb88] sm:$0xff]  ;;  %v16681_v11 = vcombine.low %v663_v63, %v667_v1 }
 0x1ce   :  { %v16688_v12 = vcombine.high %v670_v5, %v674_v6  ;;  %v16690_v17 = vcombine.high %v671_v7, %v675_v9  ;;  %v16687_v19 = vcombine.low %v670_v5, %v674_v6  ;;  %v16689_v21 = vcombine.low %v671_v7, %v675_v9  ;;  %v722_v63 = vld [vmem:[#allocation5 + $0xd20] sm:$0xff] }
 0x1cf   :  { %v16736_v5 = vcombine.high %v718_v62, %v722_v63  ;;  %v726_v6 = vld [vmem:[#allocation5 + $0xd40] sm:$0xff] }
 0x1d0   :  { %7643 = vmatpush1.bf16.msra.mxu0 %v16623_v14  ;;  %8053 = vmatpush1.bf16.msra.mxu1 %v16625_v15  ;;  %v678_v14 = vld [vmem:[#allocation5 + $0xbc0] sm:$0xff] }
 0x1d1   :  { %7644 = vmatprep.subr.bf16.mxu0 %v16632_v16  ;;  %8054 = vmatprep.subr.bf16.mxu1 %v16634_v20  ;;  %v682_v15 = vld [vmem:[#allocation5 + $0xbe0] sm:$0xff]  ;;  %v679_v16 = vld [vmem:[#allocation5 + $0xbc8] sm:$0xff] }
 0x1d2   :  { %v686_v20 = vld [vmem:[#allocation5 + $0xc00] sm:$0xff]  ;;  %v16698_v28 = vcombine.high %v679_v16, %v683_v18 }
 0x1d3   :  { %v730_v7 = vld [vmem:[#allocation5 + $0xd60] sm:$0xff] }
 0x1d4   :  { %7645 = vmatpush1.bf16.msra.mxu0 %v16631_v22  ;;  %8055 = vmatpush1.bf16.msra.mxu1 %v16633_v23  ;;  %v16696_v22 = vcombine.high %v678_v14, %v682_v15  ;;  %v690_v23 = vld [vmem:[#allocation5 + $0xc20] sm:$0xff] }
 0x1d5   :  { %7646 = vmatprep.subr.bf16.mxu0 %v16640_v25  ;;  %8056 = vmatprep.subr.bf16.mxu1 %v16642_v30  ;;  %v687_v25 = vld [vmem:[#allocation5 + $0xc08] sm:$0xff]  ;;  %v16695_v30 = vcombine.low %v678_v14, %v682_v15  ;;  %v16744_v14 = vcombine.high %v726_v6, %v730_v7  ;;  %v734_v15 = vld [vmem:[#allocation5 + $0xd80] sm:$0xff] }
 0x1d6   :  { %v16706_v38 = vcombine.high %v687_v25, %v691_v27 }
 0x1d8   :  { %7647 = vmatpush1.bf16.msra.mxu0 %v16639_v32  ;;  %8057 = vmatpush1.bf16.msra.mxu1 %v16641_v33  ;;  %v16697_v32 = vcombine.low %v679_v16, %v683_v18  ;;  %v16704_v33 = vcombine.high %v686_v20, %v690_v23  ;;  %v738_v16 = vld [vmem:[#allocation5 + $0xda0] sm:$0xff] }
 0x1d9   :  { %7648 = vmatprep.subr.bf16.mxu0 %v16648_v34  ;;  %8058 = vmatprep.subr.bf16.mxu1 %v16650_v39  ;;  %v698_v34 = vld [vmem:[#allocation5 + $0xc60] sm:$0xff]  ;;  %v271_v39 = vld [vmem:[%s21266_s12 + $0x38] sm:$0xff] }
 0x1dc   :  { %7649 = vmatpush1.bf16.msra.mxu0 %v16647_v41  ;;  %8059 = vmatpush1.bf16.msra.mxu1 %v16649_v42  ;;  %v16703_v41 = vcombine.low %v686_v20, %v690_v23  ;;  %v16705_v42 = vcombine.low %v687_v25, %v691_v27  ;;  %v16743_v20 = vcombine.low %v726_v6, %v730_v7  ;;  %v742_v23 = vld [vmem:[#allocation5 + $0xdc0] sm:$0xff]  ;;  %v743_v27 = vld [vmem:[#allocation5 + $0xdc8] sm:$0xff] }
 0x1dd   :  { %7650 = vmatprep.subr.bf16.mxu0 %v16656_v43  ;;  %8060 = vmatprep.subr.bf16.mxu1 %v16658_v47  ;;  %v16712_v43 = vcombine.high %v694_v31, %v698_v34  ;;  %v703_v47 = vld [vmem:[#allocation5 + $0xc88] sm:$0xff]  ;;  %v746_v25 = vld [vmem:[#allocation5 + $0xde0] sm:$0xff] }
 0x1de   :  { %v16722_v56 = vcombine.high %v703_v47, %v707_v48  ;;  %v786_v6 = vld [vmem:[#allocation5 + $0xf20] sm:$0xff]  ;;  %v783_v7 = vld [vmem:[#allocation5 + $0xf08] sm:$0xff] }
 0x1e0   :  { %7651 = vmatpush1.bf16.msra.mxu0 %v16655_v49  ;;  %8061 = vmatpush1.bf16.msra.mxu1 %v16657_v50  ;;  %v20868_v49 = vpack.c.bf16 %v271_v39, %v271_v39  ;;  %v16711_v50 = vcombine.low %v694_v31, %v698_v34  ;;  %v754_v34 = vld [vmem:[#allocation5 + $0xe20] sm:$0xff]  ;;  %v16759_v39 = vcombine.low %v742_v23, %v746_v25 }
 0x1e1   :  { %7652 = vmatprep.subr.bf16.mxu0 %v16664_v51  ;;  %8062 = vmatprep.subr.bf16.mxu1 %v16666_v55  ;;  %v16713_v51 = vcombine.low %v695_v36, %v699_v37  ;;  %v711_v55 = vld [vmem:[#allocation5 + $0xcc8] sm:$0xff]  ;;  %v16762_v37 = vcombine.high %v743_v27, %v747_v29 }
 0x1e2   :  { %v751_v36 = vld [vmem:[#allocation5 + $0xe08] sm:$0xff] }
 0x1e4   :  { %7653 = vmatpush1.bf16.msra.mxu0 %v16663_v57  ;;  %8063 = vmatpush1.bf16.msra.mxu1 %v16665_v59  ;;  %v715_v57 = vld [vmem:[#allocation5 + $0xce8] sm:$0xff]  ;;  %v16719_v59 = vcombine.low %v702_v44, %v706_v46  ;;  %v762_v44 = vld [vmem:[#allocation5 + $0xe60] sm:$0xff] }
 0x1e5   :  { %7654 = vmatprep.subr.bf16.mxu0 %v16672_v60  ;;  %8064 = vmatprep.subr.bf16.mxu1 %v16674_v0  ;;  %v16721_v60 = vcombine.low %v703_v47, %v707_v48  ;;  %v719_v0 = vld [vmem:[#allocation5 + $0xd08] sm:$0xff]  ;;  %v16730_v1 = vcombine.high %v711_v55, %v715_v57 }
 0x1e6   :  { %v763_v47 = vld [vmem:[#allocation5 + $0xe68] sm:$0xff] }
 0x1e8   :  { %7655 = vmatpush1.bf16.msra.mxu0 %v16671_v2  ;;  %8065 = vmatpush1.bf16.msra.mxu1 %v16673_v3  ;;  %v723_v2 = vld [vmem:[#allocation5 + $0xd28] sm:$0xff]  ;;  %v16727_v3 = vcombine.low %v710_v53, %v714_v54  ;;  %v770_v53 = vld [vmem:[#allocation5 + $0xea0] sm:$0xff] }
 0x1e9   :  { %7656 = vmatprep.subr.bf16.mxu0 %v16680_v4  ;;  %8066 = vmatprep.subr.bf16.mxu1 %v16682_v8  ;;  %v16729_v4 = vcombine.low %v711_v55, %v715_v57  ;;  %v727_v8 = vld [vmem:[#allocation5 + $0xd48] sm:$0xff]  ;;  %v16738_v9 = vcombine.high %v719_v0, %v723_v2 }
 0x1ea   :  { %v767_v54 = vld [vmem:[#allocation5 + $0xe88] sm:$0xff] }
 0x1ec   :  { %7657 = vmatpush1.bf16.msra.mxu0 %v16679_v10  ;;  %8067 = vmatpush1.bf16.msra.mxu1 %v16681_v11  ;;  %v731_v10 = vld [vmem:[#allocation5 + $0xd68] sm:$0xff]  ;;  %v16735_v11 = vcombine.low %v718_v62, %v722_v63  ;;  %v778_v62 = vld [vmem:[#allocation5 + $0xee0] sm:$0xff] }
 0x1ed   :  { %7658 = vmatprep.subr.bf16.mxu0 %v16688_v12  ;;  %8068 = vmatprep.subr.bf16.mxu1 %v16690_v17  ;;  %v16737_v12 = vcombine.low %v719_v0, %v723_v2  ;;  %v735_v17 = vld [vmem:[#allocation5 + $0xd88] sm:$0xff]  ;;  %v16746_v18 = vcombine.high %v727_v8, %v731_v10 }
 0x1ee   :  { %v775_v63 = vld [vmem:[#allocation5 + $0xec8] sm:$0xff] }
 0x1f0   :  { %7659 = vmatpush1.bf16.msra.mxu0 %v16687_v19  ;;  %8069 = vmatpush1.bf16.msra.mxu1 %v16689_v21  ;;  %v739_v19 = vld [vmem:[#allocation5 + $0xda8] sm:$0xff]  ;;  %v16745_v21 = vcombine.low %v727_v8, %v731_v10 }
 0x1f1   :  { %7660 = vmatprep.subr.bf16.mxu0 %v16696_v22  ;;  %8070 = vmatprep.subr.bf16.mxu1 %v16698_v28  ;;  %v16752_v22 = vcombine.high %v734_v15, %v738_v16  ;;  %v16754_v28 = vcombine.high %v735_v17, %v739_v19  ;;  %v16753_v31 = vcombine.low %v735_v17, %v739_v19 }
 0x1f4   :  { %7661 = vmatpush1.bf16.msra.mxu0 %v16695_v30  ;;  %8071 = vmatpush1.bf16.msra.mxu1 %v16697_v32  ;;  %v16751_v30 = vcombine.low %v734_v15, %v738_v16  ;;  %v16760_v32 = vcombine.high %v742_v23, %v746_v25  ;;  %v794_v15 = vld [vmem:[#allocation5 + $0xf60] sm:$0xff]  ;;  %v791_v16 = vld [vmem:[#allocation5 + $0xf48] sm:$0xff] }
 0x1f5   :  { %7671 = vmatprep.subr.bf16.mxu0 %v16704_v33  ;;  %8081 = vmatprep.subr.bf16.mxu1 %v16706_v38  ;;  %v750_v33 = vld [vmem:[#allocation5 + $0xe00] sm:$0xff]  ;;  %v755_v38 = vld [vmem:[#allocation5 + $0xe28] sm:$0xff] }
 0x1f6   :  { %v16770_v46 = vcombine.high %v751_v36, %v755_v38  ;;  %v16767_v48 = vcombine.low %v750_v33, %v754_v34  ;;  %v802_v23 = vld [vmem:[#allocation5 + $0xfa0] sm:$0xff]  ;;  %v799_v25 = vld [vmem:[#allocation5 + $0xf88] sm:$0xff] }
 0x1f7   :  { %7663 = vmatmul.mubr.bf16.vlgmr.msra.gmra.mrb[0].mxu0 %v20866_v40  ;;  %8073 = vmatmul.mubr.bf16.vlgmr.msra.gmra.mrb[0].mxu1 %v20866_v40 }
 0x1f8   :  { %7672 = vmatpush1.bf16.msra.mxu0 %v16703_v41  ;;  %8082 = vmatpush1.bf16.msra.mxu1 %v16705_v42  ;;  %v16761_v41 = vcombine.low %v743_v27, %v747_v29  ;;  %v16768_v42 = vcombine.high %v750_v33, %v754_v34  ;;  %v810_v33 = vld [vmem:[#allocation5 + $0xfe0] sm:$0xff]  ;;  %v807_v34 = vld [vmem:[#allocation5 + $0xfc8] sm:$0xff] }
 0x1f9   :  { %7673 = vmatprep.subr.bf16.mxu0 %v16712_v43  ;;  %8083 = vmatprep.subr.bf16.mxu1 %v16714_v45  ;;  %v758_v43 = vld [vmem:[#allocation5 + $0xe40] sm:$0xff]  ;;  %v759_v45 = vld [vmem:[#allocation5 + $0xe48] sm:$0xff] }
 0x1fa   :  { %7703 = vmatprep.mubr.bf16.mxu0 %v20868_v49  ;;  %8113 = vmatprep.mubr.bf16.mxu1 %v20868_v49  ;;  %v16778_v55 = vcombine.high %v759_v45, %v763_v47  ;;  %v16775_v57 = vcombine.low %v758_v43, %v762_v44 }
 0x1fc   :  { %7674 = vmatpush1.bf16.msra.mxu0 %v16711_v50  ;;  %8084 = vmatpush1.bf16.msra.mxu1 %v16713_v51  ;;  %v16769_v50 = vcombine.low %v751_v36, %v755_v38  ;;  %v16776_v51 = vcombine.high %v758_v43, %v762_v44  ;;  %v818_v43 = vld [vmem:[#allocation5 + $0x1020] sm:$0xff]  ;;  %v815_v44 = vld [vmem:[#allocation5 + $0x1008] sm:$0xff] }
 0x1fd   :  { %7675 = vmatprep.subr.bf16.mxu0 %v16720_v52  ;;  %8085 = vmatprep.subr.bf16.mxu1 %v16722_v56  ;;  %v766_v52 = vld [vmem:[#allocation5 + $0xe80] sm:$0xff]  ;;  %v771_v56 = vld [vmem:[#allocation5 + $0xea8] sm:$0xff] }
 0x1fe   :  { %v16786_v0 = vcombine.high %v767_v54, %v771_v56  ;;  %v16783_v2 = vcombine.low %v766_v52, %v770_v53 }
 0x200   :  { %7676 = vmatpush1.bf16.msra.mxu0 %v16719_v59  ;;  %8086 = vmatpush1.bf16.msra.mxu1 %v16721_v60  ;;  %v16777_v59 = vcombine.low %v759_v45, %v763_v47  ;;  %v16784_v60 = vcombine.high %v766_v52, %v770_v53  ;;  %v819_v45 = vld [vmem:[#allocation5 + $0x1028] sm:$0xff]  ;;  %v826_v53 = vld [vmem:[#allocation5 + $0x1060] sm:$0xff] }
 0x201   :  { %7677 = vmatprep.subr.bf16.mxu0 %v16728_v61  ;;  %8087 = vmatprep.subr.bf16.mxu1 %v16730_v1  ;;  %v774_v61 = vld [vmem:[#allocation5 + $0xec0] sm:$0xff]  ;;  %v779_v1 = vld [vmem:[#allocation5 + $0xee8] sm:$0xff] }
 0x202   :  { %v16794_v8 = vcombine.high %v775_v63, %v779_v1  ;;  %v16791_v10 = vcombine.low %v774_v61, %v778_v62  ;;  %v270_v47 = vld [vmem:[%s21266_s12 + $0x30] sm:$0xff] }
 0x204   :  { %7678 = vmatpush1.bf16.msra.mxu0 %v16727_v3  ;;  %8088 = vmatpush1.bf16.msra.mxu1 %v16729_v4  ;;  %v16785_v3 = vcombine.low %v767_v54, %v771_v56  ;;  %v16792_v4 = vcombine.high %v774_v61, %v778_v62  ;;  %v823_v54 = vld [vmem:[#allocation5 + $0x1048] sm:$0xff]  ;;  %v16834_v56 = vcombine.high %v815_v44, %v819_v45 }
 0x205   :  { %7679 = vmatprep.subr.bf16.mxu0 %v16736_v5  ;;  %8089 = vmatprep.subr.bf16.mxu1 %v16738_v9  ;;  %v782_v5 = vld [vmem:[#allocation5 + $0xf00] sm:$0xff]  ;;  %v787_v9 = vld [vmem:[#allocation5 + $0xf28] sm:$0xff]  ;;  %v16833_v61 = vcombine.low %v815_v44, %v819_v45 }
 0x206   :  { %v16802_v17 = vcombine.high %v783_v7, %v787_v9  ;;  %v16799_v19 = vcombine.low %v782_v5, %v786_v6  ;;  %v870_v45 = vld [vmem:[#allocation5 + $0x11c0] sm:$0xff] }
 0x208   :  { %7680 = vmatpush1.bf16.msra.mxu0 %v16735_v11  ;;  %8090 = vmatpush1.bf16.msra.mxu1 %v16737_v12  ;;  %v16793_v11 = vcombine.low %v775_v63, %v779_v1  ;;  %v16800_v12 = vcombine.high %v782_v5, %v786_v6  ;;  %v830_v63 = vld [vmem:[#allocation5 + $0x1080] sm:$0xff] }
 0x209   :  { %7681 = vmatprep.subr.bf16.mxu0 %v16744_v14  ;;  %8091 = vmatprep.subr.bf16.mxu1 %v16746_v18  ;;  %v790_v14 = vld [vmem:[#allocation5 + $0xf40] sm:$0xff]  ;;  %v795_v18 = vld [vmem:[#allocation5 + $0xf68] sm:$0xff] }
 0x20a   :  { %v16810_v27 = vcombine.high %v791_v16, %v795_v18  ;;  %v16807_v29 = vcombine.low %v790_v14, %v794_v15  ;;  %v834_v1 = vld [vmem:[#allocation5 + $0x10a0] sm:$0xff] }
 0x20c   :  { %7682 = vmatpush1.bf16.msra.mxu0 %v16743_v20  ;;  %8092 = vmatpush1.bf16.msra.mxu1 %v16745_v21  ;;  %v16801_v20 = vcombine.low %v783_v7, %v787_v9  ;;  %v16808_v21 = vcombine.high %v790_v14, %v794_v15  ;;  %v16848_v7 = vcombine.high %v830_v63, %v834_v1  ;;  %v842_v9 = vld [vmem:[#allocation5 + $0x10e0] sm:$0xff] }
 0x20d   :  { %7683 = vmatprep.subr.bf16.mxu0 %v16752_v22  ;;  %8093 = vmatprep.subr.bf16.mxu1 %v16754_v28  ;;  %v798_v22 = vld [vmem:[#allocation5 + $0xf80] sm:$0xff]  ;;  %v803_v28 = vld [vmem:[#allocation5 + $0xfa8] sm:$0xff]  ;;  %v16847_v14 = vcombine.low %v830_v63, %v834_v1 }
 0x20e   :  { %v16818_v36 = vcombine.high %v799_v25, %v803_v28  ;;  %v16815_v38 = vcombine.low %v798_v22, %v802_v23  ;;  %v890_v1 = vld [vmem:[#allocation5 + $0x1260] sm:$0xff] }
 0x210   :  { %7684 = vmatpush1.bf16.msra.mxu0 %v16751_v30  ;;  %8094 = vmatpush1.bf16.msra.mxu1 %v16753_v31  ;;  %v16809_v30 = vcombine.low %v791_v16, %v795_v18  ;;  %v16816_v31 = vcombine.high %v798_v22, %v802_v23  ;;  %v850_v18 = vld [vmem:[#allocation5 + $0x1120] sm:$0xff] }
 0x211   :  { %7685 = vmatprep.subr.bf16.mxu0 %v16760_v32  ;;  %8095 = vmatprep.subr.bf16.mxu1 %v16762_v37  ;;  %v806_v32 = vld [vmem:[#allocation5 + $0xfc0] sm:$0xff]  ;;  %v811_v37 = vld [vmem:[#allocation5 + $0xfe8] sm:$0xff] }
 0x214   :  { %7686 = vmatpush1.bf16.msra.mxu0 %v16759_v39  ;;  %8096 = vmatpush1.bf16.msra.mxu1 %v16761_v41  ;;  %v814_v39 = vld [vmem:[#allocation5 + $0x1000] sm:$0xff]  ;;  %v16817_v41 = vcombine.low %v799_v25, %v803_v28 }
 0x215   :  { %7687 = vmatprep.subr.bf16.mxu0 %v16768_v42  ;;  %8097 = vmatprep.subr.bf16.mxu1 %v16770_v46  ;;  %v16824_v42 = vcombine.high %v806_v32, %v810_v33  ;;  %v16826_v46 = vcombine.high %v807_v34, %v811_v37  ;;  %v16832_v52 = vcombine.high %v814_v39, %v818_v43  ;;  %v858_v28 = vld [vmem:[#allocation5 + $0x1160] sm:$0xff] }
 0x218   :  { %7688 = vmatpush1.bf16.msra.mxu0 %v16767_v48  ;;  %8098 = vmatpush1.bf16.msra.mxu1 %v16769_v50  ;;  %v16823_v48 = vcombine.low %v806_v32, %v810_v33  ;;  %v822_v50 = vld [vmem:[#allocation5 + $0x1040] sm:$0xff] }
 0x219   :  { %7689 = vmatprep.subr.bf16.mxu0 %v16776_v51  ;;  %8099 = vmatprep.subr.bf16.mxu1 %v16778_v55  ;;  %v16825_v51 = vcombine.low %v807_v34, %v811_v37  ;;  %v827_v55 = vld [vmem:[#allocation5 + $0x1068] sm:$0xff]  ;;  %v16840_v62 = vcombine.high %v822_v50, %v826_v53  ;;  %v16839_v5 = vcombine.low %v822_v50, %v826_v53  ;;  %v866_v37 = vld [vmem:[#allocation5 + $0x11a0] sm:$0xff] }
 0x21a   :  { %v16841_v6 = vcombine.low %v823_v54, %v827_v55  ;;  %v875_v50 = vld [vmem:[#allocation5 + $0x11e8] sm:$0xff] }
 0x21c   :  { %7690 = vmatpush1.bf16.msra.mxu0 %v16775_v57  ;;  %8100 = vmatpush1.bf16.msra.mxu1 %v16777_v59  ;;  %v273_v57 = vld [vmem:[%s21266_s12 + $0x48] sm:$0xff]  ;;  %v20880_v59 = vpack.c.bf16 %v270_v47, %v270_v47  ;;  %v871_v47 = vld [vmem:[#allocation5 + $0x11c8] sm:$0xff] }
 0x21d   :  { %7691 = vmatprep.subr.bf16.mxu0 %v16784_v60  ;;  %8101 = vmatprep.subr.bf16.mxu1 %v16786_v0  ;;  %v16831_v60 = vcombine.low %v814_v39, %v818_v43  ;;  %v16842_v0 = vcombine.high %v823_v54, %v827_v55  ;;  %v878_v54 = vld [vmem:[#allocation5 + $0x1200] sm:$0xff] }
 0x21e   :  { %v882_v55 = vld [vmem:[#allocation5 + $0x1220] sm:$0xff] }
 0x21f   :  { %v16896_v63 = vcombine.high %v878_v54, %v882_v55 }
 0x220   :  { %7692 = vmatpush1.bf16.msra.mxu0 %v16783_v2  ;;  %8102 = vmatpush1.bf16.msra.mxu1 %v16785_v3  ;;  %v831_v2 = vld [vmem:[#allocation5 + $0x1088] sm:$0xff] }
 0x221   :  { %7693 = vmatprep.subr.bf16.mxu0 %v16792_v4  ;;  %8103 = vmatprep.subr.bf16.mxu1 %v16794_v8  ;;  %v835_v3 = vld [vmem:[#allocation5 + $0x10a8] sm:$0xff]  ;;  %v20882_v4 = vpack.c.bf16 %v273_v57, %v273_v57  ;;  %v838_v8 = vld [vmem:[#allocation5 + $0x10c0] sm:$0xff]  ;;  %v16890_v57 = vcombine.high %v871_v47, %v875_v50 }
 0x222   :  { %v16849_v15 = vcombine.low %v831_v2, %v835_v3  ;;  %v16856_v16 = vcombine.high %v838_v8, %v842_v9  ;;  %v16855_v22 = vcombine.low %v838_v8, %v842_v9  ;;  %v894_v9 = vld [vmem:[#allocation5 + $0x1280] sm:$0xff] }
 0x224   :  { %7694 = vmatpush1.bf16.msra.mxu0 %v16791_v10  ;;  %8104 = vmatpush1.bf16.msra.mxu1 %v16793_v11  ;;  %v839_v10 = vld [vmem:[#allocation5 + $0x10c8] sm:$0xff]  ;;  %v16850_v11 = vcombine.high %v831_v2, %v835_v3 }
 0x225   :  { %7695 = vmatprep.subr.bf16.mxu0 %v16800_v12  ;;  %8105 = vmatprep.subr.bf16.mxu1 %v16802_v17  ;;  %v843_v12 = vld [vmem:[#allocation5 + $0x10e8] sm:$0xff]  ;;  %v846_v17 = vld [vmem:[#allocation5 + $0x1100] sm:$0xff] }
 0x226   :  { %v16857_v23 = vcombine.low %v839_v10, %v843_v12  ;;  %v16864_v25 = vcombine.high %v846_v17, %v850_v18  ;;  %v16863_v32 = vcombine.low %v846_v17, %v850_v18  ;;  %v887_v2 = vld [vmem:[#allocation5 + $0x1248] sm:$0xff]  ;;  %v902_v18 = vld [vmem:[#allocation5 + $0x12c0] sm:$0xff] }
 0x228   :  { %7696 = vmatpush1.bf16.msra.mxu0 %v16799_v19  ;;  %8106 = vmatpush1.bf16.msra.mxu1 %v16801_v20  ;;  %v847_v19 = vld [vmem:[#allocation5 + $0x1108] sm:$0xff]  ;;  %v16858_v20 = vcombine.high %v839_v10, %v843_v12  ;;  %v898_v10 = vld [vmem:[#allocation5 + $0x12a0] sm:$0xff] }
 0x229   :  { %7697 = vmatprep.subr.bf16.mxu0 %v16808_v21  ;;  %8107 = vmatprep.subr.bf16.mxu1 %v16810_v27  ;;  %v851_v21 = vld [vmem:[#allocation5 + $0x1128] sm:$0xff]  ;;  %v854_v27 = vld [vmem:[#allocation5 + $0x1140] sm:$0xff]  ;;  %v16912_v17 = vcombine.high %v894_v9, %v898_v10 }
 0x22a   :  { %v16865_v33 = vcombine.low %v847_v19, %v851_v21  ;;  %v16872_v34 = vcombine.high %v854_v27, %v858_v28 }
 0x22c   :  { %7698 = vmatpush1.bf16.msra.mxu0 %v16807_v29  ;;  %8108 = vmatpush1.bf16.msra.mxu1 %v16809_v30  ;;  %v855_v29 = vld [vmem:[#allocation5 + $0x1148] sm:$0xff]  ;;  %v16866_v30 = vcombine.high %v847_v19, %v851_v21  ;;  %v906_v19 = vld [vmem:[#allocation5 + $0x12e0] sm:$0xff] }
 0x22d   :  { %7699 = vmatprep.subr.bf16.mxu0 %v16816_v31  ;;  %8109 = vmatprep.subr.bf16.mxu1 %v16818_v36  ;;  %v859_v31 = vld [vmem:[#allocation5 + $0x1168] sm:$0xff]  ;;  %v862_v36 = vld [vmem:[#allocation5 + $0x1180] sm:$0xff] }
 0x22e   :  { %v16874_v39 = vcombine.high %v855_v29, %v859_v31  ;;  %v16873_v43 = vcombine.low %v855_v29, %v859_v31  ;;  %v16880_v44 = vcombine.high %v862_v36, %v866_v37  ;;  %v914_v29 = vld [vmem:[#allocation5 + $0x1320] sm:$0xff] }
 0x230   :  { %7700 = vmatpush1.bf16.msra.mxu0 %v16815_v38  ;;  %8110 = vmatpush1.bf16.msra.mxu1 %v16817_v41  ;;  %v863_v38 = vld [vmem:[#allocation5 + $0x1188] sm:$0xff] }
 0x231   :  { %7701 = vmatprep.subr.bf16.mxu0 %v16824_v42  ;;  %8111 = vmatprep.subr.bf16.mxu1 %v16826_v46  ;;  %v867_v41 = vld [vmem:[#allocation5 + $0x11a8] sm:$0xff]  ;;  %v16871_v42 = vcombine.low %v854_v27, %v858_v28  ;;  %v874_v46 = vld [vmem:[#allocation5 + $0x11e0] sm:$0xff]  ;;  %v16920_v27 = vcombine.high %v902_v18, %v906_v19 }
 0x232   :  { %v16888_v53 = vcombine.high %v870_v45, %v874_v46  ;;  %v910_v28 = vld [vmem:[#allocation5 + $0x1300] sm:$0xff] }
 0x234   :  { %7702 = vmatpush1.bf16.msra.mxu0 %v16823_v48  ;;  %8112 = vmatpush1.bf16.msra.mxu1 %v16825_v51  ;;  %v16882_v48 = vcombine.high %v863_v38, %v867_v41  ;;  %v16879_v51 = vcombine.low %v862_v36, %v866_v37  ;;  %v16928_v36 = vcombine.high %v910_v28, %v914_v29  ;;  %v918_v37 = vld [vmem:[#allocation5 + $0x1340] sm:$0xff] }
 0x235   :  { %7712 = vmatprep.subr.bf16.mxu0 %v16832_v52  ;;  %8122 = vmatprep.subr.bf16.mxu1 %v16834_v56  ;;  %v16881_v52 = vcombine.low %v863_v38, %v867_v41  ;;  %v879_v56 = vld [vmem:[#allocation5 + $0x1208] sm:$0xff]  ;;  %v922_v38 = vld [vmem:[#allocation5 + $0x1360] sm:$0xff] }
 0x237   :  { %7704 = vmatmul.mubr.bf16.vlgmr.msra.gmra.mrb[0].mxu0 %v20880_v59  ;;  %8114 = vmatmul.mubr.bf16.vlgmr.msra.gmra.mrb[0].mxu1 %v20880_v59 }
 0x238   :  { %7713 = vmatpush1.bf16.msra.mxu0 %v16831_v60  ;;  %8123 = vmatpush1.bf16.msra.mxu1 %v16833_v61  ;;  %v883_v60 = vld [vmem:[#allocation5 + $0x1228] sm:$0xff]  ;;  %v16887_v61 = vcombine.low %v870_v45, %v874_v46  ;;  %v16936_v45 = vcombine.high %v918_v37, %v922_v38  ;;  %v926_v46 = vld [vmem:[#allocation5 + $0x1380] sm:$0xff] }
 0x239   :  { %7714 = vmatprep.subr.bf16.mxu0 %v16840_v62  ;;  %8124 = vmatprep.subr.bf16.mxu1 %v16842_v0  ;;  %v16889_v62 = vcombine.low %v871_v47, %v875_v50  ;;  %v886_v0 = vld [vmem:[#allocation5 + $0x1240] sm:$0xff]  ;;  %v16898_v3 = vcombine.high %v879_v56, %v883_v60 }
 0x23a   :  { %7744 = vmatprep.mubr.bf16.mxu0 %v20882_v4  ;;  %8154 = vmatprep.mubr.bf16.mxu1 %v20882_v4  ;;  %v16904_v8 = vcombine.high %v886_v0, %v890_v1  ;;  %v930_v47 = vld [vmem:[#allocation5 + $0x13a0] sm:$0xff] }
 0x23c   :  { %7715 = vmatpush1.bf16.msra.mxu0 %v16839_v5  ;;  %8125 = vmatpush1.bf16.msra.mxu1 %v16841_v6  ;;  %v891_v5 = vld [vmem:[#allocation5 + $0x1268] sm:$0xff]  ;;  %v16895_v6 = vcombine.low %v878_v54, %v882_v55  ;;  %v16944_v54 = vcombine.high %v926_v46, %v930_v47  ;;  %v934_v55 = vld [vmem:[#allocation5 + $0x13c0] sm:$0xff] }
 0x23d   :  { %7716 = vmatprep.subr.bf16.mxu0 %v16848_v7  ;;  %8126 = vmatprep.subr.bf16.mxu1 %v16850_v11  ;;  %v16897_v7 = vcombine.low %v879_v56, %v883_v60  ;;  %v895_v11 = vld [vmem:[#allocation5 + $0x1288] sm:$0xff]  ;;  %v16906_v12 = vcombine.high %v887_v2, %v891_v5  ;;  %v938_v56 = vld [vmem:[#allocation5 + $0x13e0] sm:$0xff] }
 0x240   :  { %7717 = vmatpush1.bf16.msra.mxu0 %v16847_v14  ;;  %8127 = vmatpush1.bf16.msra.mxu1 %v16849_v15  ;;  %v899_v14 = vld [vmem:[#allocation5 + $0x12a8] sm:$0xff]  ;;  %v16903_v15 = vcombine.low %v886_v0, %v890_v1  ;;  %v16952_v1 = vcombine.high %v934_v55, %v938_v56 }
 0x241   :  { %7718 = vmatprep.subr.bf16.mxu0 %v16856_v16  ;;  %8128 = vmatprep.subr.bf16.mxu1 %v16858_v20  ;;  %v16905_v16 = vcombine.low %v887_v2, %v891_v5  ;;  %v903_v20 = vld [vmem:[#allocation5 + $0x12c8] sm:$0xff]  ;;  %v16914_v21 = vcombine.high %v895_v11, %v899_v14  ;;  %v946_v2 = vld [vmem:[#allocation5 + $0x1420] sm:$0xff] }
 0x242   :  { %v947_v5 = vld [vmem:[#allocation5 + $0x1428] sm:$0xff] }
 0x244   :  { %7719 = vmatpush1.bf16.msra.mxu0 %v16855_v22  ;;  %8129 = vmatpush1.bf16.msra.mxu1 %v16857_v23  ;;  %v907_v22 = vld [vmem:[#allocation5 + $0x12e8] sm:$0xff]  ;;  %v16911_v23 = vcombine.low %v894_v9, %v898_v10  ;;  %v950_v9 = vld [vmem:[#allocation5 + $0x1440] sm:$0xff] }
 0x245   :  { %7720 = vmatprep.subr.bf16.mxu0 %v16864_v25  ;;  %8130 = vmatprep.subr.bf16.mxu1 %v16866_v30  ;;  %v16913_v25 = vcombine.low %v895_v11, %v899_v14  ;;  %v911_v30 = vld [vmem:[#allocation5 + $0x1308] sm:$0xff]  ;;  %v16922_v31 = vcombine.high %v903_v20, %v907_v22 }
 0x246   :  { %v951_v14 = vld [vmem:[#allocation5 + $0x1448] sm:$0xff] }
 0x248   :  { %7721 = vmatpush1.bf16.msra.mxu0 %v16863_v32  ;;  %8131 = vmatpush1.bf16.msra.mxu1 %v16865_v33  ;;  %v915_v32 = vld [vmem:[#allocation5 + $0x1328] sm:$0xff]  ;;  %v16919_v33 = vcombine.low %v902_v18, %v906_v19 }
 0x249   :  { %7722 = vmatprep.subr.bf16.mxu0 %v16872_v34  ;;  %8132 = vmatprep.subr.bf16.mxu1 %v16874_v39  ;;  %v16921_v34 = vcombine.low %v903_v20, %v907_v22  ;;  %v919_v39 = vld [vmem:[#allocation5 + $0x1348] sm:$0xff]  ;;  %v16930_v41 = vcombine.high %v911_v30, %v915_v32  ;;  %v958_v22 = vld [vmem:[#allocation5 + $0x1480] sm:$0xff] }
 0x24c   :  { %7723 = vmatpush1.bf16.msra.mxu0 %v16871_v42  ;;  %8133 = vmatpush1.bf16.msra.mxu1 %v16873_v43  ;;  %v923_v42 = vld [vmem:[#allocation5 + $0x1368] sm:$0xff]  ;;  %v16927_v43 = vcombine.low %v910_v28, %v914_v29 }
 0x24d   :  { %7724 = vmatprep.subr.bf16.mxu0 %v16880_v44  ;;  %8134 = vmatprep.subr.bf16.mxu1 %v16882_v48  ;;  %v16929_v44 = vcombine.low %v911_v30, %v915_v32  ;;  %v927_v48 = vld [vmem:[#allocation5 + $0x1388] sm:$0xff]  ;;  %v16938_v50 = vcombine.high %v919_v39, %v923_v42 }
 0x24e   :  { %v963_v28 = vld [vmem:[#allocation5 + $0x14a8] sm:$0xff] }
 0x250   :  { %7725 = vmatpush1.bf16.msra.mxu0 %v16879_v51  ;;  %8135 = vmatpush1.bf16.msra.mxu1 %v16881_v52  ;;  %v931_v51 = vld [vmem:[#allocation5 + $0x13a8] sm:$0xff]  ;;  %v16935_v52 = vcombine.low %v918_v37, %v922_v38 }
 0x251   :  { %7726 = vmatprep.subr.bf16.mxu0 %v16888_v53  ;;  %8136 = vmatprep.subr.bf16.mxu1 %v16890_v57  ;;  %v16937_v53 = vcombine.low %v919_v39, %v923_v42  ;;  %v935_v57 = vld [vmem:[#allocation5 + $0x13c8] sm:$0xff]  ;;  %v16946_v60 = vcombine.high %v927_v48, %v931_v51  ;;  %v16945_v0 = vcombine.low %v927_v48, %v931_v51 }
 0x252   :  { %v971_v38 = vld [vmem:[#allocation5 + $0x14e8] sm:$0xff] }
 0x254   :  { %7727 = vmatpush1.bf16.msra.mxu0 %v16887_v61  ;;  %8137 = vmatpush1.bf16.msra.mxu1 %v16889_v62  ;;  %v939_v61 = vld [vmem:[#allocation5 + $0x13e8] sm:$0xff]  ;;  %v16943_v62 = vcombine.low %v926_v46, %v930_v47 }
 0x255   :  { %7728 = vmatprep.subr.bf16.mxu0 %v16896_v63  ;;  %8138 = vmatprep.subr.bf16.mxu1 %v16898_v3  ;;  %v942_v63 = vld [vmem:[#allocation5 + $0x1400] sm:$0xff]  ;;  %v943_v3 = vld [vmem:[#allocation5 + $0x1408] sm:$0xff]  ;;  %v16953_v10 = vcombine.low %v935_v57, %v939_v61 }
 0x256   :  { %v16960_v11 = vcombine.high %v942_v63, %v946_v2  ;;  %v16959_v19 = vcombine.low %v942_v63, %v946_v2  ;;  %v16961_v20 = vcombine.low %v943_v3, %v947_v5  ;;  %v979_v47 = vld [vmem:[#allocation5 + $0x1528] sm:$0xff]  ;;  %v994_v63 = vld [vmem:[#allocation5 + $0x15a0] sm:$0xff] }
 0x257   :  { %v995_v2 = vld [vmem:[#allocation5 + $0x15a8] sm:$0xff] }
 0x258   :  { %7729 = vmatpush1.bf16.msra.mxu0 %v16895_v6  ;;  %8139 = vmatpush1.bf16.msra.mxu1 %v16897_v7  ;;  %v16954_v6 = vcombine.high %v935_v57, %v939_v61  ;;  %v272_v7 = vld [vmem:[%s21266_s12 + $0x40] sm:$0xff] }
 0x259   :  { %7730 = vmatprep.subr.bf16.mxu0 %v16904_v8  ;;  %8140 = vmatprep.subr.bf16.mxu1 %v16906_v12  ;;  %v16951_v8 = vcombine.low %v934_v55, %v938_v56  ;;  %v954_v12 = vld [vmem:[#allocation5 + $0x1460] sm:$0xff]  ;;  %v20894_v18 = vpack.c.bf16 %v272_v7, %v272_v7  ;;  %v987_v56 = vld [vmem:[#allocation5 + $0x1568] sm:$0xff] }
 0x25a   :  { %v16967_v30 = vcombine.low %v950_v9, %v954_v12  ;;  %v998_v7 = vld [vmem:[#allocation5 + $0x15c0] sm:$0xff] }
 0x25c   :  { %7731 = vmatpush1.bf16.msra.mxu0 %v16903_v15  ;;  %8141 = vmatpush1.bf16.msra.mxu1 %v16905_v16  ;;  %v955_v15 = vld [vmem:[#allocation5 + $0x1468] sm:$0xff]  ;;  %v16962_v16 = vcombine.high %v943_v3, %v947_v5 }
 0x25d   :  { %7732 = vmatprep.subr.bf16.mxu0 %v16912_v17  ;;  %8142 = vmatprep.subr.bf16.mxu1 %v16914_v21  ;;  %v275_v17 = vld [vmem:[%s21266_s12 + $0x58] sm:$0xff]  ;;  %v16968_v21 = vcombine.high %v950_v9, %v954_v12 }
 0x25e   :  { %v20896_v29 = vpack.c.bf16 %v275_v17, %v275_v17  ;;  %v999_v9 = vld [vmem:[#allocation5 + $0x15c8] sm:$0xff]  ;;  %v1010_v17 = vld [vmem:[#allocation5 + $0x1620] sm:$0xff] }
 0x260   :  { %7733 = vmatpush1.bf16.msra.mxu0 %v16911_v23  ;;  %8143 = vmatpush1.bf16.msra.mxu1 %v16913_v25  ;;  %v16970_v23 = vcombine.high %v951_v14, %v955_v15  ;;  %v962_v25 = vld [vmem:[#allocation5 + $0x14a0] sm:$0xff] }
 0x261   :  { %7734 = vmatprep.subr.bf16.mxu0 %v16920_v27  ;;  %8144 = vmatprep.subr.bf16.mxu1 %v16922_v31  ;;  %v959_v27 = vld [vmem:[#allocation5 + $0x1488] sm:$0xff]  ;;  %v16969_v31 = vcombine.low %v951_v14, %v955_v15  ;;  %v16976_v32 = vcombine.high %v958_v22, %v962_v25  ;;  %v16975_v39 = vcombine.low %v958_v22, %v962_v25 }
 0x262   :  { %v16978_v37 = vcombine.high %v959_v27, %v963_v28 }
 0x264   :  { %7735 = vmatpush1.bf16.msra.mxu0 %v16919_v33  ;;  %8145 = vmatpush1.bf16.msra.mxu1 %v16921_v34  ;;  %v966_v33 = vld [vmem:[#allocation5 + $0x14c0] sm:$0xff] }
 0x265   :  { %7736 = vmatprep.subr.bf16.mxu0 %v16928_v36  ;;  %8146 = vmatprep.subr.bf16.mxu1 %v16930_v41  ;;  %v970_v34 = vld [vmem:[#allocation5 + $0x14e0] sm:$0xff]  ;;  %v967_v36 = vld [vmem:[#allocation5 + $0x14c8] sm:$0xff]  ;;  %v16977_v41 = vcombine.low %v959_v27, %v963_v28 }
 0x266   :  { %v16984_v42 = vcombine.high %v966_v33, %v970_v34  ;;  %v16986_v46 = vcombine.high %v967_v36, %v971_v38  ;;  %v16983_v48 = vcombine.low %v966_v33, %v970_v34  ;;  %v1014_v27 = vld [vmem:[#allocation5 + $0x1640] sm:$0xff] }
 0x267   :  { %v1018_v28 = vld [vmem:[#allocation5 + $0x1660] sm:$0xff] }
 0x268   :  { %7737 = vmatpush1.bf16.msra.mxu0 %v16927_v43  ;;  %8147 = vmatpush1.bf16.msra.mxu1 %v16929_v44  ;;  %v974_v43 = vld [vmem:[#allocation5 + $0x1500] sm:$0xff] }
 0x269   :  { %7738 = vmatprep.subr.bf16.mxu0 %v16936_v45  ;;  %8148 = vmatprep.subr.bf16.mxu1 %v16938_v50  ;;  %v978_v44 = vld [vmem:[#allocation5 + $0x1520] sm:$0xff]  ;;  %v975_v45 = vld [vmem:[#allocation5 + $0x1508] sm:$0xff]  ;;  %v16985_v50 = vcombine.low %v967_v36, %v971_v38  ;;  %v17032_v36 = vcombine.high %v1014_v27, %v1018_v28 }
 0x26a   :  { %v16992_v51 = vcombine.high %v974_v43, %v978_v44  ;;  %v16994_v55 = vcombine.high %v975_v45, %v979_v47  ;;  %v16991_v57 = vcombine.low %v974_v43, %v978_v44  ;;  %v1026_v38 = vld [vmem:[#allocation5 + $0x16a0] sm:$0xff]  ;;  %v17031_v43 = vcombine.low %v1014_v27, %v1018_v28 }
 0x26b   :  { %v1070_v28 = vld [vmem:[#allocation5 + $0x1800] sm:$0xff] }
 0x26c   :  { %7739 = vmatpush1.bf16.msra.mxu0 %v16935_v52  ;;  %8149 = vmatpush1.bf16.msra.mxu1 %v16937_v53  ;;  %v982_v52 = vld [vmem:[#allocation5 + $0x1540] sm:$0xff] }
 0x26d   :  { %7740 = vmatprep.subr.bf16.mxu0 %v16944_v54  ;;  %8150 = vmatprep.subr.bf16.mxu1 %v16946_v60  ;;  %v986_v53 = vld [vmem:[#allocation5 + $0x1560] sm:$0xff]  ;;  %v983_v54 = vld [vmem:[#allocation5 + $0x1548] sm:$0xff]  ;;  %v16993_v60 = vcombine.low %v975_v45, %v979_v47 }
 0x26e   :  { %v17000_v61 = vcombine.high %v982_v52, %v986_v53  ;;  %v16999_v3 = vcombine.low %v982_v52, %v986_v53  ;;  %v17001_v5 = vcombine.low %v983_v54, %v987_v56  ;;  %v1034_v47 = vld [vmem:[#allocation5 + $0x16e0] sm:$0xff] }
 0x270   :  { %7741 = vmatpush1.bf16.msra.mxu0 %v16943_v62  ;;  %8151 = vmatpush1.bf16.msra.mxu1 %v16945_v0  ;;  %v990_v62 = vld [vmem:[#allocation5 + $0x1580] sm:$0xff]  ;;  %v991_v0 = vld [vmem:[#allocation5 + $0x1588] sm:$0xff] }
 0x271   :  { %7742 = vmatprep.subr.bf16.mxu0 %v16952_v1  ;;  %8152 = vmatprep.subr.bf16.mxu1 %v16954_v6  ;;  %v17002_v1 = vcombine.high %v983_v54, %v987_v56  ;;  %v17008_v6 = vcombine.high %v990_v62, %v994_v63  ;;  %v17007_v12 = vcombine.low %v990_v62, %v994_v63  ;;  %v1042_v56 = vld [vmem:[#allocation5 + $0x1720] sm:$0xff] }
 0x272   :  { %v17009_v14 = vcombine.low %v991_v0, %v995_v2 }
 0x274   :  { %7743 = vmatpush1.bf16.msra.mxu0 %v16951_v8  ;;  %8153 = vmatpush1.bf16.msra.mxu1 %v16953_v10  ;;  %v1002_v8 = vld [vmem:[#allocation5 + $0x15e0] sm:$0xff]  ;;  %v17010_v10 = vcombine.high %v991_v0, %v995_v2 }
 0x275   :  { %7753 = vmatprep.subr.bf16.mxu0 %v16960_v11  ;;  %8163 = vmatprep.subr.bf16.mxu1 %v16962_v16  ;;  %v1003_v11 = vld [vmem:[#allocation5 + $0x15e8] sm:$0xff]  ;;  %v17016_v15 = vcombine.high %v998_v7, %v1002_v8  ;;  %v1006_v16 = vld [vmem:[#allocation5 + $0x1600] sm:$0xff]  ;;  %v17015_v22 = vcombine.low %v998_v7, %v1002_v8 }
 0x276   :  { %v17024_v25 = vcombine.high %v1006_v16, %v1010_v17  ;;  %v17023_v33 = vcombine.low %v1006_v16, %v1010_v17  ;;  %v1050_v2 = vld [vmem:[#allocation5 + $0x1760] sm:$0xff] }
 0x277   :  { %7745 = vmatmul.mubr.bf16.vlgmr.msra.gmra.mrb[0].mxu0 %v20894_v18  ;;  %8155 = vmatmul.mubr.bf16.vlgmr.msra.gmra.mrb[0].mxu1 %v20894_v18 }
 0x278   :  { %7754 = vmatpush1.bf16.msra.mxu0 %v16959_v19  ;;  %8164 = vmatpush1.bf16.msra.mxu1 %v16961_v20  ;;  %v1007_v19 = vld [vmem:[#allocation5 + $0x1608] sm:$0xff]  ;;  %v17018_v20 = vcombine.high %v999_v9, %v1003_v11 }
 0x279   :  { %7755 = vmatprep.subr.bf16.mxu0 %v16968_v21  ;;  %8165 = vmatprep.subr.bf16.mxu1 %v16970_v23  ;;  %v1011_v21 = vld [vmem:[#allocation5 + $0x1628] sm:$0xff]  ;;  %v17017_v23 = vcombine.low %v999_v9, %v1003_v11  ;;  %v1058_v11 = vld [vmem:[#allocation5 + $0x17a0] sm:$0xff] }
 0x27a   :  { %7785 = vmatprep.mubr.bf16.mxu0 %v20896_v29  ;;  %8195 = vmatprep.mubr.bf16.mxu1 %v20896_v29  ;;  %v17025_v34 = vcombine.low %v1007_v19, %v1011_v21 }
 0x27c   :  { %7756 = vmatpush1.bf16.msra.mxu0 %v16967_v30  ;;  %8166 = vmatpush1.bf16.msra.mxu1 %v16969_v31  ;;  %v1015_v30 = vld [vmem:[#allocation5 + $0x1648] sm:$0xff]  ;;  %v17026_v31 = vcombine.high %v1007_v19, %v1011_v21  ;;  %v1066_v21 = vld [vmem:[#allocation5 + $0x17e0] sm:$0xff] }
 0x27d   :  { %7757 = vmatprep.subr.bf16.mxu0 %v16976_v32  ;;  %8167 = vmatprep.subr.bf16.mxu1 %v16978_v37  ;;  %v1019_v32 = vld [vmem:[#allocation5 + $0x1668] sm:$0xff]  ;;  %v1022_v37 = vld [vmem:[#allocation5 + $0x1680] sm:$0xff] }
 0x27e   :  { %v17033_v44 = vcombine.low %v1015_v30, %v1019_v32  ;;  %v17040_v45 = vcombine.high %v1022_v37, %v1026_v38  ;;  %v17039_v52 = vcombine.low %v1022_v37, %v1026_v38  ;;  %v274_v37 = vld [vmem:[%s21266_s12 + $0x50] sm:$0xff] }
 0x280   :  { %7758 = vmatpush1.bf16.msra.mxu0 %v16975_v39  ;;  %8168 = vmatpush1.bf16.msra.mxu1 %v16977_v41  ;;  %v1023_v39 = vld [vmem:[#allocation5 + $0x1688] sm:$0xff]  ;;  %v17034_v41 = vcombine.high %v1015_v30, %v1019_v32  ;;  %v1074_v32 = vld [vmem:[#allocation5 + $0x1820] sm:$0xff] }
 0x281   :  { %7759 = vmatprep.subr.bf16.mxu0 %v16984_v42  ;;  %8169 = vmatprep.subr.bf16.mxu1 %v16986_v46  ;;  %v1027_v42 = vld [vmem:[#allocation5 + $0x16a8] sm:$0xff]  ;;  %v1030_v46 = vld [vmem:[#allocation5 + $0x16c0] sm:$0xff] }
 0x282   :  { %v17041_v53 = vcombine.low %v1023_v39, %v1027_v42  ;;  %v17048_v54 = vcombine.high %v1030_v46, %v1034_v47  ;;  %v17047_v62 = vcombine.low %v1030_v46, %v1034_v47  ;;  %v277_v47 = vld [vmem:[%s21266_s12 + $0x68] sm:$0xff] }
 0x284   :  { %7760 = vmatpush1.bf16.msra.mxu0 %v16983_v48  ;;  %8170 = vmatpush1.bf16.msra.mxu1 %v16985_v50  ;;  %v1031_v48 = vld [vmem:[#allocation5 + $0x16c8] sm:$0xff]  ;;  %v17042_v50 = vcombine.high %v1023_v39, %v1027_v42  ;;  %v1078_v39 = vld [vmem:[#allocation5 + $0x1840] sm:$0xff]  ;;  %v17088_v42 = vcombine.high %v1070_v28, %v1074_v32 }
 0x285   :  { %7761 = vmatprep.subr.bf16.mxu0 %v16992_v51  ;;  %8171 = vmatprep.subr.bf16.mxu1 %v16994_v55  ;;  %v1035_v51 = vld [vmem:[#allocation5 + $0x16e8] sm:$0xff]  ;;  %v1038_v55 = vld [vmem:[#allocation5 + $0x1700] sm:$0xff] }
 0x286   :  { %v17049_v63 = vcombine.low %v1031_v48, %v1035_v51  ;;  %v17056_v0 = vcombine.high %v1038_v55, %v1042_v56  ;;  %v17055_v7 = vcombine.low %v1038_v55, %v1042_v56  ;;  %v1090_v55 = vld [vmem:[#allocation5 + $0x18a0] sm:$0xff]  ;;  %v1087_v56 = vld [vmem:[#allocation5 + $0x1888] sm:$0xff] }
 0x288   :  { %7762 = vmatpush1.bf16.msra.mxu0 %v16991_v57  ;;  %8172 = vmatpush1.bf16.msra.mxu1 %v16993_v60  ;;  %v1039_v57 = vld [vmem:[#allocation5 + $0x1708] sm:$0xff]  ;;  %v17050_v60 = vcombine.high %v1031_v48, %v1035_v51  ;;  %v20908_v48 = vpack.c.bf16 %v274_v37, %v274_v37 }
 0x289   :  { %7763 = vmatprep.subr.bf16.mxu0 %v17000_v61  ;;  %8173 = vmatprep.subr.bf16.mxu1 %v17002_v1  ;;  %v1043_v61 = vld [vmem:[#allocation5 + $0x1728] sm:$0xff]  ;;  %v1046_v1 = vld [vmem:[#allocation5 + $0x1740] sm:$0xff] }
 0x28a   :  { %v17057_v8 = vcombine.low %v1039_v57, %v1043_v61  ;;  %v17064_v9 = vcombine.high %v1046_v1, %v1050_v2  ;;  %v17063_v16 = vcombine.low %v1046_v1, %v1050_v2  ;;  %v1098_v1 = vld [vmem:[#allocation5 + $0x18e0] sm:$0xff]  ;;  %v1095_v2 = vld [vmem:[#allocation5 + $0x18c8] sm:$0xff] }
 0x28c   :  { %7764 = vmatpush1.bf16.msra.mxu0 %v16999_v3  ;;  %8174 = vmatpush1.bf16.msra.mxu1 %v17001_v5  ;;  %v1047_v3 = vld [vmem:[#allocation5 + $0x1748] sm:$0xff]  ;;  %v17058_v5 = vcombine.high %v1039_v57, %v1043_v61 }
 0x28d   :  { %7765 = vmatprep.subr.bf16.mxu0 %v17008_v6  ;;  %8175 = vmatprep.subr.bf16.mxu1 %v17010_v10  ;;  %v1051_v6 = vld [vmem:[#allocation5 + $0x1768] sm:$0xff]  ;;  %v1054_v10 = vld [vmem:[#allocation5 + $0x1780] sm:$0xff] }
 0x28e   :  { %v17065_v17 = vcombine.low %v1047_v3, %v1051_v6  ;;  %v17072_v19 = vcombine.high %v1054_v10, %v1058_v11  ;;  %v17071_v27 = vcombine.low %v1054_v10, %v1058_v11  ;;  %v1091_v57 = vld [vmem:[#allocation5 + $0x18a8] sm:$0xff]  ;;  %v1106_v10 = vld [vmem:[#allocation5 + $0x1920] sm:$0xff] }
 0x28f   :  { %v1103_v11 = vld [vmem:[#allocation5 + $0x1908] sm:$0xff] }
 0x290   :  { %7766 = vmatpush1.bf16.msra.mxu0 %v17007_v12  ;;  %8176 = vmatpush1.bf16.msra.mxu1 %v17009_v14  ;;  %v1055_v12 = vld [vmem:[#allocation5 + $0x1788] sm:$0xff]  ;;  %v17066_v14 = vcombine.high %v1047_v3, %v1051_v6  ;;  %v17106_v3 = vcombine.high %v1087_v56, %v1091_v57 }
 0x291   :  { %7767 = vmatprep.subr.bf16.mxu0 %v17016_v15  ;;  %8177 = vmatprep.subr.bf16.mxu1 %v17018_v20  ;;  %v1059_v15 = vld [vmem:[#allocation5 + $0x17a8] sm:$0xff]  ;;  %v1062_v20 = vld [vmem:[#allocation5 + $0x17c0] sm:$0xff] }
 0x292   :  { %v17073_v30 = vcombine.low %v1055_v12, %v1059_v15  ;;  %v17079_v38 = vcombine.low %v1062_v20, %v1066_v21 }
 0x294   :  { %7768 = vmatpush1.bf16.msra.mxu0 %v17015_v22  ;;  %8178 = vmatpush1.bf16.msra.mxu1 %v17017_v23  ;;  %v1063_v22 = vld [vmem:[#allocation5 + $0x17c8] sm:$0xff]  ;;  %v17074_v23 = vcombine.high %v1055_v12, %v1059_v15 }
 0x295   :  { %7769 = vmatprep.subr.bf16.mxu0 %v17024_v25  ;;  %8179 = vmatprep.subr.bf16.mxu1 %v17026_v31  ;;  %v1067_v25 = vld [vmem:[#allocation5 + $0x17e8] sm:$0xff]  ;;  %v17080_v31 = vcombine.high %v1062_v20, %v1066_v21  ;;  %v1114_v20 = vld [vmem:[#allocation5 + $0x1960] sm:$0xff] }
 0x296   :  { %v1111_v21 = vld [vmem:[#allocation5 + $0x1948] sm:$0xff] }
 0x298   :  { %7770 = vmatpush1.bf16.msra.mxu0 %v17023_v33  ;;  %8180 = vmatpush1.bf16.msra.mxu1 %v17025_v34  ;;  %v1071_v33 = vld [vmem:[#allocation5 + $0x1808] sm:$0xff] }
 0x299   :  { %7771 = vmatprep.subr.bf16.mxu0 %v17032_v36  ;;  %8181 = vmatprep.subr.bf16.mxu1 %v17034_v41  ;;  %v1075_v34 = vld [vmem:[#allocation5 + $0x1828] sm:$0xff]  ;;  %v17082_v36 = vcombine.high %v1063_v22, %v1067_v25  ;;  %v17081_v41 = vcombine.low %v1063_v22, %v1067_v25 }
 0x29a   :  { %v17090_v46 = vcombine.high %v1071_v33, %v1075_v34  ;;  %v17089_v51 = vcombine.low %v1071_v33, %v1075_v34  ;;  %v1123_v34 = vld [vmem:[#allocation5 + $0x19a8] sm:$0xff] }
 0x29c   :  { %7772 = vmatpush1.bf16.msra.mxu0 %v17031_v43  ;;  %8182 = vmatpush1.bf16.msra.mxu1 %v17033_v44  ;;  %v1082_v43 = vld [vmem:[#allocation5 + $0x1860] sm:$0xff]  ;;  %v1079_v44 = vld [vmem:[#allocation5 + $0x1848] sm:$0xff] }
 0x29d   :  { %7773 = vmatprep.subr.bf16.mxu0 %v17040_v45  ;;  %8183 = vmatprep.subr.bf16.mxu1 %v17042_v50  ;;  %v1083_v45 = vld [vmem:[#allocation5 + $0x1868] sm:$0xff]  ;;  %v17087_v50 = vcombine.low %v1070_v28, %v1074_v32  ;;  %v17095_v61 = vcombine.low %v1078_v39, %v1082_v43 }
 0x29e   :  { %v1119_v32 = vld [vmem:[#allocation5 + $0x1988] sm:$0xff] }
 0x2a0   :  { %7774 = vmatpush1.bf16.msra.mxu0 %v17039_v52  ;;  %8184 = vmatpush1.bf16.msra.mxu1 %v17041_v53  ;;  %v17096_v52 = vcombine.high %v1078_v39, %v1082_v43  ;;  %v1086_v53 = vld [vmem:[#allocation5 + $0x1880] sm:$0xff]  ;;  %v17138_v43 = vcombine.high %v1119_v32, %v1123_v34 }
 0x2a1   :  { %7775 = vmatprep.subr.bf16.mxu0 %v17048_v54  ;;  %8185 = vmatprep.subr.bf16.mxu1 %v17050_v60  ;;  %v17098_v54 = vcombine.high %v1079_v44, %v1083_v45  ;;  %v20910_v60 = vpack.c.bf16 %v277_v47, %v277_v47  ;;  %v17103_v6 = vcombine.low %v1086_v53, %v1090_v55  ;;  %v1126_v39 = vld [vmem:[#allocation5 + $0x19c0] sm:$0xff] }
 0x2a4   :  { %7776 = vmatpush1.bf16.msra.mxu0 %v17047_v62  ;;  %8186 = vmatpush1.bf16.msra.mxu1 %v17049_v63  ;;  %v17097_v62 = vcombine.low %v1079_v44, %v1083_v45  ;;  %v17104_v63 = vcombine.high %v1086_v53, %v1090_v55  ;;  %v1131_v44 = vld [vmem:[#allocation5 + $0x19e8] sm:$0xff] }
 0x2a5   :  { %7777 = vmatprep.subr.bf16.mxu0 %v17056_v0  ;;  %8187 = vmatprep.subr.bf16.mxu1 %v17058_v5  ;;  %v1094_v0 = vld [vmem:[#allocation5 + $0x18c0] sm:$0xff]  ;;  %v1099_v5 = vld [vmem:[#allocation5 + $0x18e8] sm:$0xff] }
 0x2a6   :  { %v17114_v12 = vcombine.high %v1095_v2, %v1099_v5  ;;  %v17111_v15 = vcombine.low %v1094_v0, %v1098_v1 }
 0x2a8   :  { %7778 = vmatpush1.bf16.msra.mxu0 %v17055_v7  ;;  %8188 = vmatpush1.bf16.msra.mxu1 %v17057_v8  ;;  %v17105_v7 = vcombine.low %v1087_v56, %v1091_v57  ;;  %v17112_v8 = vcombine.high %v1094_v0, %v1098_v1  ;;  %v1147_v1 = vld [vmem:[#allocation5 + $0x1a68] sm:$0xff] }
 0x2a9   :  { %7779 = vmatprep.subr.bf16.mxu0 %v17064_v9  ;;  %8189 = vmatprep.subr.bf16.mxu1 %v17066_v14  ;;  %v1102_v9 = vld [vmem:[#allocation5 + $0x1900] sm:$0xff]  ;;  %v1107_v14 = vld [vmem:[#allocation5 + $0x1928] sm:$0xff] }
 0x2aa   :  { %v17122_v22 = vcombine.high %v1103_v11, %v1107_v14  ;;  %v17119_v25 = vcombine.low %v1102_v9, %v1106_v10 }
 0x2ac   :  { %7780 = vmatpush1.bf16.msra.mxu0 %v17063_v16  ;;  %8190 = vmatpush1.bf16.msra.mxu1 %v17065_v17  ;;  %v17113_v16 = vcombine.low %v1095_v2, %v1099_v5  ;;  %v17120_v17 = vcombine.high %v1102_v9, %v1106_v10  ;;  %v1155_v10 = vld [vmem:[#allocation5 + $0x1aa8] sm:$0xff] }
 0x2ad   :  { %7781 = vmatprep.subr.bf16.mxu0 %v17072_v19  ;;  %8191 = vmatprep.subr.bf16.mxu1 %v17074_v23  ;;  %v1110_v19 = vld [vmem:[#allocation5 + $0x1940] sm:$0xff]  ;;  %v1115_v23 = vld [vmem:[#allocation5 + $0x1968] sm:$0xff] }
 0x2ae   :  { %v17128_v28 = vcombine.high %v1110_v19, %v1114_v20  ;;  %v17130_v33 = vcombine.high %v1111_v21, %v1115_v23  ;;  %v17129_v37 = vcombine.low %v1111_v21, %v1115_v23 }
 0x2b0   :  { %7782 = vmatpush1.bf16.msra.mxu0 %v17071_v27  ;;  %8192 = vmatpush1.bf16.msra.mxu1 %v17073_v30  ;;  %v17121_v27 = vcombine.low %v1103_v11, %v1107_v14  ;;  %v1118_v30 = vld [vmem:[#allocation5 + $0x1980] sm:$0xff] }
 0x2b1   :  { %7783 = vmatprep.subr.bf16.mxu0 %v17080_v31  ;;  %8193 = vmatprep.subr.bf16.mxu1 %v17082_v36  ;;  %v1122_v31 = vld [vmem:[#allocation5 + $0x19a0] sm:$0xff]  ;;  %v17127_v36 = vcombine.low %v1110_v19, %v1114_v20  ;;  %v1163_v20 = vld [vmem:[#allocation5 + $0x1ae8] sm:$0xff] }
 0x2b2   :  { %v17135_v45 = vcombine.low %v1118_v30, %v1122_v31 }
 0x2b4   :  { %7784 = vmatpush1.bf16.msra.mxu0 %v17079_v38  ;;  %8194 = vmatpush1.bf16.msra.mxu1 %v17081_v41  ;;  %v17136_v38 = vcombine.high %v1118_v30, %v1122_v31  ;;  %v1130_v41 = vld [vmem:[#allocation5 + $0x19e0] sm:$0xff]  ;;  %v1171_v31 = vld [vmem:[#allocation5 + $0x1b28] sm:$0xff] }
 0x2b5   :  { %7794 = vmatprep.subr.bf16.mxu0 %v17088_v42  ;;  %8204 = vmatprep.subr.bf16.mxu1 %v17090_v46  ;;  %v1127_v42 = vld [vmem:[#allocation5 + $0x19c8] sm:$0xff]  ;;  %v17137_v46 = vcombine.low %v1119_v32, %v1123_v34  ;;  %v17144_v47 = vcombine.high %v1126_v39, %v1130_v41  ;;  %v17143_v55 = vcombine.low %v1126_v39, %v1130_v41 }
 0x2b6   :  { %v17146_v53 = vcombine.high %v1127_v42, %v1131_v44  ;;  %v17145_v56 = vcombine.low %v1127_v42, %v1131_v44  ;;  %v1179_v41 = vld [vmem:[#allocation5 + $0x1b68] sm:$0xff] }
 0x2b7   :  { %7786 = vmatmul.mubr.bf16.vlgmr.msra.gmra.mrb[0].mxu0 %v20908_v48  ;;  %8196 = vmatmul.mubr.bf16.vlgmr.msra.gmra.mrb[0].mxu1 %v20908_v48 }
 0x2b8   :  { %7795 = vmatpush1.bf16.msra.mxu0 %v17087_v50  ;;  %8205 = vmatpush1.bf16.msra.mxu1 %v17089_v51  ;;  %v1134_v50 = vld [vmem:[#allocation5 + $0x1a00] sm:$0xff] }
 0x2b9   :  { %7796 = vmatprep.subr.bf16.mxu0 %v17096_v52  ;;  %8206 = vmatprep.subr.bf16.mxu1 %v17098_v54  ;;  %v1138_v51 = vld [vmem:[#allocation5 + $0x1a20] sm:$0xff]  ;;  %v1135_v52 = vld [vmem:[#allocation5 + $0x1a08] sm:$0xff] }
 0x2ba   :  { %7826 = vmatprep.mubr.bf16.mxu0 %v20910_v60  ;;  %8236 = vmatprep.mubr.bf16.mxu1 %v20910_v60  ;;  %v1139_v54 = vld [vmem:[#allocation5 + $0x1a28] sm:$0xff]  ;;  %v17152_v57 = vcombine.high %v1134_v50, %v1138_v51  ;;  %v17151_v2 = vcombine.low %v1134_v50, %v1138_v51 }
 0x2bb   :  { %v17154_v0 = vcombine.high %v1135_v52, %v1139_v54  ;;  %v1187_v51 = vld [vmem:[#allocation5 + $0x1ba8] sm:$0xff] }
 0x2bc   :  { %7797 = vmatpush1.bf16.msra.mxu0 %v17095_v61  ;;  %8207 = vmatpush1.bf16.msra.mxu1 %v17097_v62  ;;  %v1142_v61 = vld [vmem:[#allocation5 + $0x1a40] sm:$0xff] }
 0x2bd   :  { %7798 = vmatprep.subr.bf16.mxu0 %v17104_v63  ;;  %8208 = vmatprep.subr.bf16.mxu1 %v17106_v3  ;;  %v1146_v62 = vld [vmem:[#allocation5 + $0x1a60] sm:$0xff]  ;;  %v1143_v63 = vld [vmem:[#allocation5 + $0x1a48] sm:$0xff]  ;;  %v17153_v3 = vcombine.low %v1135_v52, %v1139_v54 }
 0x2be   :  { %v17160_v5 = vcombine.high %v1142_v61, %v1146_v62  ;;  %v17162_v9 = vcombine.high %v1143_v63, %v1147_v1  ;;  %v17159_v11 = vcombine.low %v1142_v61, %v1146_v62  ;;  %v1195_v62 = vld [vmem:[#allocation5 + $0x1be8] sm:$0xff] }
 0x2c0   :  { %7799 = vmatpush1.bf16.msra.mxu0 %v17103_v6  ;;  %8209 = vmatpush1.bf16.msra.mxu1 %v17105_v7  ;;  %v1150_v6 = vld [vmem:[#allocation5 + $0x1a80] sm:$0xff] }
 0x2c1   :  { %7800 = vmatprep.subr.bf16.mxu0 %v17112_v8  ;;  %8210 = vmatprep.subr.bf16.mxu1 %v17114_v12  ;;  %v1154_v7 = vld [vmem:[#allocation5 + $0x1aa0] sm:$0xff]  ;;  %v1151_v8 = vld [vmem:[#allocation5 + $0x1a88] sm:$0xff]  ;;  %v17161_v12 = vcombine.low %v1143_v63, %v1147_v1 }
 0x2c2   :  { %v17168_v14 = vcombine.high %v1150_v6, %v1154_v7  ;;  %v17170_v19 = vcombine.high %v1151_v8, %v1155_v10  ;;  %v17167_v21 = vcombine.low %v1150_v6, %v1154_v7  ;;  %v1203_v6 = vld [vmem:[#allocation5 + $0x1c28] sm:$0xff] }
 0x2c4   :  { %7801 = vmatpush1.bf16.msra.mxu0 %v17111_v15  ;;  %8211 = vmatpush1.bf16.msra.mxu1 %v17113_v16  ;;  %v1158_v15 = vld [vmem:[#allocation5 + $0x1ac0] sm:$0xff] }
 0x2c5   :  { %7802 = vmatprep.subr.bf16.mxu0 %v17120_v17  ;;  %8212 = vmatprep.subr.bf16.mxu1 %v17122_v22  ;;  %v1162_v16 = vld [vmem:[#allocation5 + $0x1ae0] sm:$0xff]  ;;  %v1159_v17 = vld [vmem:[#allocation5 + $0x1ac8] sm:$0xff]  ;;  %v17169_v22 = vcombine.low %v1151_v8, %v1155_v10  ;;  %v276_v8 = vld [vmem:[%s21266_s12 + $0x60] sm:$0xff] }
 0x2c6   :  { %v17176_v23 = vcombine.high %v1158_v15, %v1162_v16  ;;  %v17178_v30 = vcombine.high %v1159_v17, %v1163_v20  ;;  %v17175_v32 = vcombine.low %v1158_v15, %v1162_v16  ;;  %v1206_v10 = vld [vmem:[#allocation5 + $0x1c40] sm:$0xff]  ;;  %v1207_v15 = vld [vmem:[#allocation5 + $0x1c48] sm:$0xff] }
 0x2c7   :  { %v1211_v16 = vld [vmem:[#allocation5 + $0x1c68] sm:$0xff] }
 0x2c8   :  { %7803 = vmatpush1.bf16.msra.mxu0 %v17119_v25  ;;  %8213 = vmatpush1.bf16.msra.mxu1 %v17121_v27  ;;  %v1166_v25 = vld [vmem:[#allocation5 + $0x1b00] sm:$0xff] }
 0x2c9   :  { %7804 = vmatprep.subr.bf16.mxu0 %v17128_v28  ;;  %8214 = vmatprep.subr.bf16.mxu1 %v17130_v33  ;;  %v1170_v27 = vld [vmem:[#allocation5 + $0x1b20] sm:$0xff]  ;;  %v1167_v28 = vld [vmem:[#allocation5 + $0x1b08] sm:$0xff]  ;;  %v17177_v33 = vcombine.low %v1159_v17, %v1163_v20  ;;  %v20922_v20 = vpack.c.bf16 %v276_v8, %v276_v8 }
 0x2ca   :  { %v17184_v34 = vcombine.high %v1166_v25, %v1170_v27  ;;  %v17186_v39 = vcombine.high %v1167_v28, %v1171_v31  ;;  %v17183_v42 = vcombine.low %v1166_v25, %v1170_v27  ;;  %v1214_v25 = vld [vmem:[#allocation5 + $0x1c80] sm:$0xff]  ;;  %v17226_v27 = vcombine.high %v1207_v15, %v1211_v16  ;;  %v1251_v8 = vld [vmem:[#allocation5 + $0x1da8] sm:$0xff] }
 0x2cc   :  { %7805 = vmatpush1.bf16.msra.mxu0 %v17127_v36  ;;  %8215 = vmatpush1.bf16.msra.mxu1 %v17129_v37  ;;  %v1174_v36 = vld [vmem:[#allocation5 + $0x1b40] sm:$0xff] }
 0x2cd   :  { %7806 = vmatprep.subr.bf16.mxu0 %v17136_v38  ;;  %8216 = vmatprep.subr.bf16.mxu1 %v17138_v43  ;;  %v1178_v37 = vld [vmem:[#allocation5 + $0x1b60] sm:$0xff]  ;;  %v1175_v38 = vld [vmem:[#allocation5 + $0x1b48] sm:$0xff]  ;;  %v17185_v43 = vcombine.low %v1167_v28, %v1171_v31 }
 0x2ce   :  { %v17192_v44 = vcombine.high %v1174_v36, %v1178_v37  ;;  %v17194_v50 = vcombine.high %v1175_v38, %v1179_v41  ;;  %v17191_v52 = vcombine.low %v1174_v36, %v1178_v37  ;;  %v1218_v28 = vld [vmem:[#allocation5 + $0x1ca0] sm:$0xff]  ;;  %v1219_v31 = vld [vmem:[#allocation5 + $0x1ca8] sm:$0xff] }
 0x2cf   :  { %v17232_v36 = vcombine.high %v1214_v25, %v1218_v28  ;;  %v1222_v37 = vld [vmem:[#allocation5 + $0x1cc0] sm:$0xff] }
 0x2d0   :  { %7807 = vmatpush1.bf16.msra.mxu0 %v17135_v45  ;;  %8217 = vmatpush1.bf16.msra.mxu1 %v17137_v46  ;;  %v1182_v45 = vld [vmem:[#allocation5 + $0x1b80] sm:$0xff] }
 0x2d1   :  { %7808 = vmatprep.subr.bf16.mxu0 %v17144_v47  ;;  %8218 = vmatprep.subr.bf16.mxu1 %v17146_v53  ;;  %v1186_v46 = vld [vmem:[#allocation5 + $0x1ba0] sm:$0xff]  ;;  %v1183_v47 = vld [vmem:[#allocation5 + $0x1b88] sm:$0xff]  ;;  %v17193_v53 = vcombine.low %v1175_v38, %v1179_v41 }
 0x2d2   :  { %v17200_v54 = vcombine.high %v1182_v45, %v1186_v46  ;;  %v17202_v61 = vcombine.high %v1183_v47, %v1187_v51  ;;  %v17199_v63 = vcombine.low %v1182_v45, %v1186_v46  ;;  %v17201_v1 = vcombine.low %v1183_v47, %v1187_v51  ;;  %v1226_v38 = vld [vmem:[#allocation5 + $0x1ce0] sm:$0xff] }
 0x2d3   :  { %v17240_v45 = vcombine.high %v1222_v37, %v1226_v38  ;;  %v1230_v46 = vld [vmem:[#allocation5 + $0x1d00] sm:$0xff] }
 0x2d4   :  { %7809 = vmatpush1.bf16.msra.mxu0 %v17143_v55  ;;  %8219 = vmatpush1.bf16.msra.mxu1 %v17145_v56  ;;  %v1190_v55 = vld [vmem:[#allocation5 + $0x1bc0] sm:$0xff] }
 0x2d5   :  { %7810 = vmatprep.subr.bf16.mxu0 %v17152_v57  ;;  %8220 = vmatprep.subr.bf16.mxu1 %v17154_v0  ;;  %v1194_v56 = vld [vmem:[#allocation5 + $0x1be0] sm:$0xff]  ;;  %v1191_v57 = vld [vmem:[#allocation5 + $0x1bc8] sm:$0xff] }
 0x2d6   :  { %v1198_v0 = vld [vmem:[#allocation5 + $0x1c00] sm:$0xff]  ;;  %v17210_v7 = vcombine.high %v1191_v57, %v1195_v62 }
 0x2d7   :  { %v1234_v47 = vld [vmem:[#allocation5 + $0x1d20] sm:$0xff] }
 0x2d8   :  { %7811 = vmatpush1.bf16.msra.mxu0 %v17151_v2  ;;  %8221 = vmatpush1.bf16.msra.mxu1 %v17153_v3  ;;  %v17208_v2 = vcombine.high %v1190_v55, %v1194_v56  ;;  %v1202_v3 = vld [vmem:[#allocation5 + $0x1c20] sm:$0xff] }
 0x2d9   :  { %7812 = vmatprep.subr.bf16.mxu0 %v17160_v5  ;;  %8222 = vmatprep.subr.bf16.mxu1 %v17162_v9  ;;  %v1199_v5 = vld [vmem:[#allocation5 + $0x1c08] sm:$0xff]  ;;  %v17207_v9 = vcombine.low %v1190_v55, %v1194_v56  ;;  %v17248_v55 = vcombine.high %v1230_v46, %v1234_v47  ;;  %v1238_v56 = vld [vmem:[#allocation5 + $0x1d40] sm:$0xff] }
 0x2da   :  { %v17218_v17 = vcombine.high %v1199_v5, %v1203_v6 }
 0x2dc   :  { %7813 = vmatpush1.bf16.msra.mxu0 %v17159_v11  ;;  %8223 = vmatpush1.bf16.msra.mxu1 %v17161_v12  ;;  %v17209_v11 = vcombine.low %v1191_v57, %v1195_v62  ;;  %v17216_v12 = vcombine.high %v1198_v0, %v1202_v3  ;;  %v1242_v57 = vld [vmem:[#allocation5 + $0x1d60] sm:$0xff] }
 0x2dd   :  { %7814 = vmatprep.subr.bf16.mxu0 %v17168_v14  ;;  %8224 = vmatprep.subr.bf16.mxu1 %v17170_v19  ;;  %v1210_v14 = vld [vmem:[#allocation5 + $0x1c60] sm:$0xff]  ;;  %v279_v19 = vld [vmem:[%s21266_s12 + $0x78] sm:$0xff] }
 0x2e0   :  { %7815 = vmatpush1.bf16.msra.mxu0 %v17167_v21  ;;  %8225 = vmatpush1.bf16.msra.mxu1 %v17169_v22  ;;  %v17215_v21 = vcombine.low %v1198_v0, %v1202_v3  ;;  %v17217_v22 = vcombine.low %v1199_v5, %v1203_v6  ;;  %v17247_v0 = vcombine.low %v1230_v46, %v1234_v47  ;;  %v1246_v3 = vld [vmem:[#allocation5 + $0x1d80] sm:$0xff]  ;;  %v1247_v6 = vld [vmem:[#allocation5 + $0x1d88] sm:$0xff] }
 0x2e1   :  { %7816 = vmatprep.subr.bf16.mxu0 %v17176_v23  ;;  %8226 = vmatprep.subr.bf16.mxu1 %v17178_v30  ;;  %v17224_v23 = vcombine.high %v1206_v10, %v1210_v14  ;;  %v1215_v30 = vld [vmem:[#allocation5 + $0x1c88] sm:$0xff]  ;;  %v1250_v5 = vld [vmem:[#allocation5 + $0x1da0] sm:$0xff] }
 0x2e2   :  { %v17234_v41 = vcombine.high %v1215_v30, %v1219_v31  ;;  %v1282_v46 = vld [vmem:[#allocation5 + $0x1ea0] sm:$0xff]  ;;  %v1279_v47 = vld [vmem:[#allocation5 + $0x1e88] sm:$0xff] }
 0x2e4   :  { %7817 = vmatpush1.bf16.msra.mxu0 %v17175_v32  ;;  %8227 = vmatpush1.bf16.msra.mxu1 %v17177_v33  ;;  %v20924_v32 = vpack.c.bf16 %v279_v19, %v279_v19  ;;  %v17223_v33 = vcombine.low %v1206_v10, %v1210_v14  ;;  %v1258_v14 = vld [vmem:[#allocation5 + $0x1de0] sm:$0xff]  ;;  %v17263_v19 = vcombine.low %v1246_v3, %v1250_v5 }
 0x2e5   :  { %7818 = vmatprep.subr.bf16.mxu0 %v17184_v34  ;;  %8228 = vmatprep.subr.bf16.mxu1 %v17186_v39  ;;  %v17225_v34 = vcombine.low %v1207_v15, %v1211_v16  ;;  %v1223_v39 = vld [vmem:[#allocation5 + $0x1cc8] sm:$0xff]  ;;  %v17266_v16 = vcombine.high %v1247_v6, %v1251_v8 }
 0x2e6   :  { %v1255_v15 = vld [vmem:[#allocation5 + $0x1dc8] sm:$0xff] }
 0x2e8   :  { %7819 = vmatpush1.bf16.msra.mxu0 %v17183_v42  ;;  %8229 = vmatpush1.bf16.msra.mxu1 %v17185_v43  ;;  %v1227_v42 = vld [vmem:[#allocation5 + $0x1ce8] sm:$0xff]  ;;  %v17231_v43 = vcombine.low %v1214_v25, %v1218_v28  ;;  %v1266_v25 = vld [vmem:[#allocation5 + $0x1e20] sm:$0xff] }
 0x2e9   :  { %7820 = vmatprep.subr.bf16.mxu0 %v17192_v44  ;;  %8230 = vmatprep.subr.bf16.mxu1 %v17194_v50  ;;  %v17233_v44 = vcombine.low %v1215_v30, %v1219_v31  ;;  %v1231_v50 = vld [vmem:[#allocation5 + $0x1d08] sm:$0xff]  ;;  %v17242_v51 = vcombine.high %v1223_v39, %v1227_v42 }
 0x2ea   :  { %v1263_v28 = vld [vmem:[#allocation5 + $0x1e08] sm:$0xff] }
 0x2eb   :  { %v1267_v30 = vld [vmem:[#allocation5 + $0x1e28] sm:$0xff] }
 0x2ec   :  { %7821 = vmatpush1.bf16.msra.mxu0 %v17191_v52  ;;  %8231 = vmatpush1.bf16.msra.mxu1 %v17193_v53  ;;  %v1235_v52 = vld [vmem:[#allocation5 + $0x1d28] sm:$0xff]  ;;  %v17239_v53 = vcombine.low %v1222_v37, %v1226_v38  ;;  %v1274_v37 = vld [vmem:[#allocation5 + $0x1e60] sm:$0xff] }
 0x2ed   :  { %7822 = vmatprep.subr.bf16.mxu0 %v17200_v54  ;;  %8232 = vmatprep.subr.bf16.mxu1 %v17202_v61  ;;  %v17241_v54 = vcombine.low %v1223_v39, %v1227_v42  ;;  %v1239_v61 = vld [vmem:[#allocation5 + $0x1d48] sm:$0xff]  ;;  %v17250_v62 = vcombine.high %v1231_v50, %v1235_v52  ;;  %v17282_v39 = vcombine.high %v1263_v28, %v1267_v30 }
 0x2ee   :  { %v1271_v38 = vld [vmem:[#allocation5 + $0x1e48] sm:$0xff] }
 0x2f0   :  { %7823 = vmatpush1.bf16.msra.mxu0 %v17199_v63  ;;  %8233 = vmatpush1.bf16.msra.mxu1 %v17201_v1  ;;  %v1243_v63 = vld [vmem:[#allocation5 + $0x1d68] sm:$0xff]  ;;  %v17249_v1 = vcombine.low %v1231_v50, %v1235_v52 }
 0x2f1   :  { %7824 = vmatprep.subr.bf16.mxu0 %v17208_v2  ;;  %8234 = vmatprep.subr.bf16.mxu1 %v17210_v7  ;;  %v17256_v2 = vcombine.high %v1238_v56, %v1242_v57  ;;  %v17258_v7 = vcombine.high %v1239_v61, %v1243_v63  ;;  %v17257_v10 = vcombine.low %v1239_v61, %v1243_v63 }
 0x2f4   :  { %7825 = vmatpush1.bf16.msra.mxu0 %v17207_v9  ;;  %8235 = vmatpush1.bf16.msra.mxu1 %v17209_v11  ;;  %v17255_v9 = vcombine.low %v1238_v56, %v1242_v57  ;;  %v17264_v11 = vcombine.high %v1246_v3, %v1250_v5  ;;  %v1290_v56 = vld [vmem:[#allocation5 + $0x1ee0] sm:$0xff]  ;;  %v1287_v57 = vld [vmem:[#allocation5 + $0x1ec8] sm:$0xff] }
 0x2f5   :  { %7835 = vmatprep.subr.bf16.mxu0 %v17216_v12  ;;  %8245 = vmatprep.subr.bf16.mxu1 %v17218_v17  ;;  %v1254_v12 = vld [vmem:[#allocation5 + $0x1dc0] sm:$0xff]  ;;  %v1259_v17 = vld [vmem:[#allocation5 + $0x1de8] sm:$0xff] }
 0x2f6   :  { %v17271_v31 = vcombine.low %v1254_v12, %v1258_v14  ;;  %v1298_v3 = vld [vmem:[#allocation5 + $0x1f20] sm:$0xff]  ;;  %v1295_v5 = vld [vmem:[#allocation5 + $0x1f08] sm:$0xff] }
 0x2f7   :  { %7827 = vmatmul.mubr.bf16.vlgmr.msra.gmra.mrb[0].mxu0 %v20922_v20  ;;  %8237 = vmatmul.mubr.bf16.vlgmr.msra.gmra.mrb[0].mxu1 %v20922_v20 }
 0x2f8   :  { %7836 = vmatpush1.bf16.msra.mxu0 %v17215_v21  ;;  %8246 = vmatpush1.bf16.msra.mxu1 %v17217_v22  ;;  %v17265_v21 = vcombine.low %v1247_v6, %v1251_v8  ;;  %v17272_v22 = vcombine.high %v1254_v12, %v1258_v14  ;;  %v1306_v12 = vld [vmem:[#allocation5 + $0x1f60] sm:$0xff]  ;;  %v1303_v14 = vld [vmem:[#allocation5 + $0x1f48] sm:$0xff] }
 0x2f9   :  { %7837 = vmatprep.subr.bf16.mxu0 %v17224_v23  ;;  %8247 = vmatprep.subr.bf16.mxu1 %v17226_v27  ;;  %v1262_v23 = vld [vmem:[#allocation5 + $0x1e00] sm:$0xff]  ;;  %v17274_v27 = vcombine.high %v1255_v15, %v1259_v17 }
 0x2fa   :  { %7867 = vmatprep.mubr.bf16.mxu0 %v20924_v32  ;;  %8277 = vmatprep.mubr.bf16.mxu1 %v20924_v32  ;;  %v17279_v42 = vcombine.low %v1262_v23, %v1266_v25 }
 0x2fc   :  { %7838 = vmatpush1.bf16.msra.mxu0 %v17223_v33  ;;  %8248 = vmatpush1.bf16.msra.mxu1 %v17225_v34  ;;  %v17273_v33 = vcombine.low %v1255_v15, %v1259_v17  ;;  %v17280_v34 = vcombine.high %v1262_v23, %v1266_v25  ;;  %v1314_v23 = vld [vmem:[#allocation5 + $0x1fa0] sm:$0xff]  ;;  %v1311_v25 = vld [vmem:[#allocation5 + $0x1f88] sm:$0xff] }
 0x2fd   :  { %7839 = vmatprep.subr.bf16.mxu0 %v17232_v36  ;;  %8249 = vmatprep.subr.bf16.mxu1 %v17234_v41  ;;  %v1270_v36 = vld [vmem:[#allocation5 + $0x1e40] sm:$0xff]  ;;  %v1275_v41 = vld [vmem:[#allocation5 + $0x1e68] sm:$0xff] }
 0x2fe   :  { %v17290_v50 = vcombine.high %v1271_v38, %v1275_v41  ;;  %v17287_v52 = vcombine.low %v1270_v36, %v1274_v37 }
 0x300   :  { %7840 = vmatpush1.bf16.msra.mxu0 %v17231_v43  ;;  %8250 = vmatpush1.bf16.msra.mxu1 %v17233_v44  ;;  %v17281_v43 = vcombine.low %v1263_v28, %v1267_v30  ;;  %v17288_v44 = vcombine.high %v1270_v36, %v1274_v37  ;;  %v1315_v28 = vld [vmem:[#allocation5 + $0x1fa8] sm:$0xff]  ;;  %v1322_v36 = vld [vmem:[#allocation5 + $0x1fe0] sm:$0xff] }
 0x301   :  { %7841 = vmatprep.subr.bf16.mxu0 %v17240_v45  ;;  %8251 = vmatprep.subr.bf16.mxu1 %v17242_v51  ;;  %v1278_v45 = vld [vmem:[#allocation5 + $0x1e80] sm:$0xff]  ;;  %v1283_v51 = vld [vmem:[#allocation5 + $0x1ea8] sm:$0xff] }
 0x302   :  { %v17298_v61 = vcombine.high %v1279_v47, %v1283_v51  ;;  %v17295_v63 = vcombine.low %v1278_v45, %v1282_v46  ;;  %v1319_v37 = vld [vmem:[#allocation5 + $0x1fc8] sm:$0xff] }
 0x304   :  { %7842 = vmatpush1.bf16.msra.mxu0 %v17239_v53  ;;  %8252 = vmatpush1.bf16.msra.mxu1 %v17241_v54  ;;  %v17289_v53 = vcombine.low %v1271_v38, %v1275_v41  ;;  %v17296_v54 = vcombine.high %v1278_v45, %v1282_v46  ;;  %v17330_v38 = vcombine.high %v1311_v25, %v1315_v28  ;;  %v1330_v45 = vld [vmem:[#allocation5 + $0x2020] sm:$0xff]  ;;  %v1327_v46 = vld [vmem:[#allocation5 + $0x2008] sm:$0xff] }
 0x305   :  { %7843 = vmatprep.subr.bf16.mxu0 %v17248_v55  ;;  %8253 = vmatprep.subr.bf16.mxu1 %v17250_v62  ;;  %v1286_v55 = vld [vmem:[#allocation5 + $0x1ec0] sm:$0xff]  ;;  %v1291_v62 = vld [vmem:[#allocation5 + $0x1ee8] sm:$0xff] }
 0x306   :  { %v17306_v6 = vcombine.high %v1287_v57, %v1291_v62  ;;  %v17303_v8 = vcombine.low %v1286_v55, %v1290_v56 }
 0x308   :  { %7844 = vmatpush1.bf16.msra.mxu0 %v17247_v0  ;;  %8254 = vmatpush1.bf16.msra.mxu1 %v17249_v1  ;;  %v17297_v0 = vcombine.low %v1279_v47, %v1283_v51  ;;  %v17304_v1 = vcombine.high %v1286_v55, %v1290_v56  ;;  %v1331_v47 = vld [vmem:[#allocation5 + $0x2028] sm:$0xff]  ;;  %v1338_v56 = vld [vmem:[#allocation5 + $0x2060] sm:$0xff] }
 0x309   :  { %7845 = vmatprep.subr.bf16.mxu0 %v17256_v2  ;;  %8255 = vmatprep.subr.bf16.mxu1 %v17258_v7  ;;  %v1294_v2 = vld [vmem:[#allocation5 + $0x1f00] sm:$0xff]  ;;  %v1299_v7 = vld [vmem:[#allocation5 + $0x1f28] sm:$0xff] }
 0x30a   :  { %v17314_v15 = vcombine.high %v1295_v5, %v1299_v7  ;;  %v17311_v17 = vcombine.low %v1294_v2, %v1298_v3  ;;  %v278_v51 = vld [vmem:[%s21266_s12 + $0x70] sm:$0xff] }
 0x30c   :  { %7846 = vmatpush1.bf16.msra.mxu0 %v17255_v9  ;;  %8256 = vmatpush1.bf16.msra.mxu1 %v17257_v10  ;;  %v17305_v9 = vcombine.low %v1287_v57, %v1291_v62  ;;  %v17312_v10 = vcombine.high %v1294_v2, %v1298_v3  ;;  %v1335_v57 = vld [vmem:[#allocation5 + $0x2048] sm:$0xff]  ;;  %v17346_v62 = vcombine.high %v1327_v46, %v1331_v47 }
 0x30d   :  { %7847 = vmatprep.subr.bf16.mxu0 %v17264_v11  ;;  %8257 = vmatprep.subr.bf16.mxu1 %v17266_v16  ;;  %v1302_v11 = vld [vmem:[#allocation5 + $0x1f40] sm:$0xff]  ;;  %v1307_v16 = vld [vmem:[#allocation5 + $0x1f68] sm:$0xff]  ;;  %v17345_v2 = vcombine.low %v1327_v46, %v1331_v47 }
 0x30e   :  { %v17319_v30 = vcombine.low %v1302_v11, %v1306_v12  ;;  %v1374_v47 = vld [vmem:[#allocation5 + $0x2180] sm:$0xff] }
 0x310   :  { %7848 = vmatpush1.bf16.msra.mxu0 %v17263_v19  ;;  %8258 = vmatpush1.bf16.msra.mxu1 %v17265_v21  ;;  %v17313_v19 = vcombine.low %v1295_v5, %v1299_v7  ;;  %v17320_v21 = vcombine.high %v1302_v11, %v1306_v12  ;;  %v1342_v5 = vld [vmem:[#allocation5 + $0x2080] sm:$0xff]  ;;  %v1343_v7 = vld [vmem:[#allocation5 + $0x2088] sm:$0xff] }
 0x311   :  { %7849 = vmatprep.subr.bf16.mxu0 %v17272_v22  ;;  %8259 = vmatprep.subr.bf16.mxu1 %v17274_v27  ;;  %v1310_v22 = vld [vmem:[#allocation5 + $0x1f80] sm:$0xff]  ;;  %v17322_v27 = vcombine.high %v1303_v14, %v1307_v16 }
 0x312   :  { %v17327_v41 = vcombine.low %v1310_v22, %v1314_v23 }
 0x314   :  { %7850 = vmatpush1.bf16.msra.mxu0 %v17271_v31  ;;  %8260 = vmatpush1.bf16.msra.mxu1 %v17273_v33  ;;  %v17321_v31 = vcombine.low %v1303_v14, %v1307_v16  ;;  %v17328_v33 = vcombine.high %v1310_v22, %v1314_v23  ;;  %v1354_v16 = vld [vmem:[#allocation5 + $0x20e0] sm:$0xff] }
 0x315   :  { %7851 = vmatprep.subr.bf16.mxu0 %v17280_v34  ;;  %8261 = vmatprep.subr.bf16.mxu1 %v17282_v39  ;;  %v1318_v34 = vld [vmem:[#allocation5 + $0x1fc0] sm:$0xff]  ;;  %v1323_v39 = vld [vmem:[#allocation5 + $0x1fe8] sm:$0xff] }
 0x318   :  { %7852 = vmatpush1.bf16.msra.mxu0 %v17279_v42  ;;  %8262 = vmatpush1.bf16.msra.mxu1 %v17281_v43  ;;  %v1326_v42 = vld [vmem:[#allocation5 + $0x2000] sm:$0xff]  ;;  %v17329_v43 = vcombine.low %v1311_v25, %v1315_v28 }
 0x319   :  { %7853 = vmatprep.subr.bf16.mxu0 %v17288_v44  ;;  %8263 = vmatprep.subr.bf16.mxu1 %v17290_v50  ;;  %v17336_v44 = vcombine.high %v1318_v34, %v1322_v36  ;;  %v17338_v50 = vcombine.high %v1319_v37, %v1323_v39  ;;  %v17344_v55 = vcombine.high %v1326_v42, %v1330_v45  ;;  %v1362_v28 = vld [vmem:[#allocation5 + $0x2120] sm:$0xff] }
 0x31c   :  { %7854 = vmatpush1.bf16.msra.mxu0 %v17287_v52  ;;  %8264 = vmatpush1.bf16.msra.mxu1 %v17289_v53  ;;  %v17335_v52 = vcombine.low %v1318_v34, %v1322_v36  ;;  %v1334_v53 = vld [vmem:[#allocation5 + $0x2040] sm:$0xff] }
 0x31d   :  { %7855 = vmatprep.subr.bf16.mxu0 %v17296_v54  ;;  %8265 = vmatprep.subr.bf16.mxu1 %v17298_v61  ;;  %v17337_v54 = vcombine.low %v1319_v37, %v1323_v39  ;;  %v1339_v61 = vld [vmem:[#allocation5 + $0x2068] sm:$0xff]  ;;  %v17352_v3 = vcombine.high %v1334_v53, %v1338_v56  ;;  %v17351_v11 = vcombine.low %v1334_v53, %v1338_v56  ;;  %v1370_v39 = vld [vmem:[#allocation5 + $0x2160] sm:$0xff] }
 0x31e   :  { %v17353_v12 = vcombine.low %v1335_v57, %v1339_v61  ;;  %v1379_v53 = vld [vmem:[#allocation5 + $0x21a8] sm:$0xff] }
 0x320   :  { %7856 = vmatpush1.bf16.msra.mxu0 %v17295_v63  ;;  %8266 = vmatpush1.bf16.msra.mxu1 %v17297_v0  ;;  %v281_v63 = vld [vmem:[%s21266_s12 + $0x88] sm:$0xff]  ;;  %v20936_v0 = vpack.c.bf16 %v278_v51, %v278_v51  ;;  %v1375_v51 = vld [vmem:[#allocation5 + $0x2188] sm:$0xff] }
 0x321   :  { %7857 = vmatprep.subr.bf16.mxu0 %v17304_v1  ;;  %8267 = vmatprep.subr.bf16.mxu1 %v17306_v6  ;;  %v17343_v1 = vcombine.low %v1326_v42, %v1330_v45  ;;  %v1346_v6 = vld [vmem:[#allocation5 + $0x20a0] sm:$0xff] }
 0x322   :  { %v17360_v14 = vcombine.high %v1342_v5, %v1346_v6  ;;  %v17359_v22 = vcombine.low %v1342_v5, %v1346_v6 }
 0x324   :  { %7858 = vmatpush1.bf16.msra.mxu0 %v17303_v8  ;;  %8268 = vmatpush1.bf16.msra.mxu1 %v17305_v9  ;;  %v17354_v8 = vcombine.high %v1335_v57, %v1339_v61  ;;  %v1347_v9 = vld [vmem:[#allocation5 + $0x20a8] sm:$0xff]  ;;  %v1382_v57 = vld [vmem:[#allocation5 + $0x21c0] sm:$0xff] }
 0x325   :  { %7859 = vmatprep.subr.bf16.mxu0 %v17312_v10  ;;  %8269 = vmatprep.subr.bf16.mxu1 %v17314_v15  ;;  %v20938_v10 = vpack.c.bf16 %v281_v63, %v281_v63  ;;  %v1350_v15 = vld [vmem:[#allocation5 + $0x20c0] sm:$0xff]  ;;  %v17361_v23 = vcombine.low %v1343_v7, %v1347_v9  ;;  %v17394_v63 = vcombine.high %v1375_v51, %v1379_v53 }
 0x326   :  { %v17368_v25 = vcombine.high %v1350_v15, %v1354_v16  ;;  %v17367_v34 = vcombine.low %v1350_v15, %v1354_v16  ;;  %v1386_v61 = vld [vmem:[#allocation5 + $0x21e0] sm:$0xff] }
 0x327   :  { %v17400_v5 = vcombine.high %v1382_v57, %v1386_v61 }
 0x328   :  { %7860 = vmatpush1.bf16.msra.mxu0 %v17311_v17  ;;  %8270 = vmatpush1.bf16.msra.mxu1 %v17313_v19  ;;  %v1351_v17 = vld [vmem:[#allocation5 + $0x20c8] sm:$0xff]  ;;  %v17362_v19 = vcombine.high %v1343_v7, %v1347_v9  ;;  %v1390_v7 = vld [vmem:[#allocation5 + $0x2200] sm:$0xff] }
 0x329   :  { %7861 = vmatprep.subr.bf16.mxu0 %v17320_v21  ;;  %8271 = vmatprep.subr.bf16.mxu1 %v17322_v27  ;;  %v1355_v21 = vld [vmem:[#allocation5 + $0x20e8] sm:$0xff]  ;;  %v1358_v27 = vld [vmem:[#allocation5 + $0x2100] sm:$0xff] }
 0x32a   :  { %v17369_v36 = vcombine.low %v1351_v17, %v1355_v21  ;;  %v17376_v37 = vcombine.high %v1358_v27, %v1362_v28  ;;  %v1391_v9 = vld [vmem:[#allocation5 + $0x2208] sm:$0xff] }
 0x32c   :  { %7862 = vmatpush1.bf16.msra.mxu0 %v17319_v30  ;;  %8272 = vmatpush1.bf16.msra.mxu1 %v17321_v31  ;;  %v1359_v30 = vld [vmem:[#allocation5 + $0x2108] sm:$0xff]  ;;  %v17370_v31 = vcombine.high %v1351_v17, %v1355_v21  ;;  %v1398_v17 = vld [vmem:[#allocation5 + $0x2240] sm:$0xff] }
 0x32d   :  { %7863 = vmatprep.subr.bf16.mxu0 %v17328_v33  ;;  %8273 = vmatprep.subr.bf16.mxu1 %v17330_v38  ;;  %v1363_v33 = vld [vmem:[#allocation5 + $0x2128] sm:$0xff]  ;;  %v1366_v38 = vld [vmem:[#allocation5 + $0x2140] sm:$0xff] }
 0x32e   :  { %v17378_v42 = vcombine.high %v1359_v30, %v1363_v33  ;;  %v17377_v45 = vcombine.low %v1359_v30, %v1363_v33  ;;  %v17384_v46 = vcombine.high %v1366_v38, %v1370_v39  ;;  %v1399_v21 = vld [vmem:[#allocation5 + $0x2248] sm:$0xff]  ;;  %v1406_v30 = vld [vmem:[#allocation5 + $0x2280] sm:$0xff] }
 0x32f   :  { %v1407_v33 = vld [vmem:[#allocation5 + $0x2288] sm:$0xff] }
 0x330   :  { %7864 = vmatpush1.bf16.msra.mxu0 %v17327_v41  ;;  %8274 = vmatpush1.bf16.msra.mxu1 %v17329_v43  ;;  %v1367_v41 = vld [vmem:[#allocation5 + $0x2148] sm:$0xff] }
 0x331   :  { %7865 = vmatprep.subr.bf16.mxu0 %v17336_v44  ;;  %8275 = vmatprep.subr.bf16.mxu1 %v17338_v50  ;;  %v1371_v43 = vld [vmem:[#allocation5 + $0x2168] sm:$0xff]  ;;  %v17375_v44 = vcombine.low %v1358_v27, %v1362_v28  ;;  %v1378_v50 = vld [vmem:[#allocation5 + $0x21a0] sm:$0xff] }
 0x332   :  { %v17392_v56 = vcombine.high %v1374_v47, %v1378_v50 }
 0x334   :  { %7866 = vmatpush1.bf16.msra.mxu0 %v17335_v52  ;;  %8276 = vmatpush1.bf16.msra.mxu1 %v17337_v54  ;;  %v17386_v52 = vcombine.high %v1367_v41, %v1371_v43  ;;  %v17383_v54 = vcombine.low %v1366_v38, %v1370_v39 }
 0x335   :  { %7876 = vmatprep.subr.bf16.mxu0 %v17344_v55  ;;  %8286 = vmatprep.subr.bf16.mxu1 %v17346_v62  ;;  %v17385_v55 = vcombine.low %v1367_v41, %v1371_v43  ;;  %v1383_v62 = vld [vmem:[#allocation5 + $0x21c8] sm:$0xff]  ;;  %v1414_v41 = vld [vmem:[#allocation5 + $0x22c0] sm:$0xff] }
 0x336   :  { %v1415_v43 = vld [vmem:[#allocation5 + $0x22c8] sm:$0xff] }
 0x337   :  { %7868 = vmatmul.mubr.bf16.vlgmr.msra.gmra.mrb[0].mxu0 %v20936_v0  ;;  %8278 = vmatmul.mubr.bf16.vlgmr.msra.gmra.mrb[0].mxu1 %v20936_v0 }
 0x338   :  { %7877 = vmatpush1.bf16.msra.mxu0 %v17343_v1  ;;  %8287 = vmatpush1.bf16.msra.mxu1 %v17345_v2  ;;  %v1387_v1 = vld [vmem:[#allocation5 + $0x21e8] sm:$0xff]  ;;  %v17391_v2 = vcombine.low %v1374_v47, %v1378_v50 }
 0x339   :  { %7878 = vmatprep.subr.bf16.mxu0 %v17352_v3  ;;  %8288 = vmatprep.subr.bf16.mxu1 %v17354_v8  ;;  %v17393_v3 = vcombine.low %v1375_v51, %v1379_v53  ;;  %v17402_v6 = vcombine.high %v1383_v62, %v1387_v1  ;;  %v1394_v8 = vld [vmem:[#allocation5 + $0x2220] sm:$0xff]  ;;  %v1423_v53 = vld [vmem:[#allocation5 + $0x2308] sm:$0xff] }
 0x33a   :  { %7908 = vmatprep.mubr.bf16.mxu0 %v20938_v10  ;;  %8318 = vmatprep.mubr.bf16.mxu1 %v20938_v10  ;;  %v17408_v15 = vcombine.high %v1390_v7, %v1394_v8  ;;  %v1422_v51 = vld [vmem:[#allocation5 + $0x2300] sm:$0xff] }
 0x33c   :  { %7879 = vmatpush1.bf16.msra.mxu0 %v17351_v11  ;;  %8289 = vmatpush1.bf16.msra.mxu1 %v17353_v12  ;;  %v1395_v11 = vld [vmem:[#allocation5 + $0x2228] sm:$0xff]  ;;  %v17399_v12 = vcombine.low %v1382_v57, %v1386_v61 }
 0x33d   :  { %7880 = vmatprep.subr.bf16.mxu0 %v17360_v14  ;;  %8290 = vmatprep.subr.bf16.mxu1 %v17362_v19  ;;  %v17401_v14 = vcombine.low %v1383_v62, %v1387_v1  ;;  %v17410_v16 = vcombine.high %v1391_v9, %v1395_v11  ;;  %v1402_v19 = vld [vmem:[#allocation5 + $0x2260] sm:$0xff]  ;;  %v1431_v1 = vld [vmem:[#allocation5 + $0x2348] sm:$0xff] }
 0x33e   :  { %v17416_v27 = vcombine.high %v1398_v17, %v1402_v19  ;;  %v1430_v62 = vld [vmem:[#allocation5 + $0x2340] sm:$0xff] }
 0x340   :  { %7881 = vmatpush1.bf16.msra.mxu0 %v17359_v22  ;;  %8291 = vmatpush1.bf16.msra.mxu1 %v17361_v23  ;;  %v1403_v22 = vld [vmem:[#allocation5 + $0x2268] sm:$0xff]  ;;  %v17407_v23 = vcombine.low %v1390_v7, %v1394_v8  ;;  %v1438_v8 = vld [vmem:[#allocation5 + $0x2380] sm:$0xff] }
 0x341   :  { %7882 = vmatprep.subr.bf16.mxu0 %v17368_v25  ;;  %8292 = vmatprep.subr.bf16.mxu1 %v17370_v31  ;;  %v17409_v25 = vcombine.low %v1391_v9, %v1395_v11  ;;  %v17418_v28 = vcombine.high %v1399_v21, %v1403_v22  ;;  %v1410_v31 = vld [vmem:[#allocation5 + $0x22a0] sm:$0xff]  ;;  %v1439_v11 = vld [vmem:[#allocation5 + $0x2388] sm:$0xff] }
 0x342   :  { %v17424_v38 = vcombine.high %v1406_v30, %v1410_v31  ;;  %v1442_v9 = vld [vmem:[#allocation5 + $0x23a0] sm:$0xff] }
 0x344   :  { %7883 = vmatpush1.bf16.msra.mxu0 %v17367_v34  ;;  %8293 = vmatpush1.bf16.msra.mxu1 %v17369_v36  ;;  %v1411_v34 = vld [vmem:[#allocation5 + $0x22a8] sm:$0xff]  ;;  %v17415_v36 = vcombine.low %v1398_v17, %v1402_v19  ;;  %v1446_v19 = vld [vmem:[#allocation5 + $0x23c0] sm:$0xff] }
 0x345   :  { %7884 = vmatprep.subr.bf16.mxu0 %v17376_v37  ;;  %8294 = vmatprep.subr.bf16.mxu1 %v17378_v42  ;;  %v17417_v37 = vcombine.low %v1399_v21, %v1403_v22  ;;  %v17426_v39 = vcombine.high %v1407_v33, %v1411_v34  ;;  %v1418_v42 = vld [vmem:[#allocation5 + $0x22e0] sm:$0xff]  ;;  %v1447_v22 = vld [vmem:[#allocation5 + $0x23c8] sm:$0xff] }
 0x346   :  { %v17432_v47 = vcombine.high %v1414_v41, %v1418_v42  ;;  %v1450_v21 = vld [vmem:[#allocation5 + $0x23e0] sm:$0xff] }
 0x348   :  { %7885 = vmatpush1.bf16.msra.mxu0 %v17375_v44  ;;  %8295 = vmatpush1.bf16.msra.mxu1 %v17377_v45  ;;  %v1419_v44 = vld [vmem:[#allocation5 + $0x22e8] sm:$0xff]  ;;  %v17423_v45 = vcombine.low %v1406_v30, %v1410_v31  ;;  %v1454_v31 = vld [vmem:[#allocation5 + $0x2400] sm:$0xff] }
 0x349   :  { %7886 = vmatprep.subr.bf16.mxu0 %v17384_v46  ;;  %8296 = vmatprep.subr.bf16.mxu1 %v17386_v52  ;;  %v17425_v46 = vcombine.low %v1407_v33, %v1411_v34  ;;  %v17434_v50 = vcombine.high %v1415_v43, %v1419_v44  ;;  %v1426_v52 = vld [vmem:[#allocation5 + $0x2320] sm:$0xff]  ;;  %v1455_v34 = vld [vmem:[#allocation5 + $0x2408] sm:$0xff] }
 0x34a   :  { %v17440_v57 = vcombine.high %v1422_v51, %v1426_v52  ;;  %v1458_v33 = vld [vmem:[#allocation5 + $0x2420] sm:$0xff] }
 0x34c   :  { %7887 = vmatpush1.bf16.msra.mxu0 %v17383_v54  ;;  %8297 = vmatpush1.bf16.msra.mxu1 %v17385_v55  ;;  %v1427_v54 = vld [vmem:[#allocation5 + $0x2328] sm:$0xff]  ;;  %v17431_v55 = vcombine.low %v1414_v41, %v1418_v42  ;;  %v17472_v41 = vcombine.high %v1454_v31, %v1458_v33 }
 0x34d   :  { %7888 = vmatprep.subr.bf16.mxu0 %v17392_v56  ;;  %8298 = vmatprep.subr.bf16.mxu1 %v17394_v63  ;;  %v17433_v56 = vcombine.low %v1415_v43, %v1419_v44  ;;  %v17442_v61 = vcombine.high %v1423_v53, %v1427_v54  ;;  %v1434_v63 = vld [vmem:[#allocation5 + $0x2360] sm:$0xff] }
 0x34e   :  { %v1462_v43 = vld [vmem:[#allocation5 + $0x2440] sm:$0xff] }
 0x34f   :  { %v1466_v44 = vld [vmem:[#allocation5 + $0x2460] sm:$0xff] }
 0x350   :  { %7889 = vmatpush1.bf16.msra.mxu0 %v17391_v2  ;;  %8299 = vmatpush1.bf16.msra.mxu1 %v17393_v3  ;;  %v1435_v2 = vld [vmem:[#allocation5 + $0x2368] sm:$0xff]  ;;  %v17439_v3 = vcombine.low %v1422_v51, %v1426_v52  ;;  %v17480_v52 = vcombine.high %v1462_v43, %v1466_v44 }
 0x351   :  { %7890 = vmatprep.subr.bf16.mxu0 %v17400_v5  ;;  %8300 = vmatprep.subr.bf16.mxu1 %v17402_v6  ;;  %v17441_v5 = vcombine.low %v1423_v53, %v1427_v54  ;;  %v17448_v6 = vcombine.high %v1430_v62, %v1434_v63  ;;  %v17450_v7 = vcombine.high %v1431_v1, %v1435_v2  ;;  %v1470_v54 = vld [vmem:[#allocation5 + $0x2480] sm:$0xff] }
 0x354   :  { %7891 = vmatpush1.bf16.msra.mxu0 %v17399_v12  ;;  %8301 = vmatpush1.bf16.msra.mxu1 %v17401_v14  ;;  %v1443_v12 = vld [vmem:[#allocation5 + $0x23a8] sm:$0xff]  ;;  %v17447_v14 = vcombine.low %v1430_v62, %v1434_v63 }
 0x355   :  { %7892 = vmatprep.subr.bf16.mxu0 %v17408_v15  ;;  %8302 = vmatprep.subr.bf16.mxu1 %v17410_v16  ;;  %v17449_v15 = vcombine.low %v1431_v1, %v1435_v2  ;;  %v17456_v16 = vcombine.high %v1438_v8, %v1442_v9  ;;  %v17458_v17 = vcombine.high %v1439_v11, %v1443_v12  ;;  %v1478_v2 = vld [vmem:[#allocation5 + $0x24c0] sm:$0xff] }
 0x358   :  { %7893 = vmatpush1.bf16.msra.mxu0 %v17407_v23  ;;  %8303 = vmatpush1.bf16.msra.mxu1 %v17409_v25  ;;  %v1451_v23 = vld [vmem:[#allocation5 + $0x23e8] sm:$0xff]  ;;  %v17455_v25 = vcombine.low %v1438_v8, %v1442_v9 }
 0x359   :  { %7894 = vmatprep.subr.bf16.mxu0 %v17416_v27  ;;  %8304 = vmatprep.subr.bf16.mxu1 %v17418_v28  ;;  %v17457_v27 = vcombine.low %v1439_v11, %v1443_v12  ;;  %v17464_v28 = vcombine.high %v1446_v19, %v1450_v21  ;;  %v17466_v30 = vcombine.high %v1447_v22, %v1451_v23 }
 0x35c   :  { %7895 = vmatpush1.bf16.msra.mxu0 %v17415_v36  ;;  %8305 = vmatpush1.bf16.msra.mxu1 %v17417_v37  ;;  %v1459_v36 = vld [vmem:[#allocation5 + $0x2428] sm:$0xff]  ;;  %v17463_v37 = vcombine.low %v1446_v19, %v1450_v21 }
 0x35d   :  { %7896 = vmatprep.subr.bf16.mxu0 %v17424_v38  ;;  %8306 = vmatprep.subr.bf16.mxu1 %v17426_v39  ;;  %v280_v38 = vld [vmem:[%s21266_s12 + $0x80] sm:$0xff]  ;;  %v17465_v39 = vcombine.low %v1447_v22, %v1451_v23  ;;  %v17474_v42 = vcombine.high %v1455_v34, %v1459_v36  ;;  %v17473_v51 = vcombine.low %v1455_v34, %v1459_v36 }
 0x360   :  { %7897 = vmatpush1.bf16.msra.mxu0 %v17423_v45  ;;  %8307 = vmatpush1.bf16.msra.mxu1 %v17425_v46  ;;  %v20947_v45 = vpack.c.bf16 %v280_v38, %v280_v38  ;;  %v1463_v46 = vld [vmem:[#allocation5 + $0x2448] sm:$0xff]  ;;  %v308_v38 = vld [vmem:[#allocation5 + $0x30] sm:$0xff] }
 0x361   :  { %7898 = vmatprep.subr.bf16.mxu0 %v17432_v47  ;;  %8308 = vmatprep.subr.bf16.mxu1 %v17434_v50  ;;  %v1467_v47 = vld [vmem:[#allocation5 + $0x2468] sm:$0xff]  ;;  %v17471_v50 = vcombine.low %v1454_v31, %v1458_v33 }
 0x362   :  { %v17482_v53 = vcombine.high %v1463_v46, %v1467_v47  ;;  %v17481_v62 = vcombine.low %v1463_v46, %v1467_v47 }
 0x364   :  { %7899 = vmatpush1.bf16.msra.mxu0 %v17431_v55  ;;  %8309 = vmatpush1.bf16.msra.mxu1 %v17433_v56  ;;  %v1474_v55 = vld [vmem:[#allocation5 + $0x24a0] sm:$0xff]  ;;  %v1471_v56 = vld [vmem:[#allocation5 + $0x2488] sm:$0xff] }
 0x365   :  { %7900 = vmatprep.subr.bf16.mxu0 %v17440_v57  ;;  %8310 = vmatprep.subr.bf16.mxu1 %v17442_v61  ;;  %v1475_v57 = vld [vmem:[#allocation5 + $0x24a8] sm:$0xff]  ;;  %v17479_v61 = vcombine.low %v1462_v43, %v1466_v44  ;;  %v17488_v63 = vcombine.high %v1470_v54, %v1474_v55  ;;  %v17487_v8 = vcombine.low %v1470_v54, %v1474_v55  ;;  %v317_v54 = vld [vmem:[#allocation5 + $0x78] sm:$0xff] }
 0x366   :  { %v17490_v1 = vcombine.high %v1471_v56, %v1475_v57  ;;  %v17489_v9 = vcombine.low %v1471_v56, %v1475_v57  ;;  %v282_v43 = vld [vmem:[%s21266_s12 + $0x90] sm:$0xff] }
 0x368   :  { %7901 = vmatpush1.bf16.msra.mxu0 %v17439_v3  ;;  %8311 = vmatpush1.bf16.msra.mxu1 %v17441_v5  ;;  %v1482_v3 = vld [vmem:[#allocation5 + $0x24e0] sm:$0xff]  ;;  %v20521_v5 = vmov 0  }
 0x369   :  { %7902 = vmatprep.subr.bf16.mxu0 %v17448_v6  ;;  %8312 = vmatprep.subr.bf16.mxu1 %v17450_v7  ;;  %v1479_v6 = vld [vmem:[#allocation5 + $0x24c8] sm:$0xff]  ;;  %v17496_v11 = vcombine.high %v1478_v2, %v1482_v3  ;;  %v17495_v19 = vcombine.low %v1478_v2, %v1482_v3  ;;  %v325_v2 = vld [vmem:[#allocation5 + $0xb8] sm:$0xff] }
 0x36a   :  { %v1483_v7 = vld [vmem:[#allocation5 + $0x24e8] sm:$0xff] }
 0x36b   :  { %v17498_v12 = vcombine.high %v1479_v6, %v1483_v7  ;;  %v17497_v21 = vcombine.low %v1479_v6, %v1483_v7 }
 0x36c   :  { %7903 = vmatpush1.bf16.msra.mxu0 %v17447_v14  ;;  %8313 = vmatpush1.bf16.msra.mxu1 %v17449_v15  ;;  %v1486_v14 = vld [vmem:[#allocation5 + $0x2500] sm:$0xff] }
 0x36d   :  { %7904 = vmatprep.subr.bf16.mxu0 %v17456_v16  ;;  %8314 = vmatprep.subr.bf16.mxu1 %v17458_v17  ;;  %v1490_v15 = vld [vmem:[#allocation5 + $0x2520] sm:$0xff]  ;;  %v1487_v16 = vld [vmem:[#allocation5 + $0x2508] sm:$0xff] }
 0x36e   :  { %v1491_v17 = vld [vmem:[#allocation5 + $0x2528] sm:$0xff]  ;;  %v17504_v22 = vcombine.high %v1486_v14, %v1490_v15  ;;  %v17503_v31 = vcombine.low %v1486_v14, %v1490_v15  ;;  %v333_v14 = vld [vmem:[#allocation5 + $0xf8] sm:$0xff] }
 0x36f   :  { %v17506_v23 = vcombine.high %v1487_v16, %v1491_v17  ;;  %v17505_v33 = vcombine.low %v1487_v16, %v1491_v17 }
 0x370   :  { %7905 = vmatpush1.bf16.msra.mxu0 %v17455_v25  ;;  %8315 = vmatpush1.bf16.msra.mxu1 %v17457_v27  ;;  %v1494_v25 = vld [vmem:[#allocation5 + $0x2540] sm:$0xff] }
 0x371   :  { %7906 = vmatprep.subr.bf16.mxu0 %v17464_v28  ;;  %8316 = vmatprep.subr.bf16.mxu1 %v17466_v30  ;;  %v1498_v27 = vld [vmem:[#allocation5 + $0x2560] sm:$0xff]  ;;  %v1495_v28 = vld [vmem:[#allocation5 + $0x2548] sm:$0xff] }
 0x372   :  { %v1499_v30 = vld [vmem:[#allocation5 + $0x2568] sm:$0xff]  ;;  %v17512_v34 = vcombine.high %v1494_v25, %v1498_v27 }
 0x373   :  { %v17514_v36 = vcombine.high %v1495_v28, %v1499_v30  ;;  %v17513_v44 = vcombine.low %v1495_v28, %v1499_v30 }
 0x374   :  { %7907 = vmatpush1.bf16.msra.mxu0 %v17463_v37  ;;  %8317 = vmatpush1.bf16.msra.mxu1 %v17465_v39  ;;  %v304_v37 = vld [vmem:[#allocation5 + $0x10] sm:$0xff]  ;;  %v305_v39 = vld [vmem:[#allocation5 + $0x18] sm:$0xff] }
 0x375   :  { %7917 = vmatprep.subr.bf16.mxu0 %v17472_v41  ;;  %8327 = vmatprep.subr.bf16.mxu1 %v17474_v42  ;;  %v309_v41 = vld [vmem:[#allocation5 + $0x38] sm:$0xff]  ;;  %v17511_v42 = vcombine.low %v1494_v25, %v1498_v27  ;;  %v16324_v46 = vcombine.high %v304_v37, %v308_v38  ;;  %v16323_v55 = vcombine.low %v304_v37, %v308_v38 }
 0x376   :  { %v16326_v47 = vcombine.high %v305_v39, %v309_v41  ;;  %v16325_v56 = vcombine.low %v305_v39, %v309_v41  ;;  %v341_v25 = vld [vmem:[#allocation5 + $0x138] sm:$0xff] }
 0x377   :  { %7909 = vmatmul.mubr.bf16.vlgmr.msra.gmra.mrb[0].mxu0 %v20947_v45  ;;  %8319 = vmatmul.mubr.bf16.vlgmr.msra.gmra.mrb[0].mxu1 %v20947_v45 }
 0x378   :  { %7918 = vmatpush1.bf16.msra.mxu0 %v17471_v50  ;;  %8328 = vmatpush1.bf16.msra.mxu1 %v17473_v51  ;;  %v312_v50 = vld [vmem:[#allocation5 + $0x50] sm:$0xff] }
 0x379   :  { %7919 = vmatprep.subr.bf16.mxu0 %v17480_v52  ;;  %8329 = vmatprep.subr.bf16.mxu1 %v17482_v53  ;;  %v316_v51 = vld [vmem:[#allocation5 + $0x70] sm:$0xff]  ;;  %v20956_v52 = vpack.c.bf16 %v282_v43, %v282_v43  ;;  %v313_v53 = vld [vmem:[#allocation5 + $0x58] sm:$0xff] }
 0x37a   :  { %7949 = vmatprep.mubr.bf16.mxu0 %v20521_v5  ;;  %8359 = vmatprep.mubr.bf16.mxu1 %v20521_v5  ;;  %v16332_v57 = vcombine.high %v312_v50, %v316_v51  ;;  %v16331_v3 = vcombine.low %v312_v50, %v316_v51  ;;  %v16333_v6 = vcombine.low %v313_v53, %v317_v54  ;;  %v356_v43 = vld [vmem:[#allocation5 + $0x1b0] sm:$0xff] }
 0x37c   :  { %7920 = vmatpush1.bf16.msra.mxu0 %v17479_v61  ;;  %8330 = vmatpush1.bf16.msra.mxu1 %v17481_v62  ;;  %v16334_v61 = vcombine.high %v313_v53, %v317_v54  ;;  %v320_v62 = vld [vmem:[#allocation5 + $0x90] sm:$0xff] }
 0x37d   :  { %7921 = vmatprep.subr.bf16.mxu0 %v17488_v63  ;;  %8331 = vmatprep.subr.bf16.mxu1 %v17490_v1  ;;  %v324_v63 = vld [vmem:[#allocation5 + $0xb0] sm:$0xff]  ;;  %v321_v1 = vld [vmem:[#allocation5 + $0x98] sm:$0xff] }
 0x37e   :  { %v16340_v7 = vcombine.high %v320_v62, %v324_v63  ;;  %v16339_v15 = vcombine.low %v320_v62, %v324_v63  ;;  %v16341_v16 = vcombine.low %v321_v1, %v325_v2  ;;  %v360_v54 = vld [vmem:[#allocation5 + $0x1d0] sm:$0xff] }
 0x380   :  { %7922 = vmatpush1.bf16.msra.mxu0 %v17487_v8  ;;  %8332 = vmatpush1.bf16.msra.mxu1 %v17489_v9  ;;  %v16342_v8 = vcombine.high %v321_v1, %v325_v2  ;;  %v328_v9 = vld [vmem:[#allocation5 + $0xd0] sm:$0xff] }
 0x381   :  { %7923 = vmatprep.subr.bf16.mxu0 %v17496_v11  ;;  %8333 = vmatprep.subr.bf16.mxu1 %v17498_v12  ;;  %v332_v11 = vld [vmem:[#allocation5 + $0xf0] sm:$0xff]  ;;  %v329_v12 = vld [vmem:[#allocation5 + $0xd8] sm:$0xff] }
 0x382   :  { %v16348_v17 = vcombine.high %v328_v9, %v332_v11  ;;  %v16347_v27 = vcombine.low %v328_v9, %v332_v11  ;;  %v16349_v28 = vcombine.low %v329_v12, %v333_v14  ;;  %v368_v2 = vld [vmem:[#allocation5 + $0x210] sm:$0xff] }
 0x384   :  { %7924 = vmatpush1.bf16.msra.mxu0 %v17495_v19  ;;  %8334 = vmatpush1.bf16.msra.mxu1 %v17497_v21  ;;  %v16350_v19 = vcombine.high %v329_v12, %v333_v14  ;;  %v336_v21 = vld [vmem:[#allocation5 + $0x110] sm:$0xff] }
 0x385   :  { %7925 = vmatprep.subr.bf16.mxu0 %v17504_v22  ;;  %8335 = vmatprep.subr.bf16.mxu1 %v17506_v23  ;;  %v340_v22 = vld [vmem:[#allocation5 + $0x130] sm:$0xff]  ;;  %v337_v23 = vld [vmem:[#allocation5 + $0x118] sm:$0xff] }
 0x386   :  { %v16356_v30 = vcombine.high %v336_v21, %v340_v22  ;;  %v16355_v37 = vcombine.low %v336_v21, %v340_v22  ;;  %v16357_v38 = vcombine.low %v337_v23, %v341_v25  ;;  %v376_v14 = vld [vmem:[#allocation5 + $0x250] sm:$0xff] }
 0x388   :  { %7926 = vmatpush1.bf16.msra.mxu0 %v17503_v31  ;;  %8336 = vmatpush1.bf16.msra.mxu1 %v17505_v33  ;;  %v344_v31 = vld [vmem:[#allocation5 + $0x150] sm:$0xff] }
 0x389   :  { %7927 = vmatprep.subr.bf16.mxu0 %v17512_v34  ;;  %8337 = vmatprep.subr.bf16.mxu1 %v17514_v36  ;;  %v348_v33 = vld [vmem:[#allocation5 + $0x170] sm:$0xff]  ;;  %v345_v34 = vld [vmem:[#allocation5 + $0x158] sm:$0xff] }
 0x38a   :  { %v349_v36 = vld [vmem:[#allocation5 + $0x178] sm:$0xff]  ;;  %v16364_v39 = vcombine.high %v344_v31, %v348_v33 }
 0x38b   :  { %v16366_v41 = vcombine.high %v345_v34, %v349_v36  ;;  %v16365_v50 = vcombine.low %v345_v34, %v349_v36  ;;  %v392_v36 = vld [vmem:[#allocation5 + $0x2d0] sm:$0xff] }
 0x38c   :  { %7928 = vmatpush1.bf16.msra.mxu0 %v17511_v42  ;;  %8338 = vmatpush1.bf16.msra.mxu1 %v17513_v44  ;;  %v352_v42 = vld [vmem:[#allocation5 + $0x190] sm:$0xff]  ;;  %v353_v44 = vld [vmem:[#allocation5 + $0x198] sm:$0xff] }
 0x38d   :  { %8368 = vmatprep.subr.bf16.mxu0 %v16324_v46  ;;  %8778 = vmatprep.subr.bf16.mxu1 %v16326_v47  ;;  %v357_v46 = vld [vmem:[#allocation5 + $0x1b8] sm:$0xff]  ;;  %v16363_v47 = vcombine.low %v344_v31, %v348_v33  ;;  %v16372_v51 = vcombine.high %v352_v42, %v356_v43 }
 0x38e   :  { %v16374_v53 = vcombine.high %v353_v44, %v357_v46  ;;  %v16373_v62 = vcombine.low %v353_v44, %v357_v46  ;;  %v400_v46 = vld [vmem:[#allocation5 + $0x310] sm:$0xff] }
 0x38f   :  { %17519 = vmatmul.mubr.msk.bf16.vlgmr.msra.gmra.mrb[0].mxu0 %vm7544_vm0, %v20956_v52  ;;  %17520 = vmatmul.mubr.msk.bf16.vlgmr.msra.gmra.mrb[0].mxu1 %vm7544_vm0, %v20956_v52 }
 0x390   :  { %8369 = vmatpush1.bf16.msra.mxu0 %v16323_v55  ;;  %8779 = vmatpush1.bf16.msra.mxu1 %v16325_v56  ;;  %v364_v55 = vld [vmem:[#allocation5 + $0x1f0] sm:$0xff]  ;;  %v361_v56 = vld [vmem:[#allocation5 + $0x1d8] sm:$0xff] }
 0x391   :  { %8370 = vmatprep.subr.bf16.mxu0 %v16332_v57  ;;  %8780 = vmatprep.subr.bf16.mxu1 %v16334_v61  ;;  %v365_v57 = vld [vmem:[#allocation5 + $0x1f8] sm:$0xff]  ;;  %v16371_v61 = vcombine.low %v352_v42, %v356_v43  ;;  %v16380_v63 = vcombine.high %v360_v54, %v364_v55 }
 0x392   :  { %8400 = vmatprep.mubr.bf16.mxu0 %v20828_v58  ;;  %8810 = vmatprep.mubr.bf16.mxu1 %v20828_v58  ;;  %v16358_v58 = vcombine.high %v337_v23, %v341_v25  ;;  %v16382_v1 = vcombine.high %v361_v56, %v365_v57  ;;  %v16381_v9 = vcombine.low %v361_v56, %v365_v57  ;;  %v384_v25 = vld [vmem:[#allocation5 + $0x290] sm:$0xff] }
 0x393   :  { %v408_v57 = vld [vmem:[#allocation5 + $0x350] sm:$0xff] }
 0x394   :  { %8371 = vmatpush1.bf16.msra.mxu0 %v16331_v3  ;;  %8781 = vmatpush1.bf16.msra.mxu1 %v16333_v6  ;;  %v372_v3 = vld [vmem:[#allocation5 + $0x230] sm:$0xff]  ;;  %v369_v6 = vld [vmem:[#allocation5 + $0x218] sm:$0xff] }
 0x395   :  { %8372 = vmatprep.subr.bf16.mxu0 %v16340_v7  ;;  %8782 = vmatprep.subr.bf16.mxu1 %v16342_v8  ;;  %v373_v7 = vld [vmem:[#allocation5 + $0x238] sm:$0xff]  ;;  %v16379_v8 = vcombine.low %v360_v54, %v364_v55  ;;  %v16388_v11 = vcombine.high %v368_v2, %v372_v3 }
 0x396   :  { %v16390_v12 = vcombine.high %v369_v6, %v373_v7  ;;  %v16389_v21 = vcombine.low %v369_v6, %v373_v7  ;;  %v416_v7 = vld [vmem:[#allocation5 + $0x390] sm:$0xff] }
 0x398   :  { %8373 = vmatpush1.bf16.msra.mxu0 %v16339_v15  ;;  %8783 = vmatpush1.bf16.msra.mxu1 %v16341_v16  ;;  %v380_v15 = vld [vmem:[#allocation5 + $0x270] sm:$0xff]  ;;  %v377_v16 = vld [vmem:[#allocation5 + $0x258] sm:$0xff] }
 0x399   :  { %8374 = vmatprep.subr.bf16.mxu0 %v16348_v17  ;;  %8784 = vmatprep.subr.bf16.mxu1 %v16350_v19  ;;  %v381_v17 = vld [vmem:[#allocation5 + $0x278] sm:$0xff]  ;;  %v16387_v19 = vcombine.low %v368_v2, %v372_v3  ;;  %v16396_v22 = vcombine.high %v376_v14, %v380_v15 }
 0x39a   :  { %v16398_v23 = vcombine.high %v377_v16, %v381_v17  ;;  %v16397_v31 = vcombine.low %v377_v16, %v381_v17  ;;  %v424_v17 = vld [vmem:[#allocation5 + $0x3d0] sm:$0xff] }
 0x39c   :  { %8375 = vmatpush1.bf16.msra.mxu0 %v16347_v27  ;;  %8785 = vmatpush1.bf16.msra.mxu1 %v16349_v28  ;;  %v388_v27 = vld [vmem:[#allocation5 + $0x2b0] sm:$0xff]  ;;  %v385_v28 = vld [vmem:[#allocation5 + $0x298] sm:$0xff] }
 0x39d   :  { %8376 = vmatprep.subr.bf16.mxu0 %v16356_v30  ;;  %8786 = vmatprep.subr.bf16.mxu1 %v16358_v58  ;;  %v389_v30 = vld [vmem:[#allocation5 + $0x2b8] sm:$0xff]  ;;  %v16395_v58 = vcombine.low %v376_v14, %v380_v15  ;;  %v16404_v33 = vcombine.high %v384_v25, %v388_v27 }
 0x39e   :  { %v16406_v34 = vcombine.high %v385_v28, %v389_v30  ;;  %v16405_v42 = vcombine.low %v385_v28, %v389_v30  ;;  %v432_v30 = vld [vmem:[#allocation5 + $0x410] sm:$0xff] }
 0x3a0   :  { %8377 = vmatpush1.bf16.msra.mxu0 %v16355_v37  ;;  %8787 = vmatpush1.bf16.msra.mxu1 %v16357_v38  ;;  %v396_v37 = vld [vmem:[#allocation5 + $0x2f0] sm:$0xff]  ;;  %v393_v38 = vld [vmem:[#allocation5 + $0x2d8] sm:$0xff] }
 0x3a1   :  { %8378 = vmatprep.subr.bf16.mxu0 %v16364_v39  ;;  %8788 = vmatprep.subr.bf16.mxu1 %v16366_v41  ;;  %v397_v39 = vld [vmem:[#allocation5 + $0x2f8] sm:$0xff]  ;;  %v16403_v41 = vcombine.low %v384_v25, %v388_v27  ;;  %v16412_v43 = vcombine.high %v392_v36, %v396_v37 }
 0x3a2   :  { %v16414_v44 = vcombine.high %v393_v38, %v397_v39  ;;  %v16413_v54 = vcombine.low %v393_v38, %v397_v39  ;;  %v440_v39 = vld [vmem:[#allocation5 + $0x450] sm:$0xff] }
 0x3a4   :  { %8379 = vmatpush1.bf16.msra.mxu0 %v16363_v47  ;;  %8789 = vmatpush1.bf16.msra.mxu1 %v16365_v50  ;;  %v404_v47 = vld [vmem:[#allocation5 + $0x330] sm:$0xff]  ;;  %v401_v50 = vld [vmem:[#allocation5 + $0x318] sm:$0xff] }
 0x3a5   :  { %8380 = vmatprep.subr.bf16.mxu0 %v16372_v51  ;;  %8790 = vmatprep.subr.bf16.mxu1 %v16374_v53  ;;  %v405_v51 = vld [vmem:[#allocation5 + $0x338] sm:$0xff]  ;;  %v16411_v53 = vcombine.low %v392_v36, %v396_v37  ;;  %v16420_v55 = vcombine.high %v400_v46, %v404_v47 }
 0x3a6   :  { %v16422_v56 = vcombine.high %v401_v50, %v405_v51  ;;  %v16421_v2 = vcombine.low %v401_v50, %v405_v51  ;;  %v448_v51 = vld [vmem:[#allocation5 + $0x490] sm:$0xff] }
 0x3a8   :  { %8381 = vmatpush1.bf16.msra.mxu0 %v16371_v61  ;;  %8791 = vmatpush1.bf16.msra.mxu1 %v16373_v62  ;;  %v412_v61 = vld [vmem:[#allocation5 + $0x370] sm:$0xff]  ;;  %v409_v62 = vld [vmem:[#allocation5 + $0x358] sm:$0xff] }
 0x3a9   :  { %8382 = vmatprep.subr.bf16.mxu0 %v16380_v63  ;;  %8792 = vmatprep.subr.bf16.mxu1 %v16382_v1  ;;  %v413_v63 = vld [vmem:[#allocation5 + $0x378] sm:$0xff]  ;;  %v16419_v1 = vcombine.low %v400_v46, %v404_v47  ;;  %v16428_v3 = vcombine.high %v408_v57, %v412_v61 }
 0x3aa   :  { %v16430_v6 = vcombine.high %v409_v62, %v413_v63  ;;  %v16429_v14 = vcombine.low %v409_v62, %v413_v63  ;;  %v456_v63 = vld [vmem:[#allocation5 + $0x4d0] sm:$0xff] }
 0x3ac   :  { %8383 = vmatpush1.bf16.msra.mxu0 %v16379_v8  ;;  %8793 = vmatpush1.bf16.msra.mxu1 %v16381_v9  ;;  %v420_v8 = vld [vmem:[#allocation5 + $0x3b0] sm:$0xff]  ;;  %v417_v9 = vld [vmem:[#allocation5 + $0x398] sm:$0xff] }
 0x3ad   :  { %8384 = vmatprep.subr.bf16.mxu0 %v16388_v11  ;;  %8794 = vmatprep.subr.bf16.mxu1 %v16390_v12  ;;  %v421_v11 = vld [vmem:[#allocation5 + $0x3b8] sm:$0xff]  ;;  %v16427_v12 = vcombine.low %v408_v57, %v412_v61  ;;  %v16436_v15 = vcombine.high %v416_v7, %v420_v8 }
 0x3ae   :  { %v16438_v16 = vcombine.high %v417_v9, %v421_v11  ;;  %v16437_v25 = vcombine.low %v417_v9, %v421_v11  ;;  %v464_v9 = vld [vmem:[#allocation5 + $0x510] sm:$0xff] }
 0x3af   :  { %v468_v11 = vld [vmem:[#allocation5 + $0x530] sm:$0xff] }
 0x3b0   :  { %8385 = vmatpush1.bf16.msra.mxu0 %v16387_v19  ;;  %8795 = vmatpush1.bf16.msra.mxu1 %v16389_v21  ;;  %v428_v19 = vld [vmem:[#allocation5 + $0x3f0] sm:$0xff]  ;;  %v425_v21 = vld [vmem:[#allocation5 + $0x3d8] sm:$0xff] }
 0x3b1   :  { %8386 = vmatprep.subr.bf16.mxu0 %v16396_v22  ;;  %8796 = vmatprep.subr.bf16.mxu1 %v16398_v23  ;;  %v429_v22 = vld [vmem:[#allocation5 + $0x3f8] sm:$0xff]  ;;  %v16435_v23 = vcombine.low %v416_v7, %v420_v8  ;;  %v16444_v27 = vcombine.high %v424_v17, %v428_v19 }
 0x3b2   :  { %v16446_v28 = vcombine.high %v425_v21, %v429_v22  ;;  %v16445_v36 = vcombine.low %v425_v21, %v429_v22  ;;  %v476_v21 = vld [vmem:[#allocation5 + $0x570] sm:$0xff]  ;;  %v473_v22 = vld [vmem:[#allocation5 + $0x558] sm:$0xff] }
 0x3b4   :  { %8387 = vmatpush1.bf16.msra.mxu0 %v16395_v58  ;;  %8797 = vmatpush1.bf16.msra.mxu1 %v16397_v31  ;;  %v436_v58 = vld [vmem:[#allocation5 + $0x430] sm:$0xff]  ;;  %v433_v31 = vld [vmem:[#allocation5 + $0x418] sm:$0xff] }
 0x3b5   :  { %8388 = vmatprep.subr.bf16.mxu0 %v16404_v33  ;;  %8798 = vmatprep.subr.bf16.mxu1 %v16406_v34  ;;  %v437_v33 = vld [vmem:[#allocation5 + $0x438] sm:$0xff]  ;;  %v16443_v34 = vcombine.low %v424_v17, %v428_v19  ;;  %v16452_v37 = vcombine.high %v432_v30, %v436_v58  ;;  %v16484_v17 = vcombine.high %v464_v9, %v468_v11  ;;  %v472_v19 = vld [vmem:[#allocation5 + $0x550] sm:$0xff] }
 0x3b6   :  { %v16454_v38 = vcombine.high %v433_v31, %v437_v33  ;;  %v16453_v46 = vcombine.low %v433_v31, %v437_v33  ;;  %v484_v31 = vld [vmem:[#allocation5 + $0x5b0] sm:$0xff]  ;;  %v481_v33 = vld [vmem:[#allocation5 + $0x598] sm:$0xff] }
 0x3b8   :  { %8389 = vmatpush1.bf16.msra.mxu0 %v16403_v41  ;;  %8799 = vmatpush1.bf16.msra.mxu1 %v16405_v42  ;;  %v444_v41 = vld [vmem:[#allocation5 + $0x470] sm:$0xff]  ;;  %v441_v42 = vld [vmem:[#allocation5 + $0x458] sm:$0xff] }
 0x3b9   :  { %8390 = vmatprep.subr.bf16.mxu0 %v16412_v43  ;;  %8800 = vmatprep.subr.bf16.mxu1 %v16414_v44  ;;  %v445_v43 = vld [vmem:[#allocation5 + $0x478] sm:$0xff]  ;;  %v16451_v44 = vcombine.low %v432_v30, %v436_v58  ;;  %v16460_v47 = vcombine.high %v440_v39, %v444_v41  ;;  %v480_v58 = vld [vmem:[#allocation5 + $0x590] sm:$0xff] }
 0x3ba   :  { %v16462_v50 = vcombine.high %v441_v42, %v445_v43  ;;  %v16461_v57 = vcombine.low %v441_v42, %v445_v43  ;;  %v492_v42 = vld [vmem:[#allocation5 + $0x5f0] sm:$0xff]  ;;  %v489_v43 = vld [vmem:[#allocation5 + $0x5d8] sm:$0xff] }
 0x3bc   :  { %8391 = vmatpush1.bf16.msra.mxu0 %v16411_v53  ;;  %8801 = vmatpush1.bf16.msra.mxu1 %v16413_v54  ;;  %v452_v53 = vld [vmem:[#allocation5 + $0x4b0] sm:$0xff]  ;;  %v449_v54 = vld [vmem:[#allocation5 + $0x498] sm:$0xff] }
 0x3bd   :  { %8392 = vmatprep.subr.bf16.mxu0 %v16420_v55  ;;  %8802 = vmatprep.subr.bf16.mxu1 %v16422_v56  ;;  %v453_v55 = vld [vmem:[#allocation5 + $0x4b8] sm:$0xff]  ;;  %v16459_v56 = vcombine.low %v440_v39, %v444_v41  ;;  %v16468_v61 = vcombine.high %v448_v51, %v452_v53  ;;  %v488_v41 = vld [vmem:[#allocation5 + $0x5d0] sm:$0xff] }
 0x3be   :  { %v16470_v62 = vcombine.high %v449_v54, %v453_v55 }
 0x3c0   :  { %8393 = vmatpush1.bf16.msra.mxu0 %v16419_v1  ;;  %8803 = vmatpush1.bf16.msra.mxu1 %v16421_v2  ;;  %v460_v1 = vld [vmem:[#allocation5 + $0x4f0] sm:$0xff]  ;;  %v457_v2 = vld [vmem:[#allocation5 + $0x4d8] sm:$0xff] }
 0x3c1   :  { %8394 = vmatprep.subr.bf16.mxu0 %v16428_v3  ;;  %8804 = vmatprep.subr.bf16.mxu1 %v16430_v6  ;;  %v461_v3 = vld [vmem:[#allocation5 + $0x4f8] sm:$0xff]  ;;  %v16467_v6 = vcombine.low %v448_v51, %v452_v53  ;;  %v16476_v7 = vcombine.high %v456_v63, %v460_v1  ;;  %v496_v53 = vld [vmem:[#allocation5 + $0x610] sm:$0xff] }
 0x3c2   :  { %v16478_v8 = vcombine.high %v457_v2, %v461_v3 }
 0x3c4   :  { %8395 = vmatpush1.bf16.msra.mxu0 %v16427_v12  ;;  %8805 = vmatpush1.bf16.msra.mxu1 %v16429_v14  ;;  %v465_v12 = vld [vmem:[#allocation5 + $0x518] sm:$0xff] }
 0x3c5   :  { %8396 = vmatprep.subr.bf16.mxu0 %v16436_v15  ;;  %8806 = vmatprep.subr.bf16.mxu1 %v16438_v16  ;;  %v469_v14 = vld [vmem:[#allocation5 + $0x538] sm:$0xff]  ;;  %v16475_v15 = vcombine.low %v456_v63, %v460_v1  ;;  %v16477_v16 = vcombine.low %v457_v2, %v461_v3  ;;  %v504_v1 = vld [vmem:[#allocation5 + $0x650] sm:$0xff] }
 0x3c6   :  { %v508_v2 = vld [vmem:[#allocation5 + $0x670] sm:$0xff]  ;;  %v505_v3 = vld [vmem:[#allocation5 + $0x658] sm:$0xff] }
 0x3c8   :  { %8397 = vmatpush1.bf16.msra.mxu0 %v16435_v23  ;;  %8807 = vmatpush1.bf16.msra.mxu1 %v16437_v25  ;;  %v477_v23 = vld [vmem:[#allocation5 + $0x578] sm:$0xff]  ;;  %v16483_v25 = vcombine.low %v464_v9, %v468_v11  ;;  %v512_v11 = vld [vmem:[#allocation5 + $0x690] sm:$0xff] }
 0x3c9   :  { %8398 = vmatprep.subr.bf16.mxu0 %v16444_v27  ;;  %8808 = vmatprep.subr.bf16.mxu1 %v16446_v28  ;;  %v16485_v27 = vcombine.low %v465_v12, %v469_v14  ;;  %v16492_v28 = vcombine.high %v472_v19, %v476_v21  ;;  %v16494_v30 = vcombine.high %v473_v22, %v477_v23 }
 0x3cc   :  { %8399 = vmatpush1.bf16.msra.mxu0 %v16443_v34  ;;  %8809 = vmatpush1.bf16.msra.mxu1 %v16445_v36  ;;  %v485_v34 = vld [vmem:[#allocation5 + $0x5b8] sm:$0xff]  ;;  %v16491_v36 = vcombine.low %v472_v19, %v476_v21  ;;  %v520_v21 = vld [vmem:[#allocation5 + $0x6d0] sm:$0xff] }
 0x3cd   :  { %8409 = vmatprep.subr.bf16.mxu0 %v16452_v37  ;;  %8819 = vmatprep.subr.bf16.mxu1 %v16454_v38  ;;  %v16493_v37 = vcombine.low %v473_v22, %v477_v23  ;;  %v16500_v38 = vcombine.high %v480_v58, %v484_v31  ;;  %v16502_v39 = vcombine.high %v481_v33, %v485_v34  ;;  %v524_v22 = vld [vmem:[#allocation5 + $0x6f0] sm:$0xff]  ;;  %v521_v23 = vld [vmem:[#allocation5 + $0x6d8] sm:$0xff] }
 0x3cf   :  { %8401 = vmatmul.mubr.bf16.vlgmr.msra.gmra.mrb[4].mxu0 %v20835_v13  ;;  %8811 = vmatmul.mubr.bf16.vlgmr.msra.gmra.mrb[4].mxu1 %v20835_v13  ;;  %v16469_v13 = vcombine.low %v449_v54, %v453_v55  ;;  %v500_v54 = vld [vmem:[#allocation5 + $0x630] sm:$0xff]  ;;  %v497_v55 = vld [vmem:[#allocation5 + $0x618] sm:$0xff] }
 0x3d0   :  { %8410 = vmatpush1.bf16.msra.mxu0 %v16451_v44  ;;  %8820 = vmatpush1.bf16.msra.mxu1 %v16453_v46  ;;  %v493_v44 = vld [vmem:[#allocation5 + $0x5f8] sm:$0xff]  ;;  %v16499_v46 = vcombine.low %v480_v58, %v484_v31  ;;  %v528_v31 = vld [vmem:[#allocation5 + $0x710] sm:$0xff] }
 0x3d1   :  { %8411 = vmatprep.subr.bf16.mxu0 %v16460_v47  ;;  %8821 = vmatprep.subr.bf16.mxu1 %v16462_v50  ;;  %v16501_v47 = vcombine.low %v481_v33, %v485_v34  ;;  %v16508_v50 = vcombine.high %v488_v41, %v492_v42  ;;  %v16510_v51 = vcombine.high %v489_v43, %v493_v44  ;;  %v532_v33 = vld [vmem:[#allocation5 + $0x730] sm:$0xff]  ;;  %v529_v34 = vld [vmem:[#allocation5 + $0x718] sm:$0xff] }
 0x3d2   :  { %8441 = vmatprep.mubr.bf16.mxu0 %v20840_v24  ;;  %8851 = vmatprep.mubr.bf16.mxu1 %v20840_v24  ;;  %v16486_v24 = vcombine.high %v465_v12, %v469_v14  ;;  %v516_v12 = vld [vmem:[#allocation5 + $0x6b0] sm:$0xff]  ;;  %v513_v14 = vld [vmem:[#allocation5 + $0x698] sm:$0xff] }
 0x3d4   :  { %8412 = vmatpush1.bf16.msra.mxu0 %v16459_v56  ;;  %8822 = vmatpush1.bf16.msra.mxu1 %v16461_v57  ;;  %v501_v56 = vld [vmem:[#allocation5 + $0x638] sm:$0xff]  ;;  %v16507_v57 = vcombine.low %v488_v41, %v492_v42  ;;  %v536_v42 = vld [vmem:[#allocation5 + $0x750] sm:$0xff] }
 0x3d5   :  { %8413 = vmatprep.subr.bf16.mxu0 %v16468_v61  ;;  %8823 = vmatprep.subr.bf16.mxu1 %v16470_v62  ;;  %v16509_v61 = vcombine.low %v489_v43, %v493_v44  ;;  %v16516_v62 = vcombine.high %v496_v53, %v500_v54  ;;  %v16518_v63 = vcombine.high %v497_v55, %v501_v56  ;;  %v540_v43 = vld [vmem:[#allocation5 + $0x770] sm:$0xff]  ;;  %v537_v44 = vld [vmem:[#allocation5 + $0x758] sm:$0xff] }
 0x3d8   :  { %8414 = vmatpush1.bf16.msra.mxu0 %v16467_v6  ;;  %8824 = vmatpush1.bf16.msra.mxu1 %v16469_v13  ;;  %v509_v6 = vld [vmem:[#allocation5 + $0x678] sm:$0xff]  ;;  %v16515_v13 = vcombine.low %v496_v53, %v500_v54  ;;  %v544_v54 = vld [vmem:[#allocation5 + $0x790] sm:$0xff] }
 0x3d9   :  { %8415 = vmatprep.subr.bf16.mxu0 %v16476_v7  ;;  %8825 = vmatprep.subr.bf16.mxu1 %v16478_v8  ;;  %v16517_v7 = vcombine.low %v497_v55, %v501_v56  ;;  %v16524_v8 = vcombine.high %v504_v1, %v508_v2  ;;  %v16526_v9 = vcombine.high %v505_v3, %v509_v6  ;;  %v548_v55 = vld [vmem:[#allocation5 + $0x7b0] sm:$0xff]  ;;  %v545_v56 = vld [vmem:[#allocation5 + $0x798] sm:$0xff] }
 0x3dc   :  { %8416 = vmatpush1.bf16.msra.mxu0 %v16475_v15  ;;  %8826 = vmatpush1.bf16.msra.mxu1 %v16477_v16  ;;  %v517_v15 = vld [vmem:[#allocation5 + $0x6b8] sm:$0xff]  ;;  %v16523_v16 = vcombine.low %v504_v1, %v508_v2  ;;  %v552_v2 = vld [vmem:[#allocation5 + $0x7d0] sm:$0xff] }
 0x3dd   :  { %8417 = vmatprep.subr.bf16.mxu0 %v16484_v17  ;;  %8827 = vmatprep.subr.bf16.mxu1 %v16486_v24  ;;  %v16525_v17 = vcombine.low %v505_v3, %v509_v6  ;;  %v16532_v24 = vcombine.high %v512_v11, %v516_v12  ;;  %v16534_v19 = vcombine.high %v513_v14, %v517_v15  ;;  %v556_v3 = vld [vmem:[#allocation5 + $0x7f0] sm:$0xff]  ;;  %v553_v6 = vld [vmem:[#allocation5 + $0x7d8] sm:$0xff] }
 0x3e0   :  { %8418 = vmatpush1.bf16.msra.mxu0 %v16483_v25  ;;  %8828 = vmatpush1.bf16.msra.mxu1 %v16485_v27  ;;  %v525_v25 = vld [vmem:[#allocation5 + $0x6f8] sm:$0xff]  ;;  %v16531_v27 = vcombine.low %v512_v11, %v516_v12  ;;  %v560_v12 = vld [vmem:[#allocation5 + $0x810] sm:$0xff] }
 0x3e1   :  { %8419 = vmatprep.subr.bf16.mxu0 %v16492_v28  ;;  %8829 = vmatprep.subr.bf16.mxu1 %v16494_v30  ;;  %v16533_v28 = vcombine.low %v513_v14, %v517_v15  ;;  %v16540_v30 = vcombine.high %v520_v21, %v524_v22  ;;  %v16542_v58 = vcombine.high %v521_v23, %v525_v25  ;;  %v564_v14 = vld [vmem:[#allocation5 + $0x830] sm:$0xff]  ;;  %v561_v15 = vld [vmem:[#allocation5 + $0x818] sm:$0xff] }
 0x3e4   :  { %8420 = vmatpush1.bf16.msra.mxu0 %v16491_v36  ;;  %8830 = vmatpush1.bf16.msra.mxu1 %v16493_v37  ;;  %v533_v36 = vld [vmem:[#allocation5 + $0x738] sm:$0xff]  ;;  %v16539_v37 = vcombine.low %v520_v21, %v524_v22  ;;  %v568_v22 = vld [vmem:[#allocation5 + $0x850] sm:$0xff] }
 0x3e5   :  { %8421 = vmatprep.subr.bf16.mxu0 %v16500_v38  ;;  %8831 = vmatprep.subr.bf16.mxu1 %v16502_v39  ;;  %v16541_v38 = vcombine.low %v521_v23, %v525_v25  ;;  %v16548_v39 = vcombine.high %v528_v31, %v532_v33  ;;  %v16550_v41 = vcombine.high %v529_v34, %v533_v36  ;;  %v572_v23 = vld [vmem:[#allocation5 + $0x870] sm:$0xff]  ;;  %v569_v25 = vld [vmem:[#allocation5 + $0x858] sm:$0xff] }
 0x3e8   :  { %8422 = vmatpush1.bf16.msra.mxu0 %v16499_v46  ;;  %8832 = vmatpush1.bf16.msra.mxu1 %v16501_v47  ;;  %v541_v46 = vld [vmem:[#allocation5 + $0x778] sm:$0xff]  ;;  %v16547_v47 = vcombine.low %v528_v31, %v532_v33  ;;  %v576_v33 = vld [vmem:[#allocation5 + $0x890] sm:$0xff] }
 0x3e9   :  { %8423 = vmatprep.subr.bf16.mxu0 %v16508_v50  ;;  %8833 = vmatprep.subr.bf16.mxu1 %v16510_v51  ;;  %v16549_v50 = vcombine.low %v529_v34, %v533_v36  ;;  %v16556_v51 = vcombine.high %v536_v42, %v540_v43  ;;  %v16558_v53 = vcombine.high %v537_v44, %v541_v46  ;;  %v580_v34 = vld [vmem:[#allocation5 + $0x8b0] sm:$0xff]  ;;  %v577_v36 = vld [vmem:[#allocation5 + $0x898] sm:$0xff] }
 0x3ec   :  { %8424 = vmatpush1.bf16.msra.mxu0 %v16507_v57  ;;  %8834 = vmatpush1.bf16.msra.mxu1 %v16509_v61  ;;  %v549_v57 = vld [vmem:[#allocation5 + $0x7b8] sm:$0xff]  ;;  %v16555_v61 = vcombine.low %v536_v42, %v540_v43  ;;  %v584_v43 = vld [vmem:[#allocation5 + $0x8d0] sm:$0xff] }
 0x3ed   :  { %8425 = vmatprep.subr.bf16.mxu0 %v16516_v62  ;;  %8835 = vmatprep.subr.bf16.mxu1 %v16518_v63  ;;  %v16557_v62 = vcombine.low %v537_v44, %v541_v46  ;;  %v16564_v63 = vcombine.high %v544_v54, %v548_v55  ;;  %v16566_v1 = vcombine.high %v545_v56, %v549_v57  ;;  %v588_v44 = vld [vmem:[#allocation5 + $0x8f0] sm:$0xff]  ;;  %v585_v46 = vld [vmem:[#allocation5 + $0x8d8] sm:$0xff] }
 0x3f0   :  { %8426 = vmatpush1.bf16.msra.mxu0 %v16515_v13  ;;  %8836 = vmatpush1.bf16.msra.mxu1 %v16517_v7  ;;  %v557_v13 = vld [vmem:[#allocation5 + $0x7f8] sm:$0xff]  ;;  %v16563_v7 = vcombine.low %v544_v54, %v548_v55  ;;  %v592_v54 = vld [vmem:[#allocation5 + $0x910] sm:$0xff] }
 0x3f1   :  { %8427 = vmatprep.subr.bf16.mxu0 %v16524_v8  ;;  %8837 = vmatprep.subr.bf16.mxu1 %v16526_v9  ;;  %v16565_v8 = vcombine.low %v545_v56, %v549_v57  ;;  %v16572_v9 = vcombine.high %v552_v2, %v556_v3  ;;  %v16574_v11 = vcombine.high %v553_v6, %v557_v13  ;;  %v596_v55 = vld [vmem:[#allocation5 + $0x930] sm:$0xff]  ;;  %v593_v56 = vld [vmem:[#allocation5 + $0x918] sm:$0xff] }
 0x3f2   :  { %v597_v57 = vld [vmem:[#allocation5 + $0x938] sm:$0xff] }
 0x3f4   :  { %8428 = vmatpush1.bf16.msra.mxu0 %v16523_v16  ;;  %8838 = vmatpush1.bf16.msra.mxu1 %v16525_v17  ;;  %v565_v16 = vld [vmem:[#allocation5 + $0x838] sm:$0xff]  ;;  %v16571_v17 = vcombine.low %v552_v2, %v556_v3  ;;  %v604_v2 = vld [vmem:[#allocation5 + $0x970] sm:$0xff] }
 0x3f5   :  { %8429 = vmatprep.subr.bf16.mxu0 %v16532_v24  ;;  %8839 = vmatprep.subr.bf16.mxu1 %v16534_v19  ;;  %v16573_v24 = vcombine.low %v553_v6, %v557_v13  ;;  %v16580_v19 = vcombine.high %v560_v12, %v564_v14  ;;  %v16582_v21 = vcombine.high %v561_v15, %v565_v16  ;;  %v601_v3 = vld [vmem:[#allocation5 + $0x958] sm:$0xff] }
 0x3f6   :  { %v605_v6 = vld [vmem:[#allocation5 + $0x978] sm:$0xff]  ;;  %v16611_v13 = vcombine.low %v592_v54, %v596_v55 }
 0x3f8   :  { %8430 = vmatpush1.bf16.msra.mxu0 %v16531_v27  ;;  %8840 = vmatpush1.bf16.msra.mxu1 %v16533_v28  ;;  %v573_v27 = vld [vmem:[#allocation5 + $0x878] sm:$0xff]  ;;  %v16579_v28 = vcombine.low %v560_v12, %v564_v14  ;;  %v612_v12 = vld [vmem:[#allocation5 + $0x9b0] sm:$0xff] }
 0x3f9   :  { %8431 = vmatprep.subr.bf16.mxu0 %v16540_v30  ;;  %8841 = vmatprep.subr.bf16.mxu1 %v16542_v58  ;;  %v16581_v30 = vcombine.low %v561_v15, %v565_v16  ;;  %v16588_v58 = vcombine.high %v568_v22, %v572_v23  ;;  %v16590_v31 = vcombine.high %v569_v25, %v573_v27  ;;  %v609_v14 = vld [vmem:[#allocation5 + $0x998] sm:$0xff] }
 0x3fa   :  { %v613_v15 = vld [vmem:[#allocation5 + $0x9b8] sm:$0xff] }
 0x3fc   :  { %8432 = vmatpush1.bf16.msra.mxu0 %v16539_v37  ;;  %8842 = vmatpush1.bf16.msra.mxu1 %v16541_v38  ;;  %v581_v37 = vld [vmem:[#allocation5 + $0x8b8] sm:$0xff]  ;;  %v16587_v38 = vcombine.low %v568_v22, %v572_v23  ;;  %v620_v22 = vld [vmem:[#allocation5 + $0x9f0] sm:$0xff] }
 0x3fd   :  { %8433 = vmatprep.subr.bf16.mxu0 %v16548_v39  ;;  %8843 = vmatprep.subr.bf16.mxu1 %v16550_v41  ;;  %v16589_v39 = vcombine.low %v569_v25, %v573_v27  ;;  %v16596_v41 = vcombine.high %v576_v33, %v580_v34  ;;  %v16598_v42 = vcombine.high %v577_v36, %v581_v37  ;;  %v617_v23 = vld [vmem:[#allocation5 + $0x9d8] sm:$0xff] }
 0x3fe   :  { %v621_v25 = vld [vmem:[#allocation5 + $0x9f8] sm:$0xff] }
 0x400   :  { %8434 = vmatpush1.bf16.msra.mxu0 %v16547_v47  ;;  %8844 = vmatpush1.bf16.msra.mxu1 %v16549_v50  ;;  %v589_v47 = vld [vmem:[#allocation5 + $0x8f8] sm:$0xff]  ;;  %v16595_v50 = vcombine.low %v576_v33, %v580_v34  ;;  %v628_v33 = vld [vmem:[#allocation5 + $0xa30] sm:$0xff] }
 0x401   :  { %8435 = vmatprep.subr.bf16.mxu0 %v16556_v51  ;;  %8845 = vmatprep.subr.bf16.mxu1 %v16558_v53  ;;  %v16604_v51 = vcombine.high %v584_v43, %v588_v44  ;;  %v16606_v53 = vcombine.high %v585_v46, %v589_v47  ;;  %v625_v34 = vld [vmem:[#allocation5 + $0xa18] sm:$0xff] }
 0x404   :  { %8436 = vmatpush1.bf16.msra.mxu0 %v16555_v61  ;;  %8846 = vmatpush1.bf16.msra.mxu1 %v16557_v62  ;;  %v16603_v61 = vcombine.low %v584_v43, %v588_v44  ;;  %v16605_v62 = vcombine.low %v585_v46, %v589_v47  ;;  %v636_v43 = vld [vmem:[#allocation5 + $0xa70] sm:$0xff]  ;;  %v633_v44 = vld [vmem:[#allocation5 + $0xa58] sm:$0xff] }
 0x405   :  { %8437 = vmatprep.subr.bf16.mxu0 %v16564_v63  ;;  %8847 = vmatprep.subr.bf16.mxu1 %v16566_v1  ;;  %v16612_v63 = vcombine.high %v592_v54, %v596_v55  ;;  %v600_v1 = vld [vmem:[#allocation5 + $0x950] sm:$0xff]  ;;  %v637_v46 = vld [vmem:[#allocation5 + $0xa78] sm:$0xff] }
 0x406   :  { %v16619_v16 = vcombine.low %v600_v1, %v604_v2  ;;  %v644_v54 = vld [vmem:[#allocation5 + $0xab0] sm:$0xff]  ;;  %v641_v55 = vld [vmem:[#allocation5 + $0xa98] sm:$0xff] }
 0x408   :  { %8438 = vmatpush1.bf16.msra.mxu0 %v16563_v7  ;;  %8848 = vmatpush1.bf16.msra.mxu1 %v16565_v8  ;;  %v16613_v7 = vcombine.low %v593_v56, %v597_v57  ;;  %v16620_v8 = vcombine.high %v600_v1, %v604_v2  ;;  %v652_v1 = vld [vmem:[#allocation5 + $0xaf0] sm:$0xff]  ;;  %v649_v2 = vld [vmem:[#allocation5 + $0xad8] sm:$0xff] }
 0x409   :  { %8439 = vmatprep.subr.bf16.mxu0 %v16572_v9  ;;  %8849 = vmatprep.subr.bf16.mxu1 %v16574_v11  ;;  %v16622_v9 = vcombine.high %v601_v3, %v605_v6  ;;  %v608_v11 = vld [vmem:[#allocation5 + $0x990] sm:$0xff] }
 0x40a   :  { %v16627_v27 = vcombine.low %v608_v11, %v612_v12 }
 0x40c   :  { %8440 = vmatpush1.bf16.msra.mxu0 %v16571_v17  ;;  %8850 = vmatpush1.bf16.msra.mxu1 %v16573_v24  ;;  %v16621_v17 = vcombine.low %v601_v3, %v605_v6  ;;  %v16628_v24 = vcombine.high %v608_v11, %v612_v12  ;;  %v653_v3 = vld [vmem:[#allocation5 + $0xaf8] sm:$0xff]  ;;  %v660_v11 = vld [vmem:[#allocation5 + $0xb30] sm:$0xff] }
 0x40d   :  { %8450 = vmatprep.subr.bf16.mxu0 %v16580_v19  ;;  %8860 = vmatprep.subr.bf16.mxu1 %v16582_v21  ;;  %v16630_v19 = vcombine.high %v609_v14, %v613_v15  ;;  %v616_v21 = vld [vmem:[#allocation5 + $0x9d0] sm:$0xff]  ;;  %v657_v12 = vld [vmem:[#allocation5 + $0xb18] sm:$0xff] }
 0x40f   :  { %8442 = vmatmul.mubr.bf16.vlgmr.msra.gmra.mrb[4].mxu0 %v20852_v26  ;;  %8852 = vmatmul.mubr.bf16.vlgmr.msra.gmra.mrb[4].mxu1 %v20852_v26  ;;  %v16597_v26 = vcombine.low %v577_v36, %v581_v37  ;;  %v629_v36 = vld [vmem:[#allocation5 + $0xa38] sm:$0xff]  ;;  %v16635_v37 = vcombine.low %v616_v21, %v620_v22 }
 0x410   :  { %8451 = vmatpush1.bf16.msra.mxu0 %v16579_v28  ;;  %8861 = vmatpush1.bf16.msra.mxu1 %v16581_v30  ;;  %v16629_v28 = vcombine.low %v609_v14, %v613_v15  ;;  %v16636_v30 = vcombine.high %v616_v21, %v620_v22  ;;  %v661_v14 = vld [vmem:[#allocation5 + $0xb38] sm:$0xff]  ;;  %v668_v21 = vld [vmem:[#allocation5 + $0xb70] sm:$0xff] }
 0x411   :  { %8452 = vmatprep.subr.bf16.mxu0 %v16588_v58  ;;  %8862 = vmatprep.subr.bf16.mxu1 %v16590_v31  ;;  %v16638_v58 = vcombine.high %v617_v23, %v621_v25  ;;  %v624_v31 = vld [vmem:[#allocation5 + $0xa10] sm:$0xff]  ;;  %v665_v22 = vld [vmem:[#allocation5 + $0xb58] sm:$0xff] }
 0x412   :  { %8482 = vmatprep.mubr.bf16.mxu0 %v20854_v35  ;;  %8892 = vmatprep.mubr.bf16.mxu1 %v20854_v35  ;;  %v16614_v35 = vcombine.high %v593_v56, %v597_v57  ;;  %v16643_v47 = vcombine.low %v624_v31, %v628_v33  ;;  %v645_v56 = vld [vmem:[#allocation5 + $0xab8] sm:$0xff] }
 0x414   :  { %8453 = vmatpush1.bf16.msra.mxu0 %v16587_v38  ;;  %8863 = vmatpush1.bf16.msra.mxu1 %v16589_v39  ;;  %v16637_v38 = vcombine.low %v617_v23, %v621_v25  ;;  %v16644_v39 = vcombine.high %v624_v31, %v628_v33  ;;  %v669_v23 = vld [vmem:[#allocation5 + $0xb78] sm:$0xff]  ;;  %v676_v31 = vld [vmem:[#allocation5 + $0xbb0] sm:$0xff] }
 0x415   :  { %8454 = vmatprep.subr.bf16.mxu0 %v16596_v41  ;;  %8864 = vmatprep.subr.bf16.mxu1 %v16598_v42  ;;  %v16646_v41 = vcombine.high %v625_v34, %v629_v36  ;;  %v632_v42 = vld [vmem:[#allocation5 + $0xa50] sm:$0xff]  ;;  %v673_v33 = vld [vmem:[#allocation5 + $0xb98] sm:$0xff] }
 0x416   :  { %v16651_v57 = vcombine.low %v632_v42, %v636_v43 }
 0x418   :  { %8455 = vmatpush1.bf16.msra.mxu0 %v16595_v50  ;;  %8865 = vmatpush1.bf16.msra.mxu1 %v16597_v26  ;;  %v16645_v50 = vcombine.low %v625_v34, %v629_v36  ;;  %v16652_v26 = vcombine.high %v632_v42, %v636_v43  ;;  %v677_v34 = vld [vmem:[#allocation5 + $0xbb8] sm:$0xff]  ;;  %v684_v42 = vld [vmem:[#allocation5 + $0xbf0] sm:$0xff] }
 0x419   :  { %8456 = vmatprep.subr.bf16.mxu0 %v16604_v51  ;;  %8866 = vmatprep.subr.bf16.mxu1 %v16606_v53  ;;  %v16654_v51 = vcombine.high %v633_v44, %v637_v46  ;;  %v640_v53 = vld [vmem:[#allocation5 + $0xa90] sm:$0xff]  ;;  %v681_v43 = vld [vmem:[#allocation5 + $0xbd8] sm:$0xff] }
 0x41a   :  { %v16659_v6 = vcombine.low %v640_v53, %v644_v54 }
 0x41c   :  { %8457 = vmatpush1.bf16.msra.mxu0 %v16603_v61  ;;  %8867 = vmatpush1.bf16.msra.mxu1 %v16605_v62  ;;  %v16653_v61 = vcombine.low %v633_v44, %v637_v46  ;;  %v16660_v62 = vcombine.high %v640_v53, %v644_v54  ;;  %v685_v44 = vld [vmem:[#allocation5 + $0xbf8] sm:$0xff]  ;;  %v692_v53 = vld [vmem:[#allocation5 + $0xc30] sm:$0xff] }
 0x41d   :  { %8458 = vmatprep.subr.bf16.mxu0 %v16612_v63  ;;  %8868 = vmatprep.subr.bf16.mxu1 %v16614_v35  ;;  %v16662_v63 = vcombine.high %v641_v55, %v645_v56  ;;  %v648_v35 = vld [vmem:[#allocation5 + $0xad0] sm:$0xff]  ;;  %v689_v54 = vld [vmem:[#allocation5 + $0xc18] sm:$0xff] }
 0x41e   :  { %v16667_v15 = vcombine.low %v648_v35, %v652_v1 }
 0x420   :  { %8459 = vmatpush1.bf16.msra.mxu0 %v16611_v13  ;;  %8869 = vmatpush1.bf16.msra.mxu1 %v16613_v7  ;;  %v16661_v13 = vcombine.low %v641_v55, %v645_v56  ;;  %v16668_v7 = vcombine.high %v648_v35, %v652_v1  ;;  %v693_v55 = vld [vmem:[#allocation5 + $0xc38] sm:$0xff]  ;;  %v700_v35 = vld [vmem:[#allocation5 + $0xc70] sm:$0xff] }
 0x421   :  { %8460 = vmatprep.subr.bf16.mxu0 %v16620_v8  ;;  %8870 = vmatprep.subr.bf16.mxu1 %v16622_v9  ;;  %v16670_v8 = vcombine.high %v649_v2, %v653_v3  ;;  %v656_v9 = vld [vmem:[#allocation5 + $0xb10] sm:$0xff]  ;;  %v697_v1 = vld [vmem:[#allocation5 + $0xc58] sm:$0xff] }
 0x422   :  { %v16675_v25 = vcombine.low %v656_v9, %v660_v11 }
 0x424   :  { %8461 = vmatpush1.bf16.msra.mxu0 %v16619_v16  ;;  %8871 = vmatpush1.bf16.msra.mxu1 %v16621_v17  ;;  %v16669_v16 = vcombine.low %v649_v2, %v653_v3  ;;  %v16676_v17 = vcombine.high %v656_v9, %v660_v11  ;;  %v701_v2 = vld [vmem:[#allocation5 + $0xc78] sm:$0xff]  ;;  %v708_v9 = vld [vmem:[#allocation5 + $0xcb0] sm:$0xff] }
 0x425   :  { %8462 = vmatprep.subr.bf16.mxu0 %v16628_v24  ;;  %8872 = vmatprep.subr.bf16.mxu1 %v16630_v19  ;;  %v16678_v24 = vcombine.high %v657_v12, %v661_v14  ;;  %v664_v19 = vld [vmem:[#allocation5 + $0xb50] sm:$0xff]  ;;  %v705_v11 = vld [vmem:[#allocation5 + $0xc98] sm:$0xff] }
 0x426   :  { %v16683_v36 = vcombine.low %v664_v19, %v668_v21 }
 0x428   :  { %8463 = vmatpush1.bf16.msra.mxu0 %v16627_v27  ;;  %8873 = vmatpush1.bf16.msra.mxu1 %v16629_v28  ;;  %v16677_v27 = vcombine.low %v657_v12, %v661_v14  ;;  %v16684_v28 = vcombine.high %v664_v19, %v668_v21  ;;  %v709_v12 = vld [vmem:[#allocation5 + $0xcb8] sm:$0xff]  ;;  %v716_v19 = vld [vmem:[#allocation5 + $0xcf0] sm:$0xff] }
 0x429   :  { %8464 = vmatprep.subr.bf16.mxu0 %v16636_v30  ;;  %8874 = vmatprep.subr.bf16.mxu1 %v16638_v58  ;;  %v16686_v30 = vcombine.high %v665_v22, %v669_v23  ;;  %v672_v58 = vld [vmem:[#allocation5 + $0xb90] sm:$0xff]  ;;  %v713_v21 = vld [vmem:[#allocation5 + $0xcd8] sm:$0xff] }
 0x42a   :  { %v16691_v46 = vcombine.low %v672_v58, %v676_v31 }
 0x42c   :  { %8465 = vmatpush1.bf16.msra.mxu0 %v16635_v37  ;;  %8875 = vmatpush1.bf16.msra.mxu1 %v16637_v38  ;;  %v16685_v37 = vcombine.low %v665_v22, %v669_v23  ;;  %v16692_v38 = vcombine.high %v672_v58, %v676_v31  ;;  %v717_v22 = vld [vmem:[#allocation5 + $0xcf8] sm:$0xff] }
 0x42d   :  { %8466 = vmatprep.subr.bf16.mxu0 %v16644_v39  ;;  %8876 = vmatprep.subr.bf16.mxu1 %v16646_v41  ;;  %v16694_v39 = vcombine.high %v673_v33, %v677_v34  ;;  %v680_v41 = vld [vmem:[#allocation5 + $0xbd0] sm:$0xff]  ;;  %v721_v58 = vld [vmem:[#allocation5 + $0xd18] sm:$0xff] }
 0x42e   :  { %v16699_v56 = vcombine.low %v680_v41, %v684_v42  ;;  %v725_v31 = vld [vmem:[#allocation5 + $0xd38] sm:$0xff] }
 0x430   :  { %8467 = vmatpush1.bf16.msra.mxu0 %v16643_v47  ;;  %8877 = vmatpush1.bf16.msra.mxu1 %v16645_v50  ;;  %v16693_v47 = vcombine.low %v673_v33, %v677_v34  ;;  %v16700_v50 = vcombine.high %v680_v41, %v684_v42  ;;  %v16733_v34 = vcombine.low %v713_v21, %v717_v22  ;;  %v733_v41 = vld [vmem:[#allocation5 + $0xd78] sm:$0xff] }
 0x431   :  { %8468 = vmatprep.subr.bf16.mxu0 %v16652_v26  ;;  %8878 = vmatprep.subr.bf16.mxu1 %v16654_v51  ;;  %v16702_v26 = vcombine.high %v681_v43, %v685_v44  ;;  %v688_v51 = vld [vmem:[#allocation5 + $0xc10] sm:$0xff] }
 0x432   :  { %v16707_v3 = vcombine.low %v688_v51, %v692_v53 }
 0x434   :  { %8469 = vmatpush1.bf16.msra.mxu0 %v16651_v57  ;;  %8879 = vmatpush1.bf16.msra.mxu1 %v16653_v61  ;;  %v16701_v57 = vcombine.low %v681_v43, %v685_v44  ;;  %v16708_v61 = vcombine.high %v688_v51, %v692_v53  ;;  %v16741_v43 = vcombine.low %v721_v58, %v725_v31  ;;  %v741_v51 = vld [vmem:[#allocation5 + $0xdb8] sm:$0xff] }
 0x435   :  { %8470 = vmatprep.subr.bf16.mxu0 %v16660_v62  ;;  %8880 = vmatprep.subr.bf16.mxu1 %v16662_v63  ;;  %v16710_v62 = vcombine.high %v689_v54, %v693_v55  ;;  %v696_v63 = vld [vmem:[#allocation5 + $0xc50] sm:$0xff] }
 0x436   :  { %v16715_v14 = vcombine.low %v696_v63, %v700_v35 }
 0x438   :  { %8471 = vmatpush1.bf16.msra.mxu0 %v16659_v6  ;;  %8881 = vmatpush1.bf16.msra.mxu1 %v16661_v13  ;;  %v16709_v6 = vcombine.low %v689_v54, %v693_v55  ;;  %v16716_v13 = vcombine.high %v696_v63, %v700_v35 }
 0x439   :  { %8472 = vmatprep.subr.bf16.mxu0 %v16668_v7  ;;  %8882 = vmatprep.subr.bf16.mxu1 %v16670_v8  ;;  %v16718_v7 = vcombine.high %v697_v1, %v701_v2  ;;  %v704_v8 = vld [vmem:[#allocation5 + $0xc90] sm:$0xff] }
 0x43a   :  { %v16723_v23 = vcombine.low %v704_v8, %v708_v9 }
 0x43c   :  { %8473 = vmatpush1.bf16.msra.mxu0 %v16667_v15  ;;  %8883 = vmatpush1.bf16.msra.mxu1 %v16669_v16  ;;  %v16717_v15 = vcombine.low %v697_v1, %v701_v2  ;;  %v16724_v16 = vcombine.high %v704_v8, %v708_v9  ;;  %v745_v1 = vld [vmem:[#allocation5 + $0xdd8] sm:$0xff] }
 0x43d   :  { %8474 = vmatprep.subr.bf16.mxu0 %v16676_v17  ;;  %8884 = vmatprep.subr.bf16.mxu1 %v16678_v24  ;;  %v16726_v17 = vcombine.high %v705_v11, %v709_v12  ;;  %v712_v24 = vld [vmem:[#allocation5 + $0xcd0] sm:$0xff]  ;;  %v749_v2 = vld [vmem:[#allocation5 + $0xdf8] sm:$0xff] }
 0x43e   :  { %v16731_v33 = vcombine.low %v712_v24, %v716_v19 }
 0x440   :  { %8475 = vmatpush1.bf16.msra.mxu0 %v16675_v25  ;;  %8885 = vmatpush1.bf16.msra.mxu1 %v16677_v27  ;;  %v16732_v25 = vcombine.high %v712_v24, %v716_v19  ;;  %v16734_v27 = vcombine.high %v713_v21, %v717_v22  ;;  %v757_v24 = vld [vmem:[#allocation5 + $0xe38] sm:$0xff]  ;;  %v16765_v21 = vcombine.low %v745_v1, %v749_v2 }
 0x441   :  { %8476 = vmatprep.subr.bf16.mxu0 %v16684_v28  ;;  %8886 = vmatprep.subr.bf16.mxu1 %v16686_v30  ;;  %v720_v28 = vld [vmem:[#allocation5 + $0xd10] sm:$0xff] }
 0x442   :  { %v724_v30 = vld [vmem:[#allocation5 + $0xd30] sm:$0xff] }
 0x443   :  { %v16739_v42 = vcombine.low %v720_v28, %v724_v30 }
 0x444   :  { %8477 = vmatpush1.bf16.msra.mxu0 %v16683_v36  ;;  %8887 = vmatpush1.bf16.msra.mxu1 %v16685_v37  ;;  %v16740_v36 = vcombine.high %v720_v28, %v724_v30  ;;  %v728_v37 = vld [vmem:[#allocation5 + $0xd50] sm:$0xff]  ;;  %v765_v28 = vld [vmem:[#allocation5 + $0xe78] sm:$0xff] }
 0x445   :  { %8478 = vmatprep.subr.bf16.mxu0 %v16692_v38  ;;  %8888 = vmatprep.subr.bf16.mxu1 %v16694_v39  ;;  %v732_v38 = vld [vmem:[#allocation5 + $0xd70] sm:$0xff]  ;;  %v729_v39 = vld [vmem:[#allocation5 + $0xd58] sm:$0xff] }
 0x446   :  { %v16748_v44 = vcombine.high %v728_v37, %v732_v38  ;;  %v16747_v53 = vcombine.low %v728_v37, %v732_v38  ;;  %v16749_v54 = vcombine.low %v729_v39, %v733_v41  ;;  %v773_v37 = vld [vmem:[#allocation5 + $0xeb8] sm:$0xff] }
 0x448   :  { %8479 = vmatpush1.bf16.msra.mxu0 %v16691_v46  ;;  %8889 = vmatpush1.bf16.msra.mxu1 %v16693_v47  ;;  %v16750_v46 = vcombine.high %v729_v39, %v733_v41  ;;  %v736_v47 = vld [vmem:[#allocation5 + $0xd90] sm:$0xff] }
 0x449   :  { %8480 = vmatprep.subr.bf16.mxu0 %v16700_v50  ;;  %8890 = vmatprep.subr.bf16.mxu1 %v16702_v26  ;;  %v740_v50 = vld [vmem:[#allocation5 + $0xdb0] sm:$0xff]  ;;  %v737_v26 = vld [vmem:[#allocation5 + $0xd98] sm:$0xff] }
 0x44a   :  { %v16756_v55 = vcombine.high %v736_v47, %v740_v50  ;;  %v16757_v9 = vcombine.low %v737_v26, %v741_v51 }
 0x44c   :  { %8481 = vmatpush1.bf16.msra.mxu0 %v16699_v56  ;;  %8891 = vmatpush1.bf16.msra.mxu1 %v16701_v57  ;;  %v16758_v57 = vcombine.high %v737_v26, %v741_v51 }
 0x44d   :  { %8491 = vmatprep.subr.bf16.mxu0 %v16708_v61  ;;  %8901 = vmatprep.subr.bf16.mxu1 %v16710_v62  ;;  %v744_v61 = vld [vmem:[#allocation5 + $0xdd0] sm:$0xff] }
 0x44e   :  { %v748_v62 = vld [vmem:[#allocation5 + $0xdf0] sm:$0xff] }
 0x44f   :  { %8483 = vmatmul.mubr.bf16.vlgmr.msra.gmra.mrb[4].mxu0 %v20866_v40  ;;  %8893 = vmatmul.mubr.bf16.vlgmr.msra.gmra.mrb[4].mxu1 %v20866_v40  ;;  %v16725_v40 = vcombine.low %v705_v11, %v709_v12  ;;  %v16764_v11 = vcombine.high %v744_v61, %v748_v62  ;;  %v16763_v19 = vcombine.low %v744_v61, %v748_v62  ;;  %v789_v61 = vld [vmem:[#allocation5 + $0xf38] sm:$0xff] }
 0x450   :  { %8492 = vmatpush1.bf16.msra.mxu0 %v16707_v3  ;;  %8902 = vmatpush1.bf16.msra.mxu1 %v16709_v6 }
 0x451   :  { %8493 = vmatprep.subr.bf16.mxu0 %v16716_v13  ;;  %8903 = vmatprep.subr.bf16.mxu1 %v16718_v7  ;;  %v16755_v13 = vcombine.low %v736_v47, %v740_v50  ;;  %v781_v47 = vld [vmem:[#allocation5 + $0xef8] sm:$0xff] }
 0x452   :  { %8523 = vmatprep.mubr.bf16.mxu0 %v20868_v49  ;;  %8933 = vmatprep.mubr.bf16.mxu1 %v20868_v49  ;;  %v16742_v49 = vcombine.high %v721_v58, %v725_v31 }
 0x454   :  { %8494 = vmatpush1.bf16.msra.mxu0 %v16715_v14  ;;  %8904 = vmatpush1.bf16.msra.mxu1 %v16717_v15  ;;  %v16766_v14 = vcombine.high %v745_v1, %v749_v2  ;;  %v752_v15 = vld [vmem:[#allocation5 + $0xe10] sm:$0xff] }
 0x455   :  { %8495 = vmatprep.subr.bf16.mxu0 %v16724_v16  ;;  %8905 = vmatprep.subr.bf16.mxu1 %v16726_v17  ;;  %v756_v16 = vld [vmem:[#allocation5 + $0xe30] sm:$0xff]  ;;  %v753_v17 = vld [vmem:[#allocation5 + $0xe18] sm:$0xff] }
 0x456   :  { %v16772_v22 = vcombine.high %v752_v15, %v756_v16  ;;  %v16771_v30 = vcombine.low %v752_v15, %v756_v16  ;;  %v16773_v58 = vcombine.low %v753_v17, %v757_v24  ;;  %v800_v16 = vld [vmem:[#allocation5 + $0xf90] sm:$0xff] }
 0x458   :  { %8496 = vmatpush1.bf16.msra.mxu0 %v16723_v23  ;;  %8906 = vmatpush1.bf16.msra.mxu1 %v16725_v40  ;;  %v16774_v23 = vcombine.high %v753_v17, %v757_v24  ;;  %v760_v40 = vld [vmem:[#allocation5 + $0xe50] sm:$0xff]  ;;  %v801_v24 = vld [vmem:[#allocation5 + $0xf98] sm:$0xff] }
 0x459   :  { %8497 = vmatprep.subr.bf16.mxu0 %v16732_v25  ;;  %8907 = vmatprep.subr.bf16.mxu1 %v16734_v27  ;;  %v764_v25 = vld [vmem:[#allocation5 + $0xe70] sm:$0xff]  ;;  %v761_v27 = vld [vmem:[#allocation5 + $0xe58] sm:$0xff] }
 0x45a   :  { %v16780_v31 = vcombine.high %v760_v40, %v764_v25  ;;  %v16779_v38 = vcombine.low %v760_v40, %v764_v25  ;;  %v16781_v39 = vcombine.low %v761_v27, %v765_v28  ;;  %v804_v17 = vld [vmem:[#allocation5 + $0xfb0] sm:$0xff] }
 0x45b   :  { %v808_v25 = vld [vmem:[#allocation5 + $0xfd0] sm:$0xff] }
 0x45c   :  { %8498 = vmatpush1.bf16.msra.mxu0 %v16731_v33  ;;  %8908 = vmatpush1.bf16.msra.mxu1 %v16733_v34  ;;  %v16782_v33 = vcombine.high %v761_v27, %v765_v28  ;;  %v768_v34 = vld [vmem:[#allocation5 + $0xe90] sm:$0xff]  ;;  %v809_v28 = vld [vmem:[#allocation5 + $0xfd8] sm:$0xff] }
 0x45d   :  { %8499 = vmatprep.subr.bf16.mxu0 %v16740_v36  ;;  %8909 = vmatprep.subr.bf16.mxu1 %v16742_v49  ;;  %v772_v36 = vld [vmem:[#allocation5 + $0xeb0] sm:$0xff]  ;;  %v769_v49 = vld [vmem:[#allocation5 + $0xe98] sm:$0xff] }
 0x45e   :  { %v16788_v41 = vcombine.high %v768_v34, %v772_v36  ;;  %v16787_v50 = vcombine.low %v768_v34, %v772_v36  ;;  %v16789_v26 = vcombine.low %v769_v49, %v773_v37  ;;  %v812_v27 = vld [vmem:[#allocation5 + $0xff0] sm:$0xff] }
 0x45f   :  { %v816_v36 = vld [vmem:[#allocation5 + $0x1010] sm:$0xff] }
 0x460   :  { %8500 = vmatpush1.bf16.msra.mxu0 %v16739_v42  ;;  %8910 = vmatpush1.bf16.msra.mxu1 %v16741_v43  ;;  %v16790_v42 = vcombine.high %v769_v49, %v773_v37  ;;  %v776_v43 = vld [vmem:[#allocation5 + $0xed0] sm:$0xff]  ;;  %v817_v37 = vld [vmem:[#allocation5 + $0x1018] sm:$0xff] }
 0x461   :  { %8501 = vmatprep.subr.bf16.mxu0 %v16748_v44  ;;  %8911 = vmatprep.subr.bf16.mxu1 %v16750_v46  ;;  %v780_v44 = vld [vmem:[#allocation5 + $0xef0] sm:$0xff]  ;;  %v777_v46 = vld [vmem:[#allocation5 + $0xed8] sm:$0xff] }
 0x462   :  { %v20976_v56 = vpop.f32.mrb[0].mxu0  ;;  %v20978_v63 = vpop.f32.mrb[0].mxu1  ;;  %v16796_v51 = vcombine.high %v776_v43, %v780_v44  ;;  %v16795_v62 = vcombine.low %v776_v43, %v780_v44  ;;  %v16797_v1 = vcombine.low %v777_v46, %v781_v47  ;;  %v820_v49 = vld [vmem:[#allocation5 + $0x1030] sm:$0xff] }
 0x463   :  { %v20980_v35 = vpop.f32.mrb[1].mxu0  ;;  %v20982_v3 = vpop.f32.mrb[1].mxu1  ;;  %v824_v44 = vld [vmem:[#allocation5 + $0x1050] sm:$0xff] }
 0x464   :  { %v7955_v6 = vpop.f32.mrb[2].mxu0  ;;  %8502 = vmatpush1.bf16.msra.mxu0 %v16747_v53  ;;  %v8365_v7 = vpop.f32.mrb[2].mxu1  ;;  %8912 = vmatpush1.bf16.msra.mxu1 %v16749_v54  ;;  %v16798_v53 = vcombine.high %v777_v46, %v781_v47  ;;  %v784_v54 = vld [vmem:[#allocation5 + $0xf10] sm:$0xff]  ;;  %v825_v47 = vld [vmem:[#allocation5 + $0x1058] sm:$0xff] }
 0x465   :  { %v7956_v8 = vpop.f32.mrb[3].mxu0  ;;  %8503 = vmatprep.subr.bf16.mxu0 %v16756_v55  ;;  %v8366_v12 = vpop.f32.mrb[3].mxu1  ;;  %8913 = vmatprep.subr.bf16.mxu1 %v16758_v57  ;;  %v788_v55 = vld [vmem:[#allocation5 + $0xf30] sm:$0xff]  ;;  %v785_v57 = vld [vmem:[#allocation5 + $0xf18] sm:$0xff] }
 0x466   :  { %v16804_v2 = vcombine.high %v784_v54, %v788_v55  ;;  %v16806_v6 = vcombine.high %v785_v57, %v789_v61  ;;  %v796_v7 = vld [vmem:[#allocation5 + $0xf70] sm:$0xff]  ;;  %v793_v8 = vld [vmem:[#allocation5 + $0xf58] sm:$0xff]  ;;  %v16805_v12 = vcombine.low %v785_v57, %v789_v61 }
 0x467   :  { %v828_v46 = vld [vmem:[#allocation5 + $0x1070] sm:$0xff]  ;;  %v833_v61 = vld [vmem:[#allocation5 + $0x1098] sm:$0xff] }
 0x468   :  { %8504 = vmatpush1.bf16.msra.mxu0 %v16755_v13  ;;  %8914 = vmatpush1.bf16.msra.mxu1 %v16757_v9  ;;  %v792_v13 = vld [vmem:[#allocation5 + $0xf50] sm:$0xff]  ;;  %v797_v9 = vld [vmem:[#allocation5 + $0xf78] sm:$0xff] }
 0x469   :  { %8505 = vmatprep.subr.bf16.mxu0 %v16764_v11  ;;  %8915 = vmatprep.subr.bf16.mxu1 %v16766_v14  ;;  %v16803_v11 = vcombine.low %v784_v54, %v788_v55  ;;  %v16812_v14 = vcombine.high %v792_v13, %v796_v7  ;;  %v16814_v15 = vcombine.high %v793_v8, %v797_v9  ;;  %v832_v55 = vld [vmem:[#allocation5 + $0x1090] sm:$0xff] }
 0x46a   :  { %v836_v57 = vld [vmem:[#allocation5 + $0x10b0] sm:$0xff] }
 0x46c   :  { %8506 = vmatpush1.bf16.msra.mxu0 %v16763_v19  ;;  %8916 = vmatpush1.bf16.msra.mxu1 %v16765_v21  ;;  %v805_v19 = vld [vmem:[#allocation5 + $0xfb8] sm:$0xff]  ;;  %v16811_v21 = vcombine.low %v792_v13, %v796_v7  ;;  %v840_v7 = vld [vmem:[#allocation5 + $0x10d0] sm:$0xff] }
 0x46d   :  { %8507 = vmatprep.subr.bf16.mxu0 %v16772_v22  ;;  %8917 = vmatprep.subr.bf16.mxu1 %v16774_v23  ;;  %v16813_v22 = vcombine.low %v793_v8, %v797_v9  ;;  %v16820_v23 = vcombine.high %v800_v16, %v804_v17  ;;  %v16822_v40 = vcombine.high %v801_v24, %v805_v19  ;;  %v844_v8 = vld [vmem:[#allocation5 + $0x10f0] sm:$0xff]  ;;  %v841_v9 = vld [vmem:[#allocation5 + $0x10d8] sm:$0xff] }
 0x470   :  { %8508 = vmatpush1.bf16.msra.mxu0 %v16771_v30  ;;  %8918 = vmatpush1.bf16.msra.mxu1 %v16773_v58  ;;  %v813_v30 = vld [vmem:[#allocation5 + $0xff8] sm:$0xff]  ;;  %v16819_v58 = vcombine.low %v800_v16, %v804_v17  ;;  %v848_v16 = vld [vmem:[#allocation5 + $0x1110] sm:$0xff] }
 0x471   :  { %8509 = vmatprep.subr.bf16.mxu0 %v16780_v31  ;;  %8919 = vmatprep.subr.bf16.mxu1 %v16782_v33  ;;  %v16821_v31 = vcombine.low %v801_v24, %v805_v19  ;;  %v16828_v33 = vcombine.high %v808_v25, %v812_v27  ;;  %v16830_v34 = vcombine.high %v809_v28, %v813_v30  ;;  %v852_v17 = vld [vmem:[#allocation5 + $0x1130] sm:$0xff]  ;;  %v849_v24 = vld [vmem:[#allocation5 + $0x1118] sm:$0xff] }
 0x472   :  { %v853_v19 = vld [vmem:[#allocation5 + $0x1138] sm:$0xff] }
 0x474   :  { %8510 = vmatpush1.bf16.msra.mxu0 %v16779_v38  ;;  %8920 = vmatpush1.bf16.msra.mxu1 %v16781_v39  ;;  %v821_v38 = vld [vmem:[#allocation5 + $0x1038] sm:$0xff]  ;;  %v16827_v39 = vcombine.low %v808_v25, %v812_v27  ;;  %v860_v25 = vld [vmem:[#allocation5 + $0x1170] sm:$0xff] }
 0x475   :  { %8511 = vmatprep.subr.bf16.mxu0 %v16788_v41  ;;  %8921 = vmatprep.subr.bf16.mxu1 %v16790_v42  ;;  %v16829_v41 = vcombine.low %v809_v28, %v813_v30  ;;  %v16836_v42 = vcombine.high %v816_v36, %v820_v49  ;;  %v16838_v43 = vcombine.high %v817_v37, %v821_v38  ;;  %v857_v27 = vld [vmem:[#allocation5 + $0x1158] sm:$0xff] }
 0x476   :  { %v861_v28 = vld [vmem:[#allocation5 + $0x1178] sm:$0xff]  ;;  %v16867_v30 = vcombine.low %v848_v16, %v852_v17 }
 0x478   :  { %8512 = vmatpush1.bf16.msra.mxu0 %v16787_v50  ;;  %8922 = vmatpush1.bf16.msra.mxu1 %v16789_v26  ;;  %v829_v50 = vld [vmem:[#allocation5 + $0x1078] sm:$0xff]  ;;  %v16835_v26 = vcombine.low %v816_v36, %v820_v49  ;;  %v868_v36 = vld [vmem:[#allocation5 + $0x11b0] sm:$0xff] }
 0x479   :  { %8513 = vmatprep.subr.bf16.mxu0 %v16796_v51  ;;  %8923 = vmatprep.subr.bf16.mxu1 %v16798_v53  ;;  %v16837_v51 = vcombine.low %v817_v37, %v821_v38  ;;  %v16844_v53 = vcombine.high %v824_v44, %v828_v46  ;;  %v16846_v54 = vcombine.high %v825_v47, %v829_v50  ;;  %v865_v49 = vld [vmem:[#allocation5 + $0x1198] sm:$0xff] }
 0x47a   :  { %v869_v37 = vld [vmem:[#allocation5 + $0x11b8] sm:$0xff] }
 0x47c   :  { %8514 = vmatpush1.bf16.msra.mxu0 %v16795_v62  ;;  %8924 = vmatpush1.bf16.msra.mxu1 %v16797_v1  ;;  %v837_v62 = vld [vmem:[#allocation5 + $0x10b8] sm:$0xff]  ;;  %v16843_v1 = vcombine.low %v824_v44, %v828_v46  ;;  %v876_v44 = vld [vmem:[#allocation5 + $0x11f0] sm:$0xff] }
 0x47d   :  { %8515 = vmatprep.subr.bf16.mxu0 %v16804_v2  ;;  %8925 = vmatprep.subr.bf16.mxu1 %v16806_v6  ;;  %v16845_v2 = vcombine.low %v825_v47, %v829_v50  ;;  %v16852_v6 = vcombine.high %v832_v55, %v836_v57  ;;  %v16854_v13 = vcombine.high %v833_v61, %v837_v62  ;;  %v873_v46 = vld [vmem:[#allocation5 + $0x11d8] sm:$0xff] }
 0x47e   :  { %v877_v47 = vld [vmem:[#allocation5 + $0x11f8] sm:$0xff] }
 0x480   :  { %8516 = vmatpush1.bf16.msra.mxu0 %v16803_v11  ;;  %8926 = vmatpush1.bf16.msra.mxu1 %v16805_v12  ;;  %v845_v11 = vld [vmem:[#allocation5 + $0x10f8] sm:$0xff]  ;;  %v16851_v12 = vcombine.low %v832_v55, %v836_v57  ;;  %v884_v55 = vld [vmem:[#allocation5 + $0x1230] sm:$0xff] }
 0x481   :  { %8517 = vmatprep.subr.bf16.mxu0 %v16812_v14  ;;  %8927 = vmatprep.subr.bf16.mxu1 %v16814_v15  ;;  %v16860_v14 = vcombine.high %v840_v7, %v844_v8  ;;  %v16862_v15 = vcombine.high %v841_v9, %v845_v11  ;;  %v881_v57 = vld [vmem:[#allocation5 + $0x1218] sm:$0xff] }
 0x484   :  { %8518 = vmatpush1.bf16.msra.mxu0 %v16811_v21  ;;  %8928 = vmatpush1.bf16.msra.mxu1 %v16813_v22  ;;  %v16859_v21 = vcombine.low %v840_v7, %v844_v8  ;;  %v16861_v22 = vcombine.low %v841_v9, %v845_v11  ;;  %v892_v7 = vld [vmem:[#allocation5 + $0x1270] sm:$0xff]  ;;  %v889_v8 = vld [vmem:[#allocation5 + $0x1258] sm:$0xff] }
 0x485   :  { %8519 = vmatprep.subr.bf16.mxu0 %v16820_v23  ;;  %8929 = vmatprep.subr.bf16.mxu1 %v16822_v40  ;;  %v16868_v23 = vcombine.high %v848_v16, %v852_v17  ;;  %v856_v40 = vld [vmem:[#allocation5 + $0x1150] sm:$0xff]  ;;  %v893_v9 = vld [vmem:[#allocation5 + $0x1278] sm:$0xff] }
 0x486   :  { %v16875_v38 = vcombine.low %v856_v40, %v860_v25  ;;  %v900_v16 = vld [vmem:[#allocation5 + $0x12b0] sm:$0xff]  ;;  %v897_v17 = vld [vmem:[#allocation5 + $0x1298] sm:$0xff] }
 0x488   :  { %8520 = vmatpush1.bf16.msra.mxu0 %v16819_v58  ;;  %8930 = vmatpush1.bf16.msra.mxu1 %v16821_v31  ;;  %v16869_v58 = vcombine.low %v849_v24, %v853_v19  ;;  %v16876_v31 = vcombine.high %v856_v40, %v860_v25  ;;  %v908_v40 = vld [vmem:[#allocation5 + $0x12f0] sm:$0xff]  ;;  %v905_v25 = vld [vmem:[#allocation5 + $0x12d8] sm:$0xff] }
 0x489   :  { %8521 = vmatprep.subr.bf16.mxu0 %v16828_v33  ;;  %8931 = vmatprep.subr.bf16.mxu1 %v16830_v34  ;;  %v16878_v33 = vcombine.high %v857_v27, %v861_v28  ;;  %v864_v34 = vld [vmem:[#allocation5 + $0x1190] sm:$0xff] }
 0x48a   :  { %v16883_v50 = vcombine.low %v864_v34, %v868_v36 }
 0x48c   :  { %8522 = vmatpush1.bf16.msra.mxu0 %v16827_v39  ;;  %8932 = vmatpush1.bf16.msra.mxu1 %v16829_v41  ;;  %v16877_v39 = vcombine.low %v857_v27, %v861_v28  ;;  %v16884_v41 = vcombine.high %v864_v34, %v868_v36  ;;  %v909_v27 = vld [vmem:[#allocation5 + $0x12f8] sm:$0xff]  ;;  %v916_v34 = vld [vmem:[#allocation5 + $0x1330] sm:$0xff] }
 0x48d   :  { %8532 = vmatprep.subr.bf16.mxu0 %v16836_v42  ;;  %8942 = vmatprep.subr.bf16.mxu1 %v16838_v43  ;;  %v16886_v42 = vcombine.high %v865_v49, %v869_v37  ;;  %v872_v43 = vld [vmem:[#allocation5 + $0x11d0] sm:$0xff]  ;;  %v913_v36 = vld [vmem:[#allocation5 + $0x1318] sm:$0xff] }
 0x48f   :  { %8524 = vmatmul.mubr.bf16.vlgmr.msra.gmra.mrb[4].mxu0 %v20880_v59  ;;  %8934 = vmatmul.mubr.bf16.vlgmr.msra.gmra.mrb[4].mxu1 %v20880_v59  ;;  %v16853_v59 = vcombine.low %v833_v61, %v837_v62  ;;  %v885_v61 = vld [vmem:[#allocation5 + $0x1238] sm:$0xff]  ;;  %v16891_v62 = vcombine.low %v872_v43, %v876_v44 }
 0x490   :  { %8533 = vmatpush1.bf16.msra.mxu0 %v16835_v26  ;;  %8943 = vmatpush1.bf16.msra.mxu1 %v16837_v51  ;;  %v16885_v26 = vcombine.low %v865_v49, %v869_v37  ;;  %v16892_v51 = vcombine.high %v872_v43, %v876_v44  ;;  %v917_v49 = vld [vmem:[#allocation5 + $0x1338] sm:$0xff]  ;;  %v924_v43 = vld [vmem:[#allocation5 + $0x1370] sm:$0xff] }
 0x491   :  { %8534 = vmatprep.subr.bf16.mxu0 %v16844_v53  ;;  %8944 = vmatprep.subr.bf16.mxu1 %v16846_v54  ;;  %v16894_v53 = vcombine.high %v873_v46, %v877_v47  ;;  %v880_v54 = vld [vmem:[#allocation5 + $0x1210] sm:$0xff]  ;;  %v921_v44 = vld [vmem:[#allocation5 + $0x1358] sm:$0xff] }
 0x492   :  { %8564 = vmatprep.mubr.bf16.mxu0 %v20882_v4  ;;  %8974 = vmatprep.mubr.bf16.mxu1 %v20882_v4  ;;  %v16870_v4 = vcombine.high %v849_v24, %v853_v19  ;;  %v16899_v11 = vcombine.low %v880_v54, %v884_v55  ;;  %v901_v24 = vld [vmem:[#allocation5 + $0x12b8] sm:$0xff] }
 0x494   :  { %8535 = vmatpush1.bf16.msra.mxu0 %v16843_v1  ;;  %8945 = vmatpush1.bf16.msra.mxu1 %v16845_v2  ;;  %v16893_v1 = vcombine.low %v873_v46, %v877_v47  ;;  %v16900_v2 = vcombine.high %v880_v54, %v884_v55  ;;  %v925_v46 = vld [vmem:[#allocation5 + $0x1378] sm:$0xff]  ;;  %v932_v54 = vld [vmem:[#allocation5 + $0x13b0] sm:$0xff] }
 0x495   :  { %8536 = vmatprep.subr.bf16.mxu0 %v16852_v6  ;;  %8946 = vmatprep.subr.bf16.mxu1 %v16854_v13  ;;  %v16902_v6 = vcombine.high %v881_v57, %v885_v61  ;;  %v888_v13 = vld [vmem:[#allocation5 + $0x1250] sm:$0xff]  ;;  %v929_v55 = vld [vmem:[#allocation5 + $0x1398] sm:$0xff] }
 0x496   :  { %v16907_v19 = vcombine.low %v888_v13, %v892_v7 }
 0x498   :  { %8537 = vmatpush1.bf16.msra.mxu0 %v16851_v12  ;;  %8947 = vmatpush1.bf16.msra.mxu1 %v16853_v59  ;;  %v16901_v12 = vcombine.low %v881_v57, %v885_v61  ;;  %v16908_v59 = vcombine.high %v888_v13, %v892_v7  ;;  %v933_v57 = vld [vmem:[#allocation5 + $0x13b8] sm:$0xff]  ;;  %v940_v13 = vld [vmem:[#allocation5 + $0x13f0] sm:$0xff] }
 0x499   :  { %8538 = vmatprep.subr.bf16.mxu0 %v16860_v14  ;;  %8948 = vmatprep.subr.bf16.mxu1 %v16862_v15  ;;  %v16910_v14 = vcombine.high %v889_v8, %v893_v9  ;;  %v896_v15 = vld [vmem:[#allocation5 + $0x1290] sm:$0xff]  ;;  %v937_v7 = vld [vmem:[#allocation5 + $0x13d8] sm:$0xff] }
 0x49a   :  { %v16915_v28 = vcombine.low %v896_v15, %v900_v16 }
 0x49c   :  { %8539 = vmatpush1.bf16.msra.mxu0 %v16859_v21  ;;  %8949 = vmatpush1.bf16.msra.mxu1 %v16861_v22  ;;  %v16909_v21 = vcombine.low %v889_v8, %v893_v9  ;;  %v16916_v22 = vcombine.high %v896_v15, %v900_v16  ;;  %v941_v8 = vld [vmem:[#allocation5 + $0x13f8] sm:$0xff]  ;;  %v948_v15 = vld [vmem:[#allocation5 + $0x1430] sm:$0xff] }
 0x49d   :  { %8540 = vmatprep.subr.bf16.mxu0 %v16868_v23  ;;  %8950 = vmatprep.subr.bf16.mxu1 %v16870_v4  ;;  %v16918_v23 = vcombine.high %v897_v17, %v901_v24  ;;  %v904_v4 = vld [vmem:[#allocation5 + $0x12d0] sm:$0xff]  ;;  %v945_v16 = vld [vmem:[#allocation5 + $0x1418] sm:$0xff] }
 0x49e   :  { %v16923_v37 = vcombine.low %v904_v4, %v908_v40 }
 0x4a0   :  { %8541 = vmatpush1.bf16.msra.mxu0 %v16867_v30  ;;  %8951 = vmatpush1.bf16.msra.mxu1 %v16869_v58  ;;  %v16917_v30 = vcombine.low %v897_v17, %v901_v24  ;;  %v16924_v58 = vcombine.high %v904_v4, %v908_v40  ;;  %v949_v17 = vld [vmem:[#allocation5 + $0x1438] sm:$0xff]  ;;  %v956_v4 = vld [vmem:[#allocation5 + $0x1470] sm:$0xff] }
 0x4a1   :  { %8542 = vmatprep.subr.bf16.mxu0 %v16876_v31  ;;  %8952 = vmatprep.subr.bf16.mxu1 %v16878_v33  ;;  %v16926_v31 = vcombine.high %v905_v25, %v909_v27  ;;  %v912_v33 = vld [vmem:[#allocation5 + $0x1310] sm:$0xff]  ;;  %v953_v40 = vld [vmem:[#allocation5 + $0x1458] sm:$0xff] }
 0x4a2   :  { %v16931_v47 = vcombine.low %v912_v33, %v916_v34 }
 0x4a4   :  { %8543 = vmatpush1.bf16.msra.mxu0 %v16875_v38  ;;  %8953 = vmatpush1.bf16.msra.mxu1 %v16877_v39  ;;  %v16925_v38 = vcombine.low %v905_v25, %v909_v27  ;;  %v16932_v39 = vcombine.high %v912_v33, %v916_v34  ;;  %v957_v25 = vld [vmem:[#allocation5 + $0x1478] sm:$0xff]  ;;  %v964_v33 = vld [vmem:[#allocation5 + $0x14b0] sm:$0xff] }
 0x4a5   :  { %8544 = vmatprep.subr.bf16.mxu0 %v16884_v41  ;;  %8954 = vmatprep.subr.bf16.mxu1 %v16886_v42  ;;  %v16934_v41 = vcombine.high %v913_v36, %v917_v49  ;;  %v920_v42 = vld [vmem:[#allocation5 + $0x1350] sm:$0xff]  ;;  %v961_v34 = vld [vmem:[#allocation5 + $0x1498] sm:$0xff] }
 0x4a6   :  { %v16939_v61 = vcombine.low %v920_v42, %v924_v43 }
 0x4a8   :  { %8545 = vmatpush1.bf16.msra.mxu0 %v16883_v50  ;;  %8955 = vmatpush1.bf16.msra.mxu1 %v16885_v26  ;;  %v16933_v50 = vcombine.low %v913_v36, %v917_v49  ;;  %v16940_v26 = vcombine.high %v920_v42, %v924_v43  ;;  %v965_v36 = vld [vmem:[#allocation5 + $0x14b8] sm:$0xff]  ;;  %v972_v42 = vld [vmem:[#allocation5 + $0x14f0] sm:$0xff] }
 0x4a9   :  { %8546 = vmatprep.subr.bf16.mxu0 %v16892_v51  ;;  %8956 = vmatprep.subr.bf16.mxu1 %v16894_v53  ;;  %v16942_v51 = vcombine.high %v921_v44, %v925_v46  ;;  %v928_v53 = vld [vmem:[#allocation5 + $0x1390] sm:$0xff]  ;;  %v969_v43 = vld [vmem:[#allocation5 + $0x14d8] sm:$0xff] }
 0x4aa   :  { %v16947_v9 = vcombine.low %v928_v53, %v932_v54 }
 0x4ac   :  { %8547 = vmatpush1.bf16.msra.mxu0 %v16891_v62  ;;  %8957 = vmatpush1.bf16.msra.mxu1 %v16893_v1  ;;  %v16941_v62 = vcombine.low %v921_v44, %v925_v46  ;;  %v16948_v1 = vcombine.high %v928_v53, %v932_v54  ;;  %v973_v44 = vld [vmem:[#allocation5 + $0x14f8] sm:$0xff] }
 0x4ad   :  { %8548 = vmatprep.subr.bf16.mxu0 %v16900_v2  ;;  %8958 = vmatprep.subr.bf16.mxu1 %v16902_v6  ;;  %v16950_v2 = vcombine.high %v929_v55, %v933_v57  ;;  %v936_v6 = vld [vmem:[#allocation5 + $0x13d0] sm:$0xff]  ;;  %v977_v53 = vld [vmem:[#allocation5 + $0x1518] sm:$0xff] }
 0x4ae   :  { %v16955_v24 = vcombine.low %v936_v6, %v940_v13  ;;  %v981_v54 = vld [vmem:[#allocation5 + $0x1538] sm:$0xff] }
 0x4b0   :  { %8549 = vmatpush1.bf16.msra.mxu0 %v16899_v11  ;;  %8959 = vmatpush1.bf16.msra.mxu1 %v16901_v12  ;;  %v16949_v11 = vcombine.low %v929_v55, %v933_v57  ;;  %v16956_v12 = vcombine.high %v936_v6, %v940_v13  ;;  %v16989_v57 = vcombine.low %v969_v43, %v973_v44  ;;  %v989_v6 = vld [vmem:[#allocation5 + $0x1578] sm:$0xff] }
 0x4b1   :  { %8550 = vmatprep.subr.bf16.mxu0 %v16908_v59  ;;  %8960 = vmatprep.subr.bf16.mxu1 %v16910_v14  ;;  %v16958_v59 = vcombine.high %v937_v7, %v941_v8  ;;  %v944_v14 = vld [vmem:[#allocation5 + $0x1410] sm:$0xff] }
 0x4b2   :  { %v16963_v27 = vcombine.low %v944_v14, %v948_v15 }
 0x4b4   :  { %8551 = vmatpush1.bf16.msra.mxu0 %v16907_v19  ;;  %8961 = vmatpush1.bf16.msra.mxu1 %v16909_v21  ;;  %v16957_v19 = vcombine.low %v937_v7, %v941_v8  ;;  %v16964_v21 = vcombine.high %v944_v14, %v948_v15  ;;  %v16997_v7 = vcombine.low %v977_v53, %v981_v54  ;;  %v997_v14 = vld [vmem:[#allocation5 + $0x15b8] sm:$0xff] }
 0x4b5   :  { %8552 = vmatprep.subr.bf16.mxu0 %v16916_v22  ;;  %8962 = vmatprep.subr.bf16.mxu1 %v16918_v23  ;;  %v16966_v22 = vcombine.high %v945_v16, %v949_v17  ;;  %v952_v23 = vld [vmem:[#allocation5 + $0x1450] sm:$0xff] }
 0x4b6   :  { %v16971_v49 = vcombine.low %v952_v23, %v956_v4 }
 0x4b8   :  { %8553 = vmatpush1.bf16.msra.mxu0 %v16915_v28  ;;  %8963 = vmatpush1.bf16.msra.mxu1 %v16917_v30  ;;  %v16965_v28 = vcombine.low %v945_v16, %v949_v17  ;;  %v16972_v30 = vcombine.high %v952_v23, %v956_v4  ;;  %v1005_v23 = vld [vmem:[#allocation5 + $0x15f8] sm:$0xff] }
 0x4b9   :  { %8554 = vmatprep.subr.bf16.mxu0 %v16924_v58  ;;  %8964 = vmatprep.subr.bf16.mxu1 %v16926_v31  ;;  %v16974_v58 = vcombine.high %v953_v40, %v957_v25  ;;  %v960_v31 = vld [vmem:[#allocation5 + $0x1490] sm:$0xff] }
 0x4ba   :  { %v16979_v46 = vcombine.low %v960_v31, %v964_v33 }
 0x4bc   :  { %8555 = vmatpush1.bf16.msra.mxu0 %v16923_v37  ;;  %8965 = vmatpush1.bf16.msra.mxu1 %v16925_v38  ;;  %v16973_v37 = vcombine.low %v953_v40, %v957_v25  ;;  %v16980_v38 = vcombine.high %v960_v31, %v964_v33  ;;  %v1013_v31 = vld [vmem:[#allocation5 + $0x1638] sm:$0xff] }
 0x4bd   :  { %8556 = vmatprep.subr.bf16.mxu0 %v16932_v39  ;;  %8966 = vmatprep.subr.bf16.mxu1 %v16934_v41  ;;  %v16982_v39 = vcombine.high %v961_v34, %v965_v36  ;;  %v968_v41 = vld [vmem:[#allocation5 + $0x14d0] sm:$0xff] }
 0x4be   :  { %v16987_v55 = vcombine.low %v968_v41, %v972_v42 }
 0x4c0   :  { %8557 = vmatpush1.bf16.msra.mxu0 %v16931_v47  ;;  %8967 = vmatpush1.bf16.msra.mxu1 %v16933_v50  ;;  %v16988_v47 = vcombine.high %v968_v41, %v972_v42  ;;  %v16990_v50 = vcombine.high %v969_v43, %v973_v44  ;;  %v1021_v41 = vld [vmem:[#allocation5 + $0x1678] sm:$0xff] }
 0x4c1   :  { %8558 = vmatprep.subr.bf16.mxu0 %v16940_v26  ;;  %8968 = vmatprep.subr.bf16.mxu1 %v16942_v51  ;;  %v976_v26 = vld [vmem:[#allocation5 + $0x1510] sm:$0xff] }
 0x4c2   :  { %v980_v51 = vld [vmem:[#allocation5 + $0x1530] sm:$0xff] }
 0x4c3   :  { %v16995_v13 = vcombine.low %v976_v26, %v980_v51 }
 0x4c4   :  { %8559 = vmatpush1.bf16.msra.mxu0 %v16939_v61  ;;  %8969 = vmatpush1.bf16.msra.mxu1 %v16941_v62  ;;  %v16996_v61 = vcombine.high %v976_v26, %v980_v51  ;;  %v984_v62 = vld [vmem:[#allocation5 + $0x1550] sm:$0xff]  ;;  %v1029_v26 = vld [vmem:[#allocation5 + $0x16b8] sm:$0xff] }
 0x4c5   :  { %8560 = vmatprep.subr.bf16.mxu0 %v16948_v1  ;;  %8970 = vmatprep.subr.bf16.mxu1 %v16950_v2  ;;  %v988_v1 = vld [vmem:[#allocation5 + $0x1570] sm:$0xff]  ;;  %v985_v2 = vld [vmem:[#allocation5 + $0x1558] sm:$0xff] }
 0x4c6   :  { %v17004_v8 = vcombine.high %v984_v62, %v988_v1  ;;  %v17003_v15 = vcombine.low %v984_v62, %v988_v1  ;;  %v17005_v16 = vcombine.low %v985_v2, %v989_v6  ;;  %v1037_v62 = vld [vmem:[#allocation5 + $0x16f8] sm:$0xff] }
 0x4c8   :  { %8561 = vmatpush1.bf16.msra.mxu0 %v16947_v9  ;;  %8971 = vmatpush1.bf16.msra.mxu1 %v16949_v11  ;;  %v17006_v9 = vcombine.high %v985_v2, %v989_v6  ;;  %v992_v11 = vld [vmem:[#allocation5 + $0x1590] sm:$0xff] }
 0x4c9   :  { %8562 = vmatprep.subr.bf16.mxu0 %v16956_v12  ;;  %8972 = vmatprep.subr.bf16.mxu1 %v16958_v59  ;;  %v996_v12 = vld [vmem:[#allocation5 + $0x15b0] sm:$0xff]  ;;  %v993_v59 = vld [vmem:[#allocation5 + $0x1598] sm:$0xff] }
 0x4ca   :  { %v17012_v17 = vcombine.high %v992_v11, %v996_v12  ;;  %v17011_v4 = vcombine.low %v992_v11, %v996_v12  ;;  %v17013_v40 = vcombine.low %v993_v59, %v997_v14  ;;  %v1045_v11 = vld [vmem:[#allocation5 + $0x1738] sm:$0xff] }
 0x4cc   :  { %8563 = vmatpush1.bf16.msra.mxu0 %v16955_v24  ;;  %8973 = vmatpush1.bf16.msra.mxu1 %v16957_v19  ;;  %v17014_v24 = vcombine.high %v993_v59, %v997_v14  ;;  %v1000_v19 = vld [vmem:[#allocation5 + $0x15d0] sm:$0xff] }
 0x4cd   :  { %8573 = vmatprep.subr.bf16.mxu0 %v16964_v21  ;;  %8983 = vmatprep.subr.bf16.mxu1 %v16966_v22  ;;  %v1004_v21 = vld [vmem:[#allocation5 + $0x15f0] sm:$0xff]  ;;  %v1001_v22 = vld [vmem:[#allocation5 + $0x15d8] sm:$0xff] }
 0x4ce   :  { %v17020_v25 = vcombine.high %v1000_v19, %v1004_v21  ;;  %v17019_v33 = vcombine.low %v1000_v19, %v1004_v21  ;;  %v1053_v19 = vld [vmem:[#allocation5 + $0x1778] sm:$0xff] }
 0x4cf   :  { %8565 = vmatmul.mubr.bf16.vlgmr.msra.gmra.mrb[4].mxu0 %v20894_v18  ;;  %8975 = vmatmul.mubr.bf16.vlgmr.msra.gmra.mrb[4].mxu1 %v20894_v18  ;;  %v16981_v18 = vcombine.low %v961_v34, %v965_v36  ;;  %v17021_v34 = vcombine.low %v1001_v22, %v1005_v23 }
 0x4d0   :  { %8574 = vmatpush1.bf16.msra.mxu0 %v16963_v27  ;;  %8984 = vmatpush1.bf16.msra.mxu1 %v16965_v28  ;;  %v17022_v27 = vcombine.high %v1001_v22, %v1005_v23  ;;  %v1008_v28 = vld [vmem:[#allocation5 + $0x1610] sm:$0xff] }
 0x4d1   :  { %8575 = vmatprep.subr.bf16.mxu0 %v16972_v30  ;;  %8985 = vmatprep.subr.bf16.mxu1 %v16974_v58  ;;  %v1012_v30 = vld [vmem:[#allocation5 + $0x1630] sm:$0xff]  ;;  %v1009_v58 = vld [vmem:[#allocation5 + $0x1618] sm:$0xff] }
 0x4d2   :  { %8605 = vmatprep.mubr.bf16.mxu0 %v20896_v29  ;;  %9015 = vmatprep.mubr.bf16.mxu1 %v20896_v29  ;;  %v16998_v29 = vcombine.high %v977_v53, %v981_v54  ;;  %v17028_v36 = vcombine.high %v1008_v28, %v1012_v30  ;;  %v17027_v42 = vcombine.low %v1008_v28, %v1012_v30  ;;  %v1061_v28 = vld [vmem:[#allocation5 + $0x17b8] sm:$0xff] }
 0x4d3   :  { %v17029_v43 = vcombine.low %v1009_v58, %v1013_v31 }
 0x4d4   :  { %8576 = vmatpush1.bf16.msra.mxu0 %v16971_v49  ;;  %8986 = vmatpush1.bf16.msra.mxu1 %v16973_v37  ;;  %v17030_v49 = vcombine.high %v1009_v58, %v1013_v31  ;;  %v1016_v37 = vld [vmem:[#allocation5 + $0x1650] sm:$0xff] }
 0x4d5   :  { %8577 = vmatprep.subr.bf16.mxu0 %v16980_v38  ;;  %8987 = vmatprep.subr.bf16.mxu1 %v16982_v39  ;;  %v1020_v38 = vld [vmem:[#allocation5 + $0x1670] sm:$0xff]  ;;  %v1017_v39 = vld [vmem:[#allocation5 + $0x1658] sm:$0xff] }
 0x4d6   :  { %v17036_v44 = vcombine.high %v1016_v37, %v1020_v38  ;;  %v17035_v51 = vcombine.low %v1016_v37, %v1020_v38  ;;  %v17037_v53 = vcombine.low %v1017_v39, %v1021_v41  ;;  %v1069_v37 = vld [vmem:[#allocation5 + $0x17f8] sm:$0xff] }
 0x4d8   :  { %8578 = vmatpush1.bf16.msra.mxu0 %v16979_v46  ;;  %8988 = vmatpush1.bf16.msra.mxu1 %v16981_v18  ;;  %v17038_v46 = vcombine.high %v1017_v39, %v1021_v41  ;;  %v1024_v18 = vld [vmem:[#allocation5 + $0x1690] sm:$0xff] }
 0x4d9   :  { %8579 = vmatprep.subr.bf16.mxu0 %v16988_v47  ;;  %8989 = vmatprep.subr.bf16.mxu1 %v16990_v50  ;;  %v1028_v47 = vld [vmem:[#allocation5 + $0x16b0] sm:$0xff]  ;;  %v1025_v50 = vld [vmem:[#allocation5 + $0x1698] sm:$0xff] }
 0x4da   :  { %v17044_v54 = vcombine.high %v1024_v18, %v1028_v47  ;;  %v17043_v1 = vcombine.low %v1024_v18, %v1028_v47  ;;  %v17045_v2 = vcombine.low %v1025_v50, %v1029_v26  ;;  %v1077_v18 = vld [vmem:[#allocation5 + $0x1838] sm:$0xff] }
 0x4dc   :  { %8580 = vmatpush1.bf16.msra.mxu0 %v16987_v55  ;;  %8990 = vmatpush1.bf16.msra.mxu1 %v16989_v57  ;;  %v17046_v55 = vcombine.high %v1025_v50, %v1029_v26  ;;  %v1032_v57 = vld [vmem:[#allocation5 + $0x16d0] sm:$0xff] }
 0x4dd   :  { %8581 = vmatprep.subr.bf16.mxu0 %v16996_v61  ;;  %8991 = vmatprep.subr.bf16.mxu1 %v16998_v29  ;;  %v1036_v61 = vld [vmem:[#allocation5 + $0x16f0] sm:$0xff]  ;;  %v1033_v29 = vld [vmem:[#allocation5 + $0x16d8] sm:$0xff] }
 0x4de   :  { %v17052_v6 = vcombine.high %v1032_v57, %v1036_v61  ;;  %v17051_v12 = vcombine.low %v1032_v57, %v1036_v61  ;;  %v17053_v59 = vcombine.low %v1033_v29, %v1037_v62  ;;  %v1085_v57 = vld [vmem:[#allocation5 + $0x1878] sm:$0xff] }
 0x4e0   :  { %8582 = vmatpush1.bf16.msra.mxu0 %v16995_v13  ;;  %8992 = vmatpush1.bf16.msra.mxu1 %v16997_v7  ;;  %v17054_v13 = vcombine.high %v1033_v29, %v1037_v62  ;;  %v1040_v7 = vld [vmem:[#allocation5 + $0x1710] sm:$0xff] }
 0x4e1   :  { %8583 = vmatprep.subr.bf16.mxu0 %v17004_v8  ;;  %8993 = vmatprep.subr.bf16.mxu1 %v17006_v9  ;;  %v1044_v8 = vld [vmem:[#allocation5 + $0x1730] sm:$0xff]  ;;  %v1041_v9 = vld [vmem:[#allocation5 + $0x1718] sm:$0xff] }
 0x4e2   :  { %v17060_v14 = vcombine.high %v1040_v7, %v1044_v8  ;;  %v17059_v21 = vcombine.low %v1040_v7, %v1044_v8  ;;  %v17061_v22 = vcombine.low %v1041_v9, %v1045_v11  ;;  %v1093_v7 = vld [vmem:[#allocation5 + $0x18b8] sm:$0xff] }
 0x4e4   :  { %8584 = vmatpush1.bf16.msra.mxu0 %v17003_v15  ;;  %8994 = vmatpush1.bf16.msra.mxu1 %v17005_v16  ;;  %v17062_v15 = vcombine.high %v1041_v9, %v1045_v11  ;;  %v1048_v16 = vld [vmem:[#allocation5 + $0x1750] sm:$0xff] }
 0x4e5   :  { %8585 = vmatprep.subr.bf16.mxu0 %v17012_v17  ;;  %8995 = vmatprep.subr.bf16.mxu1 %v17014_v24  ;;  %v1052_v17 = vld [vmem:[#allocation5 + $0x1770] sm:$0xff]  ;;  %v1049_v24 = vld [vmem:[#allocation5 + $0x1758] sm:$0xff] }
 0x4e6   :  { %v17068_v23 = vcombine.high %v1048_v16, %v1052_v17  ;;  %v17067_v30 = vcombine.low %v1048_v16, %v1052_v17  ;;  %v17069_v58 = vcombine.low %v1049_v24, %v1053_v19  ;;  %v1101_v16 = vld [vmem:[#allocation5 + $0x18f8] sm:$0xff] }
 0x4e8   :  { %8586 = vmatpush1.bf16.msra.mxu0 %v17011_v4  ;;  %8996 = vmatpush1.bf16.msra.mxu1 %v17013_v40  ;;  %v17070_v4 = vcombine.high %v1049_v24, %v1053_v19  ;;  %v1056_v40 = vld [vmem:[#allocation5 + $0x1790] sm:$0xff] }
 0x4e9   :  { %8587 = vmatprep.subr.bf16.mxu0 %v17020_v25  ;;  %8997 = vmatprep.subr.bf16.mxu1 %v17022_v27  ;;  %v1060_v25 = vld [vmem:[#allocation5 + $0x17b0] sm:$0xff]  ;;  %v1057_v27 = vld [vmem:[#allocation5 + $0x1798] sm:$0xff] }
 0x4ea   :  { %v17076_v31 = vcombine.high %v1056_v40, %v1060_v25  ;;  %v17075_v38 = vcombine.low %v1056_v40, %v1060_v25  ;;  %v17077_v39 = vcombine.low %v1057_v27, %v1061_v28 }
 0x4ec   :  { %8588 = vmatpush1.bf16.msra.mxu0 %v17019_v33  ;;  %8998 = vmatpush1.bf16.msra.mxu1 %v17021_v34  ;;  %v17078_v33 = vcombine.high %v1057_v27, %v1061_v28  ;;  %v1064_v34 = vld [vmem:[#allocation5 + $0x17d0] sm:$0xff] }
 0x4ed   :  { %8589 = vmatprep.subr.bf16.mxu0 %v17028_v36  ;;  %8999 = vmatprep.subr.bf16.mxu1 %v17030_v49  ;;  %v1068_v36 = vld [vmem:[#allocation5 + $0x17f0] sm:$0xff]  ;;  %v1065_v49 = vld [vmem:[#allocation5 + $0x17d8] sm:$0xff] }
 0x4ee   :  { %v17084_v41 = vcombine.high %v1064_v34, %v1068_v36  ;;  %v17083_v47 = vcombine.low %v1064_v34, %v1068_v36  ;;  %v17085_v50 = vcombine.low %v1065_v49, %v1069_v37  ;;  %v1112_v28 = vld [vmem:[#allocation5 + $0x1950] sm:$0xff] }
 0x4f0   :  { %8590 = vmatpush1.bf16.msra.mxu0 %v17027_v42  ;;  %9000 = vmatpush1.bf16.msra.mxu1 %v17029_v43  ;;  %v17086_v42 = vcombine.high %v1065_v49, %v1069_v37  ;;  %v1072_v43 = vld [vmem:[#allocation5 + $0x1810] sm:$0xff] }
 0x4f1   :  { %8591 = vmatprep.subr.bf16.mxu0 %v17036_v44  ;;  %9001 = vmatprep.subr.bf16.mxu1 %v17038_v46  ;;  %v1076_v44 = vld [vmem:[#allocation5 + $0x1830] sm:$0xff]  ;;  %v1073_v46 = vld [vmem:[#allocation5 + $0x1818] sm:$0xff] }
 0x4f2   :  { %v17092_v26 = vcombine.high %v1072_v43, %v1076_v44  ;;  %v17091_v61 = vcombine.low %v1072_v43, %v1076_v44  ;;  %v17093_v29 = vcombine.low %v1073_v46, %v1077_v18  ;;  %v1120_v37 = vld [vmem:[#allocation5 + $0x1990] sm:$0xff] }
 0x4f4   :  { %8592 = vmatpush1.bf16.msra.mxu0 %v17035_v51  ;;  %9002 = vmatpush1.bf16.msra.mxu1 %v17037_v53  ;;  %v17094_v51 = vcombine.high %v1073_v46, %v1077_v18  ;;  %v1080_v53 = vld [vmem:[#allocation5 + $0x1850] sm:$0xff] }
 0x4f5   :  { %8593 = vmatprep.subr.bf16.mxu0 %v17044_v54  ;;  %9003 = vmatprep.subr.bf16.mxu1 %v17046_v55  ;;  %v1084_v54 = vld [vmem:[#allocation5 + $0x1870] sm:$0xff]  ;;  %v1081_v55 = vld [vmem:[#allocation5 + $0x1858] sm:$0xff] }
 0x4f6   :  { %v17100_v62 = vcombine.high %v1080_v53, %v1084_v54  ;;  %v17099_v8 = vcombine.low %v1080_v53, %v1084_v54  ;;  %v17101_v9 = vcombine.low %v1081_v55, %v1085_v57  ;;  %v1128_v18 = vld [vmem:[#allocation5 + $0x19d0] sm:$0xff] }
 0x4f8   :  { %8594 = vmatpush1.bf16.msra.mxu0 %v17043_v1  ;;  %9004 = vmatpush1.bf16.msra.mxu1 %v17045_v2  ;;  %v17102_v1 = vcombine.high %v1081_v55, %v1085_v57  ;;  %v1088_v2 = vld [vmem:[#allocation5 + $0x1890] sm:$0xff] }
 0x4f9   :  { %8595 = vmatprep.subr.bf16.mxu0 %v17052_v6  ;;  %9005 = vmatprep.subr.bf16.mxu1 %v17054_v13  ;;  %v1092_v6 = vld [vmem:[#allocation5 + $0x18b0] sm:$0xff]  ;;  %v1089_v13 = vld [vmem:[#allocation5 + $0x1898] sm:$0xff] }
 0x4fa   :  { %v17108_v11 = vcombine.high %v1088_v2, %v1092_v6  ;;  %v17107_v17 = vcombine.low %v1088_v2, %v1092_v6  ;;  %v1136_v57 = vld [vmem:[#allocation5 + $0x1a10] sm:$0xff] }
 0x4fc   :  { %8596 = vmatpush1.bf16.msra.mxu0 %v17051_v12  ;;  %9006 = vmatpush1.bf16.msra.mxu1 %v17053_v59  ;;  %v17110_v12 = vcombine.high %v1089_v13, %v1093_v7  ;;  %v1096_v59 = vld [vmem:[#allocation5 + $0x18d0] sm:$0xff] }
 0x4fd   :  { %8597 = vmatprep.subr.bf16.mxu0 %v17060_v14  ;;  %9007 = vmatprep.subr.bf16.mxu1 %v17062_v15  ;;  %v1100_v14 = vld [vmem:[#allocation5 + $0x18f0] sm:$0xff]  ;;  %v1097_v15 = vld [vmem:[#allocation5 + $0x18d8] sm:$0xff] }
 0x4fe   :  { %v17116_v24 = vcombine.high %v1096_v59, %v1100_v14  ;;  %v17118_v19 = vcombine.high %v1097_v15, %v1101_v16  ;;  %v17115_v40 = vcombine.low %v1096_v59, %v1100_v14  ;;  %v17117_v25 = vcombine.low %v1097_v15, %v1101_v16  ;;  %v1152_v16 = vld [vmem:[#allocation5 + $0x1a90] sm:$0xff] }
 0x500   :  { %8598 = vmatpush1.bf16.msra.mxu0 %v17059_v21  ;;  %9008 = vmatpush1.bf16.msra.mxu1 %v17061_v22  ;;  %v1104_v21 = vld [vmem:[#allocation5 + $0x1910] sm:$0xff] }
 0x501   :  { %8599 = vmatprep.subr.bf16.mxu0 %v17068_v23  ;;  %9009 = vmatprep.subr.bf16.mxu1 %v17070_v4  ;;  %v1108_v22 = vld [vmem:[#allocation5 + $0x1930] sm:$0xff]  ;;  %v1105_v23 = vld [vmem:[#allocation5 + $0x1918] sm:$0xff] }
 0x502   :  { %v1109_v4 = vld [vmem:[#allocation5 + $0x1938] sm:$0xff]  ;;  %v17124_v27 = vcombine.high %v1104_v21, %v1108_v22 }
 0x503   :  { %v17125_v34 = vcombine.low %v1105_v23, %v1109_v4 }
 0x504   :  { %8600 = vmatpush1.bf16.msra.mxu0 %v17067_v30  ;;  %9010 = vmatpush1.bf16.msra.mxu1 %v17069_v58  ;;  %v1116_v30 = vld [vmem:[#allocation5 + $0x1970] sm:$0xff]  ;;  %v1113_v58 = vld [vmem:[#allocation5 + $0x1958] sm:$0xff] }
 0x505   :  { %8601 = vmatprep.subr.bf16.mxu0 %v17076_v31  ;;  %9011 = vmatprep.subr.bf16.mxu1 %v17078_v33  ;;  %v1117_v31 = vld [vmem:[#allocation5 + $0x1978] sm:$0xff]  ;;  %v17123_v33 = vcombine.low %v1104_v21, %v1108_v22  ;;  %v17132_v36 = vcombine.high %v1112_v28, %v1116_v30 }
 0x506   :  { %v17134_v49 = vcombine.high %v1113_v58, %v1117_v31  ;;  %v17133_v43 = vcombine.low %v1113_v58, %v1117_v31  ;;  %v1168_v31 = vld [vmem:[#allocation5 + $0x1b10] sm:$0xff] }
 0x508   :  { %8602 = vmatpush1.bf16.msra.mxu0 %v17075_v38  ;;  %9012 = vmatpush1.bf16.msra.mxu1 %v17077_v39  ;;  %v1124_v38 = vld [vmem:[#allocation5 + $0x19b0] sm:$0xff]  ;;  %v1121_v39 = vld [vmem:[#allocation5 + $0x1998] sm:$0xff] }
 0x509   :  { %8603 = vmatprep.subr.bf16.mxu0 %v17084_v41  ;;  %9013 = vmatprep.subr.bf16.mxu1 %v17086_v42  ;;  %v1125_v41 = vld [vmem:[#allocation5 + $0x19b8] sm:$0xff]  ;;  %v17131_v42 = vcombine.low %v1112_v28, %v1116_v30  ;;  %v17140_v44 = vcombine.high %v1120_v37, %v1124_v38 }
 0x50a   :  { %v17142_v46 = vcombine.high %v1121_v39, %v1125_v41  ;;  %v17141_v53 = vcombine.low %v1121_v39, %v1125_v41  ;;  %v1176_v41 = vld [vmem:[#allocation5 + $0x1b50] sm:$0xff] }
 0x50c   :  { %8604 = vmatpush1.bf16.msra.mxu0 %v17083_v47  ;;  %9014 = vmatpush1.bf16.msra.mxu1 %v17085_v50  ;;  %v1132_v47 = vld [vmem:[#allocation5 + $0x19f0] sm:$0xff]  ;;  %v1129_v50 = vld [vmem:[#allocation5 + $0x19d8] sm:$0xff] }
 0x50d   :  { %8614 = vmatprep.subr.bf16.mxu0 %v17092_v26  ;;  %9024 = vmatprep.subr.bf16.mxu1 %v17094_v51  ;;  %v1133_v26 = vld [vmem:[#allocation5 + $0x19f8] sm:$0xff]  ;;  %v17139_v51 = vcombine.low %v1120_v37, %v1124_v38  ;;  %v17148_v54 = vcombine.high %v1128_v18, %v1132_v47 }
 0x50e   :  { %v17150_v55 = vcombine.high %v1129_v50, %v1133_v26  ;;  %v17149_v2 = vcombine.low %v1129_v50, %v1133_v26  ;;  %v1184_v26 = vld [vmem:[#allocation5 + $0x1b90] sm:$0xff] }
 0x50f   :  { %8606 = vmatmul.mubr.bf16.vlgmr.msra.gmra.mrb[4].mxu0 %v20908_v48  ;;  %9016 = vmatmul.mubr.bf16.vlgmr.msra.gmra.mrb[4].mxu1 %v20908_v48  ;;  %v17109_v48 = vcombine.low %v1089_v13, %v1093_v7  ;;  %v1144_v7 = vld [vmem:[#allocation5 + $0x1a50] sm:$0xff] }
 0x510   :  { %8615 = vmatpush1.bf16.msra.mxu0 %v17091_v61  ;;  %9025 = vmatpush1.bf16.msra.mxu1 %v17093_v29  ;;  %v1140_v61 = vld [vmem:[#allocation5 + $0x1a30] sm:$0xff]  ;;  %v1137_v29 = vld [vmem:[#allocation5 + $0x1a18] sm:$0xff] }
 0x511   :  { %8616 = vmatprep.subr.bf16.mxu0 %v17100_v62  ;;  %9026 = vmatprep.subr.bf16.mxu1 %v17102_v1  ;;  %v1141_v62 = vld [vmem:[#allocation5 + $0x1a38] sm:$0xff]  ;;  %v17147_v1 = vcombine.low %v1128_v18, %v1132_v47  ;;  %v17156_v6 = vcombine.high %v1136_v57, %v1140_v61 }
 0x512   :  { %8646 = vmatprep.mubr.bf16.mxu0 %v20910_v60  ;;  %9056 = vmatprep.mubr.bf16.mxu1 %v20910_v60  ;;  %v17126_v60 = vcombine.high %v1105_v23, %v1109_v4  ;;  %v17158_v13 = vcombine.high %v1137_v29, %v1141_v62  ;;  %v17157_v59 = vcombine.low %v1137_v29, %v1141_v62  ;;  %v1160_v4 = vld [vmem:[#allocation5 + $0x1ad0] sm:$0xff] }
 0x513   :  { %v1192_v62 = vld [vmem:[#allocation5 + $0x1bd0] sm:$0xff] }
 0x514   :  { %8617 = vmatpush1.bf16.msra.mxu0 %v17099_v8  ;;  %9027 = vmatpush1.bf16.msra.mxu1 %v17101_v9  ;;  %v1148_v8 = vld [vmem:[#allocation5 + $0x1a70] sm:$0xff]  ;;  %v1145_v9 = vld [vmem:[#allocation5 + $0x1a58] sm:$0xff] }
 0x515   :  { %8618 = vmatprep.subr.bf16.mxu0 %v17108_v11  ;;  %9028 = vmatprep.subr.bf16.mxu1 %v17110_v12  ;;  %v1149_v11 = vld [vmem:[#allocation5 + $0x1a78] sm:$0xff]  ;;  %v17155_v12 = vcombine.low %v1136_v57, %v1140_v61  ;;  %v17164_v14 = vcombine.high %v1144_v7, %v1148_v8 }
 0x516   :  { %v17166_v15 = vcombine.high %v1145_v9, %v1149_v11  ;;  %v17165_v21 = vcombine.low %v1145_v9, %v1149_v11  ;;  %v1200_v11 = vld [vmem:[#allocation5 + $0x1c10] sm:$0xff] }
 0x518   :  { %8619 = vmatpush1.bf16.msra.mxu0 %v17107_v17  ;;  %9029 = vmatpush1.bf16.msra.mxu1 %v17109_v48  ;;  %v1156_v17 = vld [vmem:[#allocation5 + $0x1ab0] sm:$0xff]  ;;  %v1153_v48 = vld [vmem:[#allocation5 + $0x1a98] sm:$0xff] }
 0x519   :  { %8620 = vmatprep.subr.bf16.mxu0 %v17116_v24  ;;  %9030 = vmatprep.subr.bf16.mxu1 %v17118_v19  ;;  %v1157_v24 = vld [vmem:[#allocation5 + $0x1ab8] sm:$0xff]  ;;  %v17163_v19 = vcombine.low %v1144_v7, %v1148_v8  ;;  %v17172_v22 = vcombine.high %v1152_v16, %v1156_v17 }
 0x51a   :  { %v17174_v23 = vcombine.high %v1153_v48, %v1157_v24  ;;  %v17173_v28 = vcombine.low %v1153_v48, %v1157_v24  ;;  %v1208_v24 = vld [vmem:[#allocation5 + $0x1c50] sm:$0xff] }
 0x51c   :  { %8621 = vmatpush1.bf16.msra.mxu0 %v17115_v40  ;;  %9031 = vmatpush1.bf16.msra.mxu1 %v17117_v25  ;;  %v1164_v40 = vld [vmem:[#allocation5 + $0x1af0] sm:$0xff]  ;;  %v1161_v25 = vld [vmem:[#allocation5 + $0x1ad8] sm:$0xff] }
 0x51d   :  { %8622 = vmatprep.subr.bf16.mxu0 %v17124_v27  ;;  %9032 = vmatprep.subr.bf16.mxu1 %v17126_v60  ;;  %v1165_v27 = vld [vmem:[#allocation5 + $0x1af8] sm:$0xff]  ;;  %v17171_v60 = vcombine.low %v1152_v16, %v1156_v17  ;;  %v17180_v30 = vcombine.high %v1160_v4, %v1164_v40 }
 0x51e   :  { %v17182_v58 = vcombine.high %v1161_v25, %v1165_v27  ;;  %v17181_v37 = vcombine.low %v1161_v25, %v1165_v27  ;;  %v1216_v27 = vld [vmem:[#allocation5 + $0x1c90] sm:$0xff] }
 0x520   :  { %8623 = vmatpush1.bf16.msra.mxu0 %v17123_v33  ;;  %9033 = vmatpush1.bf16.msra.mxu1 %v17125_v34  ;;  %v1172_v33 = vld [vmem:[#allocation5 + $0x1b30] sm:$0xff]  ;;  %v1169_v34 = vld [vmem:[#allocation5 + $0x1b18] sm:$0xff] }
 0x521   :  { %8624 = vmatprep.subr.bf16.mxu0 %v17132_v36  ;;  %9034 = vmatprep.subr.bf16.mxu1 %v17134_v49  ;;  %v1173_v36 = vld [vmem:[#allocation5 + $0x1b38] sm:$0xff]  ;;  %v17179_v49 = vcombine.low %v1160_v4, %v1164_v40  ;;  %v17188_v38 = vcombine.high %v1168_v31, %v1172_v33 }
 0x522   :  { %v17190_v39 = vcombine.high %v1169_v34, %v1173_v36  ;;  %v17189_v18 = vcombine.low %v1169_v34, %v1173_v36  ;;  %v1224_v36 = vld [vmem:[#allocation5 + $0x1cd0] sm:$0xff] }
 0x524   :  { %8625 = vmatpush1.bf16.msra.mxu0 %v17131_v42  ;;  %9035 = vmatpush1.bf16.msra.mxu1 %v17133_v43  ;;  %v1180_v42 = vld [vmem:[#allocation5 + $0x1b70] sm:$0xff]  ;;  %v1177_v43 = vld [vmem:[#allocation5 + $0x1b58] sm:$0xff] }
 0x525   :  { %8626 = vmatprep.subr.bf16.mxu0 %v17140_v44  ;;  %9036 = vmatprep.subr.bf16.mxu1 %v17142_v46  ;;  %v1181_v44 = vld [vmem:[#allocation5 + $0x1b78] sm:$0xff]  ;;  %v17187_v46 = vcombine.low %v1168_v31, %v1172_v33  ;;  %v17196_v47 = vcombine.high %v1176_v41, %v1180_v42 }
 0x526   :  { %v17198_v50 = vcombine.high %v1177_v43, %v1181_v44  ;;  %v17197_v57 = vcombine.low %v1177_v43, %v1181_v44  ;;  %v1232_v43 = vld [vmem:[#allocation5 + $0x1d10] sm:$0xff] }
 0x527   :  { %v1236_v44 = vld [vmem:[#allocation5 + $0x1d30] sm:$0xff] }
 0x528   :  { %8627 = vmatpush1.bf16.msra.mxu0 %v17139_v51  ;;  %9037 = vmatpush1.bf16.msra.mxu1 %v17141_v53  ;;  %v1188_v51 = vld [vmem:[#allocation5 + $0x1bb0] sm:$0xff]  ;;  %v1185_v53 = vld [vmem:[#allocation5 + $0x1b98] sm:$0xff] }
 0x529   :  { %8628 = vmatprep.subr.bf16.mxu0 %v17148_v54  ;;  %9038 = vmatprep.subr.bf16.mxu1 %v17150_v55  ;;  %v1189_v54 = vld [vmem:[#allocation5 + $0x1bb8] sm:$0xff]  ;;  %v17195_v55 = vcombine.low %v1176_v41, %v1180_v42  ;;  %v17204_v61 = vcombine.high %v1184_v26, %v1188_v51 }
 0x52a   :  { %v17206_v29 = vcombine.high %v1185_v53, %v1189_v54  ;;  %v17205_v7 = vcombine.low %v1185_v53, %v1189_v54  ;;  %v1244_v53 = vld [vmem:[#allocation5 + $0x1d70] sm:$0xff]  ;;  %v1241_v54 = vld [vmem:[#allocation5 + $0x1d58] sm:$0xff] }
 0x52c   :  { %8629 = vmatpush1.bf16.msra.mxu0 %v17147_v1  ;;  %9039 = vmatpush1.bf16.msra.mxu1 %v17149_v2  ;;  %v1196_v1 = vld [vmem:[#allocation5 + $0x1bf0] sm:$0xff]  ;;  %v1193_v2 = vld [vmem:[#allocation5 + $0x1bd8] sm:$0xff] }
 0x52d   :  { %8630 = vmatprep.subr.bf16.mxu0 %v17156_v6  ;;  %9040 = vmatprep.subr.bf16.mxu1 %v17158_v13  ;;  %v1197_v6 = vld [vmem:[#allocation5 + $0x1bf8] sm:$0xff]  ;;  %v17203_v13 = vcombine.low %v1184_v26, %v1188_v51  ;;  %v17212_v8 = vcombine.high %v1192_v62, %v1196_v1  ;;  %v17252_v26 = vcombine.high %v1232_v43, %v1236_v44  ;;  %v1240_v51 = vld [vmem:[#allocation5 + $0x1d50] sm:$0xff] }
 0x52e   :  { %v17214_v9 = vcombine.high %v1193_v2, %v1197_v6  ;;  %v17213_v16 = vcombine.low %v1193_v2, %v1197_v6  ;;  %v1252_v2 = vld [vmem:[#allocation5 + $0x1db0] sm:$0xff]  ;;  %v1249_v6 = vld [vmem:[#allocation5 + $0x1d98] sm:$0xff] }
 0x530   :  { %8631 = vmatpush1.bf16.msra.mxu0 %v17155_v12  ;;  %9041 = vmatpush1.bf16.msra.mxu1 %v17157_v59  ;;  %v1204_v12 = vld [vmem:[#allocation5 + $0x1c30] sm:$0xff]  ;;  %v1201_v59 = vld [vmem:[#allocation5 + $0x1c18] sm:$0xff] }
 0x531   :  { %8632 = vmatprep.subr.bf16.mxu0 %v17164_v14  ;;  %9042 = vmatprep.subr.bf16.mxu1 %v17166_v15  ;;  %v1205_v14 = vld [vmem:[#allocation5 + $0x1c38] sm:$0xff]  ;;  %v17211_v15 = vcombine.low %v1192_v62, %v1196_v1  ;;  %v17220_v17 = vcombine.high %v1200_v11, %v1204_v12  ;;  %v1248_v1 = vld [vmem:[#allocation5 + $0x1d90] sm:$0xff] }
 0x532   :  { %v17222_v48 = vcombine.high %v1201_v59, %v1205_v14  ;;  %v17221_v4 = vcombine.low %v1201_v59, %v1205_v14  ;;  %v1260_v59 = vld [vmem:[#allocation5 + $0x1df0] sm:$0xff]  ;;  %v1257_v14 = vld [vmem:[#allocation5 + $0x1dd8] sm:$0xff] }
 0x534   :  { %8633 = vmatpush1.bf16.msra.mxu0 %v17163_v19  ;;  %9043 = vmatpush1.bf16.msra.mxu1 %v17165_v21  ;;  %v1212_v19 = vld [vmem:[#allocation5 + $0x1c70] sm:$0xff]  ;;  %v1209_v21 = vld [vmem:[#allocation5 + $0x1c58] sm:$0xff] }
 0x535   :  { %8634 = vmatprep.subr.bf16.mxu0 %v17172_v22  ;;  %9044 = vmatprep.subr.bf16.mxu1 %v17174_v23  ;;  %v1213_v22 = vld [vmem:[#allocation5 + $0x1c78] sm:$0xff]  ;;  %v17219_v23 = vcombine.low %v1200_v11, %v1204_v12  ;;  %v17228_v40 = vcombine.high %v1208_v24, %v1212_v19  ;;  %v1256_v12 = vld [vmem:[#allocation5 + $0x1dd0] sm:$0xff] }
 0x536   :  { %v17230_v25 = vcombine.high %v1209_v21, %v1213_v22  ;;  %v17229_v31 = vcombine.low %v1209_v21, %v1213_v22  ;;  %v1268_v21 = vld [vmem:[#allocation5 + $0x1e30] sm:$0xff]  ;;  %v1265_v22 = vld [vmem:[#allocation5 + $0x1e18] sm:$0xff] }
 0x538   :  { %8635 = vmatpush1.bf16.msra.mxu0 %v17171_v60  ;;  %9045 = vmatpush1.bf16.msra.mxu1 %v17173_v28  ;;  %v1220_v60 = vld [vmem:[#allocation5 + $0x1cb0] sm:$0xff]  ;;  %v1217_v28 = vld [vmem:[#allocation5 + $0x1c98] sm:$0xff] }
 0x539   :  { %8636 = vmatprep.subr.bf16.mxu0 %v17180_v30  ;;  %9046 = vmatprep.subr.bf16.mxu1 %v17182_v58  ;;  %v1221_v30 = vld [vmem:[#allocation5 + $0x1cb8] sm:$0xff]  ;;  %v17227_v58 = vcombine.low %v1208_v24, %v1212_v19  ;;  %v17236_v33 = vcombine.high %v1216_v27, %v1220_v60  ;;  %v1264_v19 = vld [vmem:[#allocation5 + $0x1e10] sm:$0xff] }
 0x53a   :  { %v17238_v34 = vcombine.high %v1217_v28, %v1221_v30 }
 0x53c   :  { %8637 = vmatpush1.bf16.msra.mxu0 %v17179_v49  ;;  %9047 = vmatpush1.bf16.msra.mxu1 %v17181_v37  ;;  %v1228_v49 = vld [vmem:[#allocation5 + $0x1cf0] sm:$0xff]  ;;  %v1225_v37 = vld [vmem:[#allocation5 + $0x1cd8] sm:$0xff] }
 0x53d   :  { %8638 = vmatprep.subr.bf16.mxu0 %v17188_v38  ;;  %9048 = vmatprep.subr.bf16.mxu1 %v17190_v39  ;;  %v1229_v38 = vld [vmem:[#allocation5 + $0x1cf8] sm:$0xff]  ;;  %v17235_v39 = vcombine.low %v1216_v27, %v1220_v60  ;;  %v17244_v41 = vcombine.high %v1224_v36, %v1228_v49  ;;  %v1272_v60 = vld [vmem:[#allocation5 + $0x1e50] sm:$0xff] }
 0x53e   :  { %v17246_v42 = vcombine.high %v1225_v37, %v1229_v38 }
 0x540   :  { %8639 = vmatpush1.bf16.msra.mxu0 %v17187_v46  ;;  %9049 = vmatpush1.bf16.msra.mxu1 %v17189_v18  ;;  %v1233_v46 = vld [vmem:[#allocation5 + $0x1d18] sm:$0xff] }
 0x541   :  { %8640 = vmatprep.subr.bf16.mxu0 %v17196_v47  ;;  %9050 = vmatprep.subr.bf16.mxu1 %v17198_v50  ;;  %v1237_v18 = vld [vmem:[#allocation5 + $0x1d38] sm:$0xff]  ;;  %v17243_v47 = vcombine.low %v1224_v36, %v1228_v49  ;;  %v17245_v50 = vcombine.low %v1225_v37, %v1229_v38  ;;  %v1280_v49 = vld [vmem:[#allocation5 + $0x1e90] sm:$0xff] }
 0x542   :  { %v1284_v37 = vld [vmem:[#allocation5 + $0x1eb0] sm:$0xff]  ;;  %v1281_v38 = vld [vmem:[#allocation5 + $0x1e98] sm:$0xff] }
 0x544   :  { %8641 = vmatpush1.bf16.msra.mxu0 %v17195_v55  ;;  %9051 = vmatpush1.bf16.msra.mxu1 %v17197_v57  ;;  %v1245_v55 = vld [vmem:[#allocation5 + $0x1d78] sm:$0xff]  ;;  %v17251_v57 = vcombine.low %v1232_v43, %v1236_v44  ;;  %v1288_v44 = vld [vmem:[#allocation5 + $0x1ed0] sm:$0xff] }
 0x545   :  { %8642 = vmatprep.subr.bf16.mxu0 %v17204_v61  ;;  %9052 = vmatprep.subr.bf16.mxu1 %v17206_v29  ;;  %v17253_v61 = vcombine.low %v1233_v46, %v1237_v18  ;;  %v17260_v29 = vcombine.high %v1240_v51, %v1244_v53  ;;  %v17262_v62 = vcombine.high %v1241_v54, %v1245_v55 }
 0x548   :  { %8643 = vmatpush1.bf16.msra.mxu0 %v17203_v13  ;;  %9053 = vmatpush1.bf16.msra.mxu1 %v17205_v7  ;;  %v1253_v13 = vld [vmem:[#allocation5 + $0x1db8] sm:$0xff]  ;;  %v17259_v7 = vcombine.low %v1240_v51, %v1244_v53  ;;  %v1296_v53 = vld [vmem:[#allocation5 + $0x1f10] sm:$0xff] }
 0x549   :  { %8644 = vmatprep.subr.bf16.mxu0 %v17212_v8  ;;  %9054 = vmatprep.subr.bf16.mxu1 %v17214_v9  ;;  %v17261_v8 = vcombine.low %v1241_v54, %v1245_v55  ;;  %v17268_v9 = vcombine.high %v1248_v1, %v1252_v2  ;;  %v17270_v11 = vcombine.high %v1249_v6, %v1253_v13  ;;  %v1300_v54 = vld [vmem:[#allocation5 + $0x1f30] sm:$0xff]  ;;  %v1297_v55 = vld [vmem:[#allocation5 + $0x1f18] sm:$0xff] }
 0x54c   :  { %8645 = vmatpush1.bf16.msra.mxu0 %v17211_v15  ;;  %9055 = vmatpush1.bf16.msra.mxu1 %v17213_v16  ;;  %v1261_v15 = vld [vmem:[#allocation5 + $0x1df8] sm:$0xff]  ;;  %v17267_v16 = vcombine.low %v1248_v1, %v1252_v2  ;;  %v1304_v2 = vld [vmem:[#allocation5 + $0x1f50] sm:$0xff] }
 0x54d   :  { %8655 = vmatprep.subr.bf16.mxu0 %v17220_v17  ;;  %9065 = vmatprep.subr.bf16.mxu1 %v17222_v48  ;;  %v17269_v17 = vcombine.low %v1249_v6, %v1253_v13  ;;  %v17276_v48 = vcombine.high %v1256_v12, %v1260_v59  ;;  %v17278_v24 = vcombine.high %v1257_v14, %v1261_v15  ;;  %v1308_v6 = vld [vmem:[#allocation5 + $0x1f70] sm:$0xff]  ;;  %v1305_v13 = vld [vmem:[#allocation5 + $0x1f58] sm:$0xff] }
 0x54f   :  { %8647 = vmatmul.mubr.bf16.vlgmr.msra.gmra.mrb[4].mxu0 %v20922_v20  ;;  %9057 = vmatmul.mubr.bf16.vlgmr.msra.gmra.mrb[4].mxu1 %v20922_v20  ;;  %v17237_v20 = vcombine.low %v1217_v28, %v1221_v30  ;;  %v1276_v28 = vld [vmem:[#allocation5 + $0x1e70] sm:$0xff]  ;;  %v1273_v30 = vld [vmem:[#allocation5 + $0x1e58] sm:$0xff] }
 0x550   :  { %8656 = vmatpush1.bf16.msra.mxu0 %v17219_v23  ;;  %9066 = vmatpush1.bf16.msra.mxu1 %v17221_v4  ;;  %v1269_v23 = vld [vmem:[#allocation5 + $0x1e38] sm:$0xff]  ;;  %v17275_v4 = vcombine.low %v1256_v12, %v1260_v59  ;;  %v1312_v59 = vld [vmem:[#allocation5 + $0x1f90] sm:$0xff] }
 0x551   :  { %8657 = vmatprep.subr.bf16.mxu0 %v17228_v40  ;;  %9067 = vmatprep.subr.bf16.mxu1 %v17230_v25  ;;  %v17277_v40 = vcombine.low %v1257_v14, %v1261_v15  ;;  %v17284_v25 = vcombine.high %v1264_v19, %v1268_v21  ;;  %v17286_v27 = vcombine.high %v1265_v22, %v1269_v23  ;;  %v1316_v14 = vld [vmem:[#allocation5 + $0x1fb0] sm:$0xff]  ;;  %v1313_v15 = vld [vmem:[#allocation5 + $0x1f98] sm:$0xff] }
 0x552   :  { %8687 = vmatprep.mubr.bf16.mxu0 %v20924_v32  ;;  %9097 = vmatprep.mubr.bf16.mxu1 %v20924_v32  ;;  %v17254_v32 = vcombine.high %v1233_v46, %v1237_v18  ;;  %v1292_v46 = vld [vmem:[#allocation5 + $0x1ef0] sm:$0xff]  ;;  %v1289_v18 = vld [vmem:[#allocation5 + $0x1ed8] sm:$0xff] }
 0x554   :  { %8658 = vmatpush1.bf16.msra.mxu0 %v17227_v58  ;;  %9068 = vmatpush1.bf16.msra.mxu1 %v17229_v31  ;;  %v1277_v58 = vld [vmem:[#allocation5 + $0x1e78] sm:$0xff]  ;;  %v17283_v31 = vcombine.low %v1264_v19, %v1268_v21  ;;  %v1320_v21 = vld [vmem:[#allocation5 + $0x1fd0] sm:$0xff] }
 0x555   :  { %8659 = vmatprep.subr.bf16.mxu0 %v17236_v33  ;;  %9069 = vmatprep.subr.bf16.mxu1 %v17238_v34  ;;  %v17285_v33 = vcombine.low %v1265_v22, %v1269_v23  ;;  %v17292_v34 = vcombine.high %v1272_v60, %v1276_v28  ;;  %v17294_v36 = vcombine.high %v1273_v30, %v1277_v58  ;;  %v1324_v22 = vld [vmem:[#allocation5 + $0x1ff0] sm:$0xff]  ;;  %v1321_v23 = vld [vmem:[#allocation5 + $0x1fd8] sm:$0xff] }
 0x558   :  { %8660 = vmatpush1.bf16.msra.mxu0 %v17235_v39  ;;  %9070 = vmatpush1.bf16.msra.mxu1 %v17237_v20  ;;  %v1285_v39 = vld [vmem:[#allocation5 + $0x1eb8] sm:$0xff]  ;;  %v17291_v20 = vcombine.low %v1272_v60, %v1276_v28  ;;  %v1328_v28 = vld [vmem:[#allocation5 + $0x2010] sm:$0xff] }
 0x559   :  { %8661 = vmatprep.subr.bf16.mxu0 %v17244_v41  ;;  %9071 = vmatprep.subr.bf16.mxu1 %v17246_v42  ;;  %v17293_v41 = vcombine.low %v1273_v30, %v1277_v58  ;;  %v17300_v42 = vcombine.high %v1280_v49, %v1284_v37  ;;  %v17302_v43 = vcombine.high %v1281_v38, %v1285_v39  ;;  %v1332_v30 = vld [vmem:[#allocation5 + $0x2030] sm:$0xff]  ;;  %v1329_v58 = vld [vmem:[#allocation5 + $0x2018] sm:$0xff] }
 0x55c   :  { %8662 = vmatpush1.bf16.msra.mxu0 %v17243_v47  ;;  %9072 = vmatpush1.bf16.msra.mxu1 %v17245_v50  ;;  %v1293_v47 = vld [vmem:[#allocation5 + $0x1ef8] sm:$0xff]  ;;  %v17299_v50 = vcombine.low %v1280_v49, %v1284_v37  ;;  %v1336_v37 = vld [vmem:[#allocation5 + $0x2050] sm:$0xff] }
 0x55d   :  { %8663 = vmatprep.subr.bf16.mxu0 %v17252_v26  ;;  %9073 = vmatprep.subr.bf16.mxu1 %v17254_v32  ;;  %v17301_v26 = vcombine.low %v1281_v38, %v1285_v39  ;;  %v17308_v32 = vcombine.high %v1288_v44, %v1292_v46  ;;  %v17310_v51 = vcombine.high %v1289_v18, %v1293_v47  ;;  %v1340_v38 = vld [vmem:[#allocation5 + $0x2070] sm:$0xff]  ;;  %v1337_v39 = vld [vmem:[#allocation5 + $0x2058] sm:$0xff] }
 0x560   :  { %8664 = vmatpush1.bf16.msra.mxu0 %v17251_v57  ;;  %9074 = vmatpush1.bf16.msra.mxu1 %v17253_v61  ;;  %v1301_v57 = vld [vmem:[#allocation5 + $0x1f38] sm:$0xff]  ;;  %v17307_v61 = vcombine.low %v1288_v44, %v1292_v46  ;;  %v1344_v46 = vld [vmem:[#allocation5 + $0x2090] sm:$0xff] }
 0x561   :  { %8665 = vmatprep.subr.bf16.mxu0 %v17260_v29  ;;  %9075 = vmatprep.subr.bf16.mxu1 %v17262_v62  ;;  %v17309_v29 = vcombine.low %v1289_v18, %v1293_v47  ;;  %v17316_v62 = vcombine.high %v1296_v53, %v1300_v54  ;;  %v17318_v1 = vcombine.high %v1297_v55, %v1301_v57  ;;  %v1348_v18 = vld [vmem:[#allocation5 + $0x20b0] sm:$0xff]  ;;  %v1345_v47 = vld [vmem:[#allocation5 + $0x2098] sm:$0xff] }
 0x564   :  { %8666 = vmatpush1.bf16.msra.mxu0 %v17259_v7  ;;  %9076 = vmatpush1.bf16.msra.mxu1 %v17261_v8  ;;  %v1309_v7 = vld [vmem:[#allocation5 + $0x1f78] sm:$0xff]  ;;  %v17315_v8 = vcombine.low %v1296_v53, %v1300_v54  ;;  %v1352_v54 = vld [vmem:[#allocation5 + $0x20d0] sm:$0xff] }
 0x565   :  { %8667 = vmatprep.subr.bf16.mxu0 %v17268_v9  ;;  %9077 = vmatprep.subr.bf16.mxu1 %v17270_v11  ;;  %v17317_v9 = vcombine.low %v1297_v55, %v1301_v57  ;;  %v17324_v11 = vcombine.high %v1304_v2, %v1308_v6  ;;  %v17326_v12 = vcombine.high %v1305_v13, %v1309_v7  ;;  %v1356_v55 = vld [vmem:[#allocation5 + $0x20f0] sm:$0xff]  ;;  %v1353_v57 = vld [vmem:[#allocation5 + $0x20d8] sm:$0xff] }
 0x568   :  { %8668 = vmatpush1.bf16.msra.mxu0 %v17267_v16  ;;  %9078 = vmatpush1.bf16.msra.mxu1 %v17269_v17  ;;  %v1317_v16 = vld [vmem:[#allocation5 + $0x1fb8] sm:$0xff]  ;;  %v17323_v17 = vcombine.low %v1304_v2, %v1308_v6  ;;  %v1360_v2 = vld [vmem:[#allocation5 + $0x2110] sm:$0xff] }
 0x569   :  { %8669 = vmatprep.subr.bf16.mxu0 %v17276_v48  ;;  %9079 = vmatprep.subr.bf16.mxu1 %v17278_v24  ;;  %v17325_v48 = vcombine.low %v1305_v13, %v1309_v7  ;;  %v17332_v24 = vcombine.high %v1312_v59, %v1316_v14  ;;  %v17334_v19 = vcombine.high %v1313_v15, %v1317_v16  ;;  %v1364_v6 = vld [vmem:[#allocation5 + $0x2130] sm:$0xff]  ;;  %v1361_v13 = vld [vmem:[#allocation5 + $0x2118] sm:$0xff] }
 0x56a   :  { %v1365_v7 = vld [vmem:[#allocation5 + $0x2138] sm:$0xff] }
 0x56c   :  { %8670 = vmatpush1.bf16.msra.mxu0 %v17275_v4  ;;  %9080 = vmatpush1.bf16.msra.mxu1 %v17277_v40  ;;  %v1325_v4 = vld [vmem:[#allocation5 + $0x1ff8] sm:$0xff]  ;;  %v17331_v40 = vcombine.low %v1312_v59, %v1316_v14  ;;  %v1372_v59 = vld [vmem:[#allocation5 + $0x2170] sm:$0xff] }
 0x56d   :  { %8671 = vmatprep.subr.bf16.mxu0 %v17284_v25  ;;  %9081 = vmatprep.subr.bf16.mxu1 %v17286_v27  ;;  %v17333_v25 = vcombine.low %v1313_v15, %v1317_v16  ;;  %v17340_v27 = vcombine.high %v1320_v21, %v1324_v22  ;;  %v17342_v60 = vcombine.high %v1321_v23, %v1325_v4  ;;  %v1369_v14 = vld [vmem:[#allocation5 + $0x2158] sm:$0xff] }
 0x56e   :  { %v1373_v15 = vld [vmem:[#allocation5 + $0x2178] sm:$0xff]  ;;  %v17379_v16 = vcombine.low %v1360_v2, %v1364_v6 }
 0x570   :  { %8672 = vmatpush1.bf16.msra.mxu0 %v17283_v31  ;;  %9082 = vmatpush1.bf16.msra.mxu1 %v17285_v33  ;;  %v1333_v31 = vld [vmem:[#allocation5 + $0x2038] sm:$0xff]  ;;  %v17339_v33 = vcombine.low %v1320_v21, %v1324_v22  ;;  %v1380_v21 = vld [vmem:[#allocation5 + $0x21b0] sm:$0xff] }
 0x571   :  { %8673 = vmatprep.subr.bf16.mxu0 %v17292_v34  ;;  %9083 = vmatprep.subr.bf16.mxu1 %v17294_v36  ;;  %v17341_v34 = vcombine.low %v1321_v23, %v1325_v4  ;;  %v17348_v36 = vcombine.high %v1328_v28, %v1332_v30  ;;  %v17350_v49 = vcombine.high %v1329_v58, %v1333_v31  ;;  %v1377_v22 = vld [vmem:[#allocation5 + $0x2198] sm:$0xff] }
 0x572   :  { %v1381_v23 = vld [vmem:[#allocation5 + $0x21b8] sm:$0xff] }
 0x574   :  { %8674 = vmatpush1.bf16.msra.mxu0 %v17291_v20  ;;  %9084 = vmatpush1.bf16.msra.mxu1 %v17293_v41  ;;  %v1341_v20 = vld [vmem:[#allocation5 + $0x2078] sm:$0xff]  ;;  %v17347_v41 = vcombine.low %v1328_v28, %v1332_v30  ;;  %v1388_v28 = vld [vmem:[#allocation5 + $0x21f0] sm:$0xff] }
 0x575   :  { %8675 = vmatprep.subr.bf16.mxu0 %v17300_v42  ;;  %9085 = vmatprep.subr.bf16.mxu1 %v17302_v43  ;;  %v17349_v42 = vcombine.low %v1329_v58, %v1333_v31  ;;  %v17356_v43 = vcombine.high %v1336_v37, %v1340_v38  ;;  %v17358_v44 = vcombine.high %v1337_v39, %v1341_v20  ;;  %v1385_v30 = vld [vmem:[#allocation5 + $0x21d8] sm:$0xff] }
 0x576   :  { %v1389_v58 = vld [vmem:[#allocation5 + $0x21f8] sm:$0xff] }
 0x578   :  { %8676 = vmatpush1.bf16.msra.mxu0 %v17299_v50  ;;  %9086 = vmatpush1.bf16.msra.mxu1 %v17301_v26  ;;  %v1349_v50 = vld [vmem:[#allocation5 + $0x20b8] sm:$0xff]  ;;  %v17355_v26 = vcombine.low %v1336_v37, %v1340_v38  ;;  %v1396_v37 = vld [vmem:[#allocation5 + $0x2230] sm:$0xff] }
 0x579   :  { %8677 = vmatprep.subr.bf16.mxu0 %v17308_v32  ;;  %9087 = vmatprep.subr.bf16.mxu1 %v17310_v51  ;;  %v17357_v32 = vcombine.low %v1337_v39, %v1341_v20  ;;  %v17364_v51 = vcombine.high %v1344_v46, %v1348_v18  ;;  %v17366_v53 = vcombine.high %v1345_v47, %v1349_v50  ;;  %v1393_v38 = vld [vmem:[#allocation5 + $0x2218] sm:$0xff] }
 0x57a   :  { %v1397_v39 = vld [vmem:[#allocation5 + $0x2238] sm:$0xff] }
 0x57c   :  { %8678 = vmatpush1.bf16.msra.mxu0 %v17307_v61  ;;  %9088 = vmatpush1.bf16.msra.mxu1 %v17309_v29  ;;  %v1357_v61 = vld [vmem:[#allocation5 + $0x20f8] sm:$0xff]  ;;  %v17363_v29 = vcombine.low %v1344_v46, %v1348_v18  ;;  %v1404_v46 = vld [vmem:[#allocation5 + $0x2270] sm:$0xff] }
 0x57d   :  { %8679 = vmatprep.subr.bf16.mxu0 %v17316_v62  ;;  %9089 = vmatprep.subr.bf16.mxu1 %v17318_v1  ;;  %v17372_v62 = vcombine.high %v1352_v54, %v1356_v55  ;;  %v17374_v1 = vcombine.high %v1353_v57, %v1357_v61  ;;  %v1401_v18 = vld [vmem:[#allocation5 + $0x2258] sm:$0xff] }
 0x580   :  { %8680 = vmatpush1.bf16.msra.mxu0 %v17315_v8  ;;  %9090 = vmatpush1.bf16.msra.mxu1 %v17317_v9  ;;  %v17371_v8 = vcombine.low %v1352_v54, %v1356_v55  ;;  %v17373_v9 = vcombine.low %v1353_v57, %v1357_v61  ;;  %v1412_v54 = vld [vmem:[#allocation5 + $0x22b0] sm:$0xff]  ;;  %v1409_v55 = vld [vmem:[#allocation5 + $0x2298] sm:$0xff] }
 0x581   :  { %8681 = vmatprep.subr.bf16.mxu0 %v17324_v11  ;;  %9091 = vmatprep.subr.bf16.mxu1 %v17326_v12  ;;  %v17380_v11 = vcombine.high %v1360_v2, %v1364_v6  ;;  %v1368_v12 = vld [vmem:[#allocation5 + $0x2150] sm:$0xff]  ;;  %v1413_v57 = vld [vmem:[#allocation5 + $0x22b8] sm:$0xff] }
 0x582   :  { %v17387_v4 = vcombine.low %v1368_v12, %v1372_v59  ;;  %v1420_v2 = vld [vmem:[#allocation5 + $0x22f0] sm:$0xff]  ;;  %v1417_v6 = vld [vmem:[#allocation5 + $0x22d8] sm:$0xff] }
 0x584   :  { %8682 = vmatpush1.bf16.msra.mxu0 %v17323_v17  ;;  %9092 = vmatpush1.bf16.msra.mxu1 %v17325_v48  ;;  %v17381_v17 = vcombine.low %v1361_v13, %v1365_v7  ;;  %v17388_v48 = vcombine.high %v1368_v12, %v1372_v59  ;;  %v1428_v12 = vld [vmem:[#allocation5 + $0x2330] sm:$0xff]  ;;  %v1425_v59 = vld [vmem:[#allocation5 + $0x2318] sm:$0xff] }
 0x585   :  { %8683 = vmatprep.subr.bf16.mxu0 %v17332_v24  ;;  %9093 = vmatprep.subr.bf16.mxu1 %v17334_v19  ;;  %v17390_v24 = vcombine.high %v1369_v14, %v1373_v15  ;;  %v1376_v19 = vld [vmem:[#allocation5 + $0x2190] sm:$0xff] }
 0x586   :  { %v17395_v31 = vcombine.low %v1376_v19, %v1380_v21 }
 0x588   :  { %8684 = vmatpush1.bf16.msra.mxu0 %v17331_v40  ;;  %9094 = vmatpush1.bf16.msra.mxu1 %v17333_v25  ;;  %v17389_v40 = vcombine.low %v1369_v14, %v1373_v15  ;;  %v17396_v25 = vcombine.high %v1376_v19, %v1380_v21  ;;  %v1429_v14 = vld [vmem:[#allocation5 + $0x2338] sm:$0xff]  ;;  %v1436_v19 = vld [vmem:[#allocation5 + $0x2370] sm:$0xff] }
 0x589   :  { %8685 = vmatprep.subr.bf16.mxu0 %v17340_v27  ;;  %9095 = vmatprep.subr.bf16.mxu1 %v17342_v60  ;;  %v17398_v27 = vcombine.high %v1377_v22, %v1381_v23  ;;  %v1384_v60 = vld [vmem:[#allocation5 + $0x21d0] sm:$0xff]  ;;  %v1433_v21 = vld [vmem:[#allocation5 + $0x2358] sm:$0xff] }
 0x58a   :  { %v17403_v20 = vcombine.low %v1384_v60, %v1388_v28 }
 0x58c   :  { %8686 = vmatpush1.bf16.msra.mxu0 %v17339_v33  ;;  %9096 = vmatpush1.bf16.msra.mxu1 %v17341_v34  ;;  %v17397_v33 = vcombine.low %v1377_v22, %v1381_v23  ;;  %v17404_v34 = vcombine.high %v1384_v60, %v1388_v28  ;;  %v1437_v22 = vld [vmem:[#allocation5 + $0x2378] sm:$0xff]  ;;  %v1444_v60 = vld [vmem:[#allocation5 + $0x23b0] sm:$0xff] }
 0x58d   :  { %8696 = vmatprep.subr.bf16.mxu0 %v17348_v36  ;;  %9106 = vmatprep.subr.bf16.mxu1 %v17350_v49  ;;  %v17406_v36 = vcombine.high %v1385_v30, %v1389_v58  ;;  %v1392_v49 = vld [vmem:[#allocation5 + $0x2210] sm:$0xff]  ;;  %v1441_v28 = vld [vmem:[#allocation5 + $0x2398] sm:$0xff] }
 0x58f   :  { %8688 = vmatmul.mubr.bf16.vlgmr.msra.gmra.mrb[4].mxu0 %v20936_v0  ;;  %9098 = vmatmul.mubr.bf16.vlgmr.msra.gmra.mrb[4].mxu1 %v20936_v0  ;;  %v17365_v0 = vcombine.low %v1345_v47, %v1349_v50  ;;  %v1405_v47 = vld [vmem:[#allocation5 + $0x2278] sm:$0xff]  ;;  %v17411_v50 = vcombine.low %v1392_v49, %v1396_v37 }
 0x590   :  { %8697 = vmatpush1.bf16.msra.mxu0 %v17347_v41  ;;  %9107 = vmatpush1.bf16.msra.mxu1 %v17349_v42  ;;  %v17405_v41 = vcombine.low %v1385_v30, %v1389_v58  ;;  %v17412_v42 = vcombine.high %v1392_v49, %v1396_v37  ;;  %v1445_v30 = vld [vmem:[#allocation5 + $0x23b8] sm:$0xff]  ;;  %v1452_v49 = vld [vmem:[#allocation5 + $0x23f0] sm:$0xff] }
 0x591   :  { %8698 = vmatprep.subr.bf16.mxu0 %v17356_v43  ;;  %9108 = vmatprep.subr.bf16.mxu1 %v17358_v44  ;;  %v17414_v43 = vcombine.high %v1393_v38, %v1397_v39  ;;  %v1400_v44 = vld [vmem:[#allocation5 + $0x2250] sm:$0xff]  ;;  %v1449_v37 = vld [vmem:[#allocation5 + $0x23d8] sm:$0xff] }
 0x592   :  { %8728 = vmatprep.mubr.bf16.mxu0 %v20938_v10  ;;  %9138 = vmatprep.mubr.bf16.mxu1 %v20938_v10  ;;  %v17382_v10 = vcombine.high %v1361_v13, %v1365_v7  ;;  %v17419_v61 = vcombine.low %v1400_v44, %v1404_v46  ;;  %v1421_v13 = vld [vmem:[#allocation5 + $0x22f8] sm:$0xff] }
 0x594   :  { %8699 = vmatpush1.bf16.msra.mxu0 %v17355_v26  ;;  %9109 = vmatpush1.bf16.msra.mxu1 %v17357_v32  ;;  %v17413_v26 = vcombine.low %v1393_v38, %v1397_v39  ;;  %v17420_v32 = vcombine.high %v1400_v44, %v1404_v46  ;;  %v1453_v38 = vld [vmem:[#allocation5 + $0x23f8] sm:$0xff]  ;;  %v1460_v44 = vld [vmem:[#allocation5 + $0x2430] sm:$0xff] }
 0x595   :  { %8700 = vmatprep.subr.bf16.mxu0 %v17364_v51  ;;  %9110 = vmatprep.subr.bf16.mxu1 %v17366_v53  ;;  %v17422_v51 = vcombine.high %v1401_v18, %v1405_v47  ;;  %v1408_v53 = vld [vmem:[#allocation5 + $0x2290] sm:$0xff]  ;;  %v1457_v46 = vld [vmem:[#allocation5 + $0x2418] sm:$0xff] }
 0x596   :  { %v17427_v7 = vcombine.low %v1408_v53, %v1412_v54 }
 0x598   :  { %8701 = vmatpush1.bf16.msra.mxu0 %v17363_v29  ;;  %9111 = vmatpush1.bf16.msra.mxu1 %v17365_v0  ;;  %v17421_v29 = vcombine.low %v1401_v18, %v1405_v47  ;;  %v17428_v0 = vcombine.high %v1408_v53, %v1412_v54  ;;  %v1461_v18 = vld [vmem:[#allocation5 + $0x2438] sm:$0xff]  ;;  %v1468_v53 = vld [vmem:[#allocation5 + $0x2470] sm:$0xff] }
 0x599   :  { %8702 = vmatprep.subr.bf16.mxu0 %v17372_v62  ;;  %9112 = vmatprep.subr.bf16.mxu1 %v17374_v1  ;;  %v17430_v62 = vcombine.high %v1409_v55, %v1413_v57  ;;  %v1416_v1 = vld [vmem:[#allocation5 + $0x22d0] sm:$0xff]  ;;  %v1465_v54 = vld [vmem:[#allocation5 + $0x2458] sm:$0xff] }
 0x59a   :  { %v17435_v15 = vcombine.low %v1416_v1, %v1420_v2 }
 0x59c   :  { %8703 = vmatpush1.bf16.msra.mxu0 %v17371_v8  ;;  %9113 = vmatpush1.bf16.msra.mxu1 %v17373_v9  ;;  %v17429_v8 = vcombine.low %v1409_v55, %v1413_v57  ;;  %v17436_v9 = vcombine.high %v1416_v1, %v1420_v2  ;;  %v1469_v55 = vld [vmem:[#allocation5 + $0x2478] sm:$0xff]  ;;  %v1476_v1 = vld [vmem:[#allocation5 + $0x24b0] sm:$0xff]  ;;  %v1504_v2 = vlaneseq }
 0x59d   :  { %8704 = vmatprep.subr.bf16.mxu0 %v17380_v11  ;;  %9114 = vmatprep.subr.bf16.mxu1 %v17382_v10  ;;  %v17438_v11 = vcombine.high %v1417_v6, %v1421_v13  ;;  %v1424_v10 = vld [vmem:[#allocation5 + $0x2310] sm:$0xff] }
 0x59e   :  { %v17443_v23 = vcombine.low %v1424_v10, %v1428_v12 }
 0x5a0   :  { %8705 = vmatpush1.bf16.msra.mxu0 %v17379_v16  ;;  %9115 = vmatpush1.bf16.msra.mxu1 %v17381_v17  ;;  %v17437_v16 = vcombine.low %v1417_v6, %v1421_v13  ;;  %v17444_v17 = vcombine.high %v1424_v10, %v1428_v12  ;;  %v1473_v6 = vld [vmem:[#allocation5 + $0x2498] sm:$0xff]  ;;  %v1480_v10 = vld [vmem:[#allocation5 + $0x24d0] sm:$0xff] }
 0x5a1   :  { %8706 = vmatprep.subr.bf16.mxu0 %v17388_v48  ;;  %9116 = vmatprep.subr.bf16.mxu1 %v17390_v24  ;;  %v17446_v48 = vcombine.high %v1425_v59, %v1429_v14  ;;  %v1432_v24 = vld [vmem:[#allocation5 + $0x2350] sm:$0xff]  ;;  %v1477_v13 = vld [vmem:[#allocation5 + $0x24b8] sm:$0xff] }
 0x5a2   :  { %v17451_v58 = vcombine.low %v1432_v24, %v1436_v19  ;;  %v1484_v12 = vld [vmem:[#allocation5 + $0x24f0] sm:$0xff] }
 0x5a4   :  { %8707 = vmatpush1.bf16.msra.mxu0 %v17387_v4  ;;  %9117 = vmatpush1.bf16.msra.mxu1 %v17389_v40  ;;  %v17445_v4 = vcombine.low %v1425_v59, %v1429_v14  ;;  %v17452_v40 = vcombine.high %v1432_v24, %v1436_v19  ;;  %v21007_v59 = vshrl.u32 %v1504_v2, 7  ;;  %v1481_v14 = vld [vmem:[#allocation5 + $0x24d8] sm:$0xff]  ;;  %v1488_v24 = vld [vmem:[#allocation5 + $0x2510] sm:$0xff] }
 0x5a5   :  { %8708 = vmatprep.subr.bf16.mxu0 %v17396_v25  ;;  %9118 = vmatprep.subr.bf16.mxu1 %v17398_v27  ;;  %v17454_v25 = vcombine.high %v1433_v21, %v1437_v22  ;;  %v1440_v27 = vld [vmem:[#allocation5 + $0x2390] sm:$0xff]  ;;  %v18820_v2 = vld [vmem:[#allocation8 + $0x1e4] ss:$48 sps:$4 sm:$0xff]  }
 0x5a6   :  { %v17459_v39 = vcombine.low %v1440_v27, %v1444_v60  ;;  %v1492_v19 = vld [vmem:[#allocation5 + $0x2530] sm:$0xff] }
 0x5a8   :  { %8709 = vmatpush1.bf16.msra.mxu0 %v17395_v31  ;;  %9119 = vmatpush1.bf16.msra.mxu1 %v17397_v33  ;;  %v17453_v31 = vcombine.low %v1433_v21, %v1437_v22  ;;  %v17460_v33 = vcombine.high %v1440_v27, %v1444_v60  ;;  %v21011_v21 = vsub.s32 1, %v21007_v59  ;;  %v1489_v22 = vld [vmem:[#allocation5 + $0x2518] sm:$0xff]  ;;  %v17508_v27 = vcombine.high %v1488_v24, %v1492_v19 }
 0x5a9   :  { %8710 = vmatprep.subr.bf16.mxu0 %v17404_v34  ;;  %9120 = vmatprep.subr.bf16.mxu1 %v17406_v36  ;;  %v17462_v34 = vcombine.high %v1441_v28, %v1445_v30  ;;  %v1448_v36 = vld [vmem:[#allocation5 + $0x23d0] sm:$0xff] }
 0x5aa   :  { %v17467_v47 = vcombine.low %v1448_v36, %v1452_v49 }
 0x5ac   :  { %8711 = vmatpush1.bf16.msra.mxu0 %v17403_v20  ;;  %9121 = vmatpush1.bf16.msra.mxu1 %v17405_v41  ;;  %v17461_v20 = vcombine.low %v1441_v28, %v1445_v30  ;;  %v17468_v41 = vcombine.high %v1448_v36, %v1452_v49  ;;  %v1496_v28 = vld [vmem:[#allocation5 + $0x2550] sm:$0xff] }
 0x5ad   :  { %8712 = vmatprep.subr.bf16.mxu0 %v17412_v42  ;;  %9122 = vmatprep.subr.bf16.mxu1 %v17414_v43  ;;  %v17470_v42 = vcombine.high %v1449_v37, %v1453_v38  ;;  %v1456_v43 = vld [vmem:[#allocation5 + $0x2410] sm:$0xff] }
 0x5ae   :  { %v17475_v57 = vcombine.low %v1456_v43, %v1460_v44  ;;  %v1500_v30 = vld [vmem:[#allocation5 + $0x2570] sm:$0xff] }
 0x5af   :  { %v17516_v49 = vcombine.high %v1496_v28, %v1500_v30 }
 0x5b0   :  { %8713 = vmatpush1.bf16.msra.mxu0 %v17411_v50  ;;  %9123 = vmatpush1.bf16.msra.mxu1 %v17413_v26  ;;  %v17469_v50 = vcombine.low %v1449_v37, %v1453_v38  ;;  %v17476_v26 = vcombine.high %v1456_v43, %v1460_v44  ;;  %v18788_v44 = vld [vmem:[#allocation8] ss:$48 sps:$4 sm:$0xff]  }
 0x5b1   :  { %8714 = vmatprep.subr.bf16.mxu0 %v17420_v32  ;;  %9124 = vmatprep.subr.bf16.mxu1 %v17422_v51  ;;  %v17478_v32 = vcombine.high %v1457_v46, %v1461_v18  ;;  %v1464_v51 = vld [vmem:[#allocation5 + $0x2450] sm:$0xff] }
 0x5b4   :  { %8715 = vmatpush1.bf16.msra.mxu0 %v17419_v61  ;;  %9125 = vmatpush1.bf16.msra.mxu1 %v17421_v29  ;;  %v17477_v61 = vcombine.low %v1457_v46, %v1461_v18  ;;  %v17484_v29 = vcombine.high %v1464_v51, %v1468_v53  ;;  %v18791_v46 = vld [vmem:[#allocation8 + $0x8] ss:$48 sps:$4 sm:$0xff]   ;;  %v18796_v18 = vld [vmem:[#allocation8 + $0x64] ss:$48 sps:$4 sm:$0xff]  }
 0x5b5   :  { %8716 = vmatprep.subr.bf16.mxu0 %v17428_v0  ;;  %9126 = vmatprep.subr.bf16.mxu1 %v17430_v62  ;;  %v17486_v0 = vcombine.high %v1465_v54, %v1469_v55  ;;  %v1472_v62 = vld [vmem:[#allocation5 + $0x2490] sm:$0xff] }
 0x5b8   :  { %8717 = vmatpush1.bf16.msra.mxu0 %v17427_v7  ;;  %9127 = vmatpush1.bf16.msra.mxu1 %v17429_v8  ;;  %v17483_v7 = vcombine.low %v1464_v51, %v1468_v53  ;;  %v17485_v8 = vcombine.low %v1465_v54, %v1469_v55  ;;  %v18805_v51 = vld [vmem:[#allocation8 + $0xcc] ss:$48 sps:$4 sm:$0xff]   ;;  %v18800_v53 = vld [vmem:[#allocation8 + $0xc0] ss:$48 sps:$4 sm:$0xff]   ;;  %v18803_v54 = vld [vmem:[#allocation8 + $0xc8] ss:$48 sps:$4 sm:$0xff]  }
 0x5b9   :  { %8718 = vmatprep.subr.bf16.mxu0 %v17436_v9  ;;  %9128 = vmatprep.subr.bf16.mxu1 %v17438_v11  ;;  %v17492_v9 = vcombine.high %v1472_v62, %v1476_v1  ;;  %v17494_v11 = vcombine.high %v1473_v6, %v1477_v13  ;;  %v18808_v55 = vld [vmem:[#allocation8 + $0x124] ss:$48 sps:$4 sm:$0xff]  }
 0x5bc   :  { %8719 = vmatpush1.bf16.msra.mxu0 %v17435_v15  ;;  %9129 = vmatpush1.bf16.msra.mxu1 %v17437_v16  ;;  %v1485_v15 = vld [vmem:[#allocation5 + $0x24f8] sm:$0xff]  ;;  %v17491_v16 = vcombine.low %v1472_v62, %v1476_v1  ;;  %v18815_v1 = vld [vmem:[#allocation8 + $0x188] ss:$48 sps:$4 sm:$0xff]  }
 0x5bd   :  { %8720 = vmatprep.subr.bf16.mxu0 %v17444_v17  ;;  %9130 = vmatprep.subr.bf16.mxu1 %v17446_v48  ;;  %v17500_v17 = vcombine.high %v1480_v10, %v1484_v12  ;;  %v17502_v48 = vcombine.high %v1481_v14, %v1485_v15  ;;  %v18812_v62 = vld [vmem:[#allocation8 + $0x180] ss:$48 sps:$4 sm:$0xff]  }
 0x5c0   :  { %8721 = vmatpush1.bf16.msra.mxu0 %v17443_v23  ;;  %9131 = vmatpush1.bf16.msra.mxu1 %v17445_v4  ;;  %v1493_v23 = vld [vmem:[#allocation5 + $0x2538] sm:$0xff]  ;;  %v21013_v4 = vld [vmem:[#allocation7] sm:$0xff] }
 0x5c1   :  { %8722 = vmatprep.subr.bf16.mxu0 %v17452_v40  ;;  %9132 = vmatprep.subr.bf16.mxu1 %v17454_v25  ;;  %v17499_v40 = vcombine.low %v1480_v10, %v1484_v12  ;;  %v17501_v25 = vcombine.low %v1481_v14, %v1485_v15  ;;  %v17510_v60 = vcombine.high %v1489_v22, %v1493_v23  ;;  %v18827_v10 = vld [vmem:[#allocation8 + $0x248] ss:$48 sps:$4 sm:$0xff]   ;;  %v18832_v12 = vld [vmem:[#allocation8 + $0x2a4] ss:$48 sps:$4 sm:$0xff]   ;;  %v18835_v14 = vld [vmem:[#allocation8 + $0x2ac] ss:$48 sps:$4 sm:$0xff]  }
 0x5c2   :  { %v17509_v36 = vcombine.low %v1489_v22, %v1493_v23  ;;  %v18830_v15 = vld [vmem:[#allocation8 + $0x2a0] ss:$48 sps:$4 sm:$0xff]   ;;  %v18847_v22 = vld [vmem:[#allocation8 + $0x36c] ss:$48 sps:$4 sm:$0xff]  }
 0x5c3   :  { %v18842_v23 = vld [vmem:[#allocation8 + $0x360] ss:$48 sps:$4 sm:$0xff]  }
 0x5c4   :  { %8723 = vmatpush1.bf16.msra.mxu0 %v17451_v58  ;;  %9133 = vmatpush1.bf16.msra.mxu1 %v17453_v31  ;;  %v1511_v58 = vrot.slane %v21013_v4, %v21011_v21  ;;  %v1497_v31 = vld [vmem:[#allocation5 + $0x2558] sm:$0xff] }
 0x5c5   :  { %8724 = vmatprep.subr.bf16.mxu0 %v17460_v33  ;;  %9134 = vmatprep.subr.bf16.mxu1 %v17462_v34  ;;  %v1501_v33 = vld [vmem:[#allocation5 + $0x2578] sm:$0xff]  ;;  %v17507_v34 = vcombine.low %v1488_v24, %v1492_v19  ;;  %v18839_v24 = vld [vmem:[#allocation8 + $0x308] ss:$48 sps:$4 sm:$0xff]  }
 0x5c6   :  { %v17518_v37 = vcombine.high %v1497_v31, %v1501_v33  ;;  %v18516_v38 = vadd.f32 %v20980_v35, %v1511_v58  ;;  %v18799_v35 = vld [vmem:[#allocation8 + $0x6c] ss:$48 sps:$4 sm:$0xff]   ;;  %v18844_v19 = vld [vmem:[#allocation8 + $0x364] ss:$48 sps:$4 sm:$0xff]  }
 0x5c7   :  { %v18859_v58 = vld [vmem:[#allocation8 + $0x42c] ss:$48 sps:$4 sm:$0xff]  }
 0x5c8   :  { %8725 = vmatpush1.bf16.msra.mxu0 %v17459_v39  ;;  %9135 = vmatpush1.bf16.msra.mxu1 %v17461_v20  ;;  %v17515_v39 = vcombine.low %v1496_v28, %v1500_v30  ;;  %v17517_v20 = vcombine.low %v1497_v31, %v1501_v33  ;;  %v9189_v43 = vmax.f32 %v18516_v38, 0.0  ;;  %v18851_v28 = vld [vmem:[#allocation8 + $0x3c8] ss:$48 sps:$4 sm:$0xff]   ;;  %v18856_v30 = vld [vmem:[#allocation8 + $0x424] ss:$48 sps:$4 sm:$0xff]  }
 0x5c9   :  { %8726 = vmatprep.subr.bf16.mxu0 %v17468_v41  ;;  %9136 = vmatprep.subr.bf16.mxu1 %v17470_v42  ;;  %v18790_v41 = vld [vmem:[#allocation8 + $0x4] ss:$48 sps:$4 sm:$0xff]   ;;  %v18793_v42 = vld [vmem:[#allocation8 + $0xc] ss:$48 sps:$4 sm:$0xff]   ;;  %v18854_v31 = vld [vmem:[#allocation8 + $0x420] ss:$48 sps:$4 sm:$0xff]  }
 0x5ca   :  { %v18857_v33 = vld [vmem:[#allocation8 + $0x428] ss:$48 sps:$4 sm:$0xff]  }
 0x5cb   :  { %v18863_v38 = vld [vmem:[#allocation8 + $0x488] ss:$48 sps:$4 sm:$0xff]  }
 0x5cc   :  { %8727 = vmatpush1.bf16.msra.mxu0 %v17467_v47  ;;  %9137 = vmatpush1.bf16.msra.mxu1 %v17469_v50  ;;  %v21018_v47 = vpack.c.bf16 %v9189_v43, %v9189_v43  ;;  %v18794_v50 = vld [vmem:[#allocation8 + $0x60] ss:$48 sps:$4 sm:$0xff]  }
 0x5cd   :  { %8737 = vmatprep.subr.bf16.mxu0 %v17476_v26  ;;  %9147 = vmatprep.subr.bf16.mxu1 %v17478_v32  ;;  %v18797_v26 = vld [vmem:[#allocation8 + $0x68] ss:$48 sps:$4 sm:$0xff]   ;;  %v18802_v32 = vld [vmem:[#allocation8 + $0xc4] ss:$48 sps:$4 sm:$0xff]  }
 0x5cf   :  { %8729 = vmatmul.mubr.bf16.vlgmr.msra.gmra.mrb[4].mxu0 %v20947_v45  ;;  %9139 = vmatmul.mubr.bf16.vlgmr.msra.gmra.mrb[4].mxu1 %v20947_v45  ;;  %v17493_v45 = vcombine.low %v1473_v6, %v1477_v13  ;;  %v18823_v6 = vld [vmem:[#allocation8 + $0x1ec] ss:$48 sps:$4 sm:$0xff]   ;;  %v18818_v13 = vld [vmem:[#allocation8 + $0x1e0] ss:$48 sps:$4 sm:$0xff]  }
 0x5d0   :  { %8738 = vmatpush1.bf16.msra.mxu0 %v17475_v57  ;;  %9148 = vmatpush1.bf16.msra.mxu1 %v17477_v61  ;;  %v18806_v57 = vld [vmem:[#allocation8 + $0x120] ss:$48 sps:$4 sm:$0xff]   ;;  %v18809_v61 = vld [vmem:[#allocation8 + $0x128] ss:$48 sps:$4 sm:$0xff]  }
 0x5d1   :  { %8739 = vmatprep.subr.bf16.mxu0 %v17484_v29  ;;  %9149 = vmatprep.subr.bf16.mxu1 %v17486_v0  ;;  %v18814_v29 = vld [vmem:[#allocation8 + $0x184] ss:$48 sps:$4 sm:$0xff]   ;;  %v18817_v0 = vld [vmem:[#allocation8 + $0x18c] ss:$48 sps:$4 sm:$0xff]  }
 0x5d2   :  { %8769 = vmatprep.mubr.bf16.mxu0 %v20521_v5  ;;  %9179 = vmatprep.mubr.bf16.mxu1 %v20521_v5 }
 0x5d4   :  { %8740 = vmatpush1.bf16.msra.mxu0 %v17483_v7  ;;  %9150 = vmatpush1.bf16.msra.mxu1 %v17485_v8  ;;  %v18821_v7 = vld [vmem:[#allocation8 + $0x1e8] ss:$48 sps:$4 sm:$0xff]   ;;  %v18826_v8 = vld [vmem:[#allocation8 + $0x244] ss:$48 sps:$4 sm:$0xff]  }
 0x5d5   :  { %8741 = vmatprep.subr.bf16.mxu0 %v17492_v9  ;;  %9151 = vmatprep.subr.bf16.mxu1 %v17494_v11  ;;  %v18829_v9 = vld [vmem:[#allocation8 + $0x24c] ss:$48 sps:$4 sm:$0xff]   ;;  %v18824_v11 = vld [vmem:[#allocation8 + $0x240] ss:$48 sps:$4 sm:$0xff]  }
 0x5d8   :  { %8742 = vmatpush1.bf16.msra.mxu0 %v17491_v16  ;;  %9152 = vmatpush1.bf16.msra.mxu1 %v17493_v45  ;;  %v18833_v16 = vld [vmem:[#allocation8 + $0x2a8] ss:$48 sps:$4 sm:$0xff]   ;;  %v18838_v45 = vld [vmem:[#allocation8 + $0x304] ss:$48 sps:$4 sm:$0xff]  }
 0x5d9   :  { %8743 = vmatprep.subr.bf16.mxu0 %v17500_v17  ;;  %9153 = vmatprep.subr.bf16.mxu1 %v17502_v48  ;;  %v18841_v17 = vld [vmem:[#allocation8 + $0x30c] ss:$48 sps:$4 sm:$0xff]   ;;  %v18836_v48 = vld [vmem:[#allocation8 + $0x300] ss:$48 sps:$4 sm:$0xff]  }
 0x5dc   :  { %8744 = vmatpush1.bf16.msra.mxu0 %v17499_v40  ;;  %9154 = vmatpush1.bf16.msra.mxu1 %v17501_v25  ;;  %v18845_v40 = vld [vmem:[#allocation8 + $0x368] ss:$48 sps:$4 sm:$0xff]   ;;  %v18850_v25 = vld [vmem:[#allocation8 + $0x3c4] ss:$48 sps:$4 sm:$0xff]  }
 0x5dd   :  { %8745 = vmatprep.subr.bf16.mxu0 %v17508_v27  ;;  %9155 = vmatprep.subr.bf16.mxu1 %v17510_v60  ;;  %v18853_v27 = vld [vmem:[#allocation8 + $0x3cc] ss:$48 sps:$4 sm:$0xff]   ;;  %v18848_v60 = vld [vmem:[#allocation8 + $0x3c0] ss:$48 sps:$4 sm:$0xff]  }
 0x5e0   :  { %8746 = vmatpush1.bf16.msra.mxu0 %v17507_v34  ;;  %9156 = vmatpush1.bf16.msra.mxu1 %v17509_v36  ;;  %v18862_v34 = vld [vmem:[#allocation8 + $0x484] ss:$48 sps:$4 sm:$0xff]   ;;  %v18865_v36 = vld [vmem:[#allocation8 + $0x48c] ss:$48 sps:$4 sm:$0xff]  }
 0x5e1   :  { %8747 = vmatprep.subr.bf16.mxu0 %v17516_v49  ;;  %9157 = vmatprep.subr.bf16.mxu1 %v17518_v37  ;;  %v18860_v49 = vld [vmem:[#allocation8 + $0x480] ss:$48 sps:$4 sm:$0xff]   ;;  %v21027_v37 = vsub.s32 0, %v21007_v59 }
 0x5e3   :  { %v1507_v43 = vrot.slane %v21013_v4, %v21027_v37 }
 0x5e4   :  { %8748 = vmatpush1.bf16.msra.mxu0 %v17515_v39  ;;  %9158 = vmatpush1.bf16.msra.mxu1 %v17517_v20  ;;  %v18868_v39 = vld [vmem:[#allocation8 + $0x4e4] ss:$48 sps:$4 sm:$0xff]   ;;  %v18871_v20 = vld [vmem:[#allocation8 + $0x4ec] ss:$48 sps:$4 sm:$0xff]  }
 0x5e5   :  { %13876 = vmatprep.subr.bf16.mxu0 %v18790_v41  ;;  %14040 = vmatprep.subr.bf16.mxu1 %v18793_v42  ;;  %v21030_v41 = vsub.s32 3, %v21007_v59  ;;  %v18866_v42 = vld [vmem:[#allocation8 + $0x4e0] ss:$48 sps:$4 sm:$0xff]  }
 0x5e7   :  { %17521 = vmatmul.mubr.msk.bf16.vlgmr.msra.gmra.mrb[4].mxu0 %vm7544_vm0, %v20956_v52  ;;  %17522 = vmatmul.mubr.msk.bf16.vlgmr.msra.gmra.mrb[4].mxu1 %vm7544_vm0, %v20956_v52  ;;  %v18811_v52 = vld [vmem:[#allocation8 + $0x12c] ss:$48 sps:$4 sm:$0xff]  }
 0x5e8   :  { %13877 = vmatpush1.bf16.msra.mxu0 %v18788_v44  ;;  %13908 = vmatprep.mubr.bf16.mxu0 %v21018_v47  ;;  %v18869_v44 = vld [vmem:[#allocation8 + $0x4e8] ss:$48 sps:$4 sm:$0xff]  }
 0x5e9   :  { %14041 = vmatpush1.bf16.msra.mxu1 %v18791_v46  ;;  %14072 = vmatprep.mubr.bf16.mxu1 %v21018_v47  ;;  %v18874_v46 = vld [vmem:[#allocation8 + $0x544] ss:$48 sps:$4 sm:$0xff]  }
 0x5ea   :  { %13878 = vmatprep.subr.bf16.mxu0 %v18796_v18  ;;  %14042 = vmatprep.subr.bf16.mxu1 %v18799_v35  ;;  %v18877_v18 = vld [vmem:[#allocation8 + $0x54c] ss:$48 sps:$4 sm:$0xff]   ;;  %v1519_v35 = vrot.slane %v21013_v4, %v21030_v41 }
 0x5ec   :  { %13879 = vmatpush1.bf16.msra.mxu0 %v18794_v50  ;;  %v18872_v50 = vld [vmem:[#allocation8 + $0x540] ss:$48 sps:$4 sm:$0xff]  }
 0x5ed   :  { %14043 = vmatpush1.bf16.msra.mxu1 %v18797_v26  ;;  %13880 = vmatprep.subr.bf16.mxu0 %v18802_v32  ;;  %v18515_v26 = vadd.f32 %v20976_v56, %v1507_v43  ;;  %v18875_v32 = vld [vmem:[#allocation8 + $0x548] ss:$48 sps:$4 sm:$0xff]   ;;  %v18884_v56 = vld [vmem:[#allocation8 + $0x600] ss:$48 sps:$4 sm:$0xff]  }
 0x5ee   :  { %14044 = vmatprep.subr.bf16.mxu1 %v18805_v51  ;;  %v18880_v51 = vld [vmem:[#allocation8 + $0x5a4] ss:$48 sps:$4 sm:$0xff]   ;;  %v18941_v43 = vld [vmem:[#allocation8 + $0x968] ss:$48 sps:$4 sm:$0xff]  }
 0x5f0   :  { %13881 = vmatpush1.bf16.msra.mxu0 %v18800_v53  ;;  %v18883_v53 = vld [vmem:[#allocation8 + $0x5ac] ss:$48 sps:$4 sm:$0xff]  }
 0x5f1   :  { %14045 = vmatpush1.bf16.msra.mxu1 %v18803_v54  ;;  %13882 = vmatprep.subr.bf16.mxu0 %v18808_v55  ;;  %v18518_v54 = vadd.f32 %v20982_v3, %v1519_v35  ;;  %v18878_v55 = vld [vmem:[#allocation8 + $0x5a0] ss:$48 sps:$4 sm:$0xff]   ;;  %v18947_v35 = vld [vmem:[#allocation8 + $0x9c8] ss:$48 sps:$4 sm:$0xff]  }
 0x5f2   :  { %14046 = vmatprep.subr.bf16.mxu1 %v18811_v52  ;;  %v9188_v52 = vmax.f32 %v18515_v26, 0.0  ;;  %v18955_v26 = vld [vmem:[#allocation8 + $0xa2c] ss:$48 sps:$4 sm:$0xff]  }
 0x5f4   :  { %13883 = vmatpush1.bf16.msra.mxu0 %v18806_v57  ;;  %v18881_v57 = vld [vmem:[#allocation8 + $0x5a8] ss:$48 sps:$4 sm:$0xff]  }
 0x5f5   :  { %14047 = vmatpush1.bf16.msra.mxu1 %v18809_v61  ;;  %13884 = vmatprep.subr.bf16.mxu0 %v18814_v29  ;;  %v18886_v61 = vld [vmem:[#allocation8 + $0x604] ss:$48 sps:$4 sm:$0xff]   ;;  %v18889_v29 = vld [vmem:[#allocation8 + $0x60c] ss:$48 sps:$4 sm:$0xff]  }
 0x5f6   :  { %14048 = vmatprep.subr.bf16.mxu1 %v18817_v0  ;;  %v9191_v0 = vmax.f32 %v18518_v54, 0.0  ;;  %v18961_v54 = vld [vmem:[#allocation8 + $0xa8c] ss:$48 sps:$4 sm:$0xff]  }
 0x5f8   :  { %13885 = vmatpush1.bf16.msra.mxu0 %v18812_v62  ;;  %v21038_v62 = vpack.c.bf16 %v9188_v52, %v9188_v52  ;;  %v21040_v3 = vpack.c.bf16 %v9191_v0, %v9191_v0  ;;  %v21047_v52 = vsub.s32 2, %v21007_v59  ;;  %v18962_v0 = vld [vmem:[#allocation8 + $0xae0] ss:$48 sps:$4 sm:$0xff]  }
 0x5f9   :  { %14049 = vmatpush1.bf16.msra.mxu1 %v18815_v1  ;;  %13886 = vmatprep.subr.bf16.mxu0 %v18820_v2  ;;  %v18887_v1 = vld [vmem:[#allocation8 + $0x608] ss:$48 sps:$4 sm:$0xff]   ;;  %v18892_v2 = vld [vmem:[#allocation8 + $0x664] ss:$48 sps:$4 sm:$0xff]  }
 0x5fa   :  { %14050 = vmatprep.subr.bf16.mxu1 %v18823_v6  ;;  %v18895_v6 = vld [vmem:[#allocation8 + $0x66c] ss:$48 sps:$4 sm:$0xff]  }
 0x5fc   :  { %13887 = vmatpush1.bf16.msra.mxu0 %v18818_v13  ;;  %v18890_v13 = vld [vmem:[#allocation8 + $0x660] ss:$48 sps:$4 sm:$0xff]  }
 0x5fd   :  { %14051 = vmatpush1.bf16.msra.mxu1 %v18821_v7  ;;  %13888 = vmatprep.subr.bf16.mxu0 %v18826_v8  ;;  %v18893_v7 = vld [vmem:[#allocation8 + $0x668] ss:$48 sps:$4 sm:$0xff]   ;;  %v18898_v8 = vld [vmem:[#allocation8 + $0x6c4] ss:$48 sps:$4 sm:$0xff]  }
 0x5fe   :  { %14052 = vmatprep.subr.bf16.mxu1 %v18829_v9  ;;  %v18901_v9 = vld [vmem:[#allocation8 + $0x6cc] ss:$48 sps:$4 sm:$0xff]  }
 0x600   :  { %13889 = vmatpush1.bf16.msra.mxu0 %v18824_v11  ;;  %v18896_v11 = vld [vmem:[#allocation8 + $0x6c0] ss:$48 sps:$4 sm:$0xff]  }
 0x601   :  { %14053 = vmatpush1.bf16.msra.mxu1 %v18827_v10  ;;  %13890 = vmatprep.subr.bf16.mxu0 %v18832_v12  ;;  %v18899_v10 = vld [vmem:[#allocation8 + $0x6c8] ss:$48 sps:$4 sm:$0xff]   ;;  %v18904_v12 = vld [vmem:[#allocation8 + $0x724] ss:$48 sps:$4 sm:$0xff]  }
 0x602   :  { %14054 = vmatprep.subr.bf16.mxu1 %v18835_v14  ;;  %v18907_v14 = vld [vmem:[#allocation8 + $0x72c] ss:$48 sps:$4 sm:$0xff]  }
 0x604   :  { %13891 = vmatpush1.bf16.msra.mxu0 %v18830_v15  ;;  %v18902_v15 = vld [vmem:[#allocation8 + $0x720] ss:$48 sps:$4 sm:$0xff]  }
 0x605   :  { %14055 = vmatpush1.bf16.msra.mxu1 %v18833_v16  ;;  %13892 = vmatprep.subr.bf16.mxu0 %v18838_v45  ;;  %v18905_v16 = vld [vmem:[#allocation8 + $0x728] ss:$48 sps:$4 sm:$0xff]   ;;  %v18910_v45 = vld [vmem:[#allocation8 + $0x784] ss:$48 sps:$4 sm:$0xff]  }
 0x606   :  { %14056 = vmatprep.subr.bf16.mxu1 %v18841_v17  ;;  %v18913_v17 = vld [vmem:[#allocation8 + $0x78c] ss:$48 sps:$4 sm:$0xff]  }
 0x608   :  { %13893 = vmatpush1.bf16.msra.mxu0 %v18836_v48  ;;  %v18908_v48 = vld [vmem:[#allocation8 + $0x780] ss:$48 sps:$4 sm:$0xff]  }
 0x609   :  { %14057 = vmatpush1.bf16.msra.mxu1 %v18839_v24  ;;  %13894 = vmatprep.subr.bf16.mxu0 %v18844_v19  ;;  %v18911_v24 = vld [vmem:[#allocation8 + $0x788] ss:$48 sps:$4 sm:$0xff]   ;;  %v18916_v19 = vld [vmem:[#allocation8 + $0x7e4] ss:$48 sps:$4 sm:$0xff]  }
 0x60a   :  { %14058 = vmatprep.subr.bf16.mxu1 %v18847_v22  ;;  %v18919_v22 = vld [vmem:[#allocation8 + $0x7ec] ss:$48 sps:$4 sm:$0xff]  }
 0x60c   :  { %13895 = vmatpush1.bf16.msra.mxu0 %v18842_v23  ;;  %v18914_v23 = vld [vmem:[#allocation8 + $0x7e0] ss:$48 sps:$4 sm:$0xff]  }
 0x60d   :  { %14059 = vmatpush1.bf16.msra.mxu1 %v18845_v40  ;;  %13896 = vmatprep.subr.bf16.mxu0 %v18850_v25  ;;  %v18917_v40 = vld [vmem:[#allocation8 + $0x7e8] ss:$48 sps:$4 sm:$0xff]   ;;  %v18922_v25 = vld [vmem:[#allocation8 + $0x844] ss:$48 sps:$4 sm:$0xff]  }
 0x60e   :  { %14060 = vmatprep.subr.bf16.mxu1 %v18853_v27  ;;  %v18925_v27 = vld [vmem:[#allocation8 + $0x84c] ss:$48 sps:$4 sm:$0xff]  }
 0x610   :  { %13897 = vmatpush1.bf16.msra.mxu0 %v18848_v60  ;;  %v18920_v60 = vld [vmem:[#allocation8 + $0x840] ss:$48 sps:$4 sm:$0xff]  }
 0x611   :  { %14061 = vmatpush1.bf16.msra.mxu1 %v18851_v28  ;;  %13898 = vmatprep.subr.bf16.mxu0 %v18856_v30  ;;  %v18923_v28 = vld [vmem:[#allocation8 + $0x848] ss:$48 sps:$4 sm:$0xff]   ;;  %v18928_v30 = vld [vmem:[#allocation8 + $0x8a4] ss:$48 sps:$4 sm:$0xff]  }
 0x612   :  { %14062 = vmatprep.subr.bf16.mxu1 %v18859_v58  ;;  %v18931_v58 = vld [vmem:[#allocation8 + $0x8ac] ss:$48 sps:$4 sm:$0xff]  }
 0x614   :  { %13899 = vmatpush1.bf16.msra.mxu0 %v18854_v31  ;;  %v18926_v31 = vld [vmem:[#allocation8 + $0x8a0] ss:$48 sps:$4 sm:$0xff]  }
 0x615   :  { %14063 = vmatpush1.bf16.msra.mxu1 %v18857_v33  ;;  %13900 = vmatprep.subr.bf16.mxu0 %v18862_v34  ;;  %v18929_v33 = vld [vmem:[#allocation8 + $0x8a8] ss:$48 sps:$4 sm:$0xff]   ;;  %v18934_v34 = vld [vmem:[#allocation8 + $0x904] ss:$48 sps:$4 sm:$0xff]  }
 0x616   :  { %14064 = vmatprep.subr.bf16.mxu1 %v18865_v36  ;;  %v18937_v36 = vld [vmem:[#allocation8 + $0x90c] ss:$48 sps:$4 sm:$0xff]  }
 0x618   :  { %13901 = vmatpush1.bf16.msra.mxu0 %v18860_v49  ;;  %v18932_v49 = vld [vmem:[#allocation8 + $0x900] ss:$48 sps:$4 sm:$0xff]  }
 0x619   :  { %14065 = vmatpush1.bf16.msra.mxu1 %v18863_v38  ;;  %13902 = vmatprep.subr.bf16.mxu0 %v18868_v39  ;;  %v18935_v38 = vld [vmem:[#allocation8 + $0x908] ss:$48 sps:$4 sm:$0xff]   ;;  %v18940_v39 = vld [vmem:[#allocation8 + $0x964] ss:$48 sps:$4 sm:$0xff]  }
 0x61a   :  { %14066 = vmatprep.subr.bf16.mxu1 %v18871_v20  ;;  %v18943_v20 = vld [vmem:[#allocation8 + $0x96c] ss:$48 sps:$4 sm:$0xff]  }
 0x61c   :  { %13903 = vmatpush1.bf16.msra.mxu0 %v18866_v42  ;;  %v18938_v42 = vld [vmem:[#allocation8 + $0x960] ss:$48 sps:$4 sm:$0xff]  }
 0x61d   :  { %14067 = vmatpush1.bf16.msra.mxu1 %v18869_v44  ;;  %13904 = vmatprep.subr.bf16.mxu0 %v18874_v46  ;;  %v18946_v44 = vld [vmem:[#allocation8 + $0x9c4] ss:$48 sps:$4 sm:$0xff]   ;;  %v18949_v46 = vld [vmem:[#allocation8 + $0x9cc] ss:$48 sps:$4 sm:$0xff]  }
 0x61e   :  { %14068 = vmatprep.subr.bf16.mxu1 %v18877_v18  ;;  %v18944_v18 = vld [vmem:[#allocation8 + $0x9c0] ss:$48 sps:$4 sm:$0xff]  }
 0x620   :  { %13905 = vmatpush1.bf16.msra.mxu0 %v18872_v50  ;;  %v18952_v50 = vld [vmem:[#allocation8 + $0xa24] ss:$48 sps:$4 sm:$0xff]  }
 0x621   :  { %14069 = vmatpush1.bf16.msra.mxu1 %v18875_v32  ;;  %13906 = vmatprep.subr.bf16.mxu0 %v18880_v51  ;;  %v18950_v32 = vld [vmem:[#allocation8 + $0xa20] ss:$48 sps:$4 sm:$0xff]   ;;  %v18953_v51 = vld [vmem:[#allocation8 + $0xa28] ss:$48 sps:$4 sm:$0xff]  }
 0x622   :  { %14070 = vmatprep.subr.bf16.mxu1 %v18883_v53  ;;  %v18958_v53 = vld [vmem:[#allocation8 + $0xa84] ss:$48 sps:$4 sm:$0xff]  }
 0x624   :  { %13907 = vmatpush1.bf16.msra.mxu0 %v18878_v55  ;;  %v18956_v55 = vld [vmem:[#allocation8 + $0xa80] ss:$48 sps:$4 sm:$0xff]  }
 0x625   :  { %14071 = vmatpush1.bf16.msra.mxu1 %v18881_v57  ;;  %13917 = vmatprep.subr.bf16.mxu0 %v18886_v61  ;;  %v18959_v57 = vld [vmem:[#allocation8 + $0xa88] ss:$48 sps:$4 sm:$0xff]   ;;  %v18964_v61 = vld [vmem:[#allocation8 + $0xae4] ss:$48 sps:$4 sm:$0xff]  }
 0x626   :  { %14081 = vmatprep.subr.bf16.mxu1 %v18889_v29  ;;  %v18967_v29 = vld [vmem:[#allocation8 + $0xaec] ss:$48 sps:$4 sm:$0xff]  }
 0x627   :  { %13909 = vmatmul.mubr.bf16.vlgmr.msra.gmra.mrb[8].mxu0 %v21038_v62 }
 0x628   :  { %14073 = vmatmul.mubr.bf16.vlgmr.msra.gmra.mrb[8].mxu1 %v21038_v62  ;;  %13918 = vmatpush1.bf16.msra.mxu0 %v18884_v56  ;;  %v1515_v56 = vrot.slane %v21013_v4, %v21047_v52 }
 0x629   :  { %13949 = vmatprep.mubr.bf16.mxu0 %v21040_v3  ;;  %14082 = vmatpush1.bf16.msra.mxu1 %v18887_v1  ;;  %v18965_v1 = vld [vmem:[#allocation8 + $0xae8] ss:$48 sps:$4 sm:$0xff]  }
 0x62a   :  { %14113 = vmatprep.mubr.bf16.mxu1 %v21040_v3  ;;  %13919 = vmatprep.subr.bf16.mxu0 %v18892_v2  ;;  %v18970_v2 = vld [vmem:[#allocation8 + $0xb44] ss:$48 sps:$4 sm:$0xff]  }
 0x62b   :  { %14083 = vmatprep.subr.bf16.mxu1 %v18895_v6  ;;  %v18973_v6 = vld [vmem:[#allocation8 + $0xb4c] ss:$48 sps:$4 sm:$0xff]  }
 0x62c   :  { %13920 = vmatpush1.bf16.msra.mxu0 %v18890_v13  ;;  %v18968_v13 = vld [vmem:[#allocation8 + $0xb40] ss:$48 sps:$4 sm:$0xff]  }
 0x62d   :  { %14084 = vmatpush1.bf16.msra.mxu1 %v18893_v7  ;;  %13921 = vmatprep.subr.bf16.mxu0 %v18898_v8  ;;  %v18517_v7 = vadd.f32 %v20978_v63, %v1515_v56  ;;  %v18971_v8 = vld [vmem:[#allocation8 + $0xb48] ss:$48 sps:$4 sm:$0xff]   ;;  %v19045_v56 = vld [vmem:[#allocation8 + $0xfcc] ss:$48 sps:$4 sm:$0xff]  }
 0x62e   :  { %14085 = vmatprep.subr.bf16.mxu1 %v18901_v9  ;;  %v18976_v9 = vld [vmem:[#allocation8 + $0xba4] ss:$48 sps:$4 sm:$0xff]   ;;  %v18983_v63 = vld [vmem:[#allocation8 + $0xc08] ss:$48 sps:$4 sm:$0xff]  }
 0x630   :  { %13922 = vmatpush1.bf16.msra.mxu0 %v18896_v11  ;;  %v18979_v11 = vld [vmem:[#allocation8 + $0xbac] ss:$48 sps:$4 sm:$0xff]  }
 0x631   :  { %14086 = vmatpush1.bf16.msra.mxu1 %v18899_v10  ;;  %13923 = vmatprep.subr.bf16.mxu0 %v18904_v12  ;;  %v18974_v10 = vld [vmem:[#allocation8 + $0xba0] ss:$48 sps:$4 sm:$0xff]   ;;  %v9190_v12 = vmax.f32 %v18517_v7, 0.0 }
 0x632   :  { %14087 = vmatprep.subr.bf16.mxu1 %v18907_v14  ;;  %v18977_v14 = vld [vmem:[#allocation8 + $0xba8] ss:$48 sps:$4 sm:$0xff]   ;;  %v19046_v7 = vld [vmem:[#allocation8 + $0x1020] ss:$48 sps:$4 sm:$0xff]  }
 0x634   :  { %13924 = vmatpush1.bf16.msra.mxu0 %v18902_v15  ;;  %v18982_v15 = vld [vmem:[#allocation8 + $0xc04] ss:$48 sps:$4 sm:$0xff]  }
 0x635   :  { %14088 = vmatpush1.bf16.msra.mxu1 %v18905_v16  ;;  %13925 = vmatprep.subr.bf16.mxu0 %v18910_v45  ;;  %v18985_v16 = vld [vmem:[#allocation8 + $0xc0c] ss:$48 sps:$4 sm:$0xff]   ;;  %v18980_v45 = vld [vmem:[#allocation8 + $0xc00] ss:$48 sps:$4 sm:$0xff]  }
 0x636   :  { %14089 = vmatprep.subr.bf16.mxu1 %v18913_v17  ;;  %v21052_v17 = vpack.c.bf16 %v9190_v12, %v9190_v12  ;;  %v19055_v12 = vld [vmem:[#allocation8 + $0x1088] ss:$48 sps:$4 sm:$0xff]  }
 0x638   :  { %13926 = vmatpush1.bf16.msra.mxu0 %v18908_v48  ;;  %v18988_v48 = vld [vmem:[#allocation8 + $0xc64] ss:$48 sps:$4 sm:$0xff]  }
 0x639   :  { %14090 = vmatpush1.bf16.msra.mxu1 %v18911_v24  ;;  %13927 = vmatprep.subr.bf16.mxu0 %v18916_v19  ;;  %v18991_v24 = vld [vmem:[#allocation8 + $0xc6c] ss:$48 sps:$4 sm:$0xff]   ;;  %v18986_v19 = vld [vmem:[#allocation8 + $0xc60] ss:$48 sps:$4 sm:$0xff]  }
 0x63a   :  { %14091 = vmatprep.subr.bf16.mxu1 %v18919_v22  ;;  %v18989_v22 = vld [vmem:[#allocation8 + $0xc68] ss:$48 sps:$4 sm:$0xff]  }
 0x63c   :  { %13928 = vmatpush1.bf16.msra.mxu0 %v18914_v23  ;;  %v18994_v23 = vld [vmem:[#allocation8 + $0xcc4] ss:$48 sps:$4 sm:$0xff]  }
 0x63d   :  { %14092 = vmatpush1.bf16.msra.mxu1 %v18917_v40  ;;  %13929 = vmatprep.subr.bf16.mxu0 %v18922_v25  ;;  %v18997_v40 = vld [vmem:[#allocation8 + $0xccc] ss:$48 sps:$4 sm:$0xff]   ;;  %v18992_v25 = vld [vmem:[#allocation8 + $0xcc0] ss:$48 sps:$4 sm:$0xff]  }
 0x63e   :  { %14093 = vmatprep.subr.bf16.mxu1 %v18925_v27  ;;  %v18995_v27 = vld [vmem:[#allocation8 + $0xcc8] ss:$48 sps:$4 sm:$0xff]  }
 0x640   :  { %13930 = vmatpush1.bf16.msra.mxu0 %v18920_v60  ;;  %v19000_v60 = vld [vmem:[#allocation8 + $0xd24] ss:$48 sps:$4 sm:$0xff]  }
 0x641   :  { %14094 = vmatpush1.bf16.msra.mxu1 %v18923_v28  ;;  %13931 = vmatprep.subr.bf16.mxu0 %v18928_v30  ;;  %v19003_v28 = vld [vmem:[#allocation8 + $0xd2c] ss:$48 sps:$4 sm:$0xff]   ;;  %v18998_v30 = vld [vmem:[#allocation8 + $0xd20] ss:$48 sps:$4 sm:$0xff]  }
 0x642   :  { %14095 = vmatprep.subr.bf16.mxu1 %v18931_v58  ;;  %v19001_v58 = vld [vmem:[#allocation8 + $0xd28] ss:$48 sps:$4 sm:$0xff]  }
 0x644   :  { %13932 = vmatpush1.bf16.msra.mxu0 %v18926_v31  ;;  %v19006_v31 = vld [vmem:[#allocation8 + $0xd84] ss:$48 sps:$4 sm:$0xff]  }
 0x645   :  { %14096 = vmatpush1.bf16.msra.mxu1 %v18929_v33  ;;  %13933 = vmatprep.subr.bf16.mxu0 %v18934_v34  ;;  %v19009_v33 = vld [vmem:[#allocation8 + $0xd8c] ss:$48 sps:$4 sm:$0xff]   ;;  %v19004_v34 = vld [vmem:[#allocation8 + $0xd80] ss:$48 sps:$4 sm:$0xff]  }
 0x646   :  { %14097 = vmatprep.subr.bf16.mxu1 %v18937_v36  ;;  %v19007_v36 = vld [vmem:[#allocation8 + $0xd88] ss:$48 sps:$4 sm:$0xff]  }
 0x648   :  { %13934 = vmatpush1.bf16.msra.mxu0 %v18932_v49  ;;  %v19012_v49 = vld [vmem:[#allocation8 + $0xde4] ss:$48 sps:$4 sm:$0xff]  }
 0x649   :  { %14098 = vmatpush1.bf16.msra.mxu1 %v18935_v38  ;;  %13935 = vmatprep.subr.bf16.mxu0 %v18940_v39  ;;  %v19015_v38 = vld [vmem:[#allocation8 + $0xdec] ss:$48 sps:$4 sm:$0xff]   ;;  %v19010_v39 = vld [vmem:[#allocation8 + $0xde0] ss:$48 sps:$4 sm:$0xff]  }
 0x64a   :  { %14099 = vmatprep.subr.bf16.mxu1 %v18943_v20  ;;  %v19013_v20 = vld [vmem:[#allocation8 + $0xde8] ss:$48 sps:$4 sm:$0xff]  }
 0x64c   :  { %13936 = vmatpush1.bf16.msra.mxu0 %v18938_v42  ;;  %v19018_v42 = vld [vmem:[#allocation8 + $0xe44] ss:$48 sps:$4 sm:$0xff]  }
 0x64d   :  { %14100 = vmatpush1.bf16.msra.mxu1 %v18941_v43  ;;  %13937 = vmatprep.subr.bf16.mxu0 %v18946_v44  ;;  %v19021_v43 = vld [vmem:[#allocation8 + $0xe4c] ss:$48 sps:$4 sm:$0xff]   ;;  %v19016_v44 = vld [vmem:[#allocation8 + $0xe40] ss:$48 sps:$4 sm:$0xff]  }
 0x64e   :  { %14101 = vmatprep.subr.bf16.mxu1 %v18949_v46  ;;  %v19019_v46 = vld [vmem:[#allocation8 + $0xe48] ss:$48 sps:$4 sm:$0xff]  }
 0x650   :  { %13938 = vmatpush1.bf16.msra.mxu0 %v18944_v18  ;;  %v19024_v18 = vld [vmem:[#allocation8 + $0xea4] ss:$48 sps:$4 sm:$0xff]  }
 0x651   :  { %14102 = vmatpush1.bf16.msra.mxu1 %v18947_v35  ;;  %13939 = vmatprep.subr.bf16.mxu0 %v18952_v50  ;;  %v19027_v35 = vld [vmem:[#allocation8 + $0xeac] ss:$48 sps:$4 sm:$0xff]   ;;  %v19022_v50 = vld [vmem:[#allocation8 + $0xea0] ss:$48 sps:$4 sm:$0xff]  }
 0x652   :  { %14103 = vmatprep.subr.bf16.mxu1 %v18955_v26  ;;  %v19025_v26 = vld [vmem:[#allocation8 + $0xea8] ss:$48 sps:$4 sm:$0xff]  }
 0x654   :  { %13940 = vmatpush1.bf16.msra.mxu0 %v18950_v32  ;;  %v19030_v32 = vld [vmem:[#allocation8 + $0xf04] ss:$48 sps:$4 sm:$0xff]  }
 0x655   :  { %14104 = vmatpush1.bf16.msra.mxu1 %v18953_v51  ;;  %13941 = vmatprep.subr.bf16.mxu0 %v18958_v53  ;;  %v19033_v51 = vld [vmem:[#allocation8 + $0xf0c] ss:$48 sps:$4 sm:$0xff]   ;;  %v19028_v53 = vld [vmem:[#allocation8 + $0xf00] ss:$48 sps:$4 sm:$0xff]  }
 0x656   :  { %14105 = vmatprep.subr.bf16.mxu1 %v18961_v54  ;;  %v19031_v54 = vld [vmem:[#allocation8 + $0xf08] ss:$48 sps:$4 sm:$0xff]  }
 0x658   :  { %13942 = vmatpush1.bf16.msra.mxu0 %v18956_v55  ;;  %v19036_v55 = vld [vmem:[#allocation8 + $0xf64] ss:$48 sps:$4 sm:$0xff]  }
 0x659   :  { %14106 = vmatpush1.bf16.msra.mxu1 %v18959_v57  ;;  %13943 = vmatprep.subr.bf16.mxu0 %v18964_v61  ;;  %v19039_v57 = vld [vmem:[#allocation8 + $0xf6c] ss:$48 sps:$4 sm:$0xff]   ;;  %v19034_v61 = vld [vmem:[#allocation8 + $0xf60] ss:$48 sps:$4 sm:$0xff]  }
 0x65a   :  { %14107 = vmatprep.subr.bf16.mxu1 %v18967_v29  ;;  %v19037_v29 = vld [vmem:[#allocation8 + $0xf68] ss:$48 sps:$4 sm:$0xff]  }
 0x65c   :  { %13944 = vmatpush1.bf16.msra.mxu0 %v18962_v0  ;;  %v19042_v0 = vld [vmem:[#allocation8 + $0xfc4] ss:$48 sps:$4 sm:$0xff]  }
 0x65d   :  { %14108 = vmatpush1.bf16.msra.mxu1 %v18965_v1  ;;  %13945 = vmatprep.subr.bf16.mxu0 %v18970_v2  ;;  %v19040_v1 = vld [vmem:[#allocation8 + $0xfc0] ss:$48 sps:$4 sm:$0xff]   ;;  %v19043_v2 = vld [vmem:[#allocation8 + $0xfc8] ss:$48 sps:$4 sm:$0xff]  }
 0x65e   :  { %14109 = vmatprep.subr.bf16.mxu1 %v18973_v6  ;;  %v19048_v6 = vld [vmem:[#allocation8 + $0x1024] ss:$48 sps:$4 sm:$0xff]  }
 0x660   :  { %13946 = vmatpush1.bf16.msra.mxu0 %v18968_v13  ;;  %v19051_v13 = vld [vmem:[#allocation8 + $0x102c] ss:$48 sps:$4 sm:$0xff]  }
 0x661   :  { %14110 = vmatpush1.bf16.msra.mxu1 %v18971_v8  ;;  %13947 = vmatprep.subr.bf16.mxu0 %v18976_v9  ;;  %v19049_v8 = vld [vmem:[#allocation8 + $0x1028] ss:$48 sps:$4 sm:$0xff]   ;;  %v19054_v9 = vld [vmem:[#allocation8 + $0x1084] ss:$48 sps:$4 sm:$0xff]  }
 0x662   :  { %14111 = vmatprep.subr.bf16.mxu1 %v18979_v11  ;;  %v19057_v11 = vld [vmem:[#allocation8 + $0x108c] ss:$48 sps:$4 sm:$0xff]  }
 0x664   :  { %13948 = vmatpush1.bf16.msra.mxu0 %v18974_v10  ;;  %v19052_v10 = vld [vmem:[#allocation8 + $0x1080] ss:$48 sps:$4 sm:$0xff]  }
 0x665   :  { %14112 = vmatpush1.bf16.msra.mxu1 %v18977_v14  ;;  %13958 = vmatprep.subr.bf16.mxu0 %v18982_v15  ;;  %v19060_v14 = vld [vmem:[#allocation8 + $0x10e4] ss:$48 sps:$4 sm:$0xff]   ;;  %v19063_v15 = vld [vmem:[#allocation8 + $0x10ec] ss:$48 sps:$4 sm:$0xff]  }
 0x666   :  { %14122 = vmatprep.subr.bf16.mxu1 %v18985_v16  ;;  %v19058_v16 = vld [vmem:[#allocation8 + $0x10e0] ss:$48 sps:$4 sm:$0xff]  }
 0x667   :  { %13950 = vmatmul.mubr.bf16.vlgmr.msra.gmra.mrb[8].mxu0 %v21052_v17 }
 0x668   :  { %14114 = vmatmul.mubr.bf16.vlgmr.msra.gmra.mrb[8].mxu1 %v21052_v17  ;;  %13959 = vmatpush1.bf16.msra.mxu0 %v18980_v45  ;;  %v19061_v45 = vld [vmem:[#allocation8 + $0x10e8] ss:$48 sps:$4 sm:$0xff]  }
 0x669   :  { %14123 = vmatpush1.bf16.msra.mxu1 %v18983_v63  ;;  %13960 = vmatprep.subr.bf16.mxu0 %v18988_v48  ;;  %v19066_v63 = vld [vmem:[#allocation8 + $0x1144] ss:$48 sps:$4 sm:$0xff]   ;;  %v19069_v48 = vld [vmem:[#allocation8 + $0x114c] ss:$48 sps:$4 sm:$0xff]  }
 0x66a   :  { %14124 = vmatprep.subr.bf16.mxu1 %v18991_v24  ;;  %v19064_v24 = vld [vmem:[#allocation8 + $0x1140] ss:$48 sps:$4 sm:$0xff]  }
 0x66c   :  { %13961 = vmatpush1.bf16.msra.mxu0 %v18986_v19  ;;  %v19067_v19 = vld [vmem:[#allocation8 + $0x1148] ss:$48 sps:$4 sm:$0xff]  }
 0x66d   :  { %14125 = vmatpush1.bf16.msra.mxu1 %v18989_v22  ;;  %13962 = vmatprep.subr.bf16.mxu0 %v18994_v23  ;;  %v19072_v22 = vld [vmem:[#allocation8 + $0x11a4] ss:$48 sps:$4 sm:$0xff]   ;;  %v19075_v23 = vld [vmem:[#allocation8 + $0x11ac] ss:$48 sps:$4 sm:$0xff]  }
 0x66e   :  { %14126 = vmatprep.subr.bf16.mxu1 %v18997_v40  ;;  %v19070_v40 = vld [vmem:[#allocation8 + $0x11a0] ss:$48 sps:$4 sm:$0xff]  }
 0x670   :  { %13963 = vmatpush1.bf16.msra.mxu0 %v18992_v25  ;;  %v19073_v25 = vld [vmem:[#allocation8 + $0x11a8] ss:$48 sps:$4 sm:$0xff]  }
 0x671   :  { %14127 = vmatpush1.bf16.msra.mxu1 %v18995_v27  ;;  %13964 = vmatprep.subr.bf16.mxu0 %v19000_v60  ;;  %v19078_v27 = vld [vmem:[#allocation8 + $0x1204] ss:$48 sps:$4 sm:$0xff]   ;;  %v19081_v60 = vld [vmem:[#allocation8 + $0x120c] ss:$48 sps:$4 sm:$0xff]  }
 0x672   :  { %14128 = vmatprep.subr.bf16.mxu1 %v19003_v28  ;;  %v1522_v28 = vsub.s32 4, %v21007_v59 }
 0x674   :  { %13965 = vmatpush1.bf16.msra.mxu0 %v18998_v30  ;;  %v1526_v30 = vsub.s32 5, %v21007_v59 }
 0x675   :  { %14129 = vmatpush1.bf16.msra.mxu1 %v19001_v58  ;;  %13966 = vmatprep.subr.bf16.mxu0 %v19006_v31  ;;  %v1534_v58 = vsub.s32 7, %v21007_v59  ;;  %v1523_v31 = vrot.slane %v21013_v4, %v1522_v28 }
 0x676   :  { %14130 = vmatprep.subr.bf16.mxu1 %v19009_v33  ;;  %v1527_v33 = vrot.slane %v21013_v4, %v1526_v30 }
 0x678   :  { %13967 = vmatpush1.bf16.msra.mxu0 %v19004_v34  ;;  %v1535_v34 = vrot.slane %v21013_v4, %v1534_v58 }
 0x679   :  { %14131 = vmatpush1.bf16.msra.mxu1 %v19007_v36  ;;  %13968 = vmatprep.subr.bf16.mxu0 %v19012_v49 }
 0x67a   :  { %14132 = vmatprep.subr.bf16.mxu1 %v19015_v38 }
 0x67c   :  { %13969 = vmatpush1.bf16.msra.mxu0 %v19010_v39 }
 0x67d   :  { %14133 = vmatpush1.bf16.msra.mxu1 %v19013_v20  ;;  %13970 = vmatprep.subr.bf16.mxu0 %v19018_v42 }
 0x67e   :  { %14134 = vmatprep.subr.bf16.mxu1 %v19021_v43 }
 0x680   :  { %13971 = vmatpush1.bf16.msra.mxu0 %v19016_v44 }
 0x681   :  { %14135 = vmatpush1.bf16.msra.mxu1 %v19019_v46  ;;  %13972 = vmatprep.subr.bf16.mxu0 %v19024_v18 }
 0x682   :  { %14136 = vmatprep.subr.bf16.mxu1 %v19027_v35 }
 0x684   :  { %13973 = vmatpush1.bf16.msra.mxu0 %v19022_v50 }
 0x685   :  { %14137 = vmatpush1.bf16.msra.mxu1 %v19025_v26  ;;  %13974 = vmatprep.subr.bf16.mxu0 %v19030_v32 }
 0x686   :  { %14138 = vmatprep.subr.bf16.mxu1 %v19033_v51 }
 0x688   :  { %13975 = vmatpush1.bf16.msra.mxu0 %v19028_v53  ;;  %v19076_v53 = vld [vmem:[#allocation8 + $0x1200] ss:$48 sps:$4 sm:$0xff]  }
 0x689   :  { %14139 = vmatpush1.bf16.msra.mxu1 %v19031_v54  ;;  %13976 = vmatprep.subr.bf16.mxu0 %v19036_v55  ;;  %v19079_v54 = vld [vmem:[#allocation8 + $0x1208] ss:$48 sps:$4 sm:$0xff]   ;;  %v19084_v55 = vld [vmem:[#allocation8 + $0x1264] ss:$48 sps:$4 sm:$0xff]  }
 0x68a   :  { %14140 = vmatprep.subr.bf16.mxu1 %v19039_v57  ;;  %v19087_v57 = vld [vmem:[#allocation8 + $0x126c] ss:$48 sps:$4 sm:$0xff]  }
 0x68c   :  { %13977 = vmatpush1.bf16.msra.mxu0 %v19034_v61 }
 0x68d   :  { %14141 = vmatpush1.bf16.msra.mxu1 %v19037_v29  ;;  %13978 = vmatprep.subr.bf16.mxu0 %v19042_v0  ;;  %v19082_v29 = vld [vmem:[#allocation8 + $0x1260] ss:$48 sps:$4 sm:$0xff]   ;;  %v19085_v0 = vld [vmem:[#allocation8 + $0x1268] ss:$48 sps:$4 sm:$0xff]  }
 0x68e   :  { %14142 = vmatprep.subr.bf16.mxu1 %v19045_v56  ;;  %v19090_v56 = vld [vmem:[#allocation8 + $0x12c4] ss:$48 sps:$4 sm:$0xff]  }
 0x690   :  { %13979 = vmatpush1.bf16.msra.mxu0 %v19040_v1  ;;  %v19093_v1 = vld [vmem:[#allocation8 + $0x12cc] ss:$48 sps:$4 sm:$0xff]  }
 0x691   :  { %14143 = vmatpush1.bf16.msra.mxu1 %v19043_v2  ;;  %13980 = vmatprep.subr.bf16.mxu0 %v19048_v6  ;;  %v19088_v2 = vld [vmem:[#allocation8 + $0x12c0] ss:$48 sps:$4 sm:$0xff]   ;;  %v19091_v6 = vld [vmem:[#allocation8 + $0x12c8] ss:$48 sps:$4 sm:$0xff]  }
 0x692   :  { %14144 = vmatprep.subr.bf16.mxu1 %v19051_v13  ;;  %v19096_v13 = vld [vmem:[#allocation8 + $0x1324] ss:$48 sps:$4 sm:$0xff]  }
 0x694   :  { %13981 = vmatpush1.bf16.msra.mxu0 %v19046_v7  ;;  %v19099_v7 = vld [vmem:[#allocation8 + $0x132c] ss:$48 sps:$4 sm:$0xff]  }
 0x695   :  { %14145 = vmatpush1.bf16.msra.mxu1 %v19049_v8  ;;  %13982 = vmatprep.subr.bf16.mxu0 %v19054_v9  ;;  %v19094_v8 = vld [vmem:[#allocation8 + $0x1320] ss:$48 sps:$4 sm:$0xff]   ;;  %v19097_v9 = vld [vmem:[#allocation8 + $0x1328] ss:$48 sps:$4 sm:$0xff]  }
 0x696   :  { %14146 = vmatprep.subr.bf16.mxu1 %v19057_v11  ;;  %v19102_v11 = vld [vmem:[#allocation8 + $0x1384] ss:$48 sps:$4 sm:$0xff]  }
 0x698   :  { %13983 = vmatpush1.bf16.msra.mxu0 %v19052_v10  ;;  %v19105_v10 = vld [vmem:[#allocation8 + $0x138c] ss:$48 sps:$4 sm:$0xff]  }
 0x699   :  { %14147 = vmatpush1.bf16.msra.mxu1 %v19055_v12  ;;  %13984 = vmatprep.subr.bf16.mxu0 %v19060_v14  ;;  %v19100_v12 = vld [vmem:[#allocation8 + $0x1380] ss:$48 sps:$4 sm:$0xff]   ;;  %v19103_v14 = vld [vmem:[#allocation8 + $0x1388] ss:$48 sps:$4 sm:$0xff]  }
 0x69a   :  { %14148 = vmatprep.subr.bf16.mxu1 %v19063_v15  ;;  %v19108_v15 = vld [vmem:[#allocation8 + $0x13e4] ss:$48 sps:$4 sm:$0xff]  }
 0x69c   :  { %13985 = vmatpush1.bf16.msra.mxu0 %v19058_v16  ;;  %v19111_v16 = vld [vmem:[#allocation8 + $0x13ec] ss:$48 sps:$4 sm:$0xff]  }
 0x69d   :  { %14149 = vmatpush1.bf16.msra.mxu1 %v19061_v45  ;;  %13986 = vmatprep.subr.bf16.mxu0 %v19066_v63  ;;  %v19106_v45 = vld [vmem:[#allocation8 + $0x13e0] ss:$48 sps:$4 sm:$0xff]   ;;  %v19109_v63 = vld [vmem:[#allocation8 + $0x13e8] ss:$48 sps:$4 sm:$0xff]  }
 0x69e   :  { %14150 = vmatprep.subr.bf16.mxu1 %v19069_v48  ;;  %v19114_v48 = vld [vmem:[#allocation8 + $0x1444] ss:$48 sps:$4 sm:$0xff]  }
 0x6a0   :  { %13987 = vmatpush1.bf16.msra.mxu0 %v19064_v24  ;;  %v19117_v24 = vld [vmem:[#allocation8 + $0x144c] ss:$48 sps:$4 sm:$0xff]  }
 0x6a1   :  { %14151 = vmatpush1.bf16.msra.mxu1 %v19067_v19  ;;  %13988 = vmatprep.subr.bf16.mxu0 %v19072_v22  ;;  %v19112_v19 = vld [vmem:[#allocation8 + $0x1440] ss:$48 sps:$4 sm:$0xff]   ;;  %v19115_v22 = vld [vmem:[#allocation8 + $0x1448] ss:$48 sps:$4 sm:$0xff]  }
 0x6a2   :  { %14152 = vmatprep.subr.bf16.mxu1 %v19075_v23  ;;  %v19120_v23 = vld [vmem:[#allocation8 + $0x14a4] ss:$48 sps:$4 sm:$0xff]  }
 0x6a4   :  { %13989 = vmatpush1.bf16.msra.mxu0 %v19070_v40  ;;  %v19123_v40 = vld [vmem:[#allocation8 + $0x14ac] ss:$48 sps:$4 sm:$0xff]  }
 0x6a5   :  { %14153 = vmatpush1.bf16.msra.mxu1 %v19073_v25  ;;  %13999 = vmatprep.subr.bf16.mxu0 %v19078_v27  ;;  %v19118_v25 = vld [vmem:[#allocation8 + $0x14a0] ss:$48 sps:$4 sm:$0xff]   ;;  %v19121_v27 = vld [vmem:[#allocation8 + $0x14a8] ss:$48 sps:$4 sm:$0xff]  }
 0x6a6   :  { %14163 = vmatprep.subr.bf16.mxu1 %v19081_v60  ;;  %v19126_v60 = vld [vmem:[#allocation8 + $0x1504] ss:$48 sps:$4 sm:$0xff]  }
 0x6ba   :  { %v8771_v36 = vpop.f32.mrb[4].mxu0  ;;  %v21068_v38 = vpop.f32.mrb[4].mxu1 }
 0x6bb   :  { %v18519_v49 = vadd.f32 %v8771_v36, %v1523_v31  ;;  %v8773_v39 = vpop.f32.mrb[5].mxu0  ;;  %v9183_v42 = vpop.f32.mrb[5].mxu1  ;;  %v19129_v31 = vld [vmem:[#allocation8 + $0x150c] ss:$48 sps:$4 sm:$0xff]   ;;  %v19132_v36 = vld [vmem:[#allocation8 + $0x1564] ss:$48 sps:$4 sm:$0xff]  }
 0x6bc   :  { %v18520_v20 = vadd.f32 %v8773_v39, %v1527_v33  ;;  %v8775_v43 = vpop.f32.mrb[6].mxu0  ;;  %v18522_v46 = vadd.f32 %v9183_v42, %v1535_v34  ;;  %v9185_v18 = vpop.f32.mrb[6].mxu1  ;;  %v19124_v33 = vld [vmem:[#allocation8 + $0x1500] ss:$48 sps:$4 sm:$0xff]   ;;  %v19127_v34 = vld [vmem:[#allocation8 + $0x1508] ss:$48 sps:$4 sm:$0xff]  }
 0x6bd   :  { %v9192_v44 = vmax.f32 %v18519_v49, 0.0  ;;  %v8776_v35 = vpop.f32.mrb[7].mxu0  ;;  %v9186_v26 = vpop.f32.mrb[7].mxu1  ;;  %v19135_v49 = vld [vmem:[#allocation8 + $0x156c] ss:$48 sps:$4 sm:$0xff]  }
 0x6be   :  { %v9193_v50 = vmax.f32 %v18520_v20, 0.0  ;;  %v9195_v32 = vmax.f32 %v18522_v46, 0.0  ;;  %v19130_v39 = vld [vmem:[#allocation8 + $0x1560] ss:$48 sps:$4 sm:$0xff]   ;;  %v19133_v20 = vld [vmem:[#allocation8 + $0x1568] ss:$48 sps:$4 sm:$0xff]  }
 0x6bf   :  { %v21072_v4 = vpack.c.bf16 %v9192_v44, %v9192_v44  ;;  %v19138_v42 = vld [vmem:[#allocation8 + $0x15c4] ss:$48 sps:$4 sm:$0xff]   ;;  %v19141_v43 = vld [vmem:[#allocation8 + $0x15cc] ss:$48 sps:$4 sm:$0xff]   ;;  %v19136_v44 = vld [vmem:[#allocation8 + $0x15c0] ss:$48 sps:$4 sm:$0xff]  }
 0x6c0   :  { %v21070_v51 = vpack.c.bf16 %v9193_v50, %v9193_v50  ;;  %v21076_v61 = vpack.c.bf16 %v9195_v32, %v9195_v32  ;;  %v19139_v46 = vld [vmem:[#allocation8 + $0x15c8] ss:$48 sps:$4 sm:$0xff]   ;;  %v19144_v18 = vld [vmem:[#allocation8 + $0x1624] ss:$48 sps:$4 sm:$0xff]   ;;  %v19147_v35 = vld [vmem:[#allocation8 + $0x162c] ss:$48 sps:$4 sm:$0xff]  }
 0x6c1   :  { %v19142_v50 = vld [vmem:[#allocation8 + $0x1620] ss:$48 sps:$4 sm:$0xff]   ;;  %v19145_v26 = vld [vmem:[#allocation8 + $0x1628] ss:$48 sps:$4 sm:$0xff]   ;;  %v19150_v32 = vld [vmem:[#allocation8 + $0x1684] ss:$48 sps:$4 sm:$0xff]  }
 0x6c2   :  { %13990 = vmatprep.mubr.bf16.mxu0 %v21070_v51  ;;  %14154 = vmatprep.mubr.bf16.mxu1 %v21070_v51 }
 0x6c3   :  { %13991 = vmatmul.mubr.bf16.vlgmr.msra.gmra.mrb[8].mxu0 %v21072_v4  ;;  %14155 = vmatmul.mubr.bf16.vlgmr.msra.gmra.mrb[8].mxu1 %v21072_v4 }
 0x6c4   :  { %14000 = vmatpush1.bf16.msra.mxu0 %v19076_v53  ;;  %14164 = vmatpush1.bf16.msra.mxu1 %v19079_v54  ;;  %v19153_v53 = vld [vmem:[#allocation8 + $0x168c] ss:$48 sps:$4 sm:$0xff]   ;;  %v19148_v54 = vld [vmem:[#allocation8 + $0x1680] ss:$48 sps:$4 sm:$0xff]  }
 0x6c5   :  { %14031 = vmatprep.mubr.bf16.mxu0 %v21076_v61  ;;  %14195 = vmatprep.mubr.bf16.mxu1 %v21076_v61 }
 0x6c6   :  { %14001 = vmatprep.subr.bf16.mxu0 %v19084_v55  ;;  %14165 = vmatprep.subr.bf16.mxu1 %v19087_v57  ;;  %v19151_v55 = vld [vmem:[#allocation8 + $0x1688] ss:$48 sps:$4 sm:$0xff]   ;;  %v1530_v57 = vsub.s32 6, %v21007_v59 }
 0x6c8   :  { %14002 = vmatpush1.bf16.msra.mxu0 %v19082_v29  ;;  %14166 = vmatpush1.bf16.msra.mxu1 %v19085_v0  ;;  %v19156_v29 = vld [vmem:[#allocation8 + $0x16e4] ss:$48 sps:$4 sm:$0xff]   ;;  %v19159_v0 = vld [vmem:[#allocation8 + $0x16ec] ss:$48 sps:$4 sm:$0xff]  }
 0x6c9   :  { %14003 = vmatprep.subr.bf16.mxu0 %v19090_v56  ;;  %14167 = vmatprep.subr.bf16.mxu1 %v19093_v1  ;;  %v19154_v56 = vld [vmem:[#allocation8 + $0x16e0] ss:$48 sps:$4 sm:$0xff]   ;;  %v19157_v1 = vld [vmem:[#allocation8 + $0x16e8] ss:$48 sps:$4 sm:$0xff]  }
 0x6cc   :  { %14004 = vmatpush1.bf16.msra.mxu0 %v19088_v2  ;;  %14168 = vmatpush1.bf16.msra.mxu1 %v19091_v6  ;;  %v20121_v2 = vld [vmem:[#allocation7] sm:$0xff] }
 0x6cd   :  { %14005 = vmatprep.subr.bf16.mxu0 %v19096_v13  ;;  %14169 = vmatprep.subr.bf16.mxu1 %v19099_v7  ;;  %v1531_v6 = vrot.slane %v20121_v2, %v1530_v57  ;;  %v19162_v13 = vld [vmem:[#allocation8 + $0x1744] ss:$48 sps:$4 sm:$0xff]   ;;  %v19165_v7 = vld [vmem:[#allocation8 + $0x174c] ss:$48 sps:$4 sm:$0xff]   ;;  %v19220_v2 = vld [vmem:[#allocation8 + $0x310] ss:$48 sps:$4 sm:$0xff]  }
 0x6d0   :  { %14006 = vmatpush1.bf16.msra.mxu0 %v19094_v8  ;;  %14170 = vmatpush1.bf16.msra.mxu1 %v19097_v9  ;;  %v19160_v8 = vld [vmem:[#allocation8 + $0x1740] ss:$48 sps:$4 sm:$0xff]   ;;  %v19163_v9 = vld [vmem:[#allocation8 + $0x1748] ss:$48 sps:$4 sm:$0xff]  }
 0x6d1   :  { %14007 = vmatprep.subr.bf16.mxu0 %v19102_v11  ;;  %14171 = vmatprep.subr.bf16.mxu1 %v19105_v10  ;;  %v18521_v11 = vadd.f32 %v21068_v38, %v1531_v6  ;;  %v19168_v10 = vld [vmem:[#allocation8 + $0x17a4] ss:$48 sps:$4 sm:$0xff]   ;;  %v19175_v38 = vld [vmem:[#allocation8 + $0x18] ss:$48 sps:$4 sm:$0xff]  }
 0x6d2   :  { %v19223_v6 = vld [vmem:[#allocation8 + $0x318] ss:$48 sps:$4 sm:$0xff]  }
 0x6d4   :  { %14008 = vmatpush1.bf16.msra.mxu0 %v19100_v12  ;;  %14172 = vmatpush1.bf16.msra.mxu1 %v19103_v14  ;;  %v19171_v12 = vld [vmem:[#allocation8 + $0x17ac] ss:$48 sps:$4 sm:$0xff]   ;;  %v19166_v14 = vld [vmem:[#allocation8 + $0x17a0] ss:$48 sps:$4 sm:$0xff]  }
 0x6d5   :  { %14009 = vmatprep.subr.bf16.mxu0 %v19108_v15  ;;  %14173 = vmatprep.subr.bf16.mxu1 %v19111_v16  ;;  %v19169_v15 = vld [vmem:[#allocation8 + $0x17a8] ss:$48 sps:$4 sm:$0xff]   ;;  %v9194_v16 = vmax.f32 %v18521_v11, 0.0  ;;  %v19234_v11 = vld [vmem:[#allocation8 + $0x3d4] ss:$48 sps:$4 sm:$0xff]  }
 0x6d8   :  { %14010 = vmatpush1.bf16.msra.mxu0 %v19106_v45  ;;  %14174 = vmatpush1.bf16.msra.mxu1 %v19109_v63  ;;  %v19174_v45 = vld [vmem:[#allocation8 + $0x14] ss:$48 sps:$4 sm:$0xff]   ;;  %v19177_v63 = vld [vmem:[#allocation8 + $0x1c] ss:$48 sps:$4 sm:$0xff]  }
 0x6d9   :  { %14011 = vmatprep.subr.bf16.mxu0 %v19114_v48  ;;  %14175 = vmatprep.subr.bf16.mxu1 %v19117_v24  ;;  %v19172_v48 = vld [vmem:[#allocation8 + $0x10] ss:$48 sps:$4 sm:$0xff]   ;;  %v21086_v24 = vpack.c.bf16 %v9194_v16, %v9194_v16  ;;  %v19243_v16 = vld [vmem:[#allocation8 + $0x43c] ss:$48 sps:$4 sm:$0xff]  }
 0x6dc   :  { %14012 = vmatpush1.bf16.msra.mxu0 %v19112_v19  ;;  %14176 = vmatpush1.bf16.msra.mxu1 %v19115_v22  ;;  %v19180_v19 = vld [vmem:[#allocation8 + $0x74] ss:$48 sps:$4 sm:$0xff]   ;;  %v19183_v22 = vld [vmem:[#allocation8 + $0x7c] ss:$48 sps:$4 sm:$0xff]  }
 0x6dd   :  { %14013 = vmatprep.subr.bf16.mxu0 %v19120_v23  ;;  %14177 = vmatprep.subr.bf16.mxu1 %v19123_v40  ;;  %v19178_v23 = vld [vmem:[#allocation8 + $0x70] ss:$48 sps:$4 sm:$0xff]   ;;  %v19181_v40 = vld [vmem:[#allocation8 + $0x78] ss:$48 sps:$4 sm:$0xff]  }
 0x6e0   :  { %14014 = vmatpush1.bf16.msra.mxu0 %v19118_v25  ;;  %14178 = vmatpush1.bf16.msra.mxu1 %v19121_v27  ;;  %v19186_v25 = vld [vmem:[#allocation8 + $0xd4] ss:$48 sps:$4 sm:$0xff]   ;;  %v19189_v27 = vld [vmem:[#allocation8 + $0xdc] ss:$48 sps:$4 sm:$0xff]  }
 0x6e1   :  { %14015 = vmatprep.subr.bf16.mxu0 %v19126_v60  ;;  %14179 = vmatprep.subr.bf16.mxu1 %v19129_v31  ;;  %v19184_v60 = vld [vmem:[#allocation8 + $0xd0] ss:$48 sps:$4 sm:$0xff]   ;;  %v19187_v31 = vld [vmem:[#allocation8 + $0xd8] ss:$48 sps:$4 sm:$0xff]  }
 0x6e4   :  { %14016 = vmatpush1.bf16.msra.mxu0 %v19124_v33  ;;  %14180 = vmatpush1.bf16.msra.mxu1 %v19127_v34  ;;  %v19192_v33 = vld [vmem:[#allocation8 + $0x134] ss:$48 sps:$4 sm:$0xff]   ;;  %v19195_v34 = vld [vmem:[#allocation8 + $0x13c] ss:$48 sps:$4 sm:$0xff]  }
 0x6e5   :  { %14017 = vmatprep.subr.bf16.mxu0 %v19132_v36  ;;  %14181 = vmatprep.subr.bf16.mxu1 %v19135_v49  ;;  %v19190_v36 = vld [vmem:[#allocation8 + $0x130] ss:$48 sps:$4 sm:$0xff]   ;;  %v19193_v49 = vld [vmem:[#allocation8 + $0x138] ss:$48 sps:$4 sm:$0xff]  }
 0x6e8   :  { %14018 = vmatpush1.bf16.msra.mxu0 %v19130_v39  ;;  %14182 = vmatpush1.bf16.msra.mxu1 %v19133_v20  ;;  %v19198_v39 = vld [vmem:[#allocation8 + $0x194] ss:$48 sps:$4 sm:$0xff]   ;;  %v19201_v20 = vld [vmem:[#allocation8 + $0x19c] ss:$48 sps:$4 sm:$0xff]  }
 0x6e9   :  { %14019 = vmatprep.subr.bf16.mxu0 %v19138_v42  ;;  %14183 = vmatprep.subr.bf16.mxu1 %v19141_v43  ;;  %v19196_v42 = vld [vmem:[#allocation8 + $0x190] ss:$48 sps:$4 sm:$0xff]   ;;  %v19199_v43 = vld [vmem:[#allocation8 + $0x198] ss:$48 sps:$4 sm:$0xff]  }
 0x6ec   :  { %14020 = vmatpush1.bf16.msra.mxu0 %v19136_v44  ;;  %14184 = vmatpush1.bf16.msra.mxu1 %v19139_v46  ;;  %v19204_v44 = vld [vmem:[#allocation8 + $0x1f4] ss:$48 sps:$4 sm:$0xff]   ;;  %v19207_v46 = vld [vmem:[#allocation8 + $0x1fc] ss:$48 sps:$4 sm:$0xff]  }
 0x6ed   :  { %14021 = vmatprep.subr.bf16.mxu0 %v19144_v18  ;;  %14185 = vmatprep.subr.bf16.mxu1 %v19147_v35  ;;  %v19202_v18 = vld [vmem:[#allocation8 + $0x1f0] ss:$48 sps:$4 sm:$0xff]   ;;  %v19205_v35 = vld [vmem:[#allocation8 + $0x1f8] ss:$48 sps:$4 sm:$0xff]  }
 0x6f0   :  { %14022 = vmatpush1.bf16.msra.mxu0 %v19142_v50  ;;  %14186 = vmatpush1.bf16.msra.mxu1 %v19145_v26  ;;  %v19210_v50 = vld [vmem:[#allocation8 + $0x254] ss:$48 sps:$4 sm:$0xff]   ;;  %v19213_v26 = vld [vmem:[#allocation8 + $0x25c] ss:$48 sps:$4 sm:$0xff]  }
 0x6f1   :  { %14023 = vmatprep.subr.bf16.mxu0 %v19150_v32  ;;  %14187 = vmatprep.subr.bf16.mxu1 %v19153_v53  ;;  %v19208_v32 = vld [vmem:[#allocation8 + $0x250] ss:$48 sps:$4 sm:$0xff]   ;;  %v19211_v53 = vld [vmem:[#allocation8 + $0x258] ss:$48 sps:$4 sm:$0xff]  }
 0x6f4   :  { %14024 = vmatpush1.bf16.msra.mxu0 %v19148_v54  ;;  %14188 = vmatpush1.bf16.msra.mxu1 %v19151_v55  ;;  %v19216_v54 = vld [vmem:[#allocation8 + $0x2b4] ss:$48 sps:$4 sm:$0xff]   ;;  %v19219_v55 = vld [vmem:[#allocation8 + $0x2bc] ss:$48 sps:$4 sm:$0xff]  }
 0x6f5   :  { %14025 = vmatprep.subr.bf16.mxu0 %v19156_v29  ;;  %14189 = vmatprep.subr.bf16.mxu1 %v19159_v0  ;;  %v19214_v29 = vld [vmem:[#allocation8 + $0x2b0] ss:$48 sps:$4 sm:$0xff]   ;;  %v19217_v0 = vld [vmem:[#allocation8 + $0x2b8] ss:$48 sps:$4 sm:$0xff]  }
 0x6f8   :  { %14026 = vmatpush1.bf16.msra.mxu0 %v19154_v56  ;;  %14190 = vmatpush1.bf16.msra.mxu1 %v19157_v1  ;;  %v19222_v56 = vld [vmem:[#allocation8 + $0x314] ss:$48 sps:$4 sm:$0xff]   ;;  %v19225_v1 = vld [vmem:[#allocation8 + $0x31c] ss:$48 sps:$4 sm:$0xff]  }
 0x6f9   :  { %14027 = vmatprep.subr.bf16.mxu0 %v19162_v13  ;;  %14191 = vmatprep.subr.bf16.mxu1 %v19165_v7  ;;  %v19228_v13 = vld [vmem:[#allocation8 + $0x374] ss:$48 sps:$4 sm:$0xff]   ;;  %v19231_v7 = vld [vmem:[#allocation8 + $0x37c] ss:$48 sps:$4 sm:$0xff]  }
 0x6fc   :  { %14028 = vmatpush1.bf16.msra.mxu0 %v19160_v8  ;;  %14192 = vmatpush1.bf16.msra.mxu1 %v19163_v9  ;;  %v19226_v8 = vld [vmem:[#allocation8 + $0x370] ss:$48 sps:$4 sm:$0xff]   ;;  %v19229_v9 = vld [vmem:[#allocation8 + $0x378] ss:$48 sps:$4 sm:$0xff]  }
 0x6fd   :  { %14029 = vmatprep.subr.bf16.mxu0 %v19168_v10  ;;  %14193 = vmatprep.subr.bf16.mxu1 %v19171_v12  ;;  %v19237_v10 = vld [vmem:[#allocation8 + $0x3dc] ss:$48 sps:$4 sm:$0xff]   ;;  %v19232_v12 = vld [vmem:[#allocation8 + $0x3d0] ss:$48 sps:$4 sm:$0xff]  }
 0x700   :  { %14030 = vmatpush1.bf16.msra.mxu0 %v19166_v14  ;;  %14194 = vmatpush1.bf16.msra.mxu1 %v19169_v15  ;;  %v19235_v14 = vld [vmem:[#allocation8 + $0x3d8] ss:$48 sps:$4 sm:$0xff]   ;;  %v19240_v15 = vld [vmem:[#allocation8 + $0x434] ss:$48 sps:$4 sm:$0xff]  }
 0x701   :  { %14204 = vmatprep.subr.bf16.mxu0 %v19174_v45  ;;  %14368 = vmatprep.subr.bf16.mxu1 %v19177_v63  ;;  %v19238_v45 = vld [vmem:[#allocation8 + $0x430] ss:$48 sps:$4 sm:$0xff]   ;;  %v19241_v63 = vld [vmem:[#allocation8 + $0x438] ss:$48 sps:$4 sm:$0xff]  }
 0x703   :  { %14032 = vmatmul.mubr.bf16.vlgmr.msra.gmra.mrb[8].mxu0 %v21086_v24  ;;  %14196 = vmatmul.mubr.bf16.vlgmr.msra.gmra.mrb[8].mxu1 %v21086_v24 }
 0x704   :  { %14205 = vmatpush1.bf16.msra.mxu0 %v19172_v48  ;;  %14236 = vmatprep.mubr.bf16.mxu0 %v21018_v47  ;;  %v19246_v48 = vld [vmem:[#allocation8 + $0x494] ss:$48 sps:$4 sm:$0xff]  }
 0x705   :  { %14369 = vmatpush1.bf16.msra.mxu1 %v19175_v38  ;;  %14400 = vmatprep.mubr.bf16.mxu1 %v21018_v47  ;;  %v19249_v38 = vld [vmem:[#allocation8 + $0x49c] ss:$48 sps:$4 sm:$0xff]  }
 0x706   :  { %14206 = vmatprep.subr.bf16.mxu0 %v19180_v19  ;;  %14370 = vmatprep.subr.bf16.mxu1 %v19183_v22  ;;  %v19244_v19 = vld [vmem:[#allocation8 + $0x490] ss:$48 sps:$4 sm:$0xff]   ;;  %v19247_v22 = vld [vmem:[#allocation8 + $0x498] ss:$48 sps:$4 sm:$0xff]  }
 0x708   :  { %14207 = vmatpush1.bf16.msra.mxu0 %v19178_v23  ;;  %v19252_v23 = vld [vmem:[#allocation8 + $0x4f4] ss:$48 sps:$4 sm:$0xff]  }
 0x709   :  { %14371 = vmatpush1.bf16.msra.mxu1 %v19181_v40  ;;  %14208 = vmatprep.subr.bf16.mxu0 %v19186_v25  ;;  %v19255_v40 = vld [vmem:[#allocation8 + $0x4fc] ss:$48 sps:$4 sm:$0xff]   ;;  %v19250_v25 = vld [vmem:[#allocation8 + $0x4f0] ss:$48 sps:$4 sm:$0xff]  }
 0x70a   :  { %14372 = vmatprep.subr.bf16.mxu1 %v19189_v27  ;;  %v19253_v27 = vld [vmem:[#allocation8 + $0x4f8] ss:$48 sps:$4 sm:$0xff]  }
 0x70c   :  { %14209 = vmatpush1.bf16.msra.mxu0 %v19184_v60  ;;  %v19258_v60 = vld [vmem:[#allocation8 + $0x554] ss:$48 sps:$4 sm:$0xff]  }
 0x70d   :  { %14373 = vmatpush1.bf16.msra.mxu1 %v19187_v31  ;;  %14210 = vmatprep.subr.bf16.mxu0 %v19192_v33  ;;  %v19261_v31 = vld [vmem:[#allocation8 + $0x55c] ss:$48 sps:$4 sm:$0xff]   ;;  %v19256_v33 = vld [vmem:[#allocation8 + $0x550] ss:$48 sps:$4 sm:$0xff]  }
 0x70e   :  { %14374 = vmatprep.subr.bf16.mxu1 %v19195_v34  ;;  %v19259_v34 = vld [vmem:[#allocation8 + $0x558] ss:$48 sps:$4 sm:$0xff]  }
 0x710   :  { %14211 = vmatpush1.bf16.msra.mxu0 %v19190_v36  ;;  %v19264_v36 = vld [vmem:[#allocation8 + $0x5b4] ss:$48 sps:$4 sm:$0xff]  }
 0x711   :  { %14375 = vmatpush1.bf16.msra.mxu1 %v19193_v49  ;;  %14212 = vmatprep.subr.bf16.mxu0 %v19198_v39  ;;  %v19267_v49 = vld [vmem:[#allocation8 + $0x5bc] ss:$48 sps:$4 sm:$0xff]   ;;  %v19262_v39 = vld [vmem:[#allocation8 + $0x5b0] ss:$48 sps:$4 sm:$0xff]  }
 0x712   :  { %14376 = vmatprep.subr.bf16.mxu1 %v19201_v20  ;;  %v19265_v20 = vld [vmem:[#allocation8 + $0x5b8] ss:$48 sps:$4 sm:$0xff]  }
 0x714   :  { %14213 = vmatpush1.bf16.msra.mxu0 %v19196_v42  ;;  %v19270_v42 = vld [vmem:[#allocation8 + $0x614] ss:$48 sps:$4 sm:$0xff]  }
 0x715   :  { %14377 = vmatpush1.bf16.msra.mxu1 %v19199_v43  ;;  %14214 = vmatprep.subr.bf16.mxu0 %v19204_v44  ;;  %v19273_v43 = vld [vmem:[#allocation8 + $0x61c] ss:$48 sps:$4 sm:$0xff]   ;;  %v19268_v44 = vld [vmem:[#allocation8 + $0x610] ss:$48 sps:$4 sm:$0xff]  }
 0x716   :  { %14378 = vmatprep.subr.bf16.mxu1 %v19207_v46  ;;  %v19271_v46 = vld [vmem:[#allocation8 + $0x618] ss:$48 sps:$4 sm:$0xff]  }
 0x718   :  { %14215 = vmatpush1.bf16.msra.mxu0 %v19202_v18  ;;  %v19276_v18 = vld [vmem:[#allocation8 + $0x674] ss:$48 sps:$4 sm:$0xff]  }
 0x719   :  { %14379 = vmatpush1.bf16.msra.mxu1 %v19205_v35  ;;  %14216 = vmatprep.subr.bf16.mxu0 %v19210_v50  ;;  %v19279_v35 = vld [vmem:[#allocation8 + $0x67c] ss:$48 sps:$4 sm:$0xff]   ;;  %v19274_v50 = vld [vmem:[#allocation8 + $0x670] ss:$48 sps:$4 sm:$0xff]  }
 0x71a   :  { %14380 = vmatprep.subr.bf16.mxu1 %v19213_v26  ;;  %v19277_v26 = vld [vmem:[#allocation8 + $0x678] ss:$48 sps:$4 sm:$0xff]  }
 0x71c   :  { %14217 = vmatpush1.bf16.msra.mxu0 %v19208_v32  ;;  %v19282_v32 = vld [vmem:[#allocation8 + $0x6d4] ss:$48 sps:$4 sm:$0xff]  }
 0x71d   :  { %14381 = vmatpush1.bf16.msra.mxu1 %v19211_v53  ;;  %14218 = vmatprep.subr.bf16.mxu0 %v19216_v54  ;;  %v19285_v53 = vld [vmem:[#allocation8 + $0x6dc] ss:$48 sps:$4 sm:$0xff]   ;;  %v19280_v54 = vld [vmem:[#allocation8 + $0x6d0] ss:$48 sps:$4 sm:$0xff]  }
 0x71e   :  { %14382 = vmatprep.subr.bf16.mxu1 %v19219_v55  ;;  %v19283_v55 = vld [vmem:[#allocation8 + $0x6d8] ss:$48 sps:$4 sm:$0xff]  }
 0x720   :  { %14219 = vmatpush1.bf16.msra.mxu0 %v19214_v29  ;;  %v19288_v29 = vld [vmem:[#allocation8 + $0x734] ss:$48 sps:$4 sm:$0xff]  }
 0x721   :  { %14383 = vmatpush1.bf16.msra.mxu1 %v19217_v0  ;;  %14220 = vmatprep.subr.bf16.mxu0 %v19222_v56  ;;  %v19291_v0 = vld [vmem:[#allocation8 + $0x73c] ss:$48 sps:$4 sm:$0xff]   ;;  %v19286_v56 = vld [vmem:[#allocation8 + $0x730] ss:$48 sps:$4 sm:$0xff]  }
 0x722   :  { %14384 = vmatprep.subr.bf16.mxu1 %v19225_v1  ;;  %v19289_v1 = vld [vmem:[#allocation8 + $0x738] ss:$48 sps:$4 sm:$0xff]  }
 0x724   :  { %14221 = vmatpush1.bf16.msra.mxu0 %v19220_v2  ;;  %v19294_v2 = vld [vmem:[#allocation8 + $0x794] ss:$48 sps:$4 sm:$0xff]  }
 0x725   :  { %14385 = vmatpush1.bf16.msra.mxu1 %v19223_v6  ;;  %14222 = vmatprep.subr.bf16.mxu0 %v19228_v13  ;;  %v19297_v6 = vld [vmem:[#allocation8 + $0x79c] ss:$48 sps:$4 sm:$0xff]   ;;  %v19292_v13 = vld [vmem:[#allocation8 + $0x790] ss:$48 sps:$4 sm:$0xff]  }
 0x726   :  { %14386 = vmatprep.subr.bf16.mxu1 %v19231_v7  ;;  %v19295_v7 = vld [vmem:[#allocation8 + $0x798] ss:$48 sps:$4 sm:$0xff]  }
 0x728   :  { %14223 = vmatpush1.bf16.msra.mxu0 %v19226_v8  ;;  %v19300_v8 = vld [vmem:[#allocation8 + $0x7f4] ss:$48 sps:$4 sm:$0xff]  }
 0x729   :  { %14387 = vmatpush1.bf16.msra.mxu1 %v19229_v9  ;;  %14224 = vmatprep.subr.bf16.mxu0 %v19234_v11  ;;  %v19303_v9 = vld [vmem:[#allocation8 + $0x7fc] ss:$48 sps:$4 sm:$0xff]   ;;  %v19298_v11 = vld [vmem:[#allocation8 + $0x7f0] ss:$48 sps:$4 sm:$0xff]  }
 0x72a   :  { %14388 = vmatprep.subr.bf16.mxu1 %v19237_v10  ;;  %v19301_v10 = vld [vmem:[#allocation8 + $0x7f8] ss:$48 sps:$4 sm:$0xff]  }
 0x72c   :  { %14225 = vmatpush1.bf16.msra.mxu0 %v19232_v12  ;;  %v19306_v12 = vld [vmem:[#allocation8 + $0x854] ss:$48 sps:$4 sm:$0xff]  }
 0x72d   :  { %14389 = vmatpush1.bf16.msra.mxu1 %v19235_v14  ;;  %14226 = vmatprep.subr.bf16.mxu0 %v19240_v15  ;;  %v19309_v14 = vld [vmem:[#allocation8 + $0x85c] ss:$48 sps:$4 sm:$0xff]   ;;  %v19304_v15 = vld [vmem:[#allocation8 + $0x850] ss:$48 sps:$4 sm:$0xff]  }
 0x72e   :  { %14390 = vmatprep.subr.bf16.mxu1 %v19243_v16  ;;  %v19307_v16 = vld [vmem:[#allocation8 + $0x858] ss:$48 sps:$4 sm:$0xff]  }
 0x730   :  { %14227 = vmatpush1.bf16.msra.mxu0 %v19238_v45  ;;  %v19312_v45 = vld [vmem:[#allocation8 + $0x8b4] ss:$48 sps:$4 sm:$0xff]  }
 0x731   :  { %14391 = vmatpush1.bf16.msra.mxu1 %v19241_v63  ;;  %14228 = vmatprep.subr.bf16.mxu0 %v19246_v48  ;;  %v19315_v63 = vld [vmem:[#allocation8 + $0x8bc] ss:$48 sps:$4 sm:$0xff]   ;;  %v19310_v48 = vld [vmem:[#allocation8 + $0x8b0] ss:$48 sps:$4 sm:$0xff]  }
 0x732   :  { %14392 = vmatprep.subr.bf16.mxu1 %v19249_v38  ;;  %v19313_v38 = vld [vmem:[#allocation8 + $0x8b8] ss:$48 sps:$4 sm:$0xff]  }
 0x734   :  { %14229 = vmatpush1.bf16.msra.mxu0 %v19244_v19  ;;  %v19318_v19 = vld [vmem:[#allocation8 + $0x914] ss:$48 sps:$4 sm:$0xff]  }
 0x735   :  { %14393 = vmatpush1.bf16.msra.mxu1 %v19247_v22  ;;  %14230 = vmatprep.subr.bf16.mxu0 %v19252_v23  ;;  %v19321_v22 = vld [vmem:[#allocation8 + $0x91c] ss:$48 sps:$4 sm:$0xff]   ;;  %v19316_v23 = vld [vmem:[#allocation8 + $0x910] ss:$48 sps:$4 sm:$0xff]  }
 0x736   :  { %14394 = vmatprep.subr.bf16.mxu1 %v19255_v40  ;;  %v19319_v40 = vld [vmem:[#allocation8 + $0x918] ss:$48 sps:$4 sm:$0xff]  }
 0x738   :  { %14231 = vmatpush1.bf16.msra.mxu0 %v19250_v25  ;;  %v19324_v25 = vld [vmem:[#allocation8 + $0x974] ss:$48 sps:$4 sm:$0xff]  }
 0x739   :  { %14395 = vmatpush1.bf16.msra.mxu1 %v19253_v27  ;;  %14232 = vmatprep.subr.bf16.mxu0 %v19258_v60  ;;  %v19327_v27 = vld [vmem:[#allocation8 + $0x97c] ss:$48 sps:$4 sm:$0xff]   ;;  %v19322_v60 = vld [vmem:[#allocation8 + $0x970] ss:$48 sps:$4 sm:$0xff]  }
 0x73a   :  { %14396 = vmatprep.subr.bf16.mxu1 %v19261_v31  ;;  %v19325_v31 = vld [vmem:[#allocation8 + $0x978] ss:$48 sps:$4 sm:$0xff]  }
 0x73c   :  { %14233 = vmatpush1.bf16.msra.mxu0 %v19256_v33  ;;  %v19330_v33 = vld [vmem:[#allocation8 + $0x9d4] ss:$48 sps:$4 sm:$0xff]  }
 0x73d   :  { %14397 = vmatpush1.bf16.msra.mxu1 %v19259_v34  ;;  %14234 = vmatprep.subr.bf16.mxu0 %v19264_v36  ;;  %v19333_v34 = vld [vmem:[#allocation8 + $0x9dc] ss:$48 sps:$4 sm:$0xff]   ;;  %v19328_v36 = vld [vmem:[#allocation8 + $0x9d0] ss:$48 sps:$4 sm:$0xff]  }
 0x73e   :  { %14398 = vmatprep.subr.bf16.mxu1 %v19267_v49  ;;  %v19331_v49 = vld [vmem:[#allocation8 + $0x9d8] ss:$48 sps:$4 sm:$0xff]  }
 0x740   :  { %14235 = vmatpush1.bf16.msra.mxu0 %v19262_v39  ;;  %v19336_v39 = vld [vmem:[#allocation8 + $0xa34] ss:$48 sps:$4 sm:$0xff]  }
 0x741   :  { %14399 = vmatpush1.bf16.msra.mxu1 %v19265_v20  ;;  %14245 = vmatprep.subr.bf16.mxu0 %v19270_v42  ;;  %v19339_v20 = vld [vmem:[#allocation8 + $0xa3c] ss:$48 sps:$4 sm:$0xff]   ;;  %v19334_v42 = vld [vmem:[#allocation8 + $0xa30] ss:$48 sps:$4 sm:$0xff]  }
 0x742   :  { %14409 = vmatprep.subr.bf16.mxu1 %v19273_v43  ;;  %v19337_v43 = vld [vmem:[#allocation8 + $0xa38] ss:$48 sps:$4 sm:$0xff]  }
 0x743   :  { %14237 = vmatmul.mubr.bf16.vlgmr.msra.gmra.mrb[12].mxu0 %v21038_v62 }
 0x744   :  { %14401 = vmatmul.mubr.bf16.vlgmr.msra.gmra.mrb[12].mxu1 %v21038_v62  ;;  %14246 = vmatpush1.bf16.msra.mxu0 %v19268_v44  ;;  %v19342_v44 = vld [vmem:[#allocation8 + $0xa94] ss:$48 sps:$4 sm:$0xff]  }
 0x745   :  { %14277 = vmatprep.mubr.bf16.mxu0 %v21040_v3  ;;  %14410 = vmatpush1.bf16.msra.mxu1 %v19271_v46  ;;  %v19345_v46 = vld [vmem:[#allocation8 + $0xa9c] ss:$48 sps:$4 sm:$0xff]  }
 0x746   :  { %14441 = vmatprep.mubr.bf16.mxu1 %v21040_v3  ;;  %14247 = vmatprep.subr.bf16.mxu0 %v19276_v18  ;;  %v19340_v18 = vld [vmem:[#allocation8 + $0xa90] ss:$48 sps:$4 sm:$0xff]  }
 0x747   :  { %14411 = vmatprep.subr.bf16.mxu1 %v19279_v35  ;;  %v19343_v35 = vld [vmem:[#allocation8 + $0xa98] ss:$48 sps:$4 sm:$0xff]  }
 0x748   :  { %14248 = vmatpush1.bf16.msra.mxu0 %v19274_v50  ;;  %v19348_v50 = vld [vmem:[#allocation8 + $0xaf4] ss:$48 sps:$4 sm:$0xff]  }
 0x749   :  { %14412 = vmatpush1.bf16.msra.mxu1 %v19277_v26  ;;  %14249 = vmatprep.subr.bf16.mxu0 %v19282_v32  ;;  %v19351_v26 = vld [vmem:[#allocation8 + $0xafc] ss:$48 sps:$4 sm:$0xff]   ;;  %v19346_v32 = vld [vmem:[#allocation8 + $0xaf0] ss:$48 sps:$4 sm:$0xff]  }
 0x74a   :  { %14413 = vmatprep.subr.bf16.mxu1 %v19285_v53  ;;  %v19349_v53 = vld [vmem:[#allocation8 + $0xaf8] ss:$48 sps:$4 sm:$0xff]  }
 0x74c   :  { %14250 = vmatpush1.bf16.msra.mxu0 %v19280_v54  ;;  %v19354_v54 = vld [vmem:[#allocation8 + $0xb54] ss:$48 sps:$4 sm:$0xff]  }
 0x74d   :  { %14414 = vmatpush1.bf16.msra.mxu1 %v19283_v55  ;;  %14251 = vmatprep.subr.bf16.mxu0 %v19288_v29  ;;  %v19357_v55 = vld [vmem:[#allocation8 + $0xb5c] ss:$48 sps:$4 sm:$0xff]   ;;  %v19352_v29 = vld [vmem:[#allocation8 + $0xb50] ss:$48 sps:$4 sm:$0xff]  }
 0x74e   :  { %14415 = vmatprep.subr.bf16.mxu1 %v19291_v0  ;;  %v19355_v0 = vld [vmem:[#allocation8 + $0xb58] ss:$48 sps:$4 sm:$0xff]  }
 0x750   :  { %14252 = vmatpush1.bf16.msra.mxu0 %v19286_v56  ;;  %v19360_v56 = vld [vmem:[#allocation8 + $0xbb4] ss:$48 sps:$4 sm:$0xff]  }
 0x751   :  { %14416 = vmatpush1.bf16.msra.mxu1 %v19289_v1  ;;  %14253 = vmatprep.subr.bf16.mxu0 %v19294_v2  ;;  %v19363_v1 = vld [vmem:[#allocation8 + $0xbbc] ss:$48 sps:$4 sm:$0xff]   ;;  %v19358_v2 = vld [vmem:[#allocation8 + $0xbb0] ss:$48 sps:$4 sm:$0xff]  }
 0x752   :  { %14417 = vmatprep.subr.bf16.mxu1 %v19297_v6  ;;  %v19361_v6 = vld [vmem:[#allocation8 + $0xbb8] ss:$48 sps:$4 sm:$0xff]  }
 0x754   :  { %14254 = vmatpush1.bf16.msra.mxu0 %v19292_v13  ;;  %v19366_v13 = vld [vmem:[#allocation8 + $0xc14] ss:$48 sps:$4 sm:$0xff]  }
 0x755   :  { %14418 = vmatpush1.bf16.msra.mxu1 %v19295_v7  ;;  %14255 = vmatprep.subr.bf16.mxu0 %v19300_v8  ;;  %v19369_v7 = vld [vmem:[#allocation8 + $0xc1c] ss:$48 sps:$4 sm:$0xff]   ;;  %v19364_v8 = vld [vmem:[#allocation8 + $0xc10] ss:$48 sps:$4 sm:$0xff]  }
 0x756   :  { %14419 = vmatprep.subr.bf16.mxu1 %v19303_v9  ;;  %v19367_v9 = vld [vmem:[#allocation8 + $0xc18] ss:$48 sps:$4 sm:$0xff]  }
 0x758   :  { %14256 = vmatpush1.bf16.msra.mxu0 %v19298_v11  ;;  %v19372_v11 = vld [vmem:[#allocation8 + $0xc74] ss:$48 sps:$4 sm:$0xff]  }
 0x759   :  { %14420 = vmatpush1.bf16.msra.mxu1 %v19301_v10  ;;  %14257 = vmatprep.subr.bf16.mxu0 %v19306_v12  ;;  %v19375_v10 = vld [vmem:[#allocation8 + $0xc7c] ss:$48 sps:$4 sm:$0xff]   ;;  %v19370_v12 = vld [vmem:[#allocation8 + $0xc70] ss:$48 sps:$4 sm:$0xff]  }
 0x75a   :  { %14421 = vmatprep.subr.bf16.mxu1 %v19309_v14  ;;  %v19373_v14 = vld [vmem:[#allocation8 + $0xc78] ss:$48 sps:$4 sm:$0xff]  }
 0x75c   :  { %14258 = vmatpush1.bf16.msra.mxu0 %v19304_v15  ;;  %v19378_v15 = vld [vmem:[#allocation8 + $0xcd4] ss:$48 sps:$4 sm:$0xff]  }
 0x75d   :  { %14422 = vmatpush1.bf16.msra.mxu1 %v19307_v16  ;;  %14259 = vmatprep.subr.bf16.mxu0 %v19312_v45  ;;  %v19381_v16 = vld [vmem:[#allocation8 + $0xcdc] ss:$48 sps:$4 sm:$0xff]   ;;  %v19376_v45 = vld [vmem:[#allocation8 + $0xcd0] ss:$48 sps:$4 sm:$0xff]  }
 0x75e   :  { %14423 = vmatprep.subr.bf16.mxu1 %v19315_v63  ;;  %v19379_v63 = vld [vmem:[#allocation8 + $0xcd8] ss:$48 sps:$4 sm:$0xff]  }
 0x760   :  { %14260 = vmatpush1.bf16.msra.mxu0 %v19310_v48  ;;  %v19384_v48 = vld [vmem:[#allocation8 + $0xd34] ss:$48 sps:$4 sm:$0xff]  }
 0x761   :  { %14424 = vmatpush1.bf16.msra.mxu1 %v19313_v38  ;;  %14261 = vmatprep.subr.bf16.mxu0 %v19318_v19  ;;  %v19387_v38 = vld [vmem:[#allocation8 + $0xd3c] ss:$48 sps:$4 sm:$0xff]   ;;  %v19382_v19 = vld [vmem:[#allocation8 + $0xd30] ss:$48 sps:$4 sm:$0xff]  }
 0x762   :  { %14425 = vmatprep.subr.bf16.mxu1 %v19321_v22  ;;  %v19385_v22 = vld [vmem:[#allocation8 + $0xd38] ss:$48 sps:$4 sm:$0xff]  }
 0x764   :  { %14262 = vmatpush1.bf16.msra.mxu0 %v19316_v23  ;;  %v19390_v23 = vld [vmem:[#allocation8 + $0xd94] ss:$48 sps:$4 sm:$0xff]  }
 0x765   :  { %14426 = vmatpush1.bf16.msra.mxu1 %v19319_v40  ;;  %14263 = vmatprep.subr.bf16.mxu0 %v19324_v25  ;;  %v19393_v40 = vld [vmem:[#allocation8 + $0xd9c] ss:$48 sps:$4 sm:$0xff]   ;;  %v19388_v25 = vld [vmem:[#allocation8 + $0xd90] ss:$48 sps:$4 sm:$0xff]  }
 0x766   :  { %14427 = vmatprep.subr.bf16.mxu1 %v19327_v27  ;;  %v19391_v27 = vld [vmem:[#allocation8 + $0xd98] ss:$48 sps:$4 sm:$0xff]  }
 0x768   :  { %14264 = vmatpush1.bf16.msra.mxu0 %v19322_v60  ;;  %v19396_v60 = vld [vmem:[#allocation8 + $0xdf4] ss:$48 sps:$4 sm:$0xff]  }
 0x769   :  { %14428 = vmatpush1.bf16.msra.mxu1 %v19325_v31  ;;  %14265 = vmatprep.subr.bf16.mxu0 %v19330_v33  ;;  %v19399_v31 = vld [vmem:[#allocation8 + $0xdfc] ss:$48 sps:$4 sm:$0xff]   ;;  %v19394_v33 = vld [vmem:[#allocation8 + $0xdf0] ss:$48 sps:$4 sm:$0xff]  }
 0x76a   :  { %14429 = vmatprep.subr.bf16.mxu1 %v19333_v34  ;;  %v19397_v34 = vld [vmem:[#allocation8 + $0xdf8] ss:$48 sps:$4 sm:$0xff]  }
 0x76c   :  { %14266 = vmatpush1.bf16.msra.mxu0 %v19328_v36  ;;  %v19402_v36 = vld [vmem:[#allocation8 + $0xe54] ss:$48 sps:$4 sm:$0xff]  }
 0x76d   :  { %14430 = vmatpush1.bf16.msra.mxu1 %v19331_v49  ;;  %14267 = vmatprep.subr.bf16.mxu0 %v19336_v39  ;;  %v19405_v49 = vld [vmem:[#allocation8 + $0xe5c] ss:$48 sps:$4 sm:$0xff]   ;;  %v19400_v39 = vld [vmem:[#allocation8 + $0xe50] ss:$48 sps:$4 sm:$0xff]  }
 0x76e   :  { %14431 = vmatprep.subr.bf16.mxu1 %v19339_v20  ;;  %v19403_v20 = vld [vmem:[#allocation8 + $0xe58] ss:$48 sps:$4 sm:$0xff]  }
 0x770   :  { %14268 = vmatpush1.bf16.msra.mxu0 %v19334_v42  ;;  %v19408_v42 = vld [vmem:[#allocation8 + $0xeb4] ss:$48 sps:$4 sm:$0xff]  }
 0x771   :  { %14432 = vmatpush1.bf16.msra.mxu1 %v19337_v43  ;;  %14269 = vmatprep.subr.bf16.mxu0 %v19342_v44  ;;  %v19411_v43 = vld [vmem:[#allocation8 + $0xebc] ss:$48 sps:$4 sm:$0xff]   ;;  %v19406_v44 = vld [vmem:[#allocation8 + $0xeb0] ss:$48 sps:$4 sm:$0xff]  }
 0x772   :  { %14433 = vmatprep.subr.bf16.mxu1 %v19345_v46  ;;  %v19409_v46 = vld [vmem:[#allocation8 + $0xeb8] ss:$48 sps:$4 sm:$0xff]  }
 0x774   :  { %14270 = vmatpush1.bf16.msra.mxu0 %v19340_v18  ;;  %v19414_v18 = vld [vmem:[#allocation8 + $0xf14] ss:$48 sps:$4 sm:$0xff]  }
 0x775   :  { %14434 = vmatpush1.bf16.msra.mxu1 %v19343_v35  ;;  %14271 = vmatprep.subr.bf16.mxu0 %v19348_v50  ;;  %v19417_v35 = vld [vmem:[#allocation8 + $0xf1c] ss:$48 sps:$4 sm:$0xff]   ;;  %v19412_v50 = vld [vmem:[#allocation8 + $0xf10] ss:$48 sps:$4 sm:$0xff]  }
 0x776   :  { %14435 = vmatprep.subr.bf16.mxu1 %v19351_v26  ;;  %v19415_v26 = vld [vmem:[#allocation8 + $0xf18] ss:$48 sps:$4 sm:$0xff]  }
 0x778   :  { %14272 = vmatpush1.bf16.msra.mxu0 %v19346_v32  ;;  %v19420_v32 = vld [vmem:[#allocation8 + $0xf74] ss:$48 sps:$4 sm:$0xff]  }
 0x779   :  { %14436 = vmatpush1.bf16.msra.mxu1 %v19349_v53  ;;  %14273 = vmatprep.subr.bf16.mxu0 %v19354_v54  ;;  %v19423_v53 = vld [vmem:[#allocation8 + $0xf7c] ss:$48 sps:$4 sm:$0xff]   ;;  %v19418_v54 = vld [vmem:[#allocation8 + $0xf70] ss:$48 sps:$4 sm:$0xff]  }
 0x77a   :  { %14437 = vmatprep.subr.bf16.mxu1 %v19357_v55  ;;  %v19421_v55 = vld [vmem:[#allocation8 + $0xf78] ss:$48 sps:$4 sm:$0xff]  }
 0x77c   :  { %14274 = vmatpush1.bf16.msra.mxu0 %v19352_v29  ;;  %v19426_v29 = vld [vmem:[#allocation8 + $0xfd4] ss:$48 sps:$4 sm:$0xff]  }
 0x77d   :  { %14438 = vmatpush1.bf16.msra.mxu1 %v19355_v0  ;;  %14275 = vmatprep.subr.bf16.mxu0 %v19360_v56  ;;  %v19429_v0 = vld [vmem:[#allocation8 + $0xfdc] ss:$48 sps:$4 sm:$0xff]   ;;  %v19424_v56 = vld [vmem:[#allocation8 + $0xfd0] ss:$48 sps:$4 sm:$0xff]  }
 0x77e   :  { %14439 = vmatprep.subr.bf16.mxu1 %v19363_v1  ;;  %v19427_v1 = vld [vmem:[#allocation8 + $0xfd8] ss:$48 sps:$4 sm:$0xff]  }
 0x780   :  { %14276 = vmatpush1.bf16.msra.mxu0 %v19358_v2  ;;  %v19432_v2 = vld [vmem:[#allocation8 + $0x1034] ss:$48 sps:$4 sm:$0xff]  }
 0x781   :  { %14440 = vmatpush1.bf16.msra.mxu1 %v19361_v6  ;;  %14286 = vmatprep.subr.bf16.mxu0 %v19366_v13  ;;  %v19435_v6 = vld [vmem:[#allocation8 + $0x103c] ss:$48 sps:$4 sm:$0xff]   ;;  %v19430_v13 = vld [vmem:[#allocation8 + $0x1030] ss:$48 sps:$4 sm:$0xff]  }
 0x782   :  { %14450 = vmatprep.subr.bf16.mxu1 %v19369_v7  ;;  %v19433_v7 = vld [vmem:[#allocation8 + $0x1038] ss:$48 sps:$4 sm:$0xff]  }
 0x783   :  { %14278 = vmatmul.mubr.bf16.vlgmr.msra.gmra.mrb[12].mxu0 %v21052_v17 }
 0x784   :  { %14442 = vmatmul.mubr.bf16.vlgmr.msra.gmra.mrb[12].mxu1 %v21052_v17  ;;  %14287 = vmatpush1.bf16.msra.mxu0 %v19364_v8  ;;  %v19438_v8 = vld [vmem:[#allocation8 + $0x1094] ss:$48 sps:$4 sm:$0xff]  }
 0x785   :  { %14318 = vmatprep.mubr.bf16.mxu0 %v21070_v51  ;;  %14451 = vmatpush1.bf16.msra.mxu1 %v19367_v9  ;;  %v19441_v9 = vld [vmem:[#allocation8 + $0x109c] ss:$48 sps:$4 sm:$0xff]  }
 0x786   :  { %14482 = vmatprep.mubr.bf16.mxu1 %v21070_v51  ;;  %14288 = vmatprep.subr.bf16.mxu0 %v19372_v11  ;;  %v19436_v11 = vld [vmem:[#allocation8 + $0x1090] ss:$48 sps:$4 sm:$0xff]  }
 0x787   :  { %14452 = vmatprep.subr.bf16.mxu1 %v19375_v10  ;;  %v19439_v10 = vld [vmem:[#allocation8 + $0x1098] ss:$48 sps:$4 sm:$0xff]  }
 0x788   :  { %14289 = vmatpush1.bf16.msra.mxu0 %v19370_v12  ;;  %v19444_v12 = vld [vmem:[#allocation8 + $0x10f4] ss:$48 sps:$4 sm:$0xff]  }
 0x789   :  { %14453 = vmatpush1.bf16.msra.mxu1 %v19373_v14  ;;  %14290 = vmatprep.subr.bf16.mxu0 %v19378_v15  ;;  %v19447_v14 = vld [vmem:[#allocation8 + $0x10fc] ss:$48 sps:$4 sm:$0xff]   ;;  %v19442_v15 = vld [vmem:[#allocation8 + $0x10f0] ss:$48 sps:$4 sm:$0xff]  }
 0x78a   :  { %14454 = vmatprep.subr.bf16.mxu1 %v19381_v16  ;;  %v19445_v16 = vld [vmem:[#allocation8 + $0x10f8] ss:$48 sps:$4 sm:$0xff]  }
 0x78c   :  { %14291 = vmatpush1.bf16.msra.mxu0 %v19376_v45  ;;  %v19450_v45 = vld [vmem:[#allocation8 + $0x1154] ss:$48 sps:$4 sm:$0xff]  }
 0x78d   :  { %14455 = vmatpush1.bf16.msra.mxu1 %v19379_v63  ;;  %14292 = vmatprep.subr.bf16.mxu0 %v19384_v48  ;;  %v19453_v63 = vld [vmem:[#allocation8 + $0x115c] ss:$48 sps:$4 sm:$0xff]   ;;  %v19448_v48 = vld [vmem:[#allocation8 + $0x1150] ss:$48 sps:$4 sm:$0xff]  }
 0x78e   :  { %14456 = vmatprep.subr.bf16.mxu1 %v19387_v38  ;;  %v19451_v38 = vld [vmem:[#allocation8 + $0x1158] ss:$48 sps:$4 sm:$0xff]  }
 0x790   :  { %14293 = vmatpush1.bf16.msra.mxu0 %v19382_v19  ;;  %v19456_v19 = vld [vmem:[#allocation8 + $0x11b4] ss:$48 sps:$4 sm:$0xff]  }
 0x791   :  { %14457 = vmatpush1.bf16.msra.mxu1 %v19385_v22  ;;  %14294 = vmatprep.subr.bf16.mxu0 %v19390_v23  ;;  %v19459_v22 = vld [vmem:[#allocation8 + $0x11bc] ss:$48 sps:$4 sm:$0xff]   ;;  %v19454_v23 = vld [vmem:[#allocation8 + $0x11b0] ss:$48 sps:$4 sm:$0xff]  }
 0x792   :  { %14458 = vmatprep.subr.bf16.mxu1 %v19393_v40  ;;  %v19457_v40 = vld [vmem:[#allocation8 + $0x11b8] ss:$48 sps:$4 sm:$0xff]  }
 0x794   :  { %14295 = vmatpush1.bf16.msra.mxu0 %v19388_v25  ;;  %v19462_v25 = vld [vmem:[#allocation8 + $0x1214] ss:$48 sps:$4 sm:$0xff]  }
 0x795   :  { %14459 = vmatpush1.bf16.msra.mxu1 %v19391_v27  ;;  %14296 = vmatprep.subr.bf16.mxu0 %v19396_v60  ;;  %v19465_v27 = vld [vmem:[#allocation8 + $0x121c] ss:$48 sps:$4 sm:$0xff]   ;;  %v19460_v60 = vld [vmem:[#allocation8 + $0x1210] ss:$48 sps:$4 sm:$0xff]  }
 0x796   :  { %14460 = vmatprep.subr.bf16.mxu1 %v19399_v31  ;;  %v19463_v31 = vld [vmem:[#allocation8 + $0x1218] ss:$48 sps:$4 sm:$0xff]  }
 0x798   :  { %14297 = vmatpush1.bf16.msra.mxu0 %v19394_v33  ;;  %v19468_v33 = vld [vmem:[#allocation8 + $0x1274] ss:$48 sps:$4 sm:$0xff]  }
 0x799   :  { %14461 = vmatpush1.bf16.msra.mxu1 %v19397_v34  ;;  %14298 = vmatprep.subr.bf16.mxu0 %v19402_v36  ;;  %v19471_v34 = vld [vmem:[#allocation8 + $0x127c] ss:$48 sps:$4 sm:$0xff]   ;;  %v19466_v36 = vld [vmem:[#allocation8 + $0x1270] ss:$48 sps:$4 sm:$0xff]  }
 0x79a   :  { %14462 = vmatprep.subr.bf16.mxu1 %v19405_v49  ;;  %v19469_v49 = vld [vmem:[#allocation8 + $0x1278] ss:$48 sps:$4 sm:$0xff]  }
 0x79c   :  { %14299 = vmatpush1.bf16.msra.mxu0 %v19400_v39  ;;  %v19474_v39 = vld [vmem:[#allocation8 + $0x12d4] ss:$48 sps:$4 sm:$0xff]  }
 0x79d   :  { %14463 = vmatpush1.bf16.msra.mxu1 %v19403_v20  ;;  %14300 = vmatprep.subr.bf16.mxu0 %v19408_v42  ;;  %v19477_v20 = vld [vmem:[#allocation8 + $0x12dc] ss:$48 sps:$4 sm:$0xff]   ;;  %v19472_v42 = vld [vmem:[#allocation8 + $0x12d0] ss:$48 sps:$4 sm:$0xff]  }
 0x79e   :  { %14464 = vmatprep.subr.bf16.mxu1 %v19411_v43  ;;  %v19475_v43 = vld [vmem:[#allocation8 + $0x12d8] ss:$48 sps:$4 sm:$0xff]  }
 0x7a0   :  { %14301 = vmatpush1.bf16.msra.mxu0 %v19406_v44  ;;  %v19480_v44 = vld [vmem:[#allocation8 + $0x1334] ss:$48 sps:$4 sm:$0xff]  }
 0x7a1   :  { %14465 = vmatpush1.bf16.msra.mxu1 %v19409_v46  ;;  %14302 = vmatprep.subr.bf16.mxu0 %v19414_v18  ;;  %v19483_v46 = vld [vmem:[#allocation8 + $0x133c] ss:$48 sps:$4 sm:$0xff]   ;;  %v19478_v18 = vld [vmem:[#allocation8 + $0x1330] ss:$48 sps:$4 sm:$0xff]  }
 0x7a2   :  { %14466 = vmatprep.subr.bf16.mxu1 %v19417_v35  ;;  %v19481_v35 = vld [vmem:[#allocation8 + $0x1338] ss:$48 sps:$4 sm:$0xff]  }
 0x7a4   :  { %14303 = vmatpush1.bf16.msra.mxu0 %v19412_v50  ;;  %v19486_v50 = vld [vmem:[#allocation8 + $0x1394] ss:$48 sps:$4 sm:$0xff]  }
 0x7a5   :  { %14467 = vmatpush1.bf16.msra.mxu1 %v19415_v26  ;;  %14304 = vmatprep.subr.bf16.mxu0 %v19420_v32  ;;  %v19489_v26 = vld [vmem:[#allocation8 + $0x139c] ss:$48 sps:$4 sm:$0xff]   ;;  %v19484_v32 = vld [vmem:[#allocation8 + $0x1390] ss:$48 sps:$4 sm:$0xff]  }
 0x7a6   :  { %14468 = vmatprep.subr.bf16.mxu1 %v19423_v53  ;;  %v9972_v53 = vld [vmem:[#allocation10] sm:$0xff] }
 0x7a8   :  { %14305 = vmatpush1.bf16.msra.mxu0 %v19418_v54  ;;  %v19487_v54 = vld [vmem:[#allocation8 + $0x1398] ss:$48 sps:$4 sm:$0xff]  }
 0x7a9   :  { %14469 = vmatpush1.bf16.msra.mxu1 %v19421_v55  ;;  %14306 = vmatprep.subr.bf16.mxu0 %v19426_v29  ;;  %v19492_v55 = vld [vmem:[#allocation8 + $0x13f4] ss:$48 sps:$4 sm:$0xff]   ;;  %v19495_v29 = vld [vmem:[#allocation8 + $0x13fc] ss:$48 sps:$4 sm:$0xff]  }
 0x7aa   :  { %14470 = vmatprep.subr.bf16.mxu1 %v19429_v0  ;;  %v9979_v0 = vrot.slane %v9972_v53, %v21027_v37 }
 0x7ac   :  { %14307 = vmatpush1.bf16.msra.mxu0 %v19424_v56  ;;  %v9991_v56 = vrot.slane %v9972_v53, %v21030_v41  ;;  %v19535_v53 = vld [vmem:[#allocation8 + $0x1698] ss:$48 sps:$4 sm:$0xff]  }
 0x7ad   :  { %14471 = vmatpush1.bf16.msra.mxu1 %v19427_v1  ;;  %14308 = vmatprep.subr.bf16.mxu0 %v19432_v2  ;;  %v19490_v1 = vld [vmem:[#allocation8 + $0x13f0] ss:$48 sps:$4 sm:$0xff]   ;;  %v19493_v2 = vld [vmem:[#allocation8 + $0x13f8] ss:$48 sps:$4 sm:$0xff]  }
 0x7ae   :  { %14472 = vmatprep.subr.bf16.mxu1 %v19435_v6  ;;  %v19498_v6 = vld [vmem:[#allocation8 + $0x1454] ss:$48 sps:$4 sm:$0xff]  }
 0x7b0   :  { %14309 = vmatpush1.bf16.msra.mxu0 %v19430_v13 }
 0x7b1   :  { %14473 = vmatpush1.bf16.msra.mxu1 %v19433_v7  ;;  %14310 = vmatprep.subr.bf16.mxu0 %v19438_v8  ;;  %v19501_v8 = vld [vmem:[#allocation8 + $0x145c] ss:$48 sps:$4 sm:$0xff]  }
 0x7b2   :  { %14474 = vmatprep.subr.bf16.mxu1 %v19441_v9 }
 0x7b4   :  { %14311 = vmatpush1.bf16.msra.mxu0 %v19436_v11 }
 0x7b5   :  { %14475 = vmatpush1.bf16.msra.mxu1 %v19439_v10  ;;  %14312 = vmatprep.subr.bf16.mxu0 %v19444_v12 }
 0x7b6   :  { %14476 = vmatprep.subr.bf16.mxu1 %v19447_v14 }
 0x7b8   :  { %14313 = vmatpush1.bf16.msra.mxu0 %v19442_v15 }
 0x7b9   :  { %14477 = vmatpush1.bf16.msra.mxu1 %v19445_v16  ;;  %14314 = vmatprep.subr.bf16.mxu0 %v19450_v45  ;;  %v19496_v16 = vld [vmem:[#allocation8 + $0x1450] ss:$48 sps:$4 sm:$0xff]  }
 0x7ba   :  { %14478 = vmatprep.subr.bf16.mxu1 %v19453_v63 }
 0x7bc   :  { %14315 = vmatpush1.bf16.msra.mxu0 %v19448_v48  ;;  %v19499_v48 = vld [vmem:[#allocation8 + $0x1458] ss:$48 sps:$4 sm:$0xff]  }
 0x7bd   :  { %14479 = vmatpush1.bf16.msra.mxu1 %v19451_v38  ;;  %14316 = vmatprep.subr.bf16.mxu0 %v19456_v19  ;;  %v19504_v38 = vld [vmem:[#allocation8 + $0x14b4] ss:$48 sps:$4 sm:$0xff]  }
 0x7be   :  { %14480 = vmatprep.subr.bf16.mxu1 %v19459_v22  ;;  %v19507_v22 = vld [vmem:[#allocation8 + $0x14bc] ss:$48 sps:$4 sm:$0xff]  }
 0x7c0   :  { %14317 = vmatpush1.bf16.msra.mxu0 %v19454_v23  ;;  %v19502_v23 = vld [vmem:[#allocation8 + $0x14b0] ss:$48 sps:$4 sm:$0xff]  }
 0x7c1   :  { %14481 = vmatpush1.bf16.msra.mxu1 %v19457_v40  ;;  %14327 = vmatprep.subr.bf16.mxu0 %v19462_v25  ;;  %v19505_v40 = vld [vmem:[#allocation8 + $0x14b8] ss:$48 sps:$4 sm:$0xff]   ;;  %v19510_v25 = vld [vmem:[#allocation8 + $0x1514] ss:$48 sps:$4 sm:$0xff]  }
 0x7c2   :  { %14491 = vmatprep.subr.bf16.mxu1 %v19465_v27  ;;  %v19513_v27 = vld [vmem:[#allocation8 + $0x151c] ss:$48 sps:$4 sm:$0xff]  }
 0x7c3   :  { %14319 = vmatmul.mubr.bf16.vlgmr.msra.gmra.mrb[12].mxu0 %v21072_v4 }
 0x7c4   :  { %14483 = vmatmul.mubr.bf16.vlgmr.msra.gmra.mrb[12].mxu1 %v21072_v4  ;;  %14328 = vmatpush1.bf16.msra.mxu0 %v19460_v60  ;;  %v19508_v60 = vld [vmem:[#allocation8 + $0x1510] ss:$48 sps:$4 sm:$0xff]  }
 0x7c5   :  { %14359 = vmatprep.mubr.bf16.mxu0 %v21076_v61  ;;  %14492 = vmatpush1.bf16.msra.mxu1 %v19463_v31  ;;  %v19511_v31 = vld [vmem:[#allocation8 + $0x1518] ss:$48 sps:$4 sm:$0xff]  }
 0x7c6   :  { %14523 = vmatprep.mubr.bf16.mxu1 %v21076_v61  ;;  %14329 = vmatprep.subr.bf16.mxu0 %v19468_v33  ;;  %v19516_v33 = vld [vmem:[#allocation8 + $0x1574] ss:$48 sps:$4 sm:$0xff]  }
 0x7c7   :  { %14493 = vmatprep.subr.bf16.mxu1 %v19471_v34  ;;  %v19519_v34 = vld [vmem:[#allocation8 + $0x157c] ss:$48 sps:$4 sm:$0xff]  }
 0x7c8   :  { %14330 = vmatpush1.bf16.msra.mxu0 %v19466_v36  ;;  %v19514_v36 = vld [vmem:[#allocation8 + $0x1570] ss:$48 sps:$4 sm:$0xff]  }
 0x7c9   :  { %14494 = vmatpush1.bf16.msra.mxu1 %v19469_v49  ;;  %14331 = vmatprep.subr.bf16.mxu0 %v19474_v39  ;;  %v19517_v49 = vld [vmem:[#allocation8 + $0x1578] ss:$48 sps:$4 sm:$0xff]   ;;  %v19522_v39 = vld [vmem:[#allocation8 + $0x15d4] ss:$48 sps:$4 sm:$0xff]  }
 0x7ca   :  { %14495 = vmatprep.subr.bf16.mxu1 %v19477_v20  ;;  %v19525_v20 = vld [vmem:[#allocation8 + $0x15dc] ss:$48 sps:$4 sm:$0xff]  }
 0x7cc   :  { %14332 = vmatpush1.bf16.msra.mxu0 %v19472_v42  ;;  %v19520_v42 = vld [vmem:[#allocation8 + $0x15d0] ss:$48 sps:$4 sm:$0xff]  }
 0x7cd   :  { %14496 = vmatpush1.bf16.msra.mxu1 %v19475_v43  ;;  %14333 = vmatprep.subr.bf16.mxu0 %v19480_v44  ;;  %v19523_v43 = vld [vmem:[#allocation8 + $0x15d8] ss:$48 sps:$4 sm:$0xff]   ;;  %v19528_v44 = vld [vmem:[#allocation8 + $0x1634] ss:$48 sps:$4 sm:$0xff]  }
 0x7ce   :  { %14497 = vmatprep.subr.bf16.mxu1 %v19483_v46  ;;  %v19531_v46 = vld [vmem:[#allocation8 + $0x163c] ss:$48 sps:$4 sm:$0xff]  }
 0x7d0   :  { %14334 = vmatpush1.bf16.msra.mxu0 %v19478_v18  ;;  %v19526_v18 = vld [vmem:[#allocation8 + $0x1630] ss:$48 sps:$4 sm:$0xff]  }
 0x7d1   :  { %14498 = vmatpush1.bf16.msra.mxu1 %v19481_v35  ;;  %14335 = vmatprep.subr.bf16.mxu0 %v19486_v50  ;;  %v19529_v35 = vld [vmem:[#allocation8 + $0x1638] ss:$48 sps:$4 sm:$0xff]   ;;  %v19534_v50 = vld [vmem:[#allocation8 + $0x1694] ss:$48 sps:$4 sm:$0xff]  }
 0x7d2   :  { %14499 = vmatprep.subr.bf16.mxu1 %v19489_v26  ;;  %v19537_v26 = vld [vmem:[#allocation8 + $0x169c] ss:$48 sps:$4 sm:$0xff]  }
 0x7d4   :  { %14336 = vmatpush1.bf16.msra.mxu0 %v19484_v32  ;;  %v19532_v32 = vld [vmem:[#allocation8 + $0x1690] ss:$48 sps:$4 sm:$0xff]  }
 0x7d5   :  { %14500 = vmatpush1.bf16.msra.mxu1 %v19487_v54  ;;  %14337 = vmatprep.subr.bf16.mxu0 %v19492_v55  ;;  %v19540_v54 = vld [vmem:[#allocation8 + $0x16f4] ss:$48 sps:$4 sm:$0xff]   ;;  %v19543_v55 = vld [vmem:[#allocation8 + $0x16fc] ss:$48 sps:$4 sm:$0xff]  }
 0x7d6   :  { %v14033_v13 = vpop.f32.mrb[8].mxu0  ;;  %v21106_v7 = vpop.f32.mrb[8].mxu1  ;;  %14501 = vmatprep.subr.bf16.mxu1 %v19495_v29  ;;  %v19538_v29 = vld [vmem:[#allocation8 + $0x16f0] ss:$48 sps:$4 sm:$0xff]  }
 0x7d7   :  { %v21108_v9 = vadd.f32 %v14033_v13, %v9979_v0  ;;  %v21110_v11 = vpop.f32.mrb[9].mxu0  ;;  %v14199_v10 = vpop.f32.mrb[9].mxu1  ;;  %v19541_v0 = vld [vmem:[#allocation8 + $0x16f8] ss:$48 sps:$4 sm:$0xff]   ;;  %v19552_v13 = vld [vmem:[#allocation8 + $0x17b4] ss:$48 sps:$4 sm:$0xff]  }
 0x7d8   :  { %v21112_v12 = vadd.f32 %v14199_v10, %v9991_v56  ;;  %v14037_v14 = vpop.f32.mrb[10].mxu0  ;;  %v14201_v15 = vpop.f32.mrb[10].mxu1  ;;  %14338 = vmatpush1.bf16.msra.mxu0 %v19490_v1  ;;  %v19546_v56 = vld [vmem:[#allocation8 + $0x1754] ss:$48 sps:$4 sm:$0xff]   ;;  %v19549_v1 = vld [vmem:[#allocation8 + $0x175c] ss:$48 sps:$4 sm:$0xff]  }
 0x7d9   :  { %14502 = vmatpush1.bf16.msra.mxu1 %v19493_v2  ;;  %v14038_v45 = vpop.f32.mrb[11].mxu0  ;;  %v14202_v63 = vpop.f32.mrb[11].mxu1  ;;  %14339 = vmatprep.subr.bf16.mxu0 %v19498_v6  ;;  %v19544_v2 = vld [vmem:[#allocation8 + $0x1750] ss:$48 sps:$4 sm:$0xff]   ;;  %v19547_v6 = vld [vmem:[#allocation8 + $0x1758] ss:$48 sps:$4 sm:$0xff]  }
 0x7da   :  { %v14860_v19 = vmax.f32 %v21108_v9, %v21112_v12  ;;  %14503 = vmatprep.subr.bf16.mxu1 %v19501_v8  ;;  %v19555_v8 = vld [vmem:[#allocation8 + $0x17bc] ss:$48 sps:$4 sm:$0xff]   ;;  %v19550_v10 = vld [vmem:[#allocation8 + $0x17b0] ss:$48 sps:$4 sm:$0xff]   ;;  %v19553_v14 = vld [vmem:[#allocation8 + $0x17b8] ss:$48 sps:$4 sm:$0xff]  }
 0x7db   :  { %v19558_v15 = vld [vmem:[#allocation8 + $0x24] ss:$48 sps:$4 sm:$0xff]   ;;  %v19556_v45 = vld [vmem:[#allocation8 + $0x20] ss:$48 sps:$4 sm:$0xff]   ;;  %v19559_v63 = vld [vmem:[#allocation8 + $0x28] ss:$48 sps:$4 sm:$0xff]  }
 0x7dc   :  { %14340 = vmatpush1.bf16.msra.mxu0 %v19496_v16  ;;  %v19561_v16 = vld [vmem:[#allocation8 + $0x2c] ss:$48 sps:$4 sm:$0xff]   ;;  %v19996_v9 = vld [vmem:[#allocation11 + $0x124] ss:$8 sps:$4 sm:$0xff]  }
 0x7dd   :  { %14504 = vmatpush1.bf16.msra.mxu1 %v19499_v48  ;;  %14341 = vmatprep.subr.bf16.mxu0 %v19504_v38  ;;  %v19564_v48 = vld [vmem:[#allocation8 + $0x84] ss:$48 sps:$4 sm:$0xff]   ;;  %v19567_v38 = vld [vmem:[#allocation8 + $0x8c] ss:$48 sps:$4 sm:$0xff]  }
 0x7de   :  { %14505 = vmatprep.subr.bf16.mxu1 %v19507_v22  ;;  %v19562_v22 = vld [vmem:[#allocation8 + $0x80] ss:$48 sps:$4 sm:$0xff]   ;;  %v19994_v12 = vld [vmem:[#allocation11 + $0x120] ss:$8 sps:$4 sm:$0xff]  }
 0x7e0   :  { %14342 = vmatpush1.bf16.msra.mxu0 %v19502_v23  ;;  %v19565_v23 = vld [vmem:[#allocation8 + $0x88] ss:$48 sps:$4 sm:$0xff]  }
 0x7e1   :  { %14506 = vmatpush1.bf16.msra.mxu1 %v19505_v40  ;;  %14343 = vmatprep.subr.bf16.mxu0 %v19510_v25  ;;  %v19570_v40 = vld [vmem:[#allocation8 + $0xe4] ss:$48 sps:$4 sm:$0xff]   ;;  %v19573_v25 = vld [vmem:[#allocation8 + $0xec] ss:$48 sps:$4 sm:$0xff]  }
 0x7e2   :  { %14507 = vmatprep.subr.bf16.mxu1 %v19513_v27  ;;  %v19568_v27 = vld [vmem:[#allocation8 + $0xe0] ss:$48 sps:$4 sm:$0xff]  }
 0x7e4   :  { %14344 = vmatpush1.bf16.msra.mxu0 %v19508_v60  ;;  %v19571_v60 = vld [vmem:[#allocation8 + $0xe8] ss:$48 sps:$4 sm:$0xff]  }
 0x7e5   :  { %14508 = vmatpush1.bf16.msra.mxu1 %v19511_v31  ;;  %14345 = vmatprep.subr.bf16.mxu0 %v19516_v33  ;;  %v19576_v31 = vld [vmem:[#allocation8 + $0x144] ss:$48 sps:$4 sm:$0xff]   ;;  %v19579_v33 = vld [vmem:[#allocation8 + $0x14c] ss:$48 sps:$4 sm:$0xff]  }
 0x7e6   :  { %14509 = vmatprep.subr.bf16.mxu1 %v19519_v34  ;;  %v19574_v34 = vld [vmem:[#allocation8 + $0x140] ss:$48 sps:$4 sm:$0xff]  }
 0x7e8   :  { %14346 = vmatpush1.bf16.msra.mxu0 %v19514_v36  ;;  %v19577_v36 = vld [vmem:[#allocation8 + $0x148] ss:$48 sps:$4 sm:$0xff]  }
 0x7e9   :  { %14510 = vmatpush1.bf16.msra.mxu1 %v19517_v49  ;;  %14347 = vmatprep.subr.bf16.mxu0 %v19522_v39  ;;  %v19582_v49 = vld [vmem:[#allocation8 + $0x1a4] ss:$48 sps:$4 sm:$0xff]   ;;  %v19585_v39 = vld [vmem:[#allocation8 + $0x1ac] ss:$48 sps:$4 sm:$0xff]  }
 0x7ea   :  { %14511 = vmatprep.subr.bf16.mxu1 %v19525_v20  ;;  %v19583_v20 = vld [vmem:[#allocation8 + $0x1a8] ss:$48 sps:$4 sm:$0xff]  }
 0x7ec   :  { %14348 = vmatpush1.bf16.msra.mxu0 %v19520_v42  ;;  %v19588_v42 = vld [vmem:[#allocation8 + $0x204] ss:$48 sps:$4 sm:$0xff]  }
 0x7ed   :  { %14512 = vmatpush1.bf16.msra.mxu1 %v19523_v43  ;;  %14349 = vmatprep.subr.bf16.mxu0 %v19528_v44  ;;  %v19591_v43 = vld [vmem:[#allocation8 + $0x20c] ss:$48 sps:$4 sm:$0xff]   ;;  %v19586_v44 = vld [vmem:[#allocation8 + $0x200] ss:$48 sps:$4 sm:$0xff]  }
 0x7ee   :  { %14513 = vmatprep.subr.bf16.mxu1 %v19531_v46  ;;  %v19589_v46 = vld [vmem:[#allocation8 + $0x208] ss:$48 sps:$4 sm:$0xff]  }
 0x7f0   :  { %14350 = vmatpush1.bf16.msra.mxu0 %v19526_v18  ;;  %v19594_v18 = vld [vmem:[#allocation8 + $0x264] ss:$48 sps:$4 sm:$0xff]  }
 0x7f1   :  { %14514 = vmatpush1.bf16.msra.mxu1 %v19529_v35  ;;  %14351 = vmatprep.subr.bf16.mxu0 %v19534_v50  ;;  %v19597_v35 = vld [vmem:[#allocation8 + $0x26c] ss:$48 sps:$4 sm:$0xff]   ;;  %v19592_v50 = vld [vmem:[#allocation8 + $0x260] ss:$48 sps:$4 sm:$0xff]  }
 0x7f2   :  { %14515 = vmatprep.subr.bf16.mxu1 %v19537_v26  ;;  %v19595_v26 = vld [vmem:[#allocation8 + $0x268] ss:$48 sps:$4 sm:$0xff]  }
 0x7f4   :  { %14352 = vmatpush1.bf16.msra.mxu0 %v19532_v32  ;;  %v19600_v32 = vld [vmem:[#allocation8 + $0x2c4] ss:$48 sps:$4 sm:$0xff]  }
 0x7f5   :  { %14516 = vmatpush1.bf16.msra.mxu1 %v19535_v53  ;;  %14353 = vmatprep.subr.bf16.mxu0 %v19540_v54  ;;  %v19603_v53 = vld [vmem:[#allocation8 + $0x2cc] ss:$48 sps:$4 sm:$0xff]   ;;  %v19598_v54 = vld [vmem:[#allocation8 + $0x2c0] ss:$48 sps:$4 sm:$0xff]  }
 0x7f6   :  { %14517 = vmatprep.subr.bf16.mxu1 %v19543_v55  ;;  %v19601_v55 = vld [vmem:[#allocation8 + $0x2c8] ss:$48 sps:$4 sm:$0xff]  }
 0x7f8   :  { %14354 = vmatpush1.bf16.msra.mxu0 %v19538_v29  ;;  %v19606_v29 = vld [vmem:[#allocation8 + $0x324] ss:$48 sps:$4 sm:$0xff]  }
 0x7f9   :  { %14518 = vmatpush1.bf16.msra.mxu1 %v19541_v0  ;;  %14355 = vmatprep.subr.bf16.mxu0 %v19546_v56  ;;  %v19609_v0 = vld [vmem:[#allocation8 + $0x32c] ss:$48 sps:$4 sm:$0xff]   ;;  %v19604_v56 = vld [vmem:[#allocation8 + $0x320] ss:$48 sps:$4 sm:$0xff]  }
 0x7fa   :  { %14519 = vmatprep.subr.bf16.mxu1 %v19549_v1  ;;  %v19607_v1 = vld [vmem:[#allocation8 + $0x328] ss:$48 sps:$4 sm:$0xff]  }
 0x7fc   :  { %14356 = vmatpush1.bf16.msra.mxu0 %v19544_v2  ;;  %v19612_v2 = vld [vmem:[#allocation8 + $0x384] ss:$48 sps:$4 sm:$0xff]  }
 0x7fd   :  { %14520 = vmatpush1.bf16.msra.mxu1 %v19547_v6  ;;  %14357 = vmatprep.subr.bf16.mxu0 %v19552_v13  ;;  %v19615_v6 = vld [vmem:[#allocation8 + $0x38c] ss:$48 sps:$4 sm:$0xff]   ;;  %v19610_v13 = vld [vmem:[#allocation8 + $0x380] ss:$48 sps:$4 sm:$0xff]  }
 0x7fe   :  { %14521 = vmatprep.subr.bf16.mxu1 %v19555_v8  ;;  %v19613_v8 = vld [vmem:[#allocation8 + $0x388] ss:$48 sps:$4 sm:$0xff]  }
 0x800   :  { %14358 = vmatpush1.bf16.msra.mxu0 %v19550_v10  ;;  %v19618_v10 = vld [vmem:[#allocation8 + $0x3e4] ss:$48 sps:$4 sm:$0xff]  }
 0x801   :  { %14522 = vmatpush1.bf16.msra.mxu1 %v19553_v14  ;;  %14532 = vmatprep.subr.bf16.mxu0 %v19558_v15  ;;  %v19621_v14 = vld [vmem:[#allocation8 + $0x3ec] ss:$48 sps:$4 sm:$0xff]   ;;  %v19616_v15 = vld [vmem:[#allocation8 + $0x3e0] ss:$48 sps:$4 sm:$0xff]  }
 0x802   :  { %14696 = vmatprep.subr.bf16.mxu1 %v19561_v16  ;;  %v19619_v16 = vld [vmem:[#allocation8 + $0x3e8] ss:$48 sps:$4 sm:$0xff]  }
 0x803   :  { %14360 = vmatmul.mubr.bf16.vlgmr.msra.gmra.mrb[12].mxu0 %v21086_v24 }
 0x804   :  { %14524 = vmatmul.mubr.bf16.vlgmr.msra.gmra.mrb[12].mxu1 %v21086_v24  ;;  %14533 = vmatpush1.bf16.msra.mxu0 %v19556_v45  ;;  %v19624_v45 = vld [vmem:[#allocation8 + $0x444] ss:$48 sps:$4 sm:$0xff]  }
 0x805   :  { %14564 = vmatprep.mubr.bf16.mxu0 %v21018_v47  ;;  %14697 = vmatpush1.bf16.msra.mxu1 %v19559_v63  ;;  %v19627_v63 = vld [vmem:[#allocation8 + $0x44c] ss:$48 sps:$4 sm:$0xff]  }
 0x806   :  { %14728 = vmatprep.mubr.bf16.mxu1 %v21018_v47  ;;  %14534 = vmatprep.subr.bf16.mxu0 %v19564_v48  ;;  %v19580_v47 = vld [vmem:[#allocation8 + $0x1a0] ss:$48 sps:$4 sm:$0xff]  }
 0x807   :  { %14698 = vmatprep.subr.bf16.mxu1 %v19567_v38  ;;  %v19622_v48 = vld [vmem:[#allocation8 + $0x440] ss:$48 sps:$4 sm:$0xff]   ;;  %v19625_v38 = vld [vmem:[#allocation8 + $0x448] ss:$48 sps:$4 sm:$0xff]  }
 0x808   :  { %14535 = vmatpush1.bf16.msra.mxu0 %v19562_v22  ;;  %v19630_v22 = vld [vmem:[#allocation8 + $0x4a4] ss:$48 sps:$4 sm:$0xff]  }
 0x809   :  { %14699 = vmatpush1.bf16.msra.mxu1 %v19565_v23  ;;  %14536 = vmatprep.subr.bf16.mxu0 %v19570_v40  ;;  %v19633_v23 = vld [vmem:[#allocation8 + $0x4ac] ss:$48 sps:$4 sm:$0xff]   ;;  %v19628_v40 = vld [vmem:[#allocation8 + $0x4a0] ss:$48 sps:$4 sm:$0xff]  }
 0x80a   :  { %14700 = vmatprep.subr.bf16.mxu1 %v19573_v25  ;;  %v19631_v25 = vld [vmem:[#allocation8 + $0x4a8] ss:$48 sps:$4 sm:$0xff]  }
 0x80c   :  { %14537 = vmatpush1.bf16.msra.mxu0 %v19568_v27  ;;  %v19636_v27 = vld [vmem:[#allocation8 + $0x504] ss:$48 sps:$4 sm:$0xff]  }
 0x80d   :  { %14701 = vmatpush1.bf16.msra.mxu1 %v19571_v60  ;;  %14538 = vmatprep.subr.bf16.mxu0 %v19576_v31  ;;  %v19639_v60 = vld [vmem:[#allocation8 + $0x50c] ss:$48 sps:$4 sm:$0xff]   ;;  %v19634_v31 = vld [vmem:[#allocation8 + $0x500] ss:$48 sps:$4 sm:$0xff]  }
 0x80e   :  { %14702 = vmatprep.subr.bf16.mxu1 %v19579_v33  ;;  %v19637_v33 = vld [vmem:[#allocation8 + $0x508] ss:$48 sps:$4 sm:$0xff]  }
 0x810   :  { %14539 = vmatpush1.bf16.msra.mxu0 %v19574_v34  ;;  %v19642_v34 = vld [vmem:[#allocation8 + $0x564] ss:$48 sps:$4 sm:$0xff]  }
 0x811   :  { %14703 = vmatpush1.bf16.msra.mxu1 %v19577_v36  ;;  %14540 = vmatprep.subr.bf16.mxu0 %v19582_v49  ;;  %v19645_v36 = vld [vmem:[#allocation8 + $0x56c] ss:$48 sps:$4 sm:$0xff]   ;;  %v19640_v49 = vld [vmem:[#allocation8 + $0x560] ss:$48 sps:$4 sm:$0xff]  }
 0x812   :  { %14704 = vmatprep.subr.bf16.mxu1 %v19585_v39  ;;  %v19643_v39 = vld [vmem:[#allocation8 + $0x568] ss:$48 sps:$4 sm:$0xff]  }
 0x814   :  { %14541 = vmatpush1.bf16.msra.mxu0 %v19580_v47  ;;  %v19648_v47 = vld [vmem:[#allocation8 + $0x5c4] ss:$48 sps:$4 sm:$0xff]  }
 0x815   :  { %14705 = vmatpush1.bf16.msra.mxu1 %v19583_v20  ;;  %14542 = vmatprep.subr.bf16.mxu0 %v19588_v42  ;;  %v19651_v20 = vld [vmem:[#allocation8 + $0x5cc] ss:$48 sps:$4 sm:$0xff]   ;;  %v19646_v42 = vld [vmem:[#allocation8 + $0x5c0] ss:$48 sps:$4 sm:$0xff]  }
 0x816   :  { %14706 = vmatprep.subr.bf16.mxu1 %v19591_v43  ;;  %v19649_v43 = vld [vmem:[#allocation8 + $0x5c8] ss:$48 sps:$4 sm:$0xff]  }
 0x818   :  { %14543 = vmatpush1.bf16.msra.mxu0 %v19586_v44  ;;  %v19654_v44 = vld [vmem:[#allocation8 + $0x624] ss:$48 sps:$4 sm:$0xff]  }
 0x819   :  { %14707 = vmatpush1.bf16.msra.mxu1 %v19589_v46  ;;  %14544 = vmatprep.subr.bf16.mxu0 %v19594_v18  ;;  %v19657_v46 = vld [vmem:[#allocation8 + $0x62c] ss:$48 sps:$4 sm:$0xff]   ;;  %v19652_v18 = vld [vmem:[#allocation8 + $0x620] ss:$48 sps:$4 sm:$0xff]  }
 0x81a   :  { %14708 = vmatprep.subr.bf16.mxu1 %v19597_v35  ;;  %v19655_v35 = vld [vmem:[#allocation8 + $0x628] ss:$48 sps:$4 sm:$0xff]  }
 0x81c   :  { %14545 = vmatpush1.bf16.msra.mxu0 %v19592_v50  ;;  %v19660_v50 = vld [vmem:[#allocation8 + $0x684] ss:$48 sps:$4 sm:$0xff]  }
 0x81d   :  { %14709 = vmatpush1.bf16.msra.mxu1 %v19595_v26  ;;  %14546 = vmatprep.subr.bf16.mxu0 %v19600_v32  ;;  %v19663_v26 = vld [vmem:[#allocation8 + $0x68c] ss:$48 sps:$4 sm:$0xff]   ;;  %v19658_v32 = vld [vmem:[#allocation8 + $0x680] ss:$48 sps:$4 sm:$0xff]  }
 0x81e   :  { %14710 = vmatprep.subr.bf16.mxu1 %v19603_v53  ;;  %v19661_v53 = vld [vmem:[#allocation8 + $0x688] ss:$48 sps:$4 sm:$0xff]  }
 0x820   :  { %14547 = vmatpush1.bf16.msra.mxu0 %v19598_v54  ;;  %v19666_v54 = vld [vmem:[#allocation8 + $0x6e4] ss:$48 sps:$4 sm:$0xff]  }
 0x821   :  { %14711 = vmatpush1.bf16.msra.mxu1 %v19601_v55  ;;  %14548 = vmatprep.subr.bf16.mxu0 %v19606_v29  ;;  %v19669_v55 = vld [vmem:[#allocation8 + $0x6ec] ss:$48 sps:$4 sm:$0xff]   ;;  %v19664_v29 = vld [vmem:[#allocation8 + $0x6e0] ss:$48 sps:$4 sm:$0xff]  }
 0x822   :  { %14712 = vmatprep.subr.bf16.mxu1 %v19609_v0  ;;  %v19667_v0 = vld [vmem:[#allocation8 + $0x6e8] ss:$48 sps:$4 sm:$0xff]  }
 0x824   :  { %14549 = vmatpush1.bf16.msra.mxu0 %v19604_v56  ;;  %v19672_v56 = vld [vmem:[#allocation8 + $0x744] ss:$48 sps:$4 sm:$0xff]  }
 0x825   :  { %14713 = vmatpush1.bf16.msra.mxu1 %v19607_v1  ;;  %14550 = vmatprep.subr.bf16.mxu0 %v19612_v2  ;;  %v19670_v1 = vld [vmem:[#allocation8 + $0x740] ss:$48 sps:$4 sm:$0xff]   ;;  %v19673_v2 = vld [vmem:[#allocation8 + $0x748] ss:$48 sps:$4 sm:$0xff]  }
 0x826   :  { %14714 = vmatprep.subr.bf16.mxu1 %v19615_v6  ;;  %v19678_v6 = vld [vmem:[#allocation8 + $0x7a4] ss:$48 sps:$4 sm:$0xff]  }
 0x828   :  { %14551 = vmatpush1.bf16.msra.mxu0 %v19610_v13  ;;  %v19681_v13 = vld [vmem:[#allocation8 + $0x7ac] ss:$48 sps:$4 sm:$0xff]  }
 0x829   :  { %14715 = vmatpush1.bf16.msra.mxu1 %v19613_v8  ;;  %14552 = vmatprep.subr.bf16.mxu0 %v19618_v10  ;;  %v19679_v8 = vld [vmem:[#allocation8 + $0x7a8] ss:$48 sps:$4 sm:$0xff]   ;;  %v19684_v10 = vld [vmem:[#allocation8 + $0x804] ss:$48 sps:$4 sm:$0xff]  }
 0x82a   :  { %14716 = vmatprep.subr.bf16.mxu1 %v19621_v14  ;;  %v19687_v14 = vld [vmem:[#allocation8 + $0x80c] ss:$48 sps:$4 sm:$0xff]  }
 0x82c   :  { %14553 = vmatpush1.bf16.msra.mxu0 %v19616_v15  ;;  %v19682_v15 = vld [vmem:[#allocation8 + $0x800] ss:$48 sps:$4 sm:$0xff]  }
 0x82d   :  { %14717 = vmatpush1.bf16.msra.mxu1 %v19619_v16  ;;  %14554 = vmatprep.subr.bf16.mxu0 %v19624_v45  ;;  %v19685_v16 = vld [vmem:[#allocation8 + $0x808] ss:$48 sps:$4 sm:$0xff]   ;;  %v19690_v45 = vld [vmem:[#allocation8 + $0x864] ss:$48 sps:$4 sm:$0xff]  }
 0x82e   :  { %14718 = vmatprep.subr.bf16.mxu1 %v19627_v63  ;;  %v19693_v63 = vld [vmem:[#allocation8 + $0x86c] ss:$48 sps:$4 sm:$0xff]  }
 0x830   :  { %14555 = vmatpush1.bf16.msra.mxu0 %v19622_v48  ;;  %v19688_v48 = vld [vmem:[#allocation8 + $0x860] ss:$48 sps:$4 sm:$0xff]  }
 0x831   :  { %14719 = vmatpush1.bf16.msra.mxu1 %v19625_v38  ;;  %14556 = vmatprep.subr.bf16.mxu0 %v19630_v22  ;;  %v19691_v38 = vld [vmem:[#allocation8 + $0x868] ss:$48 sps:$4 sm:$0xff]   ;;  %v19696_v22 = vld [vmem:[#allocation8 + $0x8c4] ss:$48 sps:$4 sm:$0xff]  }
 0x832   :  { %14720 = vmatprep.subr.bf16.mxu1 %v19633_v23  ;;  %v19699_v23 = vld [vmem:[#allocation8 + $0x8cc] ss:$48 sps:$4 sm:$0xff]  }
 0x834   :  { %14557 = vmatpush1.bf16.msra.mxu0 %v19628_v40  ;;  %v19694_v40 = vld [vmem:[#allocation8 + $0x8c0] ss:$48 sps:$4 sm:$0xff]  }
 0x835   :  { %14721 = vmatpush1.bf16.msra.mxu1 %v19631_v25  ;;  %14558 = vmatprep.subr.bf16.mxu0 %v19636_v27  ;;  %v19697_v25 = vld [vmem:[#allocation8 + $0x8c8] ss:$48 sps:$4 sm:$0xff]   ;;  %v19702_v27 = vld [vmem:[#allocation8 + $0x924] ss:$48 sps:$4 sm:$0xff]  }
 0x836   :  { %14722 = vmatprep.subr.bf16.mxu1 %v19639_v60  ;;  %v19705_v60 = vld [vmem:[#allocation8 + $0x92c] ss:$48 sps:$4 sm:$0xff]  }
 0x838   :  { %14559 = vmatpush1.bf16.msra.mxu0 %v19634_v31  ;;  %v19700_v31 = vld [vmem:[#allocation8 + $0x920] ss:$48 sps:$4 sm:$0xff]  }
 0x839   :  { %14723 = vmatpush1.bf16.msra.mxu1 %v19637_v33  ;;  %14560 = vmatprep.subr.bf16.mxu0 %v19642_v34  ;;  %v19703_v33 = vld [vmem:[#allocation8 + $0x928] ss:$48 sps:$4 sm:$0xff]   ;;  %v19708_v34 = vld [vmem:[#allocation8 + $0x984] ss:$48 sps:$4 sm:$0xff]  }
 0x83a   :  { %14724 = vmatprep.subr.bf16.mxu1 %v19645_v36  ;;  %v19711_v36 = vld [vmem:[#allocation8 + $0x98c] ss:$48 sps:$4 sm:$0xff]  }
 0x83c   :  { %14561 = vmatpush1.bf16.msra.mxu0 %v19640_v49  ;;  %v19706_v49 = vld [vmem:[#allocation8 + $0x980] ss:$48 sps:$4 sm:$0xff]  }
 0x83d   :  { %14725 = vmatpush1.bf16.msra.mxu1 %v19643_v39  ;;  %14562 = vmatprep.subr.bf16.mxu0 %v19648_v47  ;;  %v19709_v39 = vld [vmem:[#allocation8 + $0x988] ss:$48 sps:$4 sm:$0xff]   ;;  %v19714_v47 = vld [vmem:[#allocation8 + $0x9e4] ss:$48 sps:$4 sm:$0xff]  }
 0x83e   :  { %14726 = vmatprep.subr.bf16.mxu1 %v19651_v20  ;;  %v19717_v20 = vld [vmem:[#allocation8 + $0x9ec] ss:$48 sps:$4 sm:$0xff]  }
 0x840   :  { %14563 = vmatpush1.bf16.msra.mxu0 %v19646_v42  ;;  %v19712_v42 = vld [vmem:[#allocation8 + $0x9e0] ss:$48 sps:$4 sm:$0xff]  }
 0x841   :  { %14727 = vmatpush1.bf16.msra.mxu1 %v19649_v43  ;;  %14573 = vmatprep.subr.bf16.mxu0 %v19654_v44  ;;  %v19715_v43 = vld [vmem:[#allocation8 + $0x9e8] ss:$48 sps:$4 sm:$0xff]   ;;  %v19720_v44 = vld [vmem:[#allocation8 + $0xa44] ss:$48 sps:$4 sm:$0xff]  }
 0x842   :  { %14737 = vmatprep.subr.bf16.mxu1 %v19657_v46  ;;  %v19723_v46 = vld [vmem:[#allocation8 + $0xa4c] ss:$48 sps:$4 sm:$0xff]  }
 0x843   :  { %14565 = vmatmul.mubr.bf16.vlgmr.msra.gmra.mrb[16].mxu0 %v21038_v62 }
 0x844   :  { %14729 = vmatmul.mubr.bf16.vlgmr.msra.gmra.mrb[16].mxu1 %v21038_v62  ;;  %14574 = vmatpush1.bf16.msra.mxu0 %v19652_v18  ;;  %v19675_v62 = vld [vmem:[#allocation8 + $0x74c] ss:$48 sps:$4 sm:$0xff]   ;;  %v19718_v18 = vld [vmem:[#allocation8 + $0xa40] ss:$48 sps:$4 sm:$0xff]  }
 0x845   :  { %14605 = vmatprep.mubr.bf16.mxu0 %v21040_v3  ;;  %14738 = vmatpush1.bf16.msra.mxu1 %v19655_v35  ;;  %v19721_v35 = vld [vmem:[#allocation8 + $0xa48] ss:$48 sps:$4 sm:$0xff]  }
 0x846   :  { %14769 = vmatprep.mubr.bf16.mxu1 %v21040_v3  ;;  %14575 = vmatprep.subr.bf16.mxu0 %v19660_v50  ;;  %v19676_v3 = vld [vmem:[#allocation8 + $0x7a0] ss:$48 sps:$4 sm:$0xff]   ;;  %v19726_v50 = vld [vmem:[#allocation8 + $0xaa4] ss:$48 sps:$4 sm:$0xff]  }
 0x847   :  { %14739 = vmatprep.subr.bf16.mxu1 %v19663_v26  ;;  %v19729_v26 = vld [vmem:[#allocation8 + $0xaac] ss:$48 sps:$4 sm:$0xff]  }
 0x848   :  { %14576 = vmatpush1.bf16.msra.mxu0 %v19658_v32  ;;  %v19724_v32 = vld [vmem:[#allocation8 + $0xaa0] ss:$48 sps:$4 sm:$0xff]  }
 0x849   :  { %14740 = vmatpush1.bf16.msra.mxu1 %v19661_v53  ;;  %14577 = vmatprep.subr.bf16.mxu0 %v19666_v54  ;;  %v19727_v53 = vld [vmem:[#allocation8 + $0xaa8] ss:$48 sps:$4 sm:$0xff]   ;;  %v19732_v54 = vld [vmem:[#allocation8 + $0xb04] ss:$48 sps:$4 sm:$0xff]  }
 0x84a   :  { %14741 = vmatprep.subr.bf16.mxu1 %v19669_v55  ;;  %v19735_v55 = vld [vmem:[#allocation8 + $0xb0c] ss:$48 sps:$4 sm:$0xff]  }
 0x84c   :  { %14578 = vmatpush1.bf16.msra.mxu0 %v19664_v29  ;;  %v19730_v29 = vld [vmem:[#allocation8 + $0xb00] ss:$48 sps:$4 sm:$0xff]  }
 0x84d   :  { %14742 = vmatpush1.bf16.msra.mxu1 %v19667_v0  ;;  %14579 = vmatprep.subr.bf16.mxu0 %v19672_v56  ;;  %v19733_v0 = vld [vmem:[#allocation8 + $0xb08] ss:$48 sps:$4 sm:$0xff]   ;;  %v19738_v56 = vld [vmem:[#allocation8 + $0xb64] ss:$48 sps:$4 sm:$0xff]  }
 0x84e   :  { %14743 = vmatprep.subr.bf16.mxu1 %v19675_v62  ;;  %v19741_v62 = vld [vmem:[#allocation8 + $0xb6c] ss:$48 sps:$4 sm:$0xff]  }
 0x850   :  { %14580 = vmatpush1.bf16.msra.mxu0 %v19670_v1  ;;  %v19736_v1 = vld [vmem:[#allocation8 + $0xb60] ss:$48 sps:$4 sm:$0xff]  }
 0x851   :  { %14744 = vmatpush1.bf16.msra.mxu1 %v19673_v2  ;;  %14581 = vmatprep.subr.bf16.mxu0 %v19678_v6  ;;  %v19739_v2 = vld [vmem:[#allocation8 + $0xb68] ss:$48 sps:$4 sm:$0xff]   ;;  %v19744_v6 = vld [vmem:[#allocation8 + $0xbc4] ss:$48 sps:$4 sm:$0xff]  }
 0x852   :  { %14745 = vmatprep.subr.bf16.mxu1 %v19681_v13  ;;  %v19747_v13 = vld [vmem:[#allocation8 + $0xbcc] ss:$48 sps:$4 sm:$0xff]  }
 0x854   :  { %14582 = vmatpush1.bf16.msra.mxu0 %v19676_v3  ;;  %v19742_v3 = vld [vmem:[#allocation8 + $0xbc0] ss:$48 sps:$4 sm:$0xff]  }
 0x855   :  { %14746 = vmatpush1.bf16.msra.mxu1 %v19679_v8  ;;  %14583 = vmatprep.subr.bf16.mxu0 %v19684_v10  ;;  %v19745_v8 = vld [vmem:[#allocation8 + $0xbc8] ss:$48 sps:$4 sm:$0xff]   ;;  %v19750_v10 = vld [vmem:[#allocation8 + $0xc24] ss:$48 sps:$4 sm:$0xff]  }
 0x856   :  { %14747 = vmatprep.subr.bf16.mxu1 %v19687_v14  ;;  %v19753_v14 = vld [vmem:[#allocation8 + $0xc2c] ss:$48 sps:$4 sm:$0xff]  }
 0x858   :  { %14584 = vmatpush1.bf16.msra.mxu0 %v19682_v15  ;;  %v19748_v15 = vld [vmem:[#allocation8 + $0xc20] ss:$48 sps:$4 sm:$0xff]  }
 0x859   :  { %14748 = vmatpush1.bf16.msra.mxu1 %v19685_v16  ;;  %14585 = vmatprep.subr.bf16.mxu0 %v19690_v45  ;;  %v19751_v16 = vld [vmem:[#allocation8 + $0xc28] ss:$48 sps:$4 sm:$0xff]   ;;  %v19756_v45 = vld [vmem:[#allocation8 + $0xc84] ss:$48 sps:$4 sm:$0xff]  }
 0x85a   :  { %14749 = vmatprep.subr.bf16.mxu1 %v19693_v63  ;;  %v19759_v63 = vld [vmem:[#allocation8 + $0xc8c] ss:$48 sps:$4 sm:$0xff]  }
 0x85c   :  { %14586 = vmatpush1.bf16.msra.mxu0 %v19688_v48  ;;  %v19754_v48 = vld [vmem:[#allocation8 + $0xc80] ss:$48 sps:$4 sm:$0xff]  }
 0x85d   :  { %14750 = vmatpush1.bf16.msra.mxu1 %v19691_v38  ;;  %14587 = vmatprep.subr.bf16.mxu0 %v19696_v22  ;;  %v19757_v38 = vld [vmem:[#allocation8 + $0xc88] ss:$48 sps:$4 sm:$0xff]   ;;  %v19762_v22 = vld [vmem:[#allocation8 + $0xce4] ss:$48 sps:$4 sm:$0xff]  }
 0x85e   :  { %14751 = vmatprep.subr.bf16.mxu1 %v19699_v23  ;;  %v19765_v23 = vld [vmem:[#allocation8 + $0xcec] ss:$48 sps:$4 sm:$0xff]  }
 0x860   :  { %14588 = vmatpush1.bf16.msra.mxu0 %v19694_v40  ;;  %v19760_v40 = vld [vmem:[#allocation8 + $0xce0] ss:$48 sps:$4 sm:$0xff]  }
 0x861   :  { %14752 = vmatpush1.bf16.msra.mxu1 %v19697_v25  ;;  %14589 = vmatprep.subr.bf16.mxu0 %v19702_v27  ;;  %v19763_v25 = vld [vmem:[#allocation8 + $0xce8] ss:$48 sps:$4 sm:$0xff]   ;;  %v19768_v27 = vld [vmem:[#allocation8 + $0xd44] ss:$48 sps:$4 sm:$0xff]  }
 0x862   :  { %14753 = vmatprep.subr.bf16.mxu1 %v19705_v60  ;;  %v19766_v60 = vld [vmem:[#allocation8 + $0xd40] ss:$48 sps:$4 sm:$0xff]  }
 0x864   :  { %14590 = vmatpush1.bf16.msra.mxu0 %v19700_v31  ;;  %v19769_v31 = vld [vmem:[#allocation8 + $0xd48] ss:$48 sps:$4 sm:$0xff]  }
 0x865   :  { %14754 = vmatpush1.bf16.msra.mxu1 %v19703_v33  ;;  %14591 = vmatprep.subr.bf16.mxu0 %v19708_v34  ;;  %v19774_v33 = vld [vmem:[#allocation8 + $0xda4] ss:$48 sps:$4 sm:$0xff]   ;;  %v19777_v34 = vld [vmem:[#allocation8 + $0xdac] ss:$48 sps:$4 sm:$0xff]  }
 0x866   :  { %14755 = vmatprep.subr.bf16.mxu1 %v19711_v36  ;;  %v19775_v36 = vld [vmem:[#allocation8 + $0xda8] ss:$48 sps:$4 sm:$0xff]  }
 0x868   :  { %14592 = vmatpush1.bf16.msra.mxu0 %v19706_v49  ;;  %v19780_v49 = vld [vmem:[#allocation8 + $0xe04] ss:$48 sps:$4 sm:$0xff]  }
 0x869   :  { %14756 = vmatpush1.bf16.msra.mxu1 %v19709_v39  ;;  %14593 = vmatprep.subr.bf16.mxu0 %v19714_v47  ;;  %v19783_v39 = vld [vmem:[#allocation8 + $0xe0c] ss:$48 sps:$4 sm:$0xff]   ;;  %v19778_v47 = vld [vmem:[#allocation8 + $0xe00] ss:$48 sps:$4 sm:$0xff]  }
 0x86a   :  { %14757 = vmatprep.subr.bf16.mxu1 %v19717_v20  ;;  %v19781_v20 = vld [vmem:[#allocation8 + $0xe08] ss:$48 sps:$4 sm:$0xff]  }
 0x86c   :  { %14594 = vmatpush1.bf16.msra.mxu0 %v19712_v42  ;;  %v19786_v42 = vld [vmem:[#allocation8 + $0xe64] ss:$48 sps:$4 sm:$0xff]  }
 0x86d   :  { %14758 = vmatpush1.bf16.msra.mxu1 %v19715_v43  ;;  %14595 = vmatprep.subr.bf16.mxu0 %v19720_v44  ;;  %v19789_v43 = vld [vmem:[#allocation8 + $0xe6c] ss:$48 sps:$4 sm:$0xff]   ;;  %v19784_v44 = vld [vmem:[#allocation8 + $0xe60] ss:$48 sps:$4 sm:$0xff]  }
 0x86e   :  { %14759 = vmatprep.subr.bf16.mxu1 %v19723_v46  ;;  %v19787_v46 = vld [vmem:[#allocation8 + $0xe68] ss:$48 sps:$4 sm:$0xff]  }
 0x870   :  { %14596 = vmatpush1.bf16.msra.mxu0 %v19718_v18  ;;  %v19792_v18 = vld [vmem:[#allocation8 + $0xec4] ss:$48 sps:$4 sm:$0xff]  }
 0x871   :  { %14760 = vmatpush1.bf16.msra.mxu1 %v19721_v35  ;;  %14597 = vmatprep.subr.bf16.mxu0 %v19726_v50  ;;  %v19795_v35 = vld [vmem:[#allocation8 + $0xecc] ss:$48 sps:$4 sm:$0xff]   ;;  %v19790_v50 = vld [vmem:[#allocation8 + $0xec0] ss:$48 sps:$4 sm:$0xff]  }
 0x872   :  { %14761 = vmatprep.subr.bf16.mxu1 %v19729_v26  ;;  %v19793_v26 = vld [vmem:[#allocation8 + $0xec8] ss:$48 sps:$4 sm:$0xff]  }
 0x874   :  { %14598 = vmatpush1.bf16.msra.mxu0 %v19724_v32  ;;  %v19798_v32 = vld [vmem:[#allocation8 + $0xf24] ss:$48 sps:$4 sm:$0xff]  }
 0x875   :  { %14762 = vmatpush1.bf16.msra.mxu1 %v19727_v53  ;;  %14599 = vmatprep.subr.bf16.mxu0 %v19732_v54  ;;  %v19801_v53 = vld [vmem:[#allocation8 + $0xf2c] ss:$48 sps:$4 sm:$0xff]   ;;  %v19796_v54 = vld [vmem:[#allocation8 + $0xf20] ss:$48 sps:$4 sm:$0xff]  }
 0x876   :  { %14763 = vmatprep.subr.bf16.mxu1 %v19735_v55  ;;  %v19799_v55 = vld [vmem:[#allocation8 + $0xf28] ss:$48 sps:$4 sm:$0xff]  }
 0x878   :  { %14600 = vmatpush1.bf16.msra.mxu0 %v19730_v29  ;;  %v19804_v29 = vld [vmem:[#allocation8 + $0xf84] ss:$48 sps:$4 sm:$0xff]  }
 0x879   :  { %14764 = vmatpush1.bf16.msra.mxu1 %v19733_v0  ;;  %14601 = vmatprep.subr.bf16.mxu0 %v19738_v56  ;;  %v19807_v0 = vld [vmem:[#allocation8 + $0xf8c] ss:$48 sps:$4 sm:$0xff]   ;;  %v19802_v56 = vld [vmem:[#allocation8 + $0xf80] ss:$48 sps:$4 sm:$0xff]  }
 0x87a   :  { %14765 = vmatprep.subr.bf16.mxu1 %v19741_v62  ;;  %v19805_v62 = vld [vmem:[#allocation8 + $0xf88] ss:$48 sps:$4 sm:$0xff]  }
 0x87c   :  { %14602 = vmatpush1.bf16.msra.mxu0 %v19736_v1  ;;  %v19810_v1 = vld [vmem:[#allocation8 + $0xfe4] ss:$48 sps:$4 sm:$0xff]  }
 0x87d   :  { %14766 = vmatpush1.bf16.msra.mxu1 %v19739_v2  ;;  %14603 = vmatprep.subr.bf16.mxu0 %v19744_v6  ;;  %v19813_v2 = vld [vmem:[#allocation8 + $0xfec] ss:$48 sps:$4 sm:$0xff]   ;;  %v19808_v6 = vld [vmem:[#allocation8 + $0xfe0] ss:$48 sps:$4 sm:$0xff]  }
 0x87e   :  { %14767 = vmatprep.subr.bf16.mxu1 %v19747_v13  ;;  %v19811_v13 = vld [vmem:[#allocation8 + $0xfe8] ss:$48 sps:$4 sm:$0xff]  }
 0x880   :  { %14604 = vmatpush1.bf16.msra.mxu0 %v19742_v3  ;;  %v19816_v3 = vld [vmem:[#allocation8 + $0x1044] ss:$48 sps:$4 sm:$0xff]  }
 0x881   :  { %14768 = vmatpush1.bf16.msra.mxu1 %v19745_v8  ;;  %14614 = vmatprep.subr.bf16.mxu0 %v19750_v10  ;;  %v19819_v8 = vld [vmem:[#allocation8 + $0x104c] ss:$48 sps:$4 sm:$0xff]   ;;  %v19814_v10 = vld [vmem:[#allocation8 + $0x1040] ss:$48 sps:$4 sm:$0xff]  }
 0x882   :  { %14778 = vmatprep.subr.bf16.mxu1 %v19753_v14  ;;  %v19817_v14 = vld [vmem:[#allocation8 + $0x1048] ss:$48 sps:$4 sm:$0xff]  }
 0x883   :  { %14606 = vmatmul.mubr.bf16.vlgmr.msra.gmra.mrb[16].mxu0 %v21052_v17 }
 0x884   :  { %14770 = vmatmul.mubr.bf16.vlgmr.msra.gmra.mrb[16].mxu1 %v21052_v17  ;;  %14615 = vmatpush1.bf16.msra.mxu0 %v19748_v15  ;;  %v19771_v17 = vld [vmem:[#allocation8 + $0xd4c] ss:$48 sps:$4 sm:$0xff]   ;;  %v19822_v15 = vld [vmem:[#allocation8 + $0x10a4] ss:$48 sps:$4 sm:$0xff]  }
 0x885   :  { %14646 = vmatprep.mubr.bf16.mxu0 %v21070_v51  ;;  %14779 = vmatpush1.bf16.msra.mxu1 %v19751_v16  ;;  %v19825_v16 = vld [vmem:[#allocation8 + $0x10ac] ss:$48 sps:$4 sm:$0xff]  }
 0x886   :  { %14810 = vmatprep.mubr.bf16.mxu1 %v21070_v51  ;;  %14616 = vmatprep.subr.bf16.mxu0 %v19756_v45  ;;  %v19772_v51 = vld [vmem:[#allocation8 + $0xda0] ss:$48 sps:$4 sm:$0xff]  }
 0x887   :  { %14780 = vmatprep.subr.bf16.mxu1 %v19759_v63  ;;  %v19820_v45 = vld [vmem:[#allocation8 + $0x10a0] ss:$48 sps:$4 sm:$0xff]   ;;  %v19823_v63 = vld [vmem:[#allocation8 + $0x10a8] ss:$48 sps:$4 sm:$0xff]  }
 0x888   :  { %14617 = vmatpush1.bf16.msra.mxu0 %v19754_v48  ;;  %v19828_v48 = vld [vmem:[#allocation8 + $0x1104] ss:$48 sps:$4 sm:$0xff]  }
 0x889   :  { %14781 = vmatpush1.bf16.msra.mxu1 %v19757_v38  ;;  %14618 = vmatprep.subr.bf16.mxu0 %v19762_v22  ;;  %v19831_v38 = vld [vmem:[#allocation8 + $0x110c] ss:$48 sps:$4 sm:$0xff]   ;;  %v19826_v22 = vld [vmem:[#allocation8 + $0x1100] ss:$48 sps:$4 sm:$0xff]  }
 0x88a   :  { %14782 = vmatprep.subr.bf16.mxu1 %v19765_v23  ;;  %v19829_v23 = vld [vmem:[#allocation8 + $0x1108] ss:$48 sps:$4 sm:$0xff]  }
 0x88c   :  { %14619 = vmatpush1.bf16.msra.mxu0 %v19760_v40  ;;  %v19834_v40 = vld [vmem:[#allocation8 + $0x1164] ss:$48 sps:$4 sm:$0xff]  }
 0x88d   :  { %14783 = vmatpush1.bf16.msra.mxu1 %v19763_v25  ;;  %14620 = vmatprep.subr.bf16.mxu0 %v19768_v27  ;;  %v19837_v25 = vld [vmem:[#allocation8 + $0x116c] ss:$48 sps:$4 sm:$0xff]   ;;  %v19832_v27 = vld [vmem:[#allocation8 + $0x1160] ss:$48 sps:$4 sm:$0xff]  }
 0x88e   :  { %14784 = vmatprep.subr.bf16.mxu1 %v19771_v17  ;;  %v19835_v17 = vld [vmem:[#allocation8 + $0x1168] ss:$48 sps:$4 sm:$0xff]  }
 0x890   :  { %14621 = vmatpush1.bf16.msra.mxu0 %v19766_v60  ;;  %v19840_v60 = vld [vmem:[#allocation8 + $0x11c4] ss:$48 sps:$4 sm:$0xff]  }
 0x891   :  { %14785 = vmatpush1.bf16.msra.mxu1 %v19769_v31  ;;  %14622 = vmatprep.subr.bf16.mxu0 %v19774_v33  ;;  %v19843_v31 = vld [vmem:[#allocation8 + $0x11cc] ss:$48 sps:$4 sm:$0xff]   ;;  %v19838_v33 = vld [vmem:[#allocation8 + $0x11c0] ss:$48 sps:$4 sm:$0xff]  }
 0x892   :  { %14786 = vmatprep.subr.bf16.mxu1 %v19777_v34  ;;  %v19841_v34 = vld [vmem:[#allocation8 + $0x11c8] ss:$48 sps:$4 sm:$0xff]  }
 0x894   :  { %14623 = vmatpush1.bf16.msra.mxu0 %v19772_v51  ;;  %v19846_v51 = vld [vmem:[#allocation8 + $0x1224] ss:$48 sps:$4 sm:$0xff]  }
 0x895   :  { %14787 = vmatpush1.bf16.msra.mxu1 %v19775_v36  ;;  %14624 = vmatprep.subr.bf16.mxu0 %v19780_v49  ;;  %v19849_v36 = vld [vmem:[#allocation8 + $0x122c] ss:$48 sps:$4 sm:$0xff]   ;;  %v19844_v49 = vld [vmem:[#allocation8 + $0x1220] ss:$48 sps:$4 sm:$0xff]  }
 0x896   :  { %14788 = vmatprep.subr.bf16.mxu1 %v19783_v39  ;;  %v19847_v39 = vld [vmem:[#allocation8 + $0x1228] ss:$48 sps:$4 sm:$0xff]  }
 0x898   :  { %14625 = vmatpush1.bf16.msra.mxu0 %v19778_v47  ;;  %v19852_v47 = vld [vmem:[#allocation8 + $0x1284] ss:$48 sps:$4 sm:$0xff]  }
 0x899   :  { %14789 = vmatpush1.bf16.msra.mxu1 %v19781_v20  ;;  %14626 = vmatprep.subr.bf16.mxu0 %v19786_v42  ;;  %v19855_v20 = vld [vmem:[#allocation8 + $0x128c] ss:$48 sps:$4 sm:$0xff]   ;;  %v19850_v42 = vld [vmem:[#allocation8 + $0x1280] ss:$48 sps:$4 sm:$0xff]  }
 0x89a   :  { %14790 = vmatprep.subr.bf16.mxu1 %v19789_v43  ;;  %v19853_v43 = vld [vmem:[#allocation8 + $0x1288] ss:$48 sps:$4 sm:$0xff]  }
 0x89c   :  { %14627 = vmatpush1.bf16.msra.mxu0 %v19784_v44  ;;  %v19858_v44 = vld [vmem:[#allocation8 + $0x12e4] ss:$48 sps:$4 sm:$0xff]  }
 0x89d   :  { %14791 = vmatpush1.bf16.msra.mxu1 %v19787_v46  ;;  %14628 = vmatprep.subr.bf16.mxu0 %v19792_v18  ;;  %v19861_v46 = vld [vmem:[#allocation8 + $0x12ec] ss:$48 sps:$4 sm:$0xff]   ;;  %v19856_v18 = vld [vmem:[#allocation8 + $0x12e0] ss:$48 sps:$4 sm:$0xff]  }
 0x89e   :  { %14792 = vmatprep.subr.bf16.mxu1 %v19795_v35  ;;  %v19859_v35 = vld [vmem:[#allocation8 + $0x12e8] ss:$48 sps:$4 sm:$0xff]  }
 0x8a0   :  { %14629 = vmatpush1.bf16.msra.mxu0 %v19790_v50  ;;  %v19864_v50 = vld [vmem:[#allocation8 + $0x1344] ss:$48 sps:$4 sm:$0xff]  }
 0x8a1   :  { %14793 = vmatpush1.bf16.msra.mxu1 %v19793_v26  ;;  %14630 = vmatprep.subr.bf16.mxu0 %v19798_v32  ;;  %v19862_v26 = vld [vmem:[#allocation8 + $0x1340] ss:$48 sps:$4 sm:$0xff]   ;;  %v19865_v32 = vld [vmem:[#allocation8 + $0x1348] ss:$48 sps:$4 sm:$0xff]  }
 0x8a2   :  { %14794 = vmatprep.subr.bf16.mxu1 %v19801_v53  ;;  %v19870_v53 = vld [vmem:[#allocation8 + $0x13a4] ss:$48 sps:$4 sm:$0xff]  }
 0x8a4   :  { %14631 = vmatpush1.bf16.msra.mxu0 %v19796_v54  ;;  %v19873_v54 = vld [vmem:[#allocation8 + $0x13ac] ss:$48 sps:$4 sm:$0xff]  }
 0x8a5   :  { %14795 = vmatpush1.bf16.msra.mxu1 %v19799_v55  ;;  %14632 = vmatprep.subr.bf16.mxu0 %v19804_v29  ;;  %v19871_v55 = vld [vmem:[#allocation8 + $0x13a8] ss:$48 sps:$4 sm:$0xff]   ;;  %v19876_v29 = vld [vmem:[#allocation8 + $0x1404] ss:$48 sps:$4 sm:$0xff]  }
 0x8a6   :  { %14796 = vmatprep.subr.bf16.mxu1 %v19807_v0  ;;  %v19879_v0 = vld [vmem:[#allocation8 + $0x140c] ss:$48 sps:$4 sm:$0xff]  }
 0x8a8   :  { %14633 = vmatpush1.bf16.msra.mxu0 %v19802_v56  ;;  %v21132_v56 = vld [vmem:[#allocation10] sm:$0xff] }
 0x8a9   :  { %14797 = vmatpush1.bf16.msra.mxu1 %v19805_v62  ;;  %14634 = vmatprep.subr.bf16.mxu0 %v19810_v1  ;;  %v9983_v62 = vrot.slane %v21132_v56, %v21011_v21  ;;  %v9995_v1 = vrot.slane %v21132_v56, %v1522_v28 }
 0x8aa   :  { %14798 = vmatprep.subr.bf16.mxu1 %v19813_v2  ;;  %v9987_v2 = vrot.slane %v21132_v56, %v21047_v52 }
 0x8ac   :  { %14635 = vmatpush1.bf16.msra.mxu0 %v19808_v6  ;;  %v9999_v6 = vrot.slane %v21132_v56, %v1526_v30 }
 0x8ad   :  { %14799 = vmatpush1.bf16.msra.mxu1 %v19811_v13  ;;  %14636 = vmatprep.subr.bf16.mxu0 %v19816_v3  ;;  %v19874_v13 = vld [vmem:[#allocation8 + $0x1400] ss:$48 sps:$4 sm:$0xff]   ;;  %v19877_v3 = vld [vmem:[#allocation8 + $0x1408] ss:$48 sps:$4 sm:$0xff]  }
 0x8ae   :  { %14800 = vmatprep.subr.bf16.mxu1 %v19819_v8  ;;  %v19882_v8 = vld [vmem:[#allocation8 + $0x1464] ss:$48 sps:$4 sm:$0xff]  }
 0x8b0   :  { %14637 = vmatpush1.bf16.msra.mxu0 %v19814_v10 }
 0x8b1   :  { %14801 = vmatpush1.bf16.msra.mxu1 %v19817_v14  ;;  %14638 = vmatprep.subr.bf16.mxu0 %v19822_v15  ;;  %v19885_v14 = vld [vmem:[#allocation8 + $0x146c] ss:$48 sps:$4 sm:$0xff]   ;;  %v21145_v15 = vadd.f32 %v21110_v11, %v9983_v62  ;;  %v19925_v62 = vld [vmem:[#allocation8 + $0x1708] ss:$48 sps:$4 sm:$0xff]  }
 0x8b2   :  { %14802 = vmatprep.subr.bf16.mxu1 %v19825_v16 }
 0x8b4   :  { %14639 = vmatpush1.bf16.msra.mxu0 %v19820_v45 }
 0x8b5   :  { %14803 = vmatpush1.bf16.msra.mxu1 %v19823_v63  ;;  %14640 = vmatprep.subr.bf16.mxu0 %v19828_v48  ;;  %v21152_v63 = vadd.f32 %v21106_v7, %v9987_v2  ;;  %v19933_v2 = vld [vmem:[#allocation8 + $0x176c] ss:$48 sps:$4 sm:$0xff]  }
 0x8b6   :  { %14804 = vmatprep.subr.bf16.mxu1 %v19831_v38 }
 0x8b8   :  { %14641 = vmatpush1.bf16.msra.mxu0 %v19826_v22  ;;  %v19880_v22 = vld [vmem:[#allocation8 + $0x1460] ss:$48 sps:$4 sm:$0xff]  }
 0x8b9   :  { %14805 = vmatpush1.bf16.msra.mxu1 %v19829_v23  ;;  %14642 = vmatprep.subr.bf16.mxu0 %v19834_v40 }
 0x8ba   :  { %14806 = vmatprep.subr.bf16.mxu1 %v19837_v25  ;;  %v19883_v25 = vld [vmem:[#allocation8 + $0x1468] ss:$48 sps:$4 sm:$0xff]  }
 0x8bc   :  { %14643 = vmatpush1.bf16.msra.mxu0 %v19832_v27  ;;  %v19888_v27 = vld [vmem:[#allocation8 + $0x14c4] ss:$48 sps:$4 sm:$0xff]  }
 0x8bd   :  { %14807 = vmatpush1.bf16.msra.mxu1 %v19835_v17  ;;  %14644 = vmatprep.subr.bf16.mxu0 %v19840_v60  ;;  %v19891_v60 = vld [vmem:[#allocation8 + $0x14cc] ss:$48 sps:$4 sm:$0xff]  }
 0x8be   :  { %14808 = vmatprep.subr.bf16.mxu1 %v19843_v31  ;;  %v19886_v31 = vld [vmem:[#allocation8 + $0x14c0] ss:$48 sps:$4 sm:$0xff]  }
 0x8c0   :  { %14645 = vmatpush1.bf16.msra.mxu0 %v19838_v33  ;;  %v19889_v33 = vld [vmem:[#allocation8 + $0x14c8] ss:$48 sps:$4 sm:$0xff]  }
 0x8c1   :  { %14809 = vmatpush1.bf16.msra.mxu1 %v19841_v34  ;;  %14655 = vmatprep.subr.bf16.mxu0 %v19846_v51  ;;  %v19894_v34 = vld [vmem:[#allocation8 + $0x1524] ss:$48 sps:$4 sm:$0xff]   ;;  %v19897_v51 = vld [vmem:[#allocation8 + $0x152c] ss:$48 sps:$4 sm:$0xff]  }
 0x8c2   :  { %14819 = vmatprep.subr.bf16.mxu1 %v19849_v36  ;;  %v19892_v36 = vld [vmem:[#allocation8 + $0x1520] ss:$48 sps:$4 sm:$0xff]  }
 0x8c3   :  { %14647 = vmatmul.mubr.bf16.vlgmr.msra.gmra.mrb[16].mxu0 %v21072_v4 }
 0x8c4   :  { %14811 = vmatmul.mubr.bf16.vlgmr.msra.gmra.mrb[16].mxu1 %v21072_v4  ;;  %14656 = vmatpush1.bf16.msra.mxu0 %v19844_v49  ;;  %v19867_v4 = vld [vmem:[#allocation8 + $0x134c] ss:$48 sps:$4 sm:$0xff]   ;;  %v19895_v49 = vld [vmem:[#allocation8 + $0x1528] ss:$48 sps:$4 sm:$0xff]  }
 0x8c5   :  { %14687 = vmatprep.mubr.bf16.mxu0 %v21076_v61  ;;  %14820 = vmatpush1.bf16.msra.mxu1 %v19847_v39  ;;  %v19900_v39 = vld [vmem:[#allocation8 + $0x1584] ss:$48 sps:$4 sm:$0xff]  }
 0x8c6   :  { %14851 = vmatprep.mubr.bf16.mxu1 %v21076_v61  ;;  %14657 = vmatprep.subr.bf16.mxu0 %v19852_v47  ;;  %v19868_v61 = vld [vmem:[#allocation8 + $0x13a0] ss:$48 sps:$4 sm:$0xff]   ;;  %v19903_v47 = vld [vmem:[#allocation8 + $0x158c] ss:$48 sps:$4 sm:$0xff]  }
 0x8c7   :  { %14821 = vmatprep.subr.bf16.mxu1 %v19855_v20  ;;  %v19898_v20 = vld [vmem:[#allocation8 + $0x1580] ss:$48 sps:$4 sm:$0xff]  }
 0x8c8   :  { %14658 = vmatpush1.bf16.msra.mxu0 %v19850_v42  ;;  %v19901_v42 = vld [vmem:[#allocation8 + $0x1588] ss:$48 sps:$4 sm:$0xff]  }
 0x8c9   :  { %14822 = vmatpush1.bf16.msra.mxu1 %v19853_v43  ;;  %14659 = vmatprep.subr.bf16.mxu0 %v19858_v44  ;;  %v19906_v43 = vld [vmem:[#allocation8 + $0x15e4] ss:$48 sps:$4 sm:$0xff]   ;;  %v19909_v44 = vld [vmem:[#allocation8 + $0x15ec] ss:$48 sps:$4 sm:$0xff]  }
 0x8ca   :  { %14823 = vmatprep.subr.bf16.mxu1 %v19861_v46  ;;  %v19904_v46 = vld [vmem:[#allocation8 + $0x15e0] ss:$48 sps:$4 sm:$0xff]  }
 0x8cc   :  { %14660 = vmatpush1.bf16.msra.mxu0 %v19856_v18  ;;  %v19907_v18 = vld [vmem:[#allocation8 + $0x15e8] ss:$48 sps:$4 sm:$0xff]  }
 0x8cd   :  { %14824 = vmatpush1.bf16.msra.mxu1 %v19859_v35  ;;  %14661 = vmatprep.subr.bf16.mxu0 %v19864_v50  ;;  %v19912_v35 = vld [vmem:[#allocation8 + $0x1644] ss:$48 sps:$4 sm:$0xff]   ;;  %v19915_v50 = vld [vmem:[#allocation8 + $0x164c] ss:$48 sps:$4 sm:$0xff]  }
 0x8ce   :  { %14825 = vmatprep.subr.bf16.mxu1 %v19867_v4  ;;  %v19910_v4 = vld [vmem:[#allocation8 + $0x1640] ss:$48 sps:$4 sm:$0xff]  }
 0x8d0   :  { %14662 = vmatpush1.bf16.msra.mxu0 %v19862_v26  ;;  %v19913_v26 = vld [vmem:[#allocation8 + $0x1648] ss:$48 sps:$4 sm:$0xff]  }
 0x8d1   :  { %14826 = vmatpush1.bf16.msra.mxu1 %v19865_v32  ;;  %14663 = vmatprep.subr.bf16.mxu0 %v19870_v53  ;;  %v19918_v32 = vld [vmem:[#allocation8 + $0x16a4] ss:$48 sps:$4 sm:$0xff]   ;;  %v19921_v53 = vld [vmem:[#allocation8 + $0x16ac] ss:$48 sps:$4 sm:$0xff]  }
 0x8d2   :  { %14827 = vmatprep.subr.bf16.mxu1 %v19873_v54  ;;  %v19916_v54 = vld [vmem:[#allocation8 + $0x16a0] ss:$48 sps:$4 sm:$0xff]  }
 0x8d4   :  { %14664 = vmatpush1.bf16.msra.mxu0 %v19868_v61  ;;  %v19919_v61 = vld [vmem:[#allocation8 + $0x16a8] ss:$48 sps:$4 sm:$0xff]  }
 0x8d5   :  { %14828 = vmatpush1.bf16.msra.mxu1 %v19871_v55  ;;  %14665 = vmatprep.subr.bf16.mxu0 %v19876_v29  ;;  %v19924_v55 = vld [vmem:[#allocation8 + $0x1704] ss:$48 sps:$4 sm:$0xff]   ;;  %v19927_v29 = vld [vmem:[#allocation8 + $0x170c] ss:$48 sps:$4 sm:$0xff]  }
 0x8d6   :  { %v14361_v10 = vpop.f32.mrb[12].mxu0  ;;  %14829 = vmatprep.subr.bf16.mxu1 %v19879_v0  ;;  %v19922_v0 = vld [vmem:[#allocation8 + $0x1700] ss:$48 sps:$4 sm:$0xff]  }
 0x8d7   :  { %v21147_v28 = vadd.f32 %v14361_v10, %v9995_v1  ;;  %v21149_v16 = vpop.f32.mrb[12].mxu1  ;;  %v14363_v45 = vpop.f32.mrb[13].mxu0  ;;  %v19930_v1 = vld [vmem:[#allocation8 + $0x1764] ss:$48 sps:$4 sm:$0xff]   ;;  %v19934_v10 = vld [vmem:[#allocation8 + $0x17c0] ss:$48 sps:$4 sm:$0xff]  }
 0x8d8   :  { %v21154_v30 = vadd.f32 %v14363_v45, %v9999_v6  ;;  %v21156_v48 = vpop.f32.mrb[13].mxu1  ;;  %v14365_v38 = vpop.f32.mrb[14].mxu0  ;;  %14666 = vmatpush1.bf16.msra.mxu0 %v19874_v13  ;;  %v19928_v6 = vld [vmem:[#allocation8 + $0x1760] ss:$48 sps:$4 sm:$0xff]   ;;  %v19931_v13 = vld [vmem:[#allocation8 + $0x1768] ss:$48 sps:$4 sm:$0xff]  }
 0x8d9   :  { %v14861_v23 = vmax.f32 %v21145_v15, %v21147_v28  ;;  %v14529_v11 = vpop.f32.mrb[14].mxu1  ;;  %14830 = vmatpush1.bf16.msra.mxu1 %v19877_v3  ;;  %v14366_v40 = vpop.f32.mrb[15].mxu0  ;;  %14667 = vmatprep.subr.bf16.mxu0 %v19882_v8  ;;  %v19936_v3 = vld [vmem:[#allocation8 + $0x17c4] ss:$48 sps:$4 sm:$0xff]   ;;  %v19939_v8 = vld [vmem:[#allocation8 + $0x17cc] ss:$48 sps:$4 sm:$0xff]  }
 0x8da   :  { %v14862_v7 = vmax.f32 %v21152_v63, %v21154_v30  ;;  %v14530_v17 = vpop.f32.mrb[15].mxu1  ;;  %14831 = vmatprep.subr.bf16.mxu1 %v19885_v14  ;;  %v19937_v14 = vld [vmem:[#allocation8 + $0x17c8] ss:$48 sps:$4 sm:$0xff]   ;;  %v19940_v38 = vld [vmem:[#allocation11] ss:$8 sps:$4 sm:$0xff]  }
 0x8db   :  { %v19942_v45 = vld [vmem:[#allocation11 + $0x4] ss:$8 sps:$4 sm:$0xff]   ;;  %v19943_v11 = vld [vmem:[#allocation11 + $0x10] ss:$8 sps:$4 sm:$0xff]   ;;  %v20000_v63 = vld [vmem:[#allocation11 + $0x140] ss:$8 sps:$4 sm:$0xff]  }
 0x8dc   :  { %14668 = vmatpush1.bf16.msra.mxu0 %v19880_v22  ;;  %v19945_v22 = vld [vmem:[#allocation11 + $0x14] ss:$8 sps:$4 sm:$0xff]   ;;  %v19948_v40 = vld [vmem:[#allocation11 + $0x24] ss:$8 sps:$4 sm:$0xff]   ;;  %v19949_v17 = vld [vmem:[#allocation11 + $0x30] ss:$8 sps:$4 sm:$0xff]  }
 0x8dd   :  { %14832 = vmatpush1.bf16.msra.mxu1 %v19883_v25  ;;  %14669 = vmatprep.subr.bf16.mxu0 %v19888_v27  ;;  %v19946_v25 = vld [vmem:[#allocation11 + $0x20] ss:$8 sps:$4 sm:$0xff]   ;;  %v19951_v27 = vld [vmem:[#allocation11 + $0x34] ss:$8 sps:$4 sm:$0xff]   ;;  %v19997_v15 = vld [vmem:[#allocation11 + $0x130] ss:$8 sps:$4 sm:$0xff]  }
 0x8de   :  { %14833 = vmatprep.subr.bf16.mxu1 %v19891_v60  ;;  %v19954_v60 = vld [vmem:[#allocation11 + $0x44] ss:$8 sps:$4 sm:$0xff]   ;;  %v20005_v30 = vld [vmem:[#allocation11 + $0x154] ss:$8 sps:$4 sm:$0xff]  }
 0x8df   :  { %v20002_v28 = vld [vmem:[#allocation11 + $0x144] ss:$8 sps:$4 sm:$0xff]  }
 0x8e0   :  { %14670 = vmatpush1.bf16.msra.mxu0 %v19886_v31  ;;  %v19952_v31 = vld [vmem:[#allocation11 + $0x40] ss:$8 sps:$4 sm:$0xff]  }
 0x8e1   :  { %14834 = vmatpush1.bf16.msra.mxu1 %v19889_v33  ;;  %14671 = vmatprep.subr.bf16.mxu0 %v19894_v34  ;;  %v19957_v33 = vld [vmem:[#allocation11 + $0x54] ss:$8 sps:$4 sm:$0xff]   ;;  %v19955_v34 = vld [vmem:[#allocation11 + $0x50] ss:$8 sps:$4 sm:$0xff]  }
 0x8e2   :  { %14835 = vmatprep.subr.bf16.mxu1 %v19897_v51  ;;  %v19958_v51 = vld [vmem:[#allocation11 + $0x60] ss:$8 sps:$4 sm:$0xff]  }
 0x8e4   :  { %14672 = vmatpush1.bf16.msra.mxu0 %v19892_v36  ;;  %v19963_v36 = vld [vmem:[#allocation11 + $0x74] ss:$8 sps:$4 sm:$0xff]  }
 0x8e5   :  { %14836 = vmatpush1.bf16.msra.mxu1 %v19895_v49  ;;  %14673 = vmatprep.subr.bf16.mxu0 %v19900_v39  ;;  %v19961_v49 = vld [vmem:[#allocation11 + $0x70] ss:$8 sps:$4 sm:$0xff]   ;;  %v19966_v39 = vld [vmem:[#allocation11 + $0x84] ss:$8 sps:$4 sm:$0xff]  }
 0x8e6   :  { %14837 = vmatprep.subr.bf16.mxu1 %v19903_v47  ;;  %v19964_v47 = vld [vmem:[#allocation11 + $0x80] ss:$8 sps:$4 sm:$0xff]  }
 0x8e8   :  { %14674 = vmatpush1.bf16.msra.mxu0 %v19898_v20  ;;  %v19969_v20 = vld [vmem:[#allocation11 + $0x94] ss:$8 sps:$4 sm:$0xff]  }
 0x8e9   :  { %14838 = vmatpush1.bf16.msra.mxu1 %v19901_v42  ;;  %14675 = vmatprep.subr.bf16.mxu0 %v19906_v43  ;;  %v19967_v42 = vld [vmem:[#allocation11 + $0x90] ss:$8 sps:$4 sm:$0xff]   ;;  %v19972_v43 = vld [vmem:[#allocation11 + $0xa4] ss:$8 sps:$4 sm:$0xff]  }
 0x8ea   :  { %14839 = vmatprep.subr.bf16.mxu1 %v19909_v44  ;;  %v19970_v44 = vld [vmem:[#allocation11 + $0xa0] ss:$8 sps:$4 sm:$0xff]  }
 0x8ec   :  { %14676 = vmatpush1.bf16.msra.mxu0 %v19904_v46  ;;  %v19975_v46 = vld [vmem:[#allocation11 + $0xb4] ss:$8 sps:$4 sm:$0xff]  }
 0x8ed   :  { %14840 = vmatpush1.bf16.msra.mxu1 %v19907_v18  ;;  %14677 = vmatprep.subr.bf16.mxu0 %v19912_v35  ;;  %v19973_v18 = vld [vmem:[#allocation11 + $0xb0] ss:$8 sps:$4 sm:$0xff]   ;;  %v19978_v35 = vld [vmem:[#allocation11 + $0xc4] ss:$8 sps:$4 sm:$0xff]  }
 0x8ee   :  { %14841 = vmatprep.subr.bf16.mxu1 %v19915_v50  ;;  %v19976_v50 = vld [vmem:[#allocation11 + $0xc0] ss:$8 sps:$4 sm:$0xff]  }
 0x8f0   :  { %14678 = vmatpush1.bf16.msra.mxu0 %v19910_v4  ;;  %v19981_v4 = vld [vmem:[#allocation11 + $0xd4] ss:$8 sps:$4 sm:$0xff]  }
 0x8f1   :  { %14842 = vmatpush1.bf16.msra.mxu1 %v19913_v26  ;;  %14679 = vmatprep.subr.bf16.mxu0 %v19918_v32  ;;  %v19979_v26 = vld [vmem:[#allocation11 + $0xd0] ss:$8 sps:$4 sm:$0xff]   ;;  %v19984_v32 = vld [vmem:[#allocation11 + $0xe4] ss:$8 sps:$4 sm:$0xff]  }
 0x8f2   :  { %14843 = vmatprep.subr.bf16.mxu1 %v19921_v53  ;;  %v19982_v53 = vld [vmem:[#allocation11 + $0xe0] ss:$8 sps:$4 sm:$0xff]  }
 0x8f4   :  { %14680 = vmatpush1.bf16.msra.mxu0 %v19916_v54  ;;  %v19987_v54 = vld [vmem:[#allocation11 + $0xf4] ss:$8 sps:$4 sm:$0xff]  }
 0x8f5   :  { %14844 = vmatpush1.bf16.msra.mxu1 %v19919_v61  ;;  %14681 = vmatprep.subr.bf16.mxu0 %v19924_v55  ;;  %v19985_v61 = vld [vmem:[#allocation11 + $0xf0] ss:$8 sps:$4 sm:$0xff]   ;;  %v19990_v55 = vld [vmem:[#allocation11 + $0x104] ss:$8 sps:$4 sm:$0xff]  }
 0x8f6   :  { %14845 = vmatprep.subr.bf16.mxu1 %v19927_v29  ;;  %v20012_v29 = vld [vmem:[#allocation14 + $0x40] sm:$0xff]  }
 0x8f8   :  { %14682 = vmatpush1.bf16.msra.mxu0 %v19922_v0  ;;  %v20013_v0 = vld [vmem:[#allocation14] sm:$0xff]  }
 0x8f9   :  { %14846 = vmatpush1.bf16.msra.mxu1 %v19925_v62  ;;  %14683 = vmatprep.subr.bf16.mxu0 %v19930_v1  ;;  %v20014_v62 = vld [vmem:[#allocation14 + $0x48] sm:$0xff]  }
 0x8fa   :  { %14847 = vmatprep.subr.bf16.mxu1 %v19933_v2  ;;  %v20015_v1 = vld [vmem:[#allocation14 + $0x8] sm:$0xff]   ;;  %v20016_v2 = vld [vmem:[#allocation14 + $0x50] sm:$0xff]  }
 0x8fc   :  { %14684 = vmatpush1.bf16.msra.mxu0 %v19928_v6  ;;  %v20017_v6 = vld [vmem:[#allocation14 + $0x10] sm:$0xff]  }
 0x8fd   :  { %14848 = vmatpush1.bf16.msra.mxu1 %v19931_v13  ;;  %14685 = vmatprep.subr.bf16.mxu0 %v19936_v3  ;;  %v20018_v13 = vld [vmem:[#allocation14 + $0x58] sm:$0xff]  }
 0x8fe   :  { %14849 = vmatprep.subr.bf16.mxu1 %v19939_v8  ;;  %v20019_v3 = vld [vmem:[#allocation14 + $0x18] sm:$0xff]   ;;  %v20020_v8 = vld [vmem:[#allocation14 + $0x60] sm:$0xff]  }
 0x900   :  { %14686 = vmatpush1.bf16.msra.mxu0 %v19934_v10  ;;  %v20021_v10 = vld [vmem:[#allocation14 + $0x20] sm:$0xff]  }
 0x901   :  { %14850 = vmatpush1.bf16.msra.mxu1 %v19937_v14  ;;  %15172 = vmatprep.subr.bf16.mxu0 %v19942_v45  ;;  %v20022_v14 = vld [vmem:[#allocation14 + $0x68] sm:$0xff]  }
 0x902   :  { %18428 = vmatprep.subr.bf16.mxu1 %v20012_v29  ;;  %v20023_v45 = vld [vmem:[#allocation14 + $0x28] sm:$0xff]   ;;  %v20026_v29 = vld [vmem:[#allocation14 + $0x78] sm:$0xff]  }
 0x903   :  { %14688 = vmatmul.mubr.bf16.vlgmr.msra.gmra.mrb[16].mxu0 %v21086_v24 }
 0x904   :  { %14852 = vmatmul.mubr.bf16.vlgmr.msra.gmra.mrb[16].mxu1 %v21086_v24  ;;  %15173 = vmatpush1.bf16.msra.mxu0 %v19940_v38  ;;  %v19960_v24 = vld [vmem:[#allocation11 + $0x64] ss:$8 sps:$4 sm:$0xff]   ;;  %v9973_v38 = vld [vmem:[#allocation10 + $0x8] sm:$0xf] }
 0x905   :  { %15174 = vmatprep.subr.bf16.mxu0 %v19945_v22  ;;  %18429 = vmatpush3.bf16.msra.mxu1 %v20013_v0  ;;  %v10011_v22 = vrot.slane %v9973_v38, %v21027_v37  ;;  %v20027_v0 = vld [vmem:[#allocation14 + $0x38] sm:$0xff]  }
 0x906   :  { %18430 = vmatprep.subr.bf16.mxu1 %v20014_v62  ;;  %v20030_v62 = vld [vmem:[#allocation17 + $0x4] ss:$16 sps:$4 sm:$0xff]  }
 0x908   :  { %15175 = vmatpush1.bf16.msra.mxu0 %v19943_v11  ;;  %v10003_v11 = vrot.slane %v21132_v56, %v1530_v57 }
 0x909   :  { %15176 = vmatprep.subr.bf16.mxu0 %v19948_v40  ;;  %18431 = vmatpush3.bf16.msra.mxu1 %v20015_v1  ;;  %v10007_v40 = vrot.slane %v21132_v56, %v1534_v58  ;;  %v14920_v1 = vld [vmem:[#allocation13] sm:$0x3] }
 0x90a   :  { %18432 = vmatprep.subr.bf16.mxu1 %v20016_v2  ;;  %v14925_v2 = vrot.slane %v14920_v1, %v21027_v37 }
 0x90c   :  { %15177 = vmatpush1.bf16.msra.mxu0 %v19946_v25  ;;  %v10019_v25 = vrot.slane %v9973_v38, %v21047_v52 }
 0x90d   :  { %15178 = vmatprep.subr.bf16.mxu0 %v19951_v27  ;;  %18433 = vmatpush3.bf16.msra.mxu1 %v20017_v6  ;;  %v10015_v27 = vrot.slane %v9973_v38, %v21011_v21  ;;  %v14929_v6 = vrot.slane %v14920_v1, %v21011_v21  ;;  %v20066_v1 = vld [vmem:[#allocation17 + $0x8c] ss:$16 sps:$4 sm:$0xff]  }
 0x90e   :  { %18434 = vmatprep.subr.bf16.mxu1 %v20018_v13 }
 0x910   :  { %15179 = vmatpush1.bf16.msra.mxu0 %v19949_v17  ;;  %v10023_v17 = vrot.slane %v9973_v38, %v21030_v41 }
 0x911   :  { %15180 = vmatprep.subr.bf16.mxu0 %v19954_v60  ;;  %18435 = vmatpush3.bf16.msra.mxu1 %v20019_v3 }
 0x912   :  { %18436 = vmatprep.subr.bf16.mxu1 %v20020_v8 }
 0x914   :  { %15181 = vmatpush1.bf16.msra.mxu0 %v19952_v31 }
 0x915   :  { %15182 = vmatprep.subr.bf16.mxu0 %v19957_v33  ;;  %18437 = vmatpush3.bf16.msra.mxu1 %v20021_v10 }
 0x916   :  { %18438 = vmatprep.subr.bf16.mxu1 %v20022_v14 }
 0x918   :  { %15183 = vmatpush1.bf16.msra.mxu0 %v19955_v34 }
 0x919   :  { %15184 = vmatprep.subr.bf16.mxu0 %v19960_v24  ;;  %18439 = vmatpush3.bf16.msra.mxu1 %v20023_v45  ;;  %v18529_v24 = vadd.f32 %v21149_v16, %v10003_v11 }
 0x91c   :  { %15185 = vmatpush1.bf16.msra.mxu0 %v19958_v51  ;;  %v18530_v51 = vadd.f32 %v21156_v48, %v10007_v40  ;;  %v20028_v40 = vld [vmem:[#allocation17] ss:$16 sps:$4 sm:$0xff]  }
 0x91d   :  { %15186 = vmatprep.subr.bf16.mxu0 %v19963_v36 }
 0x920   :  { %15187 = vmatpush1.bf16.msra.mxu0 %v19961_v49 }
 0x921   :  { %15188 = vmatprep.subr.bf16.mxu0 %v19966_v39 }
 0x924   :  { %15189 = vmatpush1.bf16.msra.mxu0 %v19964_v47 }
 0x925   :  { %15190 = vmatprep.subr.bf16.mxu0 %v19969_v20 }
 0x928   :  { %15191 = vmatpush1.bf16.msra.mxu0 %v19967_v42 }
 0x929   :  { %15192 = vmatprep.subr.bf16.mxu0 %v19972_v43 }
 0x92c   :  { %15193 = vmatpush1.bf16.msra.mxu0 %v19970_v44 }
 0x92d   :  { %15194 = vmatprep.subr.bf16.mxu0 %v19975_v46 }
 0x930   :  { %15195 = vmatpush1.bf16.msra.mxu0 %v19973_v18 }
 0x931   :  { %15196 = vmatprep.subr.bf16.mxu0 %v19978_v35  ;;  %v19988_v35 = vld [vmem:[#allocation11 + $0x100] ss:$8 sps:$4 sm:$0xff]  }
 0x934   :  { %15197 = vmatpush1.bf16.msra.mxu0 %v19976_v50  ;;  %v19993_v50 = vld [vmem:[#allocation11 + $0x114] ss:$8 sps:$4 sm:$0xff]  }
 0x935   :  { %15198 = vmatprep.subr.bf16.mxu0 %v19981_v4  ;;  %v19991_v4 = vld [vmem:[#allocation11 + $0x110] ss:$8 sps:$4 sm:$0xff]  }
 0x938   :  { %15199 = vmatpush1.bf16.msra.mxu0 %v19979_v26  ;;  %v20006_v26 = vld [vmem:[#allocation11 + $0x160] ss:$8 sps:$4 sm:$0xff]  }
 0x939   :  { %15200 = vmatprep.subr.bf16.mxu0 %v19984_v32  ;;  %v20011_v32 = vld [vmem:[#allocation11 + $0x174] ss:$8 sps:$4 sm:$0xff]  }
 0x93c   :  { %15201 = vmatpush1.bf16.msra.mxu0 %v19982_v53  ;;  %v20009_v53 = vld [vmem:[#allocation11 + $0x170] ss:$8 sps:$4 sm:$0xff]  }
 0x93d   :  { %15202 = vmatprep.subr.bf16.mxu0 %v19987_v54 }
 0x940   :  { %15203 = vmatpush1.bf16.msra.mxu0 %v19985_v61  ;;  %v20024_v61 = vld [vmem:[#allocation14 + $0x70] sm:$0xff]  }
 0x941   :  { %15213 = vmatprep.subr.bf16.mxu0 %v19990_v55  ;;  %v20025_v55 = vld [vmem:[#allocation14 + $0x30] sm:$0xff]   ;;  %18440 = vmatprep.subr.bf16.mxu1 %v20024_v61  ;;  %v20055_v61 = vld [vmem:[#allocation17 + $0x28] ss:$16 sps:$4 sm:$0xff]  }
 0x942   :  { %18441 = vmatpush3.bf16.msra.mxu1 %v20025_v55  ;;  %v20060_v55 = vld [vmem:[#allocation17 + $0x4c] ss:$16 sps:$4 sm:$0xff]  }
 0x943   :  { %18442 = vmatprep.subr.bf16.mxu1 %v20026_v29  ;;  %v20058_v29 = vld [vmem:[#allocation17 + $0x48] ss:$16 sps:$4 sm:$0xff]  }
 0x946   :  { %18443 = vmatpush3.bf16.msra.mxu1 %v20027_v0  ;;  %v20063_v0 = vld [vmem:[#allocation17 + $0x6c] ss:$16 sps:$4 sm:$0xff]  }
 0x947   :  { %15649 = vmatprep.subr.bf16.mxu1 %v20030_v62  ;;  %v20061_v62 = vld [vmem:[#allocation17 + $0x68] ss:$16 sps:$4 sm:$0xff]  }
 0x9d6   :  { %v14689_v60 = vpop.f32.mrb[16].mxu0 }
 0x9d7   :  { %v18531_v31 = vadd.f32 %v14689_v60, %v10011_v22  ;;  %v14853_v33 = vpop.f32.mrb[16].mxu1  ;;  %v14691_v34 = vpop.f32.mrb[17].mxu0  ;;  %v20036_v60 = vld [vmem:[#allocation17 + $0x44] ss:$16 sps:$4 sm:$0xff]  }
 0x9d8   :  { %v18533_v36 = vadd.f32 %v14853_v33, %v10019_v25  ;;  %v18532_v57 = vadd.f32 %v14691_v34, %v10015_v27  ;;  %v14855_v49 = vpop.f32.mrb[17].mxu1  ;;  %v14693_v59 = vpop.f32.mrb[18].mxu0  ;;  %v20033_v27 = vld [vmem:[#allocation17 + $0x24] ss:$16 sps:$4 sm:$0xff]   ;;  %v20037_v34 = vld [vmem:[#allocation17 + $0x60] ss:$16 sps:$4 sm:$0xff]  }
 0x9d9   :  { %v18534_v39 = vadd.f32 %v14855_v49, %v10023_v17  ;;  %v14857_v58 = vpop.f32.mrb[18].mxu1  ;;  %v14694_v56 = vpop.f32.mrb[19].mxu0  ;;  %v20031_v17 = vld [vmem:[#allocation17 + $0x20] ss:$16 sps:$4 sm:$0xff]   ;;  %v20039_v33 = vld [vmem:[#allocation17 + $0x64] ss:$16 sps:$4 sm:$0xff]  }
 0x9da   :  { %v14864_v47 = vmax.f32 %v18530_v51, %v18533_v36  ;;  %v14863_v20 = vmax.f32 %v18529_v24, %v18532_v57  ;;  %v14858_v42 = vpop.f32.mrb[19].mxu1  ;;  %v20042_v24 = vld [vmem:[#allocation17 + $0x84] ss:$16 sps:$4 sm:$0xff]   ;;  %v20040_v51 = vld [vmem:[#allocation17 + $0x80] ss:$16 sps:$4 sm:$0xff]  }
 0x9db   :  { %v14865_v43 = vmax.f32 %v18531_v31, %v18534_v39  ;;  %v20034_v31 = vld [vmem:[#allocation17 + $0x40] ss:$16 sps:$4 sm:$0xff]   ;;  %v20045_v36 = vld [vmem:[#allocation17 + $0xa4] ss:$16 sps:$4 sm:$0xff]   ;;  %v20054_v56 = vld [vmem:[#allocation17 + $0xc] ss:$16 sps:$4 sm:$0xff]  }
 0x9dc   :  { %v14866_v44 = vmax.f32 %v14860_v19, %v14863_v20  ;;  %v14867_v16 = vmax.f32 %v14861_v23, %v14864_v47  ;;  %v19999_v19 = vld [vmem:[#allocation11 + $0x134] ss:$8 sps:$4 sm:$0xff]   ;;  %v20003_v23 = vld [vmem:[#allocation11 + $0x150] ss:$8 sps:$4 sm:$0xff]  }
 0x9dd   :  { %v14868_v48 = vmax.f32 %v14862_v7, %v14865_v43  ;;  %v20008_v7 = vld [vmem:[#allocation11 + $0x164] ss:$8 sps:$4 sm:$0xff]   ;;  %v20048_v49 = vld [vmem:[#allocation17 + $0xc4] ss:$16 sps:$4 sm:$0xff]  }
 0x9de   :  { %v14869_v46 = vpack.c.bf16 %v14866_v44, %v14866_v44  ;;  %v14870_v18 = vpack.c.bf16 %v14867_v16, %v14867_v16  ;;  %v20043_v57 = vld [vmem:[#allocation17 + $0xa0] ss:$16 sps:$4 sm:$0xff]   ;;  %v20051_v39 = vld [vmem:[#allocation17 + $0xe4] ss:$16 sps:$4 sm:$0xff]   ;;  %v20080_v43 = vld [vmem:[#allocation20 + $0x18] ss:$12 sps:$4 sm:$0xff]  }
 0x9df   :  { %v14871_v54 = vpack.c.bf16 %v14868_v48, %v14868_v48  ;;  %v20046_v59 = vld [vmem:[#allocation17 + $0xc0] ss:$16 sps:$4 sm:$0xff]   ;;  %v20078_v20 = vld [vmem:[#allocation20 + $0x4] ss:$12 sps:$4 sm:$0xff]   ;;  %v20086_v44 = vld [vmem:[#allocation20 + $0x34] ss:$12 sps:$4 sm:$0xff]  }
 0x9e0   :  { %15204 = vmatprep.mubr.bf16.mxu0 %v14870_v18  ;;  %v20049_v58 = vld [vmem:[#allocation17 + $0xe0] ss:$16 sps:$4 sm:$0xff]   ;;  %v20094_v18 = vld [vmem:[#allocation20 + $0x64] ss:$12 sps:$4 sm:$0xff]  }
 0x9e1   :  { %15205 = vmatmul.mubr.bf16.vlgmr.msra.gmra.mrb[20].mxu0 %v14869_v46  ;;  %v20076_v47 = vld [vmem:[#allocation20] ss:$12 sps:$4 sm:$0xff]   ;;  %v20082_v42 = vld [vmem:[#allocation20 + $0x1c] ss:$12 sps:$4 sm:$0xff]  }
 0x9e2   :  { %15214 = vmatpush1.bf16.msra.mxu0 %v19988_v35  ;;  %15245 = vmatprep.mubr.bf16.mxu0 %v20521_v5  ;;  %v20084_v16 = vld [vmem:[#allocation20 + $0x30] ss:$12 sps:$4 sm:$0xff]   ;;  %v20090_v48 = vld [vmem:[#allocation20 + $0x4c] ss:$12 sps:$4 sm:$0xff]   ;;  %v20088_v46 = vld [vmem:[#allocation20 + $0x48] ss:$12 sps:$4 sm:$0xff]  }
 0x9e3   :  { %15215 = vmatprep.subr.bf16.mxu0 %v19993_v50  ;;  %v20092_v35 = vld [vmem:[#allocation20 + $0x60] ss:$12 sps:$4 sm:$0xff]   ;;  %v20098_v50 = vld [vmem:[#allocation20 + $0x7c] ss:$12 sps:$4 sm:$0xff]  }
 0x9e6   :  { %15216 = vmatpush1.bf16.msra.mxu0 %v19991_v4  ;;  %v20096_v4 = vld [vmem:[#allocation20 + $0x78] ss:$12 sps:$4 sm:$0xff]  }
 0x9e7   :  { %15217 = vmatprep.subr.bf16.mxu0 %v19996_v9  ;;  %v20102_v9 = vld [vmem:[#allocation20 + $0x94] ss:$12 sps:$4 sm:$0xff]  }
 0x9ea   :  { %15218 = vmatpush1.bf16.msra.mxu0 %v19994_v12  ;;  %v20100_v12 = vld [vmem:[#allocation20 + $0x90] ss:$12 sps:$4 sm:$0xff]  }
 0x9eb   :  { %15219 = vmatprep.subr.bf16.mxu0 %v19999_v19 }
 0x9ee   :  { %15220 = vmatpush1.bf16.msra.mxu0 %v19997_v15  ;;  %v18339_v15 = vld [vmem:[#allocation16] ss:$0 sm:$0xff] }
 0x9ef   :  { %15221 = vmatprep.subr.bf16.mxu0 %v20002_v28 }
 0x9f2   :  { %15222 = vmatpush1.bf16.msra.mxu0 %v20000_v63 }
 0x9f3   :  { %15223 = vmatprep.subr.bf16.mxu0 %v20005_v30 }
 0x9f6   :  { %15224 = vmatpush1.bf16.msra.mxu0 %v20003_v23 }
 0x9f7   :  { %15225 = vmatprep.subr.bf16.mxu0 %v20008_v7 }
 0x9fa   :  { %15226 = vmatpush1.bf16.msra.mxu0 %v20006_v26 }
 0x9fb   :  { %15227 = vmatprep.subr.bf16.mxu0 %v20011_v32  ;;  %v20052_v32 = vld [vmem:[#allocation17 + $0x8] ss:$16 sps:$4 sm:$0xff]  }
 0x9fe   :  { %15228 = vmatpush1.bf16.msra.mxu0 %v20009_v53 }
 0x9ff   :  { %15912 = vmatprep.subr.bf16.mxu0 %v20078_v20  ;;  %v20110_v20 = vld [vmem:[#allocation23 + $0x8] sm:$0xff]  }
 0xa01   :  { %15246 = vmatmul.mubr.bf16.vlgmr.msra.gmra.mrb[20].mxu0 %v14871_v54  ;;  %v20057_v54 = vld [vmem:[#allocation17 + $0x2c] ss:$16 sps:$4 sm:$0xff]  }
 0xa02   :  { %15944 = vmatprep.mubr.bf16.mxu0 %v20521_v5  ;;  %15913 = vmatpush1.bf16.msra.mxu0 %v20076_v47 }
 0xa03   :  { %15914 = vmatprep.subr.bf16.mxu0 %v20082_v42  ;;  %v20111_v42 = vld [vmem:[#allocation23 + $0x10] sm:$0xff]  }
 0xa06   :  { %15915 = vmatpush1.bf16.msra.mxu0 %v20080_v43  ;;  %v16123_v43 = vld [vmem:[%s21267_s29] sm:$0xff] }
 0xa07   :  { %15916 = vmatprep.subr.bf16.mxu0 %v20086_v44  ;;  %v16125_v44 = vld [vmem:[#allocation3 + $0x8] sm:$0x7] }
 0xa0a   :  { %15917 = vmatpush1.bf16.msra.mxu0 %v20084_v16  ;;  %v20112_v16 = vld [vmem:[#allocation23 + $0x18] sm:$0xff]  }
 0xa0b   :  { %15918 = vmatprep.subr.bf16.mxu0 %v20090_v48  ;;  %v20113_v48 = vld [vmem:[#allocation23 + $0x20] sm:$0xff]  }
 0xa0e   :  { %15919 = vmatpush1.bf16.msra.mxu0 %v20088_v46  ;;  %v20114_v46 = vld [vmem:[#allocation23 + $0x28] sm:$0xff]  }
 0xa0f   :  { %15920 = vmatprep.subr.bf16.mxu0 %v20094_v18 }
 0xa12   :  { %15921 = vmatpush1.bf16.msra.mxu0 %v20092_v35  ;;  %v20115_v35 = vld [vmem:[#allocation23 + $0x30] sm:$0xff]  }
 0xa13   :  { %15922 = vmatprep.subr.bf16.mxu0 %v20098_v50 }
 0xa16   :  { %15923 = vmatpush1.bf16.msra.mxu0 %v20096_v4 }
 0xa17   :  { %15924 = vmatprep.subr.bf16.mxu0 %v20102_v9 }
 0xa1a   :  { %15925 = vmatpush1.bf16.msra.mxu0 %v20100_v12  ;;  %v20116_v12 = vld [vmem:[#allocation23 + $0x38] sm:$0xff]  }
 0xad4   :  { %v15247_v13 = vpop.f32.mrb[20].mxu0 }
 0xad5   :  { %v18535_v3 = vadd.f32 %v15247_v13, %v14925_v2  ;;  %v15249_v8 = vpop.f32.mrb[21].mxu0  ;;  %v20064_v2 = vld [vmem:[#allocation17 + $0x88] ss:$16 sps:$4 sm:$0xff]  }
 0xad6   :  { %v18536_v10 = vadd.f32 %v15249_v8, %v14929_v6  ;;  %v15251_v14 = vpop.f32.mrb[22].mxu0  ;;  %v20069_v6 = vld [vmem:[#allocation17 + $0xac] ss:$16 sps:$4 sm:$0xff]   ;;  %v20067_v13 = vld [vmem:[#allocation17 + $0xa8] ss:$16 sps:$4 sm:$0xff]  }
 0xad7   :  { %v15254_v45 = vmax.f32 %v18535_v3, 0.0  ;;  %v15252_v38 = vpop.f32.mrb[23].mxu0  ;;  %v20072_v3 = vld [vmem:[#allocation17 + $0xcc] ss:$16 sps:$4 sm:$0xff]  }
 0xad8   :  { %v15255_v22 = vmax.f32 %v18536_v10, 0.0  ;;  %v20075_v8 = vld [vmem:[#allocation17 + $0xec] ss:$16 sps:$4 sm:$0xff]   ;;  %v20073_v10 = vld [vmem:[#allocation17 + $0xe8] ss:$16 sps:$4 sm:$0xff]  }
 0xad9   :  { %v15256_v25 = vpack.c.bf16 %v15254_v45, %v15254_v45  ;;  %v20079_v14 = vld [vmem:[#allocation20 + $0x8] ss:$12 sps:$4 sm:$0xff]   ;;  %v20522_v45 = vmov 0.0   ;;  %v20083_v38 = vld [vmem:[#allocation20 + $0x20] ss:$12 sps:$4 sm:$0xff]  }
 0xada   :  { %v15257_v11 = vpack.c.bf16 %v15255_v22, %v15255_v22  ;;  %v20087_v22 = vld [vmem:[#allocation20 + $0x38] ss:$12 sps:$4 sm:$0xff]  }
 0xadc   :  { %15425 = vmatprep.mubr.bf16.mxu1 %v15257_v11  ;;  %v20091_v11 = vld [vmem:[#allocation20 + $0x50] ss:$12 sps:$4 sm:$0xff]  }
 0xadd   :  { %15426 = vmatmul.mubr.bf16.vlgmr.msra.gmra.mrb[20].mxu1 %v15256_v25  ;;  %v20099_v25 = vld [vmem:[#allocation20 + $0x80] ss:$12 sps:$4 sm:$0xff]  }
 0xade   :  { %15650 = vmatpush1.bf16.msra.mxu1 %v20028_v40  ;;  %15681 = vmatprep.mubr.bf16.mxu1 %v20521_v5  ;;  %v20095_v40 = vld [vmem:[#allocation20 + $0x68] ss:$12 sps:$4 sm:$0xff]  }
 0xadf   :  { %15651 = vmatprep.subr.bf16.mxu1 %v20033_v27  ;;  %v20103_v27 = vld [vmem:[#allocation20 + $0x98] ss:$12 sps:$4 sm:$0xff]  }
 0xae2   :  { %15652 = vmatpush1.bf16.msra.mxu1 %v20031_v17  ;;  %v20106_v17 = vld [vmem:[#allocation20 + $0xac] ss:$12 sps:$4 sm:$0xff]  }
 0xae3   :  { %15653 = vmatprep.subr.bf16.mxu1 %v20036_v60  ;;  %v20104_v60 = vld [vmem:[#allocation20 + $0xa8] ss:$12 sps:$4 sm:$0xff]   ;;  %15926 = vmatprep.subr.bf16.mxu0 %v20106_v17 }
 0xae4   :  { %15927 = vmatpush1.bf16.msra.mxu0 %v20104_v60 }
 0xae5   :  { %18490 = vmatprep.subr.bf16.mxu0 %v20522_v45 }
 0xae6   :  { %15654 = vmatpush1.bf16.msra.mxu1 %v20034_v31  ;;  %v20107_v31 = vld [vmem:[#allocation20 + $0xb0] ss:$12 sps:$4 sm:$0xff]  }
 0xae7   :  { %15655 = vmatprep.subr.bf16.mxu1 %v20039_v33  ;;  %v16124_v33 = vld [vmem:[#allocation3] sm:$0x77] }
 0xaea   :  { %15656 = vmatpush1.bf16.msra.mxu1 %v20037_v34  ;;  %v16128_v34 = vcombine.high %v16124_v33, %v16124_v33 }
 0xaeb   :  { %15657 = vmatprep.subr.bf16.mxu1 %v20042_v24  ;;  %v21203_v24 = vld [vmem:[#allocation19] sm:$0xf] }
 0xaec   :  { %v15476_v18 = vrot.slane %v21203_v24, %v21011_v21  ;;  %v15480_v4 = vrot.slane %v21203_v24, %v21047_v52 }
 0xaee   :  { %15658 = vmatpush1.bf16.msra.mxu1 %v20040_v51  ;;  %v15472_v51 = vrot.slane %v21203_v24, %v21027_v37 }
 0xaef   :  { %15659 = vmatprep.subr.bf16.mxu1 %v20045_v36 }
 0xaf2   :  { %15660 = vmatpush1.bf16.msra.mxu1 %v20043_v57 }
 0xaf3   :  { %15661 = vmatprep.subr.bf16.mxu1 %v20048_v49 }
 0xaf6   :  { %15662 = vmatpush1.bf16.msra.mxu1 %v20046_v59 }
 0xaf7   :  { %15663 = vmatprep.subr.bf16.mxu1 %v20051_v39 }
 0xafa   :  { %15664 = vmatpush1.bf16.msra.mxu1 %v20049_v58 }
 0xafb   :  { %15690 = vmatprep.subr.bf16.mxu1 %v20054_v56  ;;  %v20109_v56 = vld [vmem:[#allocation23] sm:$0xff]  }
 0xbb0   :  { %v18444_v19 = vpop.f32.mrb[20].mxu1 }
 0xbb1   :  { %v18445_v28 = vpop.f32.mrb[21].mxu1 }
 0xbb2   :  { %v18446_v63 = vadd.f32 %v18445_v28, %v18444_v19  ;;  %v18447_v30 = vpop.f32.mrb[22].mxu1 }
 0xbb3   :  { %v18448_v23 = vpop.f32.mrb[23].mxu1  ;;  %v18421_v30 = vld [vmem:[#allocation26] ss:$0 sm:$0xff] }
 0xbb4   :  { %v15428_v7 = vadd.f32 %v18446_v63, %v18339_v15 }
 0xbb6   :  { %v15433_v26 = vmax.f32 %v15428_v7, 0.0 }
 0xbb8   :  { %v15434_v53 = vpack.c.bf16 %v15433_v26, %v15433_v26 }
 0xbba   :  { %15682 = vmatmul.mubr.bf16.vlgmr.msra.gmra.mrb[24].mxu1 %v15434_v53 }
 0xbbb   :  { %15691 = vmatpush1.bf16.msra.mxu1 %v20052_v32  ;;  %15722 = vmatprep.mubr.bf16.mxu1 %v20521_v5  ;;  %v20070_v5 = vld [vmem:[#allocation17 + $0xc8] ss:$16 sps:$4 sm:$0xff]  }
 0xbbc   :  { %15692 = vmatprep.subr.bf16.mxu1 %v20057_v54 }
 0xbbf   :  { %15693 = vmatpush1.bf16.msra.mxu1 %v20055_v61 }
 0xbc0   :  { %15694 = vmatprep.subr.bf16.mxu1 %v20060_v55 }
 0xbc3   :  { %15695 = vmatpush1.bf16.msra.mxu1 %v20058_v29 }
 0xbc4   :  { %15696 = vmatprep.subr.bf16.mxu1 %v20063_v0 }
 0xbc7   :  { %15697 = vmatpush1.bf16.msra.mxu1 %v20061_v62 }
 0xbc8   :  { %15698 = vmatprep.subr.bf16.mxu1 %v20066_v1 }
 0xbcb   :  { %15699 = vmatpush1.bf16.msra.mxu1 %v20064_v2 }
 0xbcc   :  { %15700 = vmatprep.subr.bf16.mxu1 %v20069_v6 }
 0xbcf   :  { %15701 = vmatpush1.bf16.msra.mxu1 %v20067_v13 }
 0xbd0   :  { %15702 = vmatprep.subr.bf16.mxu1 %v20072_v3 }
 0xbd3   :  { %15703 = vmatpush1.bf16.msra.mxu1 %v20070_v5 }
 0xbd4   :  { %15704 = vmatprep.subr.bf16.mxu1 %v20075_v8 }
 0xbd7   :  { %15705 = vmatpush1.bf16.msra.mxu1 %v20073_v10  ;;  %v15484_v10 = vrot.slane %v21203_v24, %v21030_v41  ;;  %v18412_v41 = vld [vmem:[#allocation25] ss:$0 sm:$0xff] }
 0xbd8   :  { %18470 = vmatprep.subr.bf16.mxu1 %v20522_v45 }
 0xbda   :  { %15723 = vmatmul.mubr.bf16.vlgmr.msra.gmra.mrb[28].mxu1 %v15434_v53  ;;  %v15767_v53 = vld [vmem:[#allocation22] sm:$0x7] }
 0xbdb   :  { %18471 = vmatpush3.bf16.msra.mxu1 %v20079_v14  ;;  %18486 = vmatprep.mubr.msk.bf16.mxu1 %vm20523_vm2, %v20522_v45  ;;  %v15772_v54 = vrot.slane %v15767_v53, %v21027_v37  ;;  %v15776_v29 = vrot.slane %v15767_v53, %v21011_v21  ;;  %v15780_v13 = vrot.slane %v15767_v53, %v21047_v52 }
 0xbdc   :  { %18472 = vmatprep.subr.bf16.mxu1 %v20522_v45 }
 0xbdf   :  { %18473 = vmatpush3.bf16.msra.mxu1 %v20083_v38 }
 0xbe0   :  { %18474 = vmatprep.subr.bf16.mxu1 %v20522_v45 }
 0xbe3   :  { %18475 = vmatpush3.bf16.msra.mxu1 %v20087_v22 }
 0xbe4   :  { %18476 = vmatprep.subr.bf16.mxu1 %v20522_v45 }
 0xbe7   :  { %18477 = vmatpush3.bf16.msra.mxu1 %v20091_v11 }
 0xbe8   :  { %18478 = vmatprep.subr.bf16.mxu1 %v20522_v45 }
 0xbeb   :  { %18479 = vmatpush3.bf16.msra.mxu1 %v20095_v40 }
 0xbec   :  { %18480 = vmatprep.subr.bf16.mxu1 %v20522_v45 }
 0xbef   :  { %18481 = vmatpush3.bf16.msra.mxu1 %v20099_v25 }
 0xbf0   :  { %18482 = vmatprep.subr.bf16.mxu1 %v20522_v45 }
 0xbf3   :  { %18483 = vmatpush3.bf16.msra.mxu1 %v20103_v27 }
 0xbf4   :  { %18484 = vmatprep.subr.bf16.mxu1 %v20522_v45 }
 0xbf7   :  { %18485 = vmatpush3.bf16.msra.mxu1 %v20107_v31 }
 0xbf8   :  { %18423 = vmatprep.subr.msk.mxu1 %vm16133_vm1, %v16128_v34 }
 0xc8d   :  { %v15683_v36 = vpop.f32.mrb[24].mxu1 }
 0xc8e   :  { %v15684_v57 = vadd.f32 %v15683_v36, %v15472_v51  ;;  %v15685_v49 = vpop.f32.mrb[25].mxu1 }
 0xc8f   :  { %v15687_v59 = vpop.f32.mrb[26].mxu1  ;;  %v15686_v50 = vadd.f32 %v15685_v49, %v15476_v18 }
 0xc90   :  { %v15731_v39 = vmax.f32 %v15684_v57, 0.0  ;;  %v15688_v58 = vpop.f32.mrb[27].mxu1 }
 0xc91   :  { %v15732_v19 = vmax.f32 %v15686_v50, 0.0 }
 0xc92   :  { %v15734_v47 = vpack.c.bf16 %v15731_v39, %v15731_v39 }
 0xc93   :  { %v15993_v26 = vpack.c.bf16 %v15732_v19, %v15732_v19 }
 0xc94   :  { %15945 = vmatmul.mubr.bf16.vlgmr.msra.gmra.mrb[24].mxu0 %v15734_v47  ;;  %18487 = vmatmul.mubr.bf16.vlgmr.msra.gmra.mrb[32].mxu1 %v15734_v47 }
 0xc95   :  { %18491 = vmatpush3.bf16.msra.mxu0 %v20109_v56  ;;  %18424 = vmatpush1.msk.msra.mxu1 %vm16133_vm1, %v16124_v33 }
 0xc96   :  { %18492 = vmatprep.subr.bf16.mxu0 %v20522_v45  ;;  %16204 = vmatprep.mubr.f32.mxu1 %v20522_v45 }
 0xc97   :  { %18510 = vmatprep.subr.mxu1 %v20522_v45  ;;  %18506 = vmatprep.mubr.msk.bf16.mxu0 %vm20523_vm2, %v20522_v45 }
 0xc99   :  { %18493 = vmatpush3.bf16.msra.mxu0 %v20110_v20 }
 0xc9a   :  { %18494 = vmatprep.subr.bf16.mxu0 %v20522_v45 }
 0xc9c   :  { %18425 = vmatmul.mubr.msk.f32.vlgmr.msra.gmra.mrb[36].mxu1 %vm16129_vm3, %v16123_v43 }
 0xc9d   :  { %18495 = vmatpush3.bf16.msra.mxu0 %v20111_v42  ;;  %18511 = vmatpush3.msk.msra.mxu1 %vm16133_vm1, %v16125_v44 }
 0xc9e   :  { %18496 = vmatprep.subr.bf16.mxu0 %v20522_v45  ;;  %18512 = vmatprep.mubr.msk.f32.mxu1 %vm20523_vm2, %v20522_v45 }
 0xca0   :  { %18513 = vmatmul.mubr.msk.f32.vlgmr.msra.gmra.mrb[38].mxu1 %vm16129_vm3, %v16123_v43 }
 0xca1   :  { %18497 = vmatpush3.bf16.msra.mxu0 %v20112_v16  ;;  %v18422_v16 = vld [vmem:[#allocation2] ss:$0 sm:$0xff] }
 0xca2   :  { %18498 = vmatprep.subr.bf16.mxu0 %v20522_v45 }
 0xca5   :  { %18499 = vmatpush3.bf16.msra.mxu0 %v20113_v48 }
 0xca6   :  { %18500 = vmatprep.subr.bf16.mxu0 %v20522_v45 }
 0xca9   :  { %18501 = vmatpush3.bf16.msra.mxu0 %v20114_v46 }
 0xcaa   :  { %18502 = vmatprep.subr.bf16.mxu0 %v20522_v45 }
 0xcad   :  { %v15724_v9 = vpop.f32.mrb[28].mxu1  ;;  %18503 = vmatpush3.bf16.msra.mxu0 %v20115_v35 }
 0xcae   :  { %v15725_v15 = vadd.f32 %v15724_v9, %v15480_v4  ;;  %v15726_v28 = vpop.f32.mrb[29].mxu1  ;;  %18504 = vmatprep.subr.bf16.mxu0 %v20522_v45 }
 0xcaf   :  { %v15728_v63 = vpop.f32.mrb[30].mxu1  ;;  %v15727_v22 = vadd.f32 %v15726_v28, %v15484_v10 }
 0xcb0   :  { %v15733_v23 = vmax.f32 %v15725_v15, 0.0  ;;  %v15729_v7 = vpop.f32.mrb[31].mxu1 }
 0xcb1   :  { %18505 = vmatpush3.bf16.msra.mxu0 %v20116_v12 }
 0xcb2   :  { %v16112_v32 = vmul.f32 %v18421_v30, %v15733_v23 }
 0xcb4   :  { %16113 = vadd.xlane.f32.xlu0 %v16112_v32  ;;  %18507 = vmatmul.mubr.bf16.vlgmr.msra.gmra.mrb[28].mxu0 %v15993_v26 }
 0xd41   :  { %v16114_v48 = vpop.xlane.xlu0 %16113 }
 0xd42   :  { %v16122_v46 = vadd.f32 %v18422_v16, %v16114_v48 }
 0xd67   :  { %v15946_v61 = vpop.f32.mrb[24].mxu0  ;;  %v15987_v55 = vpop.f32.mrb[32].mxu1 }
 0xd68   :  { %v15948_v0 = vpop.f32.mrb[25].mxu0  ;;  %v18488_v62 = vpop.f32.mrb[33].mxu1  ;;  %v15947_v6 = vadd.f32 %v15946_v61, %v15772_v54  ;;  %v15988_v45 = vadd.f32 %v15987_v55, %v15780_v13 }
 0xd69   :  { %v15950_v1 = vpop.f32.mrb[26].mxu0  ;;  %v15990_v2 = vpop.f32.mrb[34].mxu1  ;;  %v15949_v8 = vadd.f32 %v15948_v0, %v15776_v29 }
 0xd6a   :  { %v15951_v3 = vpop.f32.mrb[27].mxu0  ;;  %v18489_v5 = vpop.f32.mrb[35].mxu1  ;;  %v16281_v14 = vand.u32 2147483647, %v15947_v6  ;;  %v16283_v25 = vand.u32 2147483647, %v15988_v45 }
 0xd6b   :  { %v16282_v37 = vand.u32 2147483647, %v15949_v8 }
 0xd6f   :  { %v16206_v38 = vpop.f32.mrb[36].mxu1 }
 0xd70   :  { %v16284_v11 = vmul.f32 %v16281_v14, %v16206_v38  ;;  %v16208_v21 = vpop.f32.mrb[37].mxu1 }
 0xd71   :  { %v16285_v40 = vmul.f32 %v16282_v37, %v16208_v21 }
 0xd72   :  { %v16287_v27 = vadd.f32 %v16284_v11, %v15727_v22 }
 0xd73   :  { %v16277_v17 = vpop.f32.mrb[38].mxu1 }
 0xd74   :  { %v16288_v60 = vadd.f32 %v16287_v27, %v16285_v40  ;;  %v16286_v31 = vmul.f32 %v16283_v25, %v16277_v17  ;;  %v18514_v52 = vpop.f32.mrb[39].mxu1 }
 0xd76   :  { %v16289_v33 = vadd.f32 %v16288_v60, %v16286_v31 }
 0xd78   :  { %v16290_v34 = vmin.f32 %v16289_v33, 0.0  ;;  %vm16297_vm4 = vcmp.gt.f32.partialorder %v16289_v33, 0.0 }
 0xd7a   :  { %v16293_v51 = vmul.f32 1.442695, %v16290_v34  ;;  %v16291_v36 = vmul.f32 0.5, %v16290_v34 }
 0xd7c   :  { %20117 = vpow2.f32 %v16293_v51 }
 0xd7d   :  { %20119 = vtanh.f32 %v16291_v36 }
 0xd86   :  { %v20118_v24 = vpop.eup %20117 }
 0xd87   :  { %v16099_v57 = vpop.f32.mrb[28].mxu0  ;;  %v16295_v39 = vadd.f32 1.0, %v20118_v24  ;;  %v20120_v58 = vpop.eup %20119 }
 0xd88   :  { %v16100_v49 = vadd.f32 %v18412_v41, %v16099_v57  ;;  %v18508_v59 = vpop.f32.mrb[29].mxu0 }
 0xd89   :  { %v16102_v56 = vpop.f32.mrb[30].mxu0  ;;  %v16296_v42 = vmul.f32 %v20120_v58, %v16295_v39 }
 0xd8a   :  { %v16299_v47 = vand.u32 2147483647, %v16100_v49  ;;  %v18509_v20 = vpop.f32.mrb[31].mxu0 }
 0xd8b   :  { %v16298_v43 = vsel %vm16297_vm4, %v16289_v33, %v16296_v42 }
 0xd8c   :  { %v16300_v44 = vmul.f32 %v16299_v47, %v16298_v43 }
 0xd8e   :  { %16301 = vadd.xlane.f32.xlu0 %v16300_v44 }
 0xe1b   :  { %v16302_v18 = vpop.xlane.xlu0 %16301 }
 0xe1c   :  { %v16303_v35 = vadd.f32 %v16302_v18, %v16122_v46 }
 0xe1e   :  { %16305 = vst.msk [vmem:[%s21256_s19] sm:$0xff] %vm16304_vm5, %v16303_v35 }
 0xe1f   :  { %16310 = vsyncpa [#allocation4], 1 }
 0xe20   :  { %16311 = vsyncpa [#allocation6], 1 }
 0xe21   :  { %16312 = vsyncpa [#allocation9], 1 }
 0xe22   :  { %16313 = vsyncpa [#allocation12], 1 }
 0xe23   :  { %16314 = vsyncpa [#allocation15], 1 }
 0xe24   :  { %16315 = vsyncpa [#allocation18], 1 }
 0xe25   :  { %16316 = vsyncpa [#allocation21], 1 }
 0xe26   :  { %16317 = vsyncpa [#allocation24], 1 }
 0xe27   :  { %16318 = vsyncpa [#allocation27], 1 }

</bundles_post_ra>
